<compile_context>
chip_gen: v6e
topology: v6e:2x2x1
jax: 0.10.0
libtpu: 0.0.40
codegen_flags: <defaults>
</compile_context>

<pallas_src>
import jax
import jax.numpy as jnp
from jax import lax
from jax.experimental import pallas as pl
from jax.experimental.pallas import tpu as pltpu

_LANES = 128


def _sigmoid(x):
    """Plain sigmoid for the pure-JAX reference (outside Pallas)."""
    return 1.0 / (1.0 + jnp.exp(-x))


def _sigmoid_eup(x):
    """In-kernel sigmoid: exp + approximate reciprocal (both EUP); the exp
    argument is clamped so it can never overflow to inf."""
    return pl.reciprocal(1.0 + jnp.exp(jnp.minimum(-x, 80.0)), approx=True)


def _make_msff_kernel(W, row_tile, halo, k1, k2, k3):
    TR = row_tile
    TRH = TR + 2 * halo
    N_MID = (TRH - 2) * W          # rows where pooled / attn / horizontal-dw live
    N_OUT = TR * W                 # rows of the output tile
    EDGE = (halo - 1) * W          # out-of-image rows to zero on boundary tiles

    def kernel(xt_ref, xc_ref, xb_ref,
               w1_ref, b1_ref,
               w01_ref, b01_ref, w02_ref, b02_ref,
               w11_ref, b11_ref, w12_ref, b12_ref,
               w21_ref, b21_ref, w22_ref, b22_ref,
               w3_ref, b3_ref,
               o_ref,
               xstage, astage):
        i = pl.program_id(1)
        last = pl.num_programs(1) - 1
        Cp = o_ref.shape[-1]

        # ---- stage the extended-row window of x (halo strips come from clamped
        # block indices, so zero them when the tile touches the image boundary).
        xstage[pl.ds(0, halo * W), :] = jnp.where(i > 0, xt_ref[...], 0.0)
        xstage[pl.ds(halo * W, N_OUT), :] = xc_ref[...]
        xstage[pl.ds((halo + TR) * W, halo * W), :] = jnp.where(i < last, xb_ref[...], 0.0)

        # ---- hoisted horizontal-edge masks: one per distinct shift distance.
        # Column index built with a 3-D iota + reshape — no div/mod planes.
        w_col = lax.broadcasted_iota(jnp.int32, (TRH - 2, W, Cp), 1).reshape(N_MID, Cp)
        dists = sorted({1, k1 // 2, k2 // 2, k3 // 2} - {0})
        mask_r = {d: w_col < (W - d) for d in dists}     # reading column w + d
        mask_l = {d: w_col >= d for d in dists}          # reading column w - d

        def hshift(a, d):
            # shifted[h, w] = a[h, w + d], zero outside [0, W).
            if d == 0:
                return a
            rolled = pltpu.roll(a, (-d) % N_MID, 0)      # XLU sublane rotate
            m = mask_r[d] if d > 0 else mask_l[-d]
            return jnp.where(m, rolled, 0.0)

        # ---- AvgPool2d(3, 1, 1): vertical taps = shifted loads from xstage,
        # horizontal taps = rolls.  The /9 normalization is folded into w1.
        vsum = (xstage[pl.ds(0, N_MID), :]
                + xstage[pl.ds(W, N_MID), :]
                + xstage[pl.ds(2 * W, N_MID), :])
        pooled = vsum + hshift(vsum, -1) + hshift(vsum, 1)

        # ---- Conv(dim, dim): BN-folded 1x1 conv (bf16 MXU matmul) + SiLU.
        y = jnp.dot(pooled.astype(jnp.bfloat16), w1_ref[...],
                    preferred_element_type=jnp.float32) + b1_ref[...]
        attn = y * _sigmoid_eup(y)

        def branch(wh_ref, bh_ref, wv_ref, bv_ref, k):
            pad = k // 2
            # (1, k) depthwise conv: rolls + hoisted masks, on the MID rows.
            acc = hshift(attn, -pad) * wh_ref[0:1, :]
            for j in range(1, k):
                acc = acc + hshift(attn, j - pad) * wh_ref[j:j + 1, :]
            astage[...] = acc + bh_ref[...]

            # Zero rows outside the image so the (k, 1) conv sees true zero
            # padding at the top/bottom of the feature map (boundary tiles only).
            if EDGE:
                @pl.when(i == 0)
                def _():
                    astage[pl.ds(0, EDGE), :] = jnp.zeros((EDGE, Cp), jnp.float32)

                @pl.when(i == last)
                def _():
                    astage[pl.ds(N_MID - EDGE, EDGE), :] = jnp.zeros((EDGE, Cp), jnp.float32)

            # (k, 1) depthwise conv: shifted loads from astage (vld slots, not
            # XLU); only the TR interior rows are produced.
            base = (halo - 1 - pad) * W
            out = astage[pl.ds(base, N_OUT), :] * wv_ref[0:1, :]
            for j in range(1, k):
                out = out + astage[pl.ds(base + j * W, N_OUT), :] * wv_ref[j:j + 1, :]
            return out + bv_ref[...]

        # Progressive product accumulation keeps at most two branch planes live.
        prod = branch(w01_ref, b01_ref, w02_ref, b02_ref, k1)
        prod = prod * branch(w11_ref, b11_ref, w12_ref, b12_ref, k2)
        prod = prod * branch(w21_ref, b21_ref, w22_ref, b22_ref, k3)

        attn_out = attn[(halo - 1) * W:(halo - 1) * W + N_OUT, :] + prod

        # ---- conv3: 1x1 conv (bf16 MXU) -> sigmoid gate on the (re-read) input.
        z = jnp.dot(attn_out.astype(jnp.bfloat16), w3_ref[...],
                    preferred_element_type=jnp.float32) + b3_ref[...]
        o_ref[...] = (_sigmoid_eup(z) * xc_ref[...]).astype(o_ref.dtype)

    return kernel


def _pick_row_tile(H, W, Cp, halo):
    """Largest row tile that divides H, is halo-aligned and keeps one
    (rows x W x Cp) f32 plane around ~2 MiB, so ~10 live planes stay well under
    v7x's 64 MiB physical VMEM (v5e/v6e with 128 MiB just get extra slack)."""
    if H % halo != 0:
        return H                                  # degenerate: one tile, halos masked off
    max_rows = max(halo, (2 * 1024 * 1024) // (W * Cp * 4))
    cands = [t for t in range(halo, H + 1, halo) if H % t == 0]
    fit = [t for t in cands if t <= max_rows]
    return max(fit) if fit else min(cands)


def msff_pallas(x_nhwc, params, k1, k2, k3, row_tile=None):
    B, H, W, C = x_nhwc.shape
    assert W % 2 == 0, "W must be even (halo-strip blocks need 8-row alignment)"
    Cp = ((C + _LANES - 1) // _LANES) * _LANES           # lane-dense channels
    pc = Cp - C
    halo = max(k1, k2, k3) // 2 + 1                      # pool (1) + largest dw (k//2)

    if row_tile is None:
        row_tile = _pick_row_tile(H, W, Cp, halo)
    TR = row_tile
    assert H % TR == 0, "row_tile must divide H"
    n_tiles = H // TR
    assert n_tiles == 1 or TR % halo == 0, "row_tile must be a multiple of the halo"

    def pad_vec(b):                                      # (C,) -> (1, Cp)
        b = b.reshape(1, C)
        return jnp.pad(b, ((0, 0), (0, pc))) if pc else b

    def pad_dw(w):                                       # (C, k) -> (k, Cp)
        w = w.T
        return jnp.pad(w, ((0, 0), (0, pc))) if pc else w

    def pad_mat_bf16(w):                                 # (O, I) -> (Ip, Op) bf16
        w = w.T
        if pc:
            w = jnp.pad(w, ((0, pc), (0, pc)))
        return w.astype(jnp.bfloat16)

    weights = [
        pad_mat_bf16(params['w1'] * (1.0 / 9.0)),        # avg-pool /9 folded in
        pad_vec(params['b1']),
        pad_dw(params['w0_1']), pad_vec(params['b0_1']),
        pad_dw(params['w0_2']), pad_vec(params['b0_2']),
        pad_dw(params['w1_1']), pad_vec(params['b1_1']),
        pad_dw(params['w1_2']), pad_vec(params['b1_2']),
        pad_dw(params['w2_1']), pad_vec(params['b2_1']),
        pad_dw(params['w2_2']), pad_vec(params['b2_2']),
        pad_mat_bf16(params['w3']), pad_vec(params['b3']),
    ]

    x_p = x_nhwc if pc == 0 else jnp.pad(x_nhwc, ((0, 0), (0, 0), (0, 0), (0, pc)))
    x_flat = x_p.reshape(B, H * W, Cp)

    rpb = max(TR // halo, 1)                             # halo-row blocks per tile
    n_halo_blocks = max(H // halo, 1)

    def full_spec(a):
        return pl.BlockSpec(a.shape, lambda b, i, nd=a.ndim: (0,) * nd)

    in_specs = [
        # Top halo strip = previous tile's last `halo` rows (clamped; masked at i==0).
        pl.BlockSpec((None, halo * W, Cp),
                     lambda b, i: (b, jnp.maximum(i * rpb - 1, 0), 0)),
        # The row tile itself.
        pl.BlockSpec((None, TR * W, Cp), lambda b, i: (b, i, 0)),
        # Bottom halo strip = next tile's first `halo` rows (clamped; masked at i==last).
        pl.BlockSpec((None, halo * W, Cp),
                     lambda b, i: (b, jnp.minimum((i + 1) * rpb, n_halo_blocks - 1), 0)),
    ]
    in_specs += [full_spec(w) for w in weights]
    out_spec = pl.BlockSpec((None, TR * W, Cp), lambda b, i: (b, i, 0))

    TRH = TR + 2 * halo
    scratch_shapes = [
        pltpu.VMEM((TRH * W, Cp), jnp.float32),          # extended-row x window
        pltpu.VMEM(((TRH - 2) * W, Cp), jnp.float32),    # horizontal-dw staging
    ]

    out = pl.pallas_call(
        _make_msff_kernel(W, TR, halo, k1, k2, k3),
        out_shape=jax.ShapeDtypeStruct((B, H * W, Cp), x_nhwc.dtype),
        grid_spec=pltpu.PrefetchScalarGridSpec(
            num_scalar_prefetch=0,
            grid=(B, n_tiles),
            in_specs=in_specs,
            out_specs=out_spec,
            scratch_shapes=scratch_shapes,
        ),
        compiler_params=pltpu.CompilerParams(
            # Batch and row-tile axes are fully independent -> both "parallel"
            # so v7x's two TensorCores split rows even when B == 1.
            dimension_semantics=("parallel", "parallel"),
            # 40 MiB scoped VMEM: headroom on v7x (64 MiB physical); v5e/v6e
            # (128 MiB) are unconstrained by this.
            vmem_limit_bytes=40 * 1024 * 1024),
    )(x_flat, x_flat, x_flat, *weights)

    out = out.reshape(B, H, W, Cp)
    return out[..., :C] if pc else out


def init_params(key, C, k1, k2, k3):
    keys = iter(jax.random.split(key, 24))

    def nrm(shape, scale):
        return scale * jax.random.normal(next(keys), shape, dtype=jnp.float32)

    p = {}
    # Conv(dim, dim): 1x1 conv (bias=False) + BatchNorm2d(eps=1e-3) + SiLU.
    conv_w = nrm((C, C), 0.2)                            # (O, I)
    gamma = jax.random.uniform(next(keys), (C,), minval=0.8, maxval=1.2)
    beta = nrm((C,), 0.1)
    mean = nrm((C,), 0.1)
    var = jax.random.uniform(next(keys), (C,), minval=0.8, maxval=1.2)
    eps = 1e-3
    scale = gamma / jnp.sqrt(var + eps)
    p['w1'] = conv_w * scale[:, None]                    # BN folded weight (O, I)
    p['b1'] = beta - mean * scale                        # BN folded bias (O,)

    for name, k in (('0', k1), ('1', k2), ('2', k3)):
        p[f'w{name}_1'] = nrm((C, k), 0.15)              # (1, k) horizontal depthwise
        p[f'b{name}_1'] = nrm((C,), 0.1)
        p[f'w{name}_2'] = nrm((C, k), 0.15)              # (k, 1) vertical depthwise
        p[f'b{name}_2'] = nrm((C,), 0.1)

    p['w3'] = nrm((C, C), 0.1)                           # 1x1 conv3 (O, I)
    p['b3'] = nrm((C,), 0.1)
    return p


def msff_reference(x_nchw, p, k1, k2, k3):
    """Pure-JAX f32 NCHW reference (mirrors the PyTorch forward)."""
    B, C, H, W = x_nchw.shape
    dn = ('NCHW', 'OIHW', 'NCHW')

    pooled = lax.reduce_window(x_nchw, 0.0, lax.add, (1, 1, 3, 3), (1, 1, 1, 1),
                               [(0, 0), (0, 0), (1, 1), (1, 1)]) / 9.0
    attn = lax.conv_general_dilated(pooled, p['w1'].reshape(C, C, 1, 1),
                                    (1, 1), 'VALID', dimension_numbers=dn)
    attn = attn + p['b1'].reshape(1, C, 1, 1)
    attn = attn * _sigmoid(attn)                         # SiLU

    def dw(a, w, pad):
        return lax.conv_general_dilated(a, w, (1, 1), pad,
                                        dimension_numbers=dn,
                                        feature_group_count=C)

    def branch(a, wh, bh, wv, bv, k):
        y = dw(a, wh.reshape(C, 1, 1, k), [(0, 0), (k // 2, k // 2)])
        y = y + bh.reshape(1, C, 1, 1)
        y = dw(y, wv.reshape(C, 1, k, 1), [(k // 2, k // 2), (0, 0)])
        return y + bv.reshape(1, C, 1, 1)

    a0 = branch(attn, p['w0_1'], p['b0_1'], p['w0_2'], p['b0_2'], k1)
    a1 = branch(attn, p['w1_1'], p['b1_1'], p['w1_2'], p['b1_2'], k2)
    a2 = branch(attn, p['w2_1'], p['b2_1'], p['w2_2'], p['b2_2'], k3)

    attn = attn + a0 * a1 * a2
    attn = lax.conv_general_dilated(attn, p['w3'].reshape(C, C, 1, 1),
                                    (1, 1), 'VALID', dimension_numbers=dn)
    attn = attn + p['b3'].reshape(1, C, 1, 1)
    return _sigmoid(attn) * x_nchw


if __name__ == "__main__":
    key = jax.random.PRNGKey(0)

    def run_case(B, C, H, W, k1, k2, k3, row_tile, case_key):
        kx, kp = jax.random.split(case_key)
        x_nchw = jax.random.normal(kx, (B, C, H, W), dtype=jnp.float32)
        params = init_params(kp, C, k1, k2, k3)

        x_nhwc = jnp.transpose(x_nchw, (0, 2, 3, 1))
        out_nhwc = msff_pallas(x_nhwc, params, k1, k2, k3, row_tile=row_tile)
        out_nchw = jnp.transpose(out_nhwc, (0, 3, 1, 2))
        jax.block_until_ready(out_nchw)

        ref = msff_reference(x_nchw, params, k1, k2, k3)
        err = float(jnp.max(jnp.abs(out_nchw - ref)))
        # Tolerance covers the deliberate bf16-MXU-operand + approx-reciprocal trade.
        assert err < 3e-2, f"max abs error vs reference: {err} (case {(B, C, H, W, row_tile)})"

    k_a, k_b = jax.random.split(key)
    # Case 1: auto row tile (whole 16x16 image in one tile); C=128 is lane-dense.
    run_case(2, 128, 16, 16, 3, 5, 7, None, k_a)
    # Case 2: forced 8-row tiles -> 4 row tiles with real halos, plus channel
    # padding (64 -> 128) and clamped/masked halo strips at the image edges.
    run_case(1, 64, 32, 32, 3, 5, 7, 8, k_b)

    print("KERNEL_OK")
</pallas_src>

<mosaic_0001>
module attributes {stable_mosaic.version = 11 : i64} {
  func.func @kernel(%arg0: i32, %arg1: i32, %arg2: memref<1x64x128xf32, #tpu.memory_space<vmem>>, %arg3: memref<1x256x128xf32, #tpu.memory_space<vmem>>, %arg4: memref<1x64x128xf32, #tpu.memory_space<vmem>>, %arg5: memref<128x128xbf16, #tpu.memory_space<vmem>>, %arg6: memref<1x128xf32, #tpu.memory_space<vmem>>, %arg7: memref<3x128xf32, #tpu.memory_space<vmem>>, %arg8: memref<1x128xf32, #tpu.memory_space<vmem>>, %arg9: memref<3x128xf32, #tpu.memory_space<vmem>>, %arg10: memref<1x128xf32, #tpu.memory_space<vmem>>, %arg11: memref<5x128xf32, #tpu.memory_space<vmem>>, %arg12: memref<1x128xf32, #tpu.memory_space<vmem>>, %arg13: memref<5x128xf32, #tpu.memory_space<vmem>>, %arg14: memref<1x128xf32, #tpu.memory_space<vmem>>, %arg15: memref<7x128xf32, #tpu.memory_space<vmem>>, %arg16: memref<1x128xf32, #tpu.memory_space<vmem>>, %arg17: memref<7x128xf32, #tpu.memory_space<vmem>>, %arg18: memref<1x128xf32, #tpu.memory_space<vmem>>, %arg19: memref<128x128xbf16, #tpu.memory_space<vmem>>, %arg20: memref<1x128xf32, #tpu.memory_space<vmem>>, %arg21: memref<1x256x128xf32, #tpu.memory_space<vmem>>, %arg22: memref<384x128xf32, #tpu.memory_space<vmem>>, %arg23: memref<352x128xf32, #tpu.memory_space<vmem>>) attributes {dimension_semantics = [#tpu.dimension_semantics<parallel>, #tpu.dimension_semantics<parallel>], iteration_bounds = array<i64: 2, 1>, scalar_prefetch = 0 : i64, scratch_operands = 2 : i64, tpu.core_type = #tpu.core_type<tc>, window_params = [{transform_indices = @transform_0, window_bounds = array<i64: 1, 64, 128>}, {transform_indices = @transform_1, window_bounds = array<i64: 1, 256, 128>}, {transform_indices = @transform_2, window_bounds = array<i64: 1, 64, 128>}, {pipeline_mode = #tpu.pipeline_mode<synchronous>, transform_indices = @transform_3, window_bounds = array<i64: 128, 128>}, {pipeline_mode = #tpu.pipeline_mode<synchronous>, transform_indices = @transform_4, window_bounds = array<i64: 1, 128>}, {pipeline_mode = #tpu.pipeline_mode<synchronous>, transform_indices = @transform_5, window_bounds = array<i64: 3, 128>}, {pipeline_mode = #tpu.pipeline_mode<synchronous>, transform_indices = @transform_6, window_bounds = array<i64: 1, 128>}, {pipeline_mode = #tpu.pipeline_mode<synchronous>, transform_indices = @transform_7, window_bounds = array<i64: 3, 128>}, {pipeline_mode = #tpu.pipeline_mode<synchronous>, transform_indices = @transform_8, window_bounds = array<i64: 1, 128>}, {pipeline_mode = #tpu.pipeline_mode<synchronous>, transform_indices = @transform_9, window_bounds = array<i64: 5, 128>}, {pipeline_mode = #tpu.pipeline_mode<synchronous>, transform_indices = @transform_10, window_bounds = array<i64: 1, 128>}, {pipeline_mode = #tpu.pipeline_mode<synchronous>, transform_indices = @transform_11, window_bounds = array<i64: 5, 128>}, {pipeline_mode = #tpu.pipeline_mode<synchronous>, transform_indices = @transform_12, window_bounds = array<i64: 1, 128>}, {pipeline_mode = #tpu.pipeline_mode<synchronous>, transform_indices = @transform_13, window_bounds = array<i64: 7, 128>}, {pipeline_mode = #tpu.pipeline_mode<synchronous>, transform_indices = @transform_14, window_bounds = array<i64: 1, 128>}, {pipeline_mode = #tpu.pipeline_mode<synchronous>, transform_indices = @transform_15, window_bounds = array<i64: 7, 128>}, {pipeline_mode = #tpu.pipeline_mode<synchronous>, transform_indices = @transform_16, window_bounds = array<i64: 1, 128>}, {pipeline_mode = #tpu.pipeline_mode<synchronous>, transform_indices = @transform_17, window_bounds = array<i64: 128, 128>}, {pipeline_mode = #tpu.pipeline_mode<synchronous>, transform_indices = @transform_18, window_bounds = array<i64: 1, 128>}, {transform_indices = @transform_19, window_bounds = array<i64: 1, 256, 128>}]} {
    %c0_i32 = arith.constant 0 : i32
    %0 = arith.cmpi sgt, %arg1, %c0_i32 : i32
    %c0 = arith.constant 0 : index
    %c0_0 = arith.constant 0 : index
    %c0_1 = arith.constant 0 : index
    %1 = vector.load %arg2[%c0, %c0_0, %c0_1] : memref<1x64x128xf32, #tpu.memory_space<vmem>>, vector<1x64x128xf32>
    %2 = vector.shape_cast %1 : vector<1x64x128xf32> to vector<64x128xf32>
    %cst = arith.constant 0.000000e+00 : f32
    %3 = vector.broadcast %cst : f32 to vector<64x128xf32>
    %4 = arith.select %0, %2, %3 : vector<64x128xf32>
    %c0_2 = arith.constant 0 : index
    %c0_3 = arith.constant 0 : index
    %5 = vector.load %arg22[%c0_2, %c0_3] : memref<384x128xf32, #tpu.memory_space<vmem>>, vector<64x128xf32>
    tpu.vector_store %arg22[%c0_2, %c0_3], %4 {strides = array<i32>} : memref<384x128xf32, #tpu.memory_space<vmem>>, vector<64x128xf32>,
    %c0_4 = arith.constant 0 : index
    %c0_5 = arith.constant 0 : index
    %c0_6 = arith.constant 0 : index
    %6 = vector.load %arg3[%c0_4, %c0_5, %c0_6] : memref<1x256x128xf32, #tpu.memory_space<vmem>>, vector<1x256x128xf32>
    %7 = vector.shape_cast %6 : vector<1x256x128xf32> to vector<256x128xf32>
    %c64 = arith.constant 64 : index
    %c0_7 = arith.constant 0 : index
    %8 = vector.load %arg22[%c64, %c0_7] : memref<384x128xf32, #tpu.memory_space<vmem>>, vector<256x128xf32>
    tpu.vector_store %arg22[%c64, %c0_7], %7 {strides = array<i32>} : memref<384x128xf32, #tpu.memory_space<vmem>>, vector<256x128xf32>,
    %c0_i32_8 = arith.constant 0 : i32
    %9 = arith.cmpi slt, %arg1, %c0_i32_8 : i32
    %c0_9 = arith.constant 0 : index
    %c0_10 = arith.constant 0 : index
    %c0_11 = arith.constant 0 : index
    %10 = vector.load %arg4[%c0_9, %c0_10, %c0_11] : memref<1x64x128xf32, #tpu.memory_space<vmem>>, vector<1x64x128xf32>
    %11 = vector.shape_cast %10 : vector<1x64x128xf32> to vector<64x128xf32>
    %cst_12 = arith.constant 0.000000e+00 : f32
    %12 = vector.broadcast %cst_12 : f32 to vector<64x128xf32>
    %13 = arith.select %9, %11, %12 : vector<64x128xf32>
    %c320 = arith.constant 320 : index
    %c0_13 = arith.constant 0 : index
    %14 = vector.load %arg22[%c320, %c0_13] : memref<384x128xf32, #tpu.memory_space<vmem>>, vector<64x128xf32>
    tpu.vector_store %arg22[%c320, %c0_13], %13 {strides = array<i32>} : memref<384x128xf32, #tpu.memory_space<vmem>>, vector<64x128xf32>,
    %15 = tpu.iota {dimensions = array<i32: 1>} : vector<22x16x128xi32>
    %16 = vector.shape_cast %15 : vector<22x16x128xi32> to vector<352x128xi32>
    %c15_i32 = arith.constant 15 : i32
    %17 = vector.broadcast %c15_i32 : i32 to vector<352x128xi32>
    %18 = arith.cmpi slt, %16, %17 : vector<352x128xi32>
    %c14_i32 = arith.constant 14 : i32
    %19 = vector.broadcast %c14_i32 : i32 to vector<352x128xi32>
    %20 = arith.cmpi slt, %16, %19 : vector<352x128xi32>
    %c13_i32 = arith.constant 13 : i32
    %21 = vector.broadcast %c13_i32 : i32 to vector<352x128xi32>
    %22 = arith.cmpi slt, %16, %21 : vector<352x128xi32>
    %c1_i32 = arith.constant 1 : i32
    %23 = vector.broadcast %c1_i32 : i32 to vector<352x128xi32>
    %24 = arith.cmpi sge, %16, %23 : vector<352x128xi32>
    %c2_i32 = arith.constant 2 : i32
    %25 = vector.broadcast %c2_i32 : i32 to vector<352x128xi32>
    %26 = arith.cmpi sge, %16, %25 : vector<352x128xi32>
    %c3_i32 = arith.constant 3 : i32
    %27 = vector.broadcast %c3_i32 : i32 to vector<352x128xi32>
    %28 = arith.cmpi sge, %16, %27 : vector<352x128xi32>
    %c0_14 = arith.constant 0 : index
    %c0_15 = arith.constant 0 : index
    %29 = vector.load %arg22[%c0_14, %c0_15] : memref<384x128xf32, #tpu.memory_space<vmem>>, vector<352x128xf32>
    %c16 = arith.constant 16 : index
    %c0_16 = arith.constant 0 : index
    %30 = vector.load %arg22[%c16, %c0_16] : memref<384x128xf32, #tpu.memory_space<vmem>>, vector<352x128xf32>
    %31 = arith.addf %29, %30 : vector<352x128xf32>
    %c32 = arith.constant 32 : index
    %c0_17 = arith.constant 0 : index
    %32 = vector.load %arg22[%c32, %c0_17] : memref<384x128xf32, #tpu.memory_space<vmem>>, vector<352x128xf32>
    %33 = arith.addf %31, %32 : vector<352x128xf32>
    %c1_i32_18 = arith.constant 1 : i32
    %34 = tpu.dynamic_rotate %33 by %c1_i32_18 dim 0 : vector<352x128xf32>, i32 -> vector<352x128xf32>
    %cst_19 = arith.constant 0.000000e+00 : f32
    %35 = vector.broadcast %cst_19 : f32 to vector<352x128xf32>
    %36 = arith.select %24, %34, %35 : vector<352x128xi1>, vector<352x128xf32>
    %37 = arith.addf %33, %36 : vector<352x128xf32>
    %c351_i32 = arith.constant 351 : i32
    %38 = tpu.dynamic_rotate %33 by %c351_i32 dim 0 : vector<352x128xf32>, i32 -> vector<352x128xf32>
    %cst_20 = arith.constant 0.000000e+00 : f32
    %39 = vector.broadcast %cst_20 : f32 to vector<352x128xf32>
    %40 = arith.select %18, %38, %39 : vector<352x128xi1>, vector<352x128xf32>
    %41 = arith.addf %37, %40 : vector<352x128xf32>
    %42 = arith.truncf %41 : vector<352x128xf32> to vector<352x128xbf16>
    %c0_21 = arith.constant 0 : index
    %c0_22 = arith.constant 0 : index
    %43 = vector.load %arg5[%c0_21, %c0_22] : memref<128x128xbf16, #tpu.memory_space<vmem>>, vector<128x128xbf16>
    %cst_23 = arith.constant dense<0.000000e+00> : vector<352x128xf32>
    %44 = tpu.matmul %42, %43, %cst_23 {dimension_numbers = #tpu.dot_dimension_numbers<[1], [0], [0], [1], [0, 0, 1, 1], [], []>} : vector<352x128xbf16>, vector<128x128xbf16>, vector<352x128xf32> -> vector<352x128xf32>
    %c0_24 = arith.constant 0 : index
    %c0_25 = arith.constant 0 : index
    %45 = vector.load %arg6[%c0_24, %c0_25] : memref<1x128xf32, #tpu.memory_space<vmem>>, vector<1x128xf32>
    %46 = vector.broadcast %45 : vector<1x128xf32> to vector<352x128xf32>
    %47 = arith.addf %44, %46 : vector<352x128xf32>
    %cst_26 = arith.constant 0.000000e+00 : f32
    %48 = vector.broadcast %cst_26 : f32 to vector<352x128xf32>
    %49 = arith.subf %48, %47 : vector<352x128xf32>
    %cst_27 = arith.constant 8.000000e+01 : f32
    %50 = vector.broadcast %cst_27 : f32 to vector<352x128xf32>
    %51 = arith.minimumf %49, %50 : vector<352x128xf32>
    %52 = math.exp %51 : vector<352x128xf32>
    %cst_28 = arith.constant 1.000000e+00 : f32
    %53 = vector.broadcast %cst_28 : f32 to vector<352x128xf32>
    %54 = arith.addf %53, %52 : vector<352x128xf32>
    %55 = tpu.reciprocal %54 {approx = true} : vector<352x128xf32> -> vector<352x128xf32>
    %56 = arith.mulf %47, %55 : vector<352x128xf32>
    %c1_i32_29 = arith.constant 1 : i32
    %57 = tpu.dynamic_rotate %56 by %c1_i32_29 dim 0 : vector<352x128xf32>, i32 -> vector<352x128xf32>
    %cst_30 = arith.constant 0.000000e+00 : f32
    %58 = vector.broadcast %cst_30 : f32 to vector<352x128xf32>
    %59 = arith.select %24, %57, %58 : vector<352x128xi1>, vector<352x128xf32>
    %c0_31 = arith.constant 0 : index
    %c0_32 = arith.constant 0 : index
    %60 = vector.load %arg7[%c0_31, %c0_32] : memref<3x128xf32, #tpu.memory_space<vmem>>, vector<1x128xf32>
    %61 = vector.broadcast %60 : vector<1x128xf32> to vector<352x128xf32>
    %62 = arith.mulf %59, %61 : vector<352x128xf32>
    %c1 = arith.constant 1 : index
    %c0_33 = arith.constant 0 : index
    %63 = vector.load %arg7[%c1, %c0_33] : memref<3x128xf32, #tpu.memory_space<vmem>>, vector<1x128xf32>
    %64 = vector.broadcast %63 : vector<1x128xf32> to vector<352x128xf32>
    %65 = arith.mulf %56, %64 : vector<352x128xf32>
    %66 = arith.addf %62, %65 : vector<352x128xf32>
    %c351_i32_34 = arith.constant 351 : i32
    %67 = tpu.dynamic_rotate %56 by %c351_i32_34 dim 0 : vector<352x128xf32>, i32 -> vector<352x128xf32>
    %cst_35 = arith.constant 0.000000e+00 : f32
    %68 = vector.broadcast %cst_35 : f32 to vector<352x128xf32>
    %69 = arith.select %18, %67, %68 : vector<352x128xi1>, vector<352x128xf32>
    %c2 = arith.constant 2 : index
    %c0_36 = arith.constant 0 : index
    %70 = vector.load %arg7[%c2, %c0_36] : memref<3x128xf32, #tpu.memory_space<vmem>>, vector<1x128xf32>
    %71 = vector.broadcast %70 : vector<1x128xf32> to vector<352x128xf32>
    %72 = arith.mulf %69, %71 : vector<352x128xf32>
    %73 = arith.addf %66, %72 : vector<352x128xf32>
    %c0_37 = arith.constant 0 : index
    %c0_38 = arith.constant 0 : index
    %74 = vector.load %arg8[%c0_37, %c0_38] : memref<1x128xf32, #tpu.memory_space<vmem>>, vector<1x128xf32>
    %75 = vector.broadcast %74 : vector<1x128xf32> to vector<352x128xf32>
    %76 = arith.addf %73, %75 : vector<352x128xf32>
    %c0_39 = arith.constant 0 : index
    %c0_40 = arith.constant 0 : index
    %77 = vector.load %arg23[%c0_39, %c0_40] : memref<352x128xf32, #tpu.memory_space<vmem>>, vector<352x128xf32>
    tpu.vector_store %arg23[%c0_39, %c0_40], %76 {strides = array<i32>} : memref<352x128xf32, #tpu.memory_space<vmem>>, vector<352x128xf32>,
    %c0_i32_41 = arith.constant 0 : i32
    %78 = arith.cmpi eq, %arg1, %c0_i32_41 : i32
    %79 = arith.extui %78 : i1 to i32
    %c0_i32_42 = arith.constant 0 : i32
    %80 = arith.cmpi ne, %79, %c0_i32_42 : i32
    scf.if %80 {
      %cst_176 = arith.constant 0.000000e+00 : f32
      %285 = vector.broadcast %cst_176 : f32 to vector<48x128xf32>
      %c0_177 = arith.constant 0 : index
      %c0_178 = arith.constant 0 : index
      %286 = vector.load %arg23[%c0_177, %c0_178] : memref<352x128xf32, #tpu.memory_space<vmem>>, vector<48x128xf32>
      tpu.vector_store %arg23[%c0_177, %c0_178], %285 {strides = array<i32>} : memref<352x128xf32, #tpu.memory_space<vmem>>, vector<48x128xf32>,
    } else {
    }
    %c0_i32_43 = arith.constant 0 : i32
    %81 = arith.cmpi eq, %arg1, %c0_i32_43 : i32
    %82 = arith.extui %81 : i1 to i32
    %c0_i32_44 = arith.constant 0 : i32
    %83 = arith.cmpi ne, %82, %c0_i32_44 : i32
    scf.if %83 {
      %cst_176 = arith.constant 0.000000e+00 : f32
      %285 = vector.broadcast %cst_176 : f32 to vector<48x128xf32>
      %c304 = arith.constant 304 : index
      %c0_177 = arith.constant 0 : index
      %286 = vector.load %arg23[%c304, %c0_177] : memref<352x128xf32, #tpu.memory_space<vmem>>, vector<48x128xf32>
      tpu.vector_store %arg23[%c304, %c0_177], %285 {strides = array<i32>} : memref<352x128xf32, #tpu.memory_space<vmem>>, vector<48x128xf32>,
    } else {
    }
    %c32_45 = arith.constant 32 : index
    %c0_46 = arith.constant 0 : index
    %84 = vector.load %arg23[%c32_45, %c0_46] : memref<352x128xf32, #tpu.memory_space<vmem>>, vector<256x128xf32>
    %c0_47 = arith.constant 0 : index
    %c0_48 = arith.constant 0 : index
    %85 = vector.load %arg9[%c0_47, %c0_48] : memref<3x128xf32, #tpu.memory_space<vmem>>, vector<1x128xf32>
    %86 = vector.broadcast %85 : vector<1x128xf32> to vector<256x128xf32>
    %87 = arith.mulf %84, %86 : vector<256x128xf32>
    %c48 = arith.constant 48 : index
    %c0_49 = arith.constant 0 : index
    %88 = vector.load %arg23[%c48, %c0_49] : memref<352x128xf32, #tpu.memory_space<vmem>>, vector<256x128xf32>
    %c1_50 = arith.constant 1 : index
    %c0_51 = arith.constant 0 : index
    %89 = vector.load %arg9[%c1_50, %c0_51] : memref<3x128xf32, #tpu.memory_space<vmem>>, vector<1x128xf32>
    %90 = vector.broadcast %89 : vector<1x128xf32> to vector<256x128xf32>
    %91 = arith.mulf %88, %90 : vector<256x128xf32>
    %92 = arith.addf %87, %91 : vector<256x128xf32>
    %c64_52 = arith.constant 64 : index
    %c0_53 = arith.constant 0 : index
    %93 = vector.load %arg23[%c64_52, %c0_53] : memref<352x128xf32, #tpu.memory_space<vmem>>, vector<256x128xf32>
    %c2_54 = arith.constant 2 : index
    %c0_55 = arith.constant 0 : index
    %94 = vector.load %arg9[%c2_54, %c0_55] : memref<3x128xf32, #tpu.memory_space<vmem>>, vector<1x128xf32>
    %95 = vector.broadcast %94 : vector<1x128xf32> to vector<256x128xf32>
    %96 = arith.mulf %93, %95 : vector<256x128xf32>
    %97 = arith.addf %92, %96 : vector<256x128xf32>
    %c0_56 = arith.constant 0 : index
    %c0_57 = arith.constant 0 : index
    %98 = vector.load %arg10[%c0_56, %c0_57] : memref<1x128xf32, #tpu.memory_space<vmem>>, vector<1x128xf32>
    %99 = vector.broadcast %98 : vector<1x128xf32> to vector<256x128xf32>
    %100 = arith.addf %97, %99 : vector<256x128xf32>
    %c2_i32_58 = arith.constant 2 : i32
    %101 = tpu.dynamic_rotate %56 by %c2_i32_58 dim 0 : vector<352x128xf32>, i32 -> vector<352x128xf32>
    %cst_59 = arith.constant 0.000000e+00 : f32
    %102 = vector.broadcast %cst_59 : f32 to vector<352x128xf32>
    %103 = arith.select %26, %101, %102 : vector<352x128xi1>, vector<352x128xf32>
    %c0_60 = arith.constant 0 : index
    %c0_61 = arith.constant 0 : index
    %104 = vector.load %arg11[%c0_60, %c0_61] : memref<5x128xf32, #tpu.memory_space<vmem>>, vector<1x128xf32>
    %105 = vector.broadcast %104 : vector<1x128xf32> to vector<352x128xf32>
    %106 = arith.mulf %103, %105 : vector<352x128xf32>
    %c1_i32_62 = arith.constant 1 : i32
    %107 = tpu.dynamic_rotate %56 by %c1_i32_62 dim 0 : vector<352x128xf32>, i32 -> vector<352x128xf32>
    %cst_63 = arith.constant 0.000000e+00 : f32
    %108 = vector.broadcast %cst_63 : f32 to vector<352x128xf32>
    %109 = arith.select %24, %107, %108 : vector<352x128xi1>, vector<352x128xf32>
    %c1_64 = arith.constant 1 : index
    %c0_65 = arith.constant 0 : index
    %110 = vector.load %arg11[%c1_64, %c0_65] : memref<5x128xf32, #tpu.memory_space<vmem>>, vector<1x128xf32>
    %111 = vector.broadcast %110 : vector<1x128xf32> to vector<352x128xf32>
    %112 = arith.mulf %109, %111 : vector<352x128xf32>
    %113 = arith.addf %106, %112 : vector<352x128xf32>
    %c2_66 = arith.constant 2 : index
    %c0_67 = arith.constant 0 : index
    %114 = vector.load %arg11[%c2_66, %c0_67] : memref<5x128xf32, #tpu.memory_space<vmem>>, vector<1x128xf32>
    %115 = vector.broadcast %114 : vector<1x128xf32> to vector<352x128xf32>
    %116 = arith.mulf %56, %115 : vector<352x128xf32>
    %117 = arith.addf %113, %116 : vector<352x128xf32>
    %c351_i32_68 = arith.constant 351 : i32
    %118 = tpu.dynamic_rotate %56 by %c351_i32_68 dim 0 : vector<352x128xf32>, i32 -> vector<352x128xf32>
    %cst_69 = arith.constant 0.000000e+00 : f32
    %119 = vector.broadcast %cst_69 : f32 to vector<352x128xf32>
    %120 = arith.select %18, %118, %119 : vector<352x128xi1>, vector<352x128xf32>
    %c3 = arith.constant 3 : index
    %c0_70 = arith.constant 0 : index
    %121 = vector.load %arg11[%c3, %c0_70] : memref<5x128xf32, #tpu.memory_space<vmem>>, vector<1x128xf32>
    %122 = vector.broadcast %121 : vector<1x128xf32> to vector<352x128xf32>
    %123 = arith.mulf %120, %122 : vector<352x128xf32>
    %124 = arith.addf %117, %123 : vector<352x128xf32>
    %c350_i32 = arith.constant 350 : i32
    %125 = tpu.dynamic_rotate %56 by %c350_i32 dim 0 : vector<352x128xf32>, i32 -> vector<352x128xf32>
    %cst_71 = arith.constant 0.000000e+00 : f32
    %126 = vector.broadcast %cst_71 : f32 to vector<352x128xf32>
    %127 = arith.select %20, %125, %126 : vector<352x128xi1>, vector<352x128xf32>
    %c4 = arith.constant 4 : index
    %c0_72 = arith.constant 0 : index
    %128 = vector.load %arg11[%c4, %c0_72] : memref<5x128xf32, #tpu.memory_space<vmem>>, vector<1x128xf32>
    %129 = vector.broadcast %128 : vector<1x128xf32> to vector<352x128xf32>
    %130 = arith.mulf %127, %129 : vector<352x128xf32>
    %131 = arith.addf %124, %130 : vector<352x128xf32>
    %c0_73 = arith.constant 0 : index
    %c0_74 = arith.constant 0 : index
    %132 = vector.load %arg12[%c0_73, %c0_74] : memref<1x128xf32, #tpu.memory_space<vmem>>, vector<1x128xf32>
    %133 = vector.broadcast %132 : vector<1x128xf32> to vector<352x128xf32>
    %134 = arith.addf %131, %133 : vector<352x128xf32>
    %c0_75 = arith.constant 0 : index
    %c0_76 = arith.constant 0 : index
    %135 = vector.load %arg23[%c0_75, %c0_76] : memref<352x128xf32, #tpu.memory_space<vmem>>, vector<352x128xf32>
    tpu.vector_store %arg23[%c0_75, %c0_76], %134 {strides = array<i32>} : memref<352x128xf32, #tpu.memory_space<vmem>>, vector<352x128xf32>,
    %c0_i32_77 = arith.constant 0 : i32
    %136 = arith.cmpi eq, %arg1, %c0_i32_77 : i32
    %137 = arith.extui %136 : i1 to i32
    %c0_i32_78 = arith.constant 0 : i32
    %138 = arith.cmpi ne, %137, %c0_i32_78 : i32
    scf.if %138 {
      %cst_176 = arith.constant 0.000000e+00 : f32
      %285 = vector.broadcast %cst_176 : f32 to vector<48x128xf32>
      %c0_177 = arith.constant 0 : index
      %c0_178 = arith.constant 0 : index
      %286 = vector.load %arg23[%c0_177, %c0_178] : memref<352x128xf32, #tpu.memory_space<vmem>>, vector<48x128xf32>
      tpu.vector_store %arg23[%c0_177, %c0_178], %285 {strides = array<i32>} : memref<352x128xf32, #tpu.memory_space<vmem>>, vector<48x128xf32>,
    } else {
    }
    %c0_i32_79 = arith.constant 0 : i32
    %139 = arith.cmpi eq, %arg1, %c0_i32_79 : i32
    %140 = arith.extui %139 : i1 to i32
    %c0_i32_80 = arith.constant 0 : i32
    %141 = arith.cmpi ne, %140, %c0_i32_80 : i32
    scf.if %141 {
      %cst_176 = arith.constant 0.000000e+00 : f32
      %285 = vector.broadcast %cst_176 : f32 to vector<48x128xf32>
      %c304 = arith.constant 304 : index
      %c0_177 = arith.constant 0 : index
      %286 = vector.load %arg23[%c304, %c0_177] : memref<352x128xf32, #tpu.memory_space<vmem>>, vector<48x128xf32>
      tpu.vector_store %arg23[%c304, %c0_177], %285 {strides = array<i32>} : memref<352x128xf32, #tpu.memory_space<vmem>>, vector<48x128xf32>,
    } else {
    }
    %c16_81 = arith.constant 16 : index
    %c0_82 = arith.constant 0 : index
    %142 = vector.load %arg23[%c16_81, %c0_82] : memref<352x128xf32, #tpu.memory_space<vmem>>, vector<256x128xf32>
    %c0_83 = arith.constant 0 : index
    %c0_84 = arith.constant 0 : index
    %143 = vector.load %arg13[%c0_83, %c0_84] : memref<5x128xf32, #tpu.memory_space<vmem>>, vector<1x128xf32>
    %144 = vector.broadcast %143 : vector<1x128xf32> to vector<256x128xf32>
    %145 = arith.mulf %142, %144 : vector<256x128xf32>
    %c32_85 = arith.constant 32 : index
    %c0_86 = arith.constant 0 : index
    %146 = vector.load %arg23[%c32_85, %c0_86] : memref<352x128xf32, #tpu.memory_space<vmem>>, vector<256x128xf32>
    %c1_87 = arith.constant 1 : index
    %c0_88 = arith.constant 0 : index
    %147 = vector.load %arg13[%c1_87, %c0_88] : memref<5x128xf32, #tpu.memory_space<vmem>>, vector<1x128xf32>
    %148 = vector.broadcast %147 : vector<1x128xf32> to vector<256x128xf32>
    %149 = arith.mulf %146, %148 : vector<256x128xf32>
    %150 = arith.addf %145, %149 : vector<256x128xf32>
    %c48_89 = arith.constant 48 : index
    %c0_90 = arith.constant 0 : index
    %151 = vector.load %arg23[%c48_89, %c0_90] : memref<352x128xf32, #tpu.memory_space<vmem>>, vector<256x128xf32>
    %c2_91 = arith.constant 2 : index
    %c0_92 = arith.constant 0 : index
    %152 = vector.load %arg13[%c2_91, %c0_92] : memref<5x128xf32, #tpu.memory_space<vmem>>, vector<1x128xf32>
    %153 = vector.broadcast %152 : vector<1x128xf32> to vector<256x128xf32>
    %154 = arith.mulf %151, %153 : vector<256x128xf32>
    %155 = arith.addf %150, %154 : vector<256x128xf32>
    %c64_93 = arith.constant 64 : index
    %c0_94 = arith.constant 0 : index
    %156 = vector.load %arg23[%c64_93, %c0_94] : memref<352x128xf32, #tpu.memory_space<vmem>>, vector<256x128xf32>
    %c3_95 = arith.constant 3 : index
    %c0_96 = arith.constant 0 : index
    %157 = vector.load %arg13[%c3_95, %c0_96] : memref<5x128xf32, #tpu.memory_space<vmem>>, vector<1x128xf32>
    %158 = vector.broadcast %157 : vector<1x128xf32> to vector<256x128xf32>
    %159 = arith.mulf %156, %158 : vector<256x128xf32>
    %160 = arith.addf %155, %159 : vector<256x128xf32>
    %c80 = arith.constant 80 : index
    %c0_97 = arith.constant 0 : index
    %161 = vector.load %arg23[%c80, %c0_97] : memref<352x128xf32, #tpu.memory_space<vmem>>, vector<256x128xf32>
    %c4_98 = arith.constant 4 : index
    %c0_99 = arith.constant 0 : index
    %162 = vector.load %arg13[%c4_98, %c0_99] : memref<5x128xf32, #tpu.memory_space<vmem>>, vector<1x128xf32>
    %163 = vector.broadcast %162 : vector<1x128xf32> to vector<256x128xf32>
    %164 = arith.mulf %161, %163 : vector<256x128xf32>
    %165 = arith.addf %160, %164 : vector<256x128xf32>
    %c0_100 = arith.constant 0 : index
    %c0_101 = arith.constant 0 : index
    %166 = vector.load %arg14[%c0_100, %c0_101] : memref<1x128xf32, #tpu.memory_space<vmem>>, vector<1x128xf32>
    %167 = vector.broadcast %166 : vector<1x128xf32> to vector<256x128xf32>
    %168 = arith.addf %165, %167 : vector<256x128xf32>
    %169 = arith.mulf %100, %168 : vector<256x128xf32>
    %c3_i32_102 = arith.constant 3 : i32
    %170 = tpu.dynamic_rotate %56 by %c3_i32_102 dim 0 : vector<352x128xf32>, i32 -> vector<352x128xf32>
    %cst_103 = arith.constant 0.000000e+00 : f32
    %171 = vector.broadcast %cst_103 : f32 to vector<352x128xf32>
    %172 = arith.select %28, %170, %171 : vector<352x128xi1>, vector<352x128xf32>
    %c0_104 = arith.constant 0 : index
    %c0_105 = arith.constant 0 : index
    %173 = vector.load %arg15[%c0_104, %c0_105] : memref<7x128xf32, #tpu.memory_space<vmem>>, vector<1x128xf32>
    %174 = vector.broadcast %173 : vector<1x128xf32> to vector<352x128xf32>
    %175 = arith.mulf %172, %174 : vector<352x128xf32>
    %c2_i32_106 = arith.constant 2 : i32
    %176 = tpu.dynamic_rotate %56 by %c2_i32_106 dim 0 : vector<352x128xf32>, i32 -> vector<352x128xf32>
    %cst_107 = arith.constant 0.000000e+00 : f32
    %177 = vector.broadcast %cst_107 : f32 to vector<352x128xf32>
    %178 = arith.select %26, %176, %177 : vector<352x128xi1>, vector<352x128xf32>
    %c1_108 = arith.constant 1 : index
    %c0_109 = arith.constant 0 : index
    %179 = vector.load %arg15[%c1_108, %c0_109] : memref<7x128xf32, #tpu.memory_space<vmem>>, vector<1x128xf32>
    %180 = vector.broadcast %179 : vector<1x128xf32> to vector<352x128xf32>
    %181 = arith.mulf %178, %180 : vector<352x128xf32>
    %182 = arith.addf %175, %181 : vector<352x128xf32>
    %c1_i32_110 = arith.constant 1 : i32
    %183 = tpu.dynamic_rotate %56 by %c1_i32_110 dim 0 : vector<352x128xf32>, i32 -> vector<352x128xf32>
    %cst_111 = arith.constant 0.000000e+00 : f32
    %184 = vector.broadcast %cst_111 : f32 to vector<352x128xf32>
    %185 = arith.select %24, %183, %184 : vector<352x128xi1>, vector<352x128xf32>
    %c2_112 = arith.constant 2 : index
    %c0_113 = arith.constant 0 : index
    %186 = vector.load %arg15[%c2_112, %c0_113] : memref<7x128xf32, #tpu.memory_space<vmem>>, vector<1x128xf32>
    %187 = vector.broadcast %186 : vector<1x128xf32> to vector<352x128xf32>
    %188 = arith.mulf %185, %187 : vector<352x128xf32>
    %189 = arith.addf %182, %188 : vector<352x128xf32>
    %c3_114 = arith.constant 3 : index
    %c0_115 = arith.constant 0 : index
    %190 = vector.load %arg15[%c3_114, %c0_115] : memref<7x128xf32, #tpu.memory_space<vmem>>, vector<1x128xf32>
    %191 = vector.broadcast %190 : vector<1x128xf32> to vector<352x128xf32>
    %192 = arith.mulf %56, %191 : vector<352x128xf32>
    %193 = arith.addf %189, %192 : vector<352x128xf32>
    %c351_i32_116 = arith.constant 351 : i32
    %194 = tpu.dynamic_rotate %56 by %c351_i32_116 dim 0 : vector<352x128xf32>, i32 -> vector<352x128xf32>
    %cst_117 = arith.constant 0.000000e+00 : f32
    %195 = vector.broadcast %cst_117 : f32 to vector<352x128xf32>
    %196 = arith.select %18, %194, %195 : vector<352x128xi1>, vector<352x128xf32>
    %c4_118 = arith.constant 4 : index
    %c0_119 = arith.constant 0 : index
    %197 = vector.load %arg15[%c4_118, %c0_119] : memref<7x128xf32, #tpu.memory_space<vmem>>, vector<1x128xf32>
    %198 = vector.broadcast %197 : vector<1x128xf32> to vector<352x128xf32>
    %199 = arith.mulf %196, %198 : vector<352x128xf32>
    %200 = arith.addf %193, %199 : vector<352x128xf32>
    %c350_i32_120 = arith.constant 350 : i32
    %201 = tpu.dynamic_rotate %56 by %c350_i32_120 dim 0 : vector<352x128xf32>, i32 -> vector<352x128xf32>
    %cst_121 = arith.constant 0.000000e+00 : f32
    %202 = vector.broadcast %cst_121 : f32 to vector<352x128xf32>
    %203 = arith.select %20, %201, %202 : vector<352x128xi1>, vector<352x128xf32>
    %c5 = arith.constant 5 : index
    %c0_122 = arith.constant 0 : index
    %204 = vector.load %arg15[%c5, %c0_122] : memref<7x128xf32, #tpu.memory_space<vmem>>, vector<1x128xf32>
    %205 = vector.broadcast %204 : vector<1x128xf32> to vector<352x128xf32>
    %206 = arith.mulf %203, %205 : vector<352x128xf32>
    %207 = arith.addf %200, %206 : vector<352x128xf32>
    %c349_i32 = arith.constant 349 : i32
    %208 = tpu.dynamic_rotate %56 by %c349_i32 dim 0 : vector<352x128xf32>, i32 -> vector<352x128xf32>
    %cst_123 = arith.constant 0.000000e+00 : f32
    %209 = vector.broadcast %cst_123 : f32 to vector<352x128xf32>
    %210 = arith.select %22, %208, %209 : vector<352x128xi1>, vector<352x128xf32>
    %c6 = arith.constant 6 : index
    %c0_124 = arith.constant 0 : index
    %211 = vector.load %arg15[%c6, %c0_124] : memref<7x128xf32, #tpu.memory_space<vmem>>, vector<1x128xf32>
    %212 = vector.broadcast %211 : vector<1x128xf32> to vector<352x128xf32>
    %213 = arith.mulf %210, %212 : vector<352x128xf32>
    %214 = arith.addf %207, %213 : vector<352x128xf32>
    %c0_125 = arith.constant 0 : index
    %c0_126 = arith.constant 0 : index
    %215 = vector.load %arg16[%c0_125, %c0_126] : memref<1x128xf32, #tpu.memory_space<vmem>>, vector<1x128xf32>
    %216 = vector.broadcast %215 : vector<1x128xf32> to vector<352x128xf32>
    %217 = arith.addf %214, %216 : vector<352x128xf32>
    %c0_127 = arith.constant 0 : index
    %c0_128 = arith.constant 0 : index
    %218 = vector.load %arg23[%c0_127, %c0_128] : memref<352x128xf32, #tpu.memory_space<vmem>>, vector<352x128xf32>
    tpu.vector_store %arg23[%c0_127, %c0_128], %217 {strides = array<i32>} : memref<352x128xf32, #tpu.memory_space<vmem>>, vector<352x128xf32>,
    %c0_i32_129 = arith.constant 0 : i32
    %219 = arith.cmpi eq, %arg1, %c0_i32_129 : i32
    %220 = arith.extui %219 : i1 to i32
    %c0_i32_130 = arith.constant 0 : i32
    %221 = arith.cmpi ne, %220, %c0_i32_130 : i32
    scf.if %221 {
      %cst_176 = arith.constant 0.000000e+00 : f32
      %285 = vector.broadcast %cst_176 : f32 to vector<48x128xf32>
      %c0_177 = arith.constant 0 : index
      %c0_178 = arith.constant 0 : index
      %286 = vector.load %arg23[%c0_177, %c0_178] : memref<352x128xf32, #tpu.memory_space<vmem>>, vector<48x128xf32>
      tpu.vector_store %arg23[%c0_177, %c0_178], %285 {strides = array<i32>} : memref<352x128xf32, #tpu.memory_space<vmem>>, vector<48x128xf32>,
    } else {
    }
    %c0_i32_131 = arith.constant 0 : i32
    %222 = arith.cmpi eq, %arg1, %c0_i32_131 : i32
    %223 = arith.extui %222 : i1 to i32
    %c0_i32_132 = arith.constant 0 : i32
    %224 = arith.cmpi ne, %223, %c0_i32_132 : i32
    scf.if %224 {
      %cst_176 = arith.constant 0.000000e+00 : f32
      %285 = vector.broadcast %cst_176 : f32 to vector<48x128xf32>
      %c304 = arith.constant 304 : index
      %c0_177 = arith.constant 0 : index
      %286 = vector.load %arg23[%c304, %c0_177] : memref<352x128xf32, #tpu.memory_space<vmem>>, vector<48x128xf32>
      tpu.vector_store %arg23[%c304, %c0_177], %285 {strides = array<i32>} : memref<352x128xf32, #tpu.memory_space<vmem>>, vector<48x128xf32>,
    } else {
    }
    %c0_133 = arith.constant 0 : index
    %c0_134 = arith.constant 0 : index
    %225 = vector.load %arg23[%c0_133, %c0_134] : memref<352x128xf32, #tpu.memory_space<vmem>>, vector<256x128xf32>
    %c0_135 = arith.constant 0 : index
    %c0_136 = arith.constant 0 : index
    %226 = vector.load %arg17[%c0_135, %c0_136] : memref<7x128xf32, #tpu.memory_space<vmem>>, vector<1x128xf32>
    %227 = vector.broadcast %226 : vector<1x128xf32> to vector<256x128xf32>
    %228 = arith.mulf %225, %227 : vector<256x128xf32>
    %c16_137 = arith.constant 16 : index
    %c0_138 = arith.constant 0 : index
    %229 = vector.load %arg23[%c16_137, %c0_138] : memref<352x128xf32, #tpu.memory_space<vmem>>, vector<256x128xf32>
    %c1_139 = arith.constant 1 : index
    %c0_140 = arith.constant 0 : index
    %230 = vector.load %arg17[%c1_139, %c0_140] : memref<7x128xf32, #tpu.memory_space<vmem>>, vector<1x128xf32>
    %231 = vector.broadcast %230 : vector<1x128xf32> to vector<256x128xf32>
    %232 = arith.mulf %229, %231 : vector<256x128xf32>
    %233 = arith.addf %228, %232 : vector<256x128xf32>
    %c32_141 = arith.constant 32 : index
    %c0_142 = arith.constant 0 : index
    %234 = vector.load %arg23[%c32_141, %c0_142] : memref<352x128xf32, #tpu.memory_space<vmem>>, vector<256x128xf32>
    %c2_143 = arith.constant 2 : index
    %c0_144 = arith.constant 0 : index
    %235 = vector.load %arg17[%c2_143, %c0_144] : memref<7x128xf32, #tpu.memory_space<vmem>>, vector<1x128xf32>
    %236 = vector.broadcast %235 : vector<1x128xf32> to vector<256x128xf32>
    %237 = arith.mulf %234, %236 : vector<256x128xf32>
    %238 = arith.addf %233, %237 : vector<256x128xf32>
    %c48_145 = arith.constant 48 : index
    %c0_146 = arith.constant 0 : index
    %239 = vector.load %arg23[%c48_145, %c0_146] : memref<352x128xf32, #tpu.memory_space<vmem>>, vector<256x128xf32>
    %c3_147 = arith.constant 3 : index
    %c0_148 = arith.constant 0 : index
    %240 = vector.load %arg17[%c3_147, %c0_148] : memref<7x128xf32, #tpu.memory_space<vmem>>, vector<1x128xf32>
    %241 = vector.broadcast %240 : vector<1x128xf32> to vector<256x128xf32>
    %242 = arith.mulf %239, %241 : vector<256x128xf32>
    %243 = arith.addf %238, %242 : vector<256x128xf32>
    %c64_149 = arith.constant 64 : index
    %c0_150 = arith.constant 0 : index
    %244 = vector.load %arg23[%c64_149, %c0_150] : memref<352x128xf32, #tpu.memory_space<vmem>>, vector<256x128xf32>
    %c4_151 = arith.constant 4 : index
    %c0_152 = arith.constant 0 : index
    %245 = vector.load %arg17[%c4_151, %c0_152] : memref<7x128xf32, #tpu.memory_space<vmem>>, vector<1x128xf32>
    %246 = vector.broadcast %245 : vector<1x128xf32> to vector<256x128xf32>
    %247 = arith.mulf %244, %246 : vector<256x128xf32>
    %248 = arith.addf %243, %247 : vector<256x128xf32>
    %c80_153 = arith.constant 80 : index
    %c0_154 = arith.constant 0 : index
    %249 = vector.load %arg23[%c80_153, %c0_154] : memref<352x128xf32, #tpu.memory_space<vmem>>, vector<256x128xf32>
    %c5_155 = arith.constant 5 : index
    %c0_156 = arith.constant 0 : index
    %250 = vector.load %arg17[%c5_155, %c0_156] : memref<7x128xf32, #tpu.memory_space<vmem>>, vector<1x128xf32>
    %251 = vector.broadcast %250 : vector<1x128xf32> to vector<256x128xf32>
    %252 = arith.mulf %249, %251 : vector<256x128xf32>
    %253 = arith.addf %248, %252 : vector<256x128xf32>
    %c96 = arith.constant 96 : index
    %c0_157 = arith.constant 0 : index
    %254 = vector.load %arg23[%c96, %c0_157] : memref<352x128xf32, #tpu.memory_space<vmem>>, vector<256x128xf32>
    %c6_158 = arith.constant 6 : index
    %c0_159 = arith.constant 0 : index
    %255 = vector.load %arg17[%c6_158, %c0_159] : memref<7x128xf32, #tpu.memory_space<vmem>>, vector<1x128xf32>
    %256 = vector.broadcast %255 : vector<1x128xf32> to vector<256x128xf32>
    %257 = arith.mulf %254, %256 : vector<256x128xf32>
    %258 = arith.addf %253, %257 : vector<256x128xf32>
    %c0_160 = arith.constant 0 : index
    %c0_161 = arith.constant 0 : index
    %259 = vector.load %arg18[%c0_160, %c0_161] : memref<1x128xf32, #tpu.memory_space<vmem>>, vector<1x128xf32>
    %260 = vector.broadcast %259 : vector<1x128xf32> to vector<256x128xf32>
    %261 = arith.addf %258, %260 : vector<256x128xf32>
    %262 = arith.mulf %169, %261 : vector<256x128xf32>
    %263 = vector.extract_strided_slice %56 {offsets = [48, 0], sizes = [256, 128], strides = [1, 1]} : vector<352x128xf32> to vector<256x128xf32>
    %264 = arith.addf %263, %262 : vector<256x128xf32>
    %265 = arith.truncf %264 : vector<256x128xf32> to vector<256x128xbf16>
    %c0_162 = arith.constant 0 : index
    %c0_163 = arith.constant 0 : index
    %266 = vector.load %arg19[%c0_162, %c0_163] : memref<128x128xbf16, #tpu.memory_space<vmem>>, vector<128x128xbf16>
    %cst_164 = arith.constant dense<0.000000e+00> : vector<256x128xf32>
    %267 = tpu.matmul %265, %266, %cst_164 {dimension_numbers = #tpu.dot_dimension_numbers<[1], [0], [0], [1], [0, 0, 1, 1], [], []>} : vector<256x128xbf16>, vector<128x128xbf16>, vector<256x128xf32> -> vector<256x128xf32>
    %c0_165 = arith.constant 0 : index
    %c0_166 = arith.constant 0 : index
    %268 = vector.load %arg20[%c0_165, %c0_166] : memref<1x128xf32, #tpu.memory_space<vmem>>, vector<1x128xf32>
    %269 = vector.broadcast %268 : vector<1x128xf32> to vector<256x128xf32>
    %270 = arith.addf %267, %269 : vector<256x128xf32>
    %cst_167 = arith.constant 0.000000e+00 : f32
    %271 = vector.broadcast %cst_167 : f32 to vector<256x128xf32>
    %272 = arith.subf %271, %270 : vector<256x128xf32>
    %cst_168 = arith.constant 8.000000e+01 : f32
    %273 = vector.broadcast %cst_168 : f32 to vector<256x128xf32>
    %274 = arith.minimumf %272, %273 : vector<256x128xf32>
    %275 = math.exp %274 : vector<256x128xf32>
    %cst_169 = arith.constant 1.000000e+00 : f32
    %276 = vector.broadcast %cst_169 : f32 to vector<256x128xf32>
    %277 = arith.addf %276, %275 : vector<256x128xf32>
    %278 = tpu.reciprocal %277 {approx = true} : vector<256x128xf32> -> vector<256x128xf32>
    %c0_170 = arith.constant 0 : index
    %c0_171 = arith.constant 0 : index
    %c0_172 = arith.constant 0 : index
    %279 = vector.load %arg3[%c0_170, %c0_171, %c0_172] : memref<1x256x128xf32, #tpu.memory_space<vmem>>, vector<1x256x128xf32>
    %280 = vector.shape_cast %279 : vector<1x256x128xf32> to vector<256x128xf32>
    %281 = arith.mulf %278, %280 : vector<256x128xf32>
    %c0_173 = arith.constant 0 : index
    %c0_174 = arith.constant 0 : index
    %c0_175 = arith.constant 0 : index
    %282 = vector.load %arg21[%c0_173, %c0_174, %c0_175] : memref<1x256x128xf32, #tpu.memory_space<vmem>>, vector<1x256x128xf32>
    %283 = vector.shape_cast %282 : vector<1x256x128xf32> to vector<256x128xf32>
    %284 = vector.shape_cast %281 : vector<256x128xf32> to vector<1x256x128xf32>
    tpu.vector_store %arg21[%c0_173, %c0_174, %c0_175], %284 {strides = array<i32>} : memref<1x256x128xf32, #tpu.memory_space<vmem>>, vector<1x256x128xf32>,
    return
  }
  func.func @transform_0(%arg0: i32, %arg1: i32) -> (i32, i32, i32) {
    %c4_i32 = arith.constant 4 : i32
    %0 = arith.muli %arg1, %c4_i32 : i32
    %c1_i32 = arith.constant 1 : i32
    %1 = arith.subi %0, %c1_i32 : i32
    %c0_i32 = arith.constant 0 : i32
    %2 = arith.maxsi %1, %c0_i32 : i32
    %c0_i32_0 = arith.constant 0 : i32
    %c0_i32_1 = arith.constant 0 : i32
    return %arg0, %2, %c0_i32_0 : i32, i32, i32
  }
  func.func @transform_1(%arg0: i32, %arg1: i32) -> (i32, i32, i32) {
    %c0_i32 = arith.constant 0 : i32
    %c0_i32_0 = arith.constant 0 : i32
    return %arg0, %arg1, %c0_i32 : i32, i32, i32
  }
  func.func @transform_2(%arg0: i32, %arg1: i32) -> (i32, i32, i32) {
    %c1_i32 = arith.constant 1 : i32
    %0 = arith.addi %arg1, %c1_i32 : i32
    %c4_i32 = arith.constant 4 : i32
    %1 = arith.muli %0, %c4_i32 : i32
    %c3_i32 = arith.constant 3 : i32
    %2 = arith.minsi %1, %c3_i32 : i32
    %c0_i32 = arith.constant 0 : i32
    %c0_i32_0 = arith.constant 0 : i32
    return %arg0, %2, %c0_i32 : i32, i32, i32
  }
  func.func @transform_3(%arg0: i32, %arg1: i32) -> (i32, i32) {
    %c0_i32 = arith.constant 0 : i32
    %c0_i32_0 = arith.constant 0 : i32
    %c0_i32_1 = arith.constant 0 : i32
    return %c0_i32, %c0_i32_0 : i32, i32
  }
  func.func @transform_4(%arg0: i32, %arg1: i32) -> (i32, i32) {
    %c0_i32 = arith.constant 0 : i32
    %c0_i32_0 = arith.constant 0 : i32
    %c0_i32_1 = arith.constant 0 : i32
    return %c0_i32, %c0_i32_0 : i32, i32
  }
  func.func @transform_5(%arg0: i32, %arg1: i32) -> (i32, i32) {
    %c0_i32 = arith.constant 0 : i32
    %c0_i32_0 = arith.constant 0 : i32
    %c0_i32_1 = arith.constant 0 : i32
    return %c0_i32, %c0_i32_0 : i32, i32
  }
  func.func @transform_6(%arg0: i32, %arg1: i32) -> (i32, i32) {
    %c0_i32 = arith.constant 0 : i32
    %c0_i32_0 = arith.constant 0 : i32
    %c0_i32_1 = arith.constant 0 : i32
    return %c0_i32, %c0_i32_0 : i32, i32
  }
  func.func @transform_7(%arg0: i32, %arg1: i32) -> (i32, i32) {
    %c0_i32 = arith.constant 0 : i32
    %c0_i32_0 = arith.constant 0 : i32
    %c0_i32_1 = arith.constant 0 : i32
    return %c0_i32, %c0_i32_0 : i32, i32
  }
  func.func @transform_8(%arg0: i32, %arg1: i32) -> (i32, i32) {
    %c0_i32 = arith.constant 0 : i32
    %c0_i32_0 = arith.constant 0 : i32
    %c0_i32_1 = arith.constant 0 : i32
    return %c0_i32, %c0_i32_0 : i32, i32
  }
  func.func @transform_9(%arg0: i32, %arg1: i32) -> (i32, i32) {
    %c0_i32 = arith.constant 0 : i32
    %c0_i32_0 = arith.constant 0 : i32
    %c0_i32_1 = arith.constant 0 : i32
    return %c0_i32, %c0_i32_0 : i32, i32
  }
  func.func @transform_10(%arg0: i32, %arg1: i32) -> (i32, i32) {
    %c0_i32 = arith.constant 0 : i32
    %c0_i32_0 = arith.constant 0 : i32
    %c0_i32_1 = arith.constant 0 : i32
    return %c0_i32, %c0_i32_0 : i32, i32
  }
  func.func @transform_11(%arg0: i32, %arg1: i32) -> (i32, i32) {
    %c0_i32 = arith.constant 0 : i32
    %c0_i32_0 = arith.constant 0 : i32
    %c0_i32_1 = arith.constant 0 : i32
    return %c0_i32, %c0_i32_0 : i32, i32
  }
  func.func @transform_12(%arg0: i32, %arg1: i32) -> (i32, i32) {
    %c0_i32 = arith.constant 0 : i32
    %c0_i32_0 = arith.constant 0 : i32
    %c0_i32_1 = arith.constant 0 : i32
    return %c0_i32, %c0_i32_0 : i32, i32
  }
  func.func @transform_13(%arg0: i32, %arg1: i32) -> (i32, i32) {
    %c0_i32 = arith.constant 0 : i32
    %c0_i32_0 = arith.constant 0 : i32
    %c0_i32_1 = arith.constant 0 : i32
    return %c0_i32, %c0_i32_0 : i32, i32
  }
  func.func @transform_14(%arg0: i32, %arg1: i32) -> (i32, i32) {
    %c0_i32 = arith.constant 0 : i32
    %c0_i32_0 = arith.constant 0 : i32
    %c0_i32_1 = arith.constant 0 : i32
    return %c0_i32, %c0_i32_0 : i32, i32
  }
  func.func @transform_15(%arg0: i32, %arg1: i32) -> (i32, i32) {
    %c0_i32 = arith.constant 0 : i32
    %c0_i32_0 = arith.constant 0 : i32
    %c0_i32_1 = arith.constant 0 : i32
    return %c0_i32, %c0_i32_0 : i32, i32
  }
  func.func @transform_16(%arg0: i32, %arg1: i32) -> (i32, i32) {
    %c0_i32 = arith.constant 0 : i32
    %c0_i32_0 = arith.constant 0 : i32
    %c0_i32_1 = arith.constant 0 : i32
    return %c0_i32, %c0_i32_0 : i32, i32
  }
  func.func @transform_17(%arg0: i32, %arg1: i32) -> (i32, i32) {
    %c0_i32 = arith.constant 0 : i32
    %c0_i32_0 = arith.constant 0 : i32
    %c0_i32_1 = arith.constant 0 : i32
    return %c0_i32, %c0_i32_0 : i32, i32
  }
  func.func @transform_18(%arg0: i32, %arg1: i32) -> (i32, i32) {
    %c0_i32 = arith.constant 0 : i32
    %c0_i32_0 = arith.constant 0 : i32
    %c0_i32_1 = arith.constant 0 : i32
    return %c0_i32, %c0_i32_0 : i32, i32
  }
  func.func @transform_19(%arg0: i32, %arg1: i32) -> (i32, i32, i32) {
    %c0_i32 = arith.constant 0 : i32
    %c0_i32_0 = arith.constant 0 : i32
    return %arg0, %arg1, %c0_i32 : i32, i32, i32
  }
}

</mosaic_0001>

<bundles_post_ra>
// kernel: tpu_custom_call.1
= control target key start
LH: loop header
LB: loop body
LE: loop exit
PB: predicated region body
PF: predicated region fallthrough
CT: control target
= control target key end

     0   :  { %s13632_s0 = inlined_call_operand.hbm [shape: f32[2,256,128], index: 0, kind: input, shape index: {}]   ;;  %s13633_s1 = inlined_call_operand.hbm [shape: f32[2,256,128], index: 1, kind: input, shape index: {}]   ;;  %s13634_s2 = inlined_call_operand.hbm [shape: f32[2,256,128], index: 2, kind: input, shape index: {}]   ;;  %s13635_s3 = inlined_call_operand.hbm [shape: bf16[128,128], index: 3, kind: input, shape index: {}]   ;;  %s13636_s4 = inlined_call_operand.hbm [shape: f32[1,128], index: 4, kind: input, shape index: {}]   ;;  %s13637_s5 = inlined_call_operand.hbm [shape: f32[3,128], index: 5, kind: input, shape index: {}]   ;;  %s13638_s6 = inlined_call_operand.hbm [shape: f32[1,128], index: 6, kind: input, shape index: {}]   ;;  %s13639_s7 = inlined_call_operand.hbm [shape: f32[3,128], index: 7, kind: input, shape index: {}]   ;;  %s13640_s8 = inlined_call_operand.hbm [shape: f32[1,128], index: 8, kind: input, shape index: {}]   ;;  %s13641_s9 = inlined_call_operand.vmem [shape: f32[5,128], index: 9, kind: input, shape index: {}]   ;;  %s13642_s10 = inlined_call_operand.vmem [shape: f32[1,128], index: 10, kind: input, shape index: {}]   ;;  %s13643_s11 = inlined_call_operand.vmem [shape: f32[5,128], index: 11, kind: input, shape index: {}]   ;;  %s13644_s12 = inlined_call_operand.hbm [shape: f32[1,128], index: 12, kind: input, shape index: {}]   ;;  %s13645_s13 = inlined_call_operand.hbm [shape: f32[7,128], index: 13, kind: input, shape index: {}]   ;;  %s13646_s14 = inlined_call_operand.hbm [shape: f32[1,128], index: 14, kind: input, shape index: {}]   ;;  %s13647_s15 = inlined_call_operand.vmem [shape: f32[7,128], index: 15, kind: input, shape index: {}]   ;;  %s13648_s16 = inlined_call_operand.vmem [shape: f32[1,128], index: 16, kind: input, shape index: {}]   ;;  %s13649_s17 = inlined_call_operand.hbm [shape: bf16[128,128], index: 17, kind: input, shape index: {}]   ;;  %s13650_s18 = inlined_call_operand.vmem [shape: f32[1,128], index: 18, kind: input, shape index: {}]   ;;  %s13651_s19 = inlined_call_operand.hbm [shape: f32[2,256,128], index: 19, kind: output, shape index: {}]  }
   0x1   :  { %14332 = sst [smem:[#allocation126_spill]] %s13632_s0 }
   0x2   :  { %14333 = sst [smem:[#allocation127_spill]] %s13633_s1 }
   0x3   :  { %14334 = sst [smem:[#allocation128_spill]] %s13634_s2 }
   0x4   :  { %14335 = sst [smem:[#allocation129_spill]] %s13635_s3 }
   0x5   :  { %14336 = sst [smem:[#allocation130_spill]] %s13636_s4 }
   0x6   :  { %14337 = sst [smem:[#allocation131_spill]] %s13637_s5 }
   0x7   :  { %14338 = sst [smem:[#allocation132_spill]] %s13639_s7 }
   0x8   :  { %14339 = sst [smem:[#allocation133_spill]] %s13642_s10 }
   0x9   :  { %14340 = sst [smem:[#allocation134_spill]] %s13644_s12 }
   0xa   :  { %14341 = sst [smem:[#allocation135_spill]] %s13646_s14 }
   0xb   :  { %14342 = sst [smem:[#allocation136_spill]] %s13647_s15 }
   0xc   :  { %14343 = sst [smem:[#allocation137_spill]] %s13648_s16 }
   0xd   :  { %14344 = sst [smem:[#allocation138_spill]] %s13650_s18 }
   0xe   :  { %14345 = sst [smem:[#allocation139_spill]] %s13651_s19 }
   0xf   :  { %24 = vsyncpa [#allocation5], 0 }
  0x10   :  { %26 = vsyncpa [#allocation5 + $0x1], 0 }
  0x11   :  { %27 = vsyncpa [#allocation8], 0 }
  0x12   :  { %29 = vsyncpa [#allocation8 + $0x1], 0 }
  0x13   :  { %30 = vsyncpa [#allocation11], 0 }
  0x14   :  { %31 = vsyncpa [#allocation14], 0 }
  0x15   :  { %32 = vsyncpa [#allocation17], 0 }
  0x16   :  { %33 = vsyncpa [#allocation20], 0 }
  0x17   :  { %34 = vsyncpa [#allocation23], 0 }
  0x18   :  { %35 = vsyncpa [#allocation6], 0 }
  0x19   :  { %37 = vsyncpa [#allocation6 + $0x1], 0  ;;  %s8063_s0 = smov 0   ;;  %s8065_s30 = smov 0  }
  0x1a   :  { %s8067_s20 = smov 0   ;;  %s8069_s21 = smov 0  }
  0x1b   :  { %s8071_s1 = smov 0   ;;  %s8073_s22 = smov 0  }
  0x1c LB: > { %14346 = sst [smem:[#allocation34_spill]] %s7920_s0  ;;  %s8094_s2 = sadd.s32 4294967295, %s7940_s22   ;;  %s7940_s22 = sphi %s8073_s22, %s43_s22   ;;  %s7936_s1 = sphi %s8071_s1, %s15328_s1   ;;  %s7932_s21 = sphi %s8069_s21, %s15327_s21   ;;  %s7928_s20 = sphi %s8067_s20, %s15326_s20   ;;  %s7924_s30 = sphi %s8065_s30, %s15330_s30   ;;  %s7920_s0 = sphi %s8063_s0, %s15329_s0  }
  0x1d   : > { %14347 = sst [smem:[#allocation35_spill]] %s7928_s20  ;;  %p6644_p0 = scmp.ge.s32.totalorder %s7940_s22, 1 }
  0x1e   : > { %14348 = sst [smem:[#allocation36_spill]] %s7932_s21  ;;  %p13656_p1 = scmp.eq.s32.totalorder %s8094_s2, 0 }
  0x1f   : > { %14349 = sst [smem:[#allocation37_spill]] %s7936_s1  ;;  %p524_p2 = scmp.lt.s32.totalorder %s7940_s22, 3 }
  0x20   : > { %14350 = sst [smem:[#allocation38_spill]] %s7940_s22  ;;  %s7942_s24 = smov [#allocation10]  }
  0x21   : > { %p8099_p3 = pnand %p6644_p0, %p524_p2  ;;  %s536_s25 = sshll.u32 %s7942_s24, 4  ;;  %s537_s25 = int_to_ptr.vmem [resolvable:$true] %s536_s25 }
  0x22   : > { %s7943_s26 = smov [#allocation13]   ;;  %s7944_s28 = smov [#allocation16]  }
  0x23   : > { %s14351_s23 = scalar_select %p8099_p3, 1, 0 }
  0x24   : > { %p6955_p4 = pneg %p8099_p3  ;;  %s561_s27 = sshll.u32 %s7943_s26, 4  ;;  %s562_s27 = int_to_ptr.vmem [resolvable:$true] %s561_s27 }
  0x25   : > { %s583_s29 = sshll.u32 %s7944_s28, 4  ;;  %s7503_s24 = scalar_lea.vmem %s537_s25, 1024  ;;  %s584_s29 = int_to_ptr.vmem [resolvable:$true] %s583_s29 }
  0x26   : > { %p8108_p6 = pnand %p6955_p4, %p13656_p1  ;;  %p7504_p8 = scmp.ne.s32.totalorder %s537_s25, %s7503_s24 }
  0x27   : > { %p7511_p11 = scmp.lt.s32.totalorder %s537_s25, %s537_s25  ;;  %p7512_p12 = scmp.lt.s32.totalorder %s7503_s24, %s7503_s24 }
  0x28   : > { %p8114_p7 = pneg %p8108_p6 }
  0x29   : > { %p7513_p13 = por %p7512_p12, %p7511_p11 }
  0x2a   : > { %p7506_p9 = pnand %p7504_p8, %p8114_p7 }
  0x2c   : > { %p7507_p10 = pneg %p7506_p9 }
  0x2e   : > { %p7514_p0 = pnand %p7513_p13, %p7507_p10 }
  0x30   : > { %7517 = shalt.err (!%p7514_p0)
}
  0x31   : > { %s13658_s26 = smov 64   ;;  %s13659_s28 = smov 4  }
  0x32   : > { %s14354_s16 = sld [smem:[#allocation129_spill]]  ;;  %s7529_s15 = scalar_lea.vmem %s562_s27, 64 }
  0x33   : > { %p7530_p2 = scmp.ne.s32.totalorder %s562_s27, %s7529_s15  ;;  %p7537_p9 = scmp.lt.s32.totalorder %s562_s27, %s562_s27 }
  0x34   : > { %p7538_p10 = scmp.lt.s32.totalorder %s7529_s15, %s7529_s15 }
  0x35   : > { %p7532_p4 = pnand %p7530_p2, %p8114_p7 }
  0x36   : > { %p7539_p11 = por %p7538_p10, %p7537_p9 }
  0x37   : > { %p7533_p8 = pneg %p7532_p4 }
  0x38   : > { %6958 = dma.hbm_to_vmem [thread:$0]  (!%p8108_p6), %s14354_s16, 1024, %s537_s25, [#allocation11], %s13658_s26, %s13658_s26, %s13659_s28  }
  0x39   : > { %p7540_p12 = pnand %p7539_p11, %p7533_p8 }
  0x3b   : > { %7543 = shalt.err (!%p7540_p12)
}
  0x3c   : > { %s14355_s5 = sld [smem:[#allocation131_spill]]  ;;  %s7555_s18 = scalar_lea.vmem %s584_s29, 64 }
  0x3d   : > { %p7556_p13 = scmp.ne.s32.totalorder %s584_s29, %s7555_s18  ;;  %p7563_p2 = scmp.lt.s32.totalorder %s584_s29, %s584_s29 }
  0x3e   : > { %p7564_p4 = scmp.lt.s32.totalorder %s7555_s18, %s7555_s18 }
  0x3f   : > { %p7558_p0 = pnand %p7556_p13, %p8114_p7 }
  0x40   : > { %p7565_p1 = por %p7564_p4, %p7563_p2 }
  0x41   : > { %p7559_p5 = pneg %p7558_p0 }
  0x42   : > { %6964 = dma.hbm_to_vmem [thread:$0]  (!%p8108_p6), %s14355_s5, 64, %s562_s27, [#allocation14]  }
  0x43   : > { %p7566_p3 = pnand %p7565_p1, %p7559_p5 }
  0x45   : > { %7569 = shalt.err (!%p7566_p3)
}
  0x46   : > { %s14356_s7 = sld [smem:[#allocation132_spill]]  ;;  %s7947_s10 = smov [#allocation19]  }
  0x47   : > { %s614_s21 = sshll.u32 %s7947_s10, 4  ;;  %s7948_s25 = smov [#allocation22]   ;;  %s615_s21 = int_to_ptr.vmem [resolvable:$true] %s614_s21 }
  0x48   : > { %s636_s27 = sshll.u32 %s7948_s25, 4  ;;  %s7581_s24 = scalar_lea.vmem %s615_s21, 16  ;;  %s637_s27 = int_to_ptr.vmem [resolvable:$true] %s636_s27 }
  0x49   : > { %p7582_p8 = scmp.ne.s32.totalorder %s615_s21, %s7581_s24  ;;  %s7588_s18 = scalar_lea.vmem %s615_s21, 32 }
  0x4a   : > { %p7589_p1 = scmp.lt.s32.totalorder %s615_s21, %s615_s21  ;;  %p7590_p3 = scmp.lt.s32.totalorder %s7588_s18, %s7581_s24 }
  0x4b   : > { %p7584_p9 = pnand %p7582_p8, %p8114_p7 }
  0x4c   : > { %6970 = dma.hbm_to_vmem [thread:$0]  (!%p8108_p6), %s14356_s7, 64, %s584_s29, [#allocation17]  }
  0x4d   : > { %p7585_p10 = pneg %p7584_p9  ;;  %p7591_p5 = por %p7590_p3, %p7589_p1 }
  0x4f   : > { %p7592_p11 = pnand %p7591_p5, %p7585_p10 }
  0x51   : > { %7595 = shalt.err (!%p7592_p11)
}
  0x52   : > { %s14357_s12 = sld [smem:[#allocation134_spill]]  ;;  %s7607_s16 = scalar_lea.vmem %s637_s27, 16 }
  0x53   : > { %p7608_p12 = scmp.ne.s32.totalorder %s637_s27, %s7607_s16  ;;  %s7614_s10 = scalar_lea.vmem %s637_s27, 32 }
  0x54   : > { %p7615_p2 = scmp.lt.s32.totalorder %s637_s27, %s637_s27  ;;  %p7616_p4 = scmp.lt.s32.totalorder %s7614_s10, %s7607_s16 }
  0x55   : > { %p7610_p13 = pnand %p7608_p12, %p8114_p7 }
  0x56   : > { %p7617_p8 = por %p7616_p4, %p7615_p2 }
  0x57   : > { %p7611_p0 = pneg %p7610_p13 }
  0x58   : > { %6976 = dma.hbm_to_vmem [thread:$0]  (!%p8108_p6), %s14357_s12, 16, %s615_s21, [#allocation20]  }
  0x59   : > { %p7618_p9 = pnand %p7617_p8, %p7611_p0 }
  0x5b   : > { %7621 = shalt.err (!%p7618_p9)
}
  0x5c   : > { %s14358_s14 = sld [smem:[#allocation135_spill]]  ;;  %s6643_s21 = sadd.s32 4294967294, %s7940_s22  }
  0x5d   : > { %s55_s18 = sadd.s32 1, %s7936_s1  ;;  %s72_s15 = sadd.s32 1, %s7928_s20 }
  0x5e   : > { %p57_p10 = scmp.ge.s32.totalorder %s55_s18, 2  ;;  %p79_p1 = scmp.ne.s32.totalorder %s7928_s20, %s7924_s30 }
  0x5f   : > { %p80_p3 = scmp.eq.s32.totalorder %s7940_s22, 0  ;;  %p85_p5 = scmp.ne.s32.totalorder %s7924_s30, %s7920_s0 }
  0x60   : > { %s15332_s18 = smov (%p57_p10, %s55_s18), 0  ;;  %p14360_p12 = scmp.eq.s32.totalorder %s8094_s2, 0 }
  0x61   : > { %14359 = sst [smem:[#allocation39_spill]] %s15332_s18  ;;  %p81_p11 = por %p80_p3, %p79_p1 }
  0x62   : > { %6982 = dma.hbm_to_vmem [thread:$0]  (!%p8108_p6), %s14358_s14, 16, %s637_s27, [#allocation23]  }
  0x63   : > { %p8168_p13 = por %p14360_p12, %p85_p5  ;;  %s67_s27 = ssub.s32 %s7936_s1, %s15332_s18 }
  0x64   : > { %p511_p0 = scmp.eq.s32.totalorder %s8094_s2, 1  ;;  %p70_p2 = scmp.eq.s32.totalorder %s67_s27, 0 }
  0x65   : > { %s14361_s29 = scalar_select %p8168_p13, 1, 0 }
  0x66   : > { %p517_p4 = scmp.eq.s32.totalorder %s6643_s21, 1  ;;  %p8175_p8 = por %p511_p0, %p79_p1 }
  0x67   : > { %p7010_p9 = scmp.lt.s32.totalorder %s7940_s22, 2  ;;  %s8188_s24 = sand.u32 1, %s7928_s20  }
  0x68   : > { %s14362_s16 = scalar_select %p8175_p8, 1, 0 }
  0x69   : > { %s8181_s10 = scalar_select %p70_p2, %s7928_s20, %s72_s15  }
  0x6a   : > { %p8183_p10 = por %p517_p4, %p85_p5  ;;  %s8191_s26 = sshll.u32 %s7936_s1, 12 }
  0x6b   : > { %14363 = sst [smem:[#allocation40_spill]] %s8181_s10  ;;  %p8193_p3 = pnand %p7010_p9, %p81_p11 }
  0x6c   : > { %s14364_s25 = scalar_select %p8183_p10, 1, 0 }
  0x6d   : > { %s14366_s27 = scalar_select %p8193_p3, 1, 0 }
  0x6e   : > { %14365 = sst [smem:[#allocation41_spill]] %s14364_s25  ;;  %s696_s21 = sand.u32 1, %s7940_s22  }
  0x6f   : > { %s6659_s28 = sshll.u32 %s8188_s24, 8  ;;  %s14367_s7 = sld [smem:[#allocation127_spill]] }
  0x70   : > { %s700_s14 = scalar_lea.vmem [#allocation7], %s6659_s28  ;;  %s7949_s10 = smov [#allocation12]  }
  0x71   : > { %s709_s18 = sshll.u32 %s700_s14, 4  ;;  %s550_s20 = sshll.u32 %s7949_s10, 4  ;;  %s710_s18 = int_to_ptr.vmem [resolvable:$true] %s709_s18  ;;  %s551_s20 = int_to_ptr.vmem [resolvable:$true] %s550_s20 }
  0x72   : > { %s8203_s1 = scalar_lea.sflag [#allocation8], %s696_s21  ;;  %p13667_p1 = pneg %p8193_p3 }
  0x73   : > { %s7635_s25 = scalar_lea.vmem %s710_s18, 4096  ;;  %s7950_s22 = smov [#allocation7]  }
  0x74   : > { %p7636_p5 = scmp.ne.s32.totalorder %s710_s18, %s7635_s25  ;;  %s7640_s0 = sshll.u32 %s7950_s22, 4  ;;  %s7641_s0 = int_to_ptr.vmem [resolvable:$false] %s7640_s0 }
  0x75   : > { %s708_s12 = scalar_lea.hbm %s14367_s7, %s8191_s26  ;;  %s7642_s5 = scalar_lea.vmem %s7641_s0, 8192 }
  0x76   : > { %p7638_p11 = pnand %p7636_p5, %p13667_p1  ;;  %p7643_p0 = scmp.lt.s32.totalorder %s710_s18, %s7641_s0 }
  0x77   : > { %p7644_p2 = scmp.lt.s32.totalorder %s7642_s5, %s7635_s25 }
  0x78   : > { %p7639_p12 = pneg %p7638_p11 }
  0x79   : > { %p7645_p4 = por %p7644_p2, %p7643_p0 }
  0x7b   : > { %p7646_p9 = pnand %p7645_p4, %p7639_p12 }
  0x7d   : > { %7649 = shalt.err (!%p7646_p9)
}
  0x7e   : > { %s13672_s7 = smov 128   ;;  %s13674_s14 = smov 8  }
  0x7f   : > { %6992 = dma.hbm_to_vmem [thread:$0]  (!%p8193_p3), %s708_s12, 4096, %s710_s18, %s8203_s1, %s13672_s7, %s13672_s7, %s13674_s14  }
  0x80   : > { %s7661_s28 = scalar_lea.vmem %s551_s20, 16  ;;  %s7668_s0 = scalar_lea.vmem %s551_s20, 32 }
  0x81   : > { %p7662_p5 = scmp.ne.s32.totalorder %s551_s20, %s7661_s28  ;;  %p7669_p0 = scmp.lt.s32.totalorder %s551_s20, %s551_s20 }
  0x82   : > { %p7670_p12 = scmp.lt.s32.totalorder %s7668_s0, %s7661_s28 }
  0x83   : > { %p7664_p11 = pnand %p7662_p5, %p8114_p7 }
  0x84   : > { %p7671_p2 = por %p7670_p12, %p7669_p0 }
  0x85   : > { %p7665_p1 = pneg %p7664_p11 }
  0x87   : > { %p7672_p4 = pnand %p7671_p2, %p7665_p1 }
  0x89   : > { %7675 = shalt.err (!%p7672_p4)
}
  0x8a   : > { %s14368_s4 = sld [smem:[#allocation130_spill]]  ;;  %s7953_s12 = smov [#allocation15]  }
  0x8b   : > { %s572_s18 = sshll.u32 %s7953_s12, 4  ;;  %s7954_s25 = smov [#allocation18]   ;;  %s573_s18 = int_to_ptr.vmem [resolvable:$true] %s572_s18 }
  0x8c   : > { %s594_s21 = sshll.u32 %s7954_s25, 4  ;;  %s7687_s15 = scalar_lea.vmem %s573_s18, 16  ;;  %s595_s21 = int_to_ptr.vmem [resolvable:$true] %s594_s21 }
  0x8d   : > { %p7688_p9 = scmp.ne.s32.totalorder %s573_s18, %s7687_s15  ;;  %s7694_s5 = scalar_lea.vmem %s573_s18, 32 }
  0x8e   : > { %p7695_p1 = scmp.lt.s32.totalorder %s573_s18, %s573_s18  ;;  %p7696_p0 = scmp.lt.s32.totalorder %s7694_s5, %s7687_s15 }
  0x8f   : > { %p7690_p5 = pnand %p7688_p9, %p8114_p7 }
  0x90   : > { %6961 = dma.hbm_to_vmem [thread:$0]  (!%p8108_p6), %s14368_s4, 16, %s551_s20, [#allocation11]  }
  0x91   : > { %p7691_p11 = pneg %p7690_p5  ;;  %p7697_p12 = por %p7696_p0, %p7695_p1 }
  0x93   : > { %p7698_p2 = pnand %p7697_p12, %p7691_p11 }
  0x95   : > { %7701 = shalt.err (!%p7698_p2)
}
  0x96   : > { %6967 = dma.hbm_to_vmem [thread:$0]  (!%p8108_p6), %s13638_s6, 16, %s573_s18, [#allocation14]  }
  0x97   : > { %s7713_s0 = scalar_lea.vmem %s595_s21, 16  ;;  %s7720_s22 = scalar_lea.vmem %s595_s21, 32 }
  0x98   : > { %p7714_p4 = scmp.ne.s32.totalorder %s595_s21, %s7713_s0  ;;  %p7721_p5 = scmp.lt.s32.totalorder %s595_s21, %s595_s21 }
  0x99   : > { %p7722_p8 = scmp.lt.s32.totalorder %s7720_s22, %s7713_s0 }
  0x9a   : > { %p7716_p10 = pnand %p7714_p4, %p8114_p7 }
  0x9b   : > { %p7723_p13 = por %p7722_p8, %p7721_p5 }
  0x9c   : > { %p7717_p9 = pneg %p7716_p10 }
  0x9e   : > { %p7724_p1 = pnand %p7723_p13, %p7717_p9 }
  0xa0   : > { %7727 = shalt.err (!%p7724_p1)
}
  0xa1   : > { %6973 = dma.hbm_to_vmem [thread:$0]  (!%p8108_p6), %s13640_s8, 16, %s595_s21, [#allocation17]  }
  0xa2   : > { %s7955_s18 = smov [#allocation21]   ;;  %s7956_s15 = smov [#allocation24]  }
  0xa3   : > { %s625_s25 = sshll.u32 %s7955_s18, 4  ;;  %s652_s5 = sshll.u32 %s7956_s15, 4  ;;  %s626_s25 = int_to_ptr.vmem [resolvable:$true] %s625_s25  ;;  %s653_s5 = int_to_ptr.vmem [resolvable:$true] %s652_s5 }
  0xa4   : > { %s7739_s28 = scalar_lea.vmem %s626_s25, 128  ;;  %p7747_p8 = scmp.lt.s32.totalorder %s626_s25, %s626_s25 }
  0xa5   : > { %p7740_p10 = scmp.ne.s32.totalorder %s626_s25, %s7739_s28  ;;  %p7748_p13 = scmp.lt.s32.totalorder %s7739_s28, %s7739_s28 }
  0xa7   : > { %p7742_p11 = pnand %p7740_p10, %p8114_p7  ;;  %p7749_p12 = por %p7748_p13, %p7747_p8 }
  0xa9   : > { %p7743_p0 = pneg %p7742_p11 }
  0xab   : > { %p7750_p2 = pnand %p7749_p12, %p7743_p0 }
  0xad   : > { %7753 = shalt.err (!%p7750_p2)
}
  0xae   : > { %6979 = dma.hbm_to_vmem [thread:$0]  (!%p8108_p6), %s13645_s13, 128, %s626_s25, [#allocation20]  }
  0xaf   : > { %s7765_s21 = scalar_lea.vmem %s653_s5, 1024  ;;  %p7773_p1 = scmp.lt.s32.totalorder %s653_s5, %s653_s5 }
  0xb0   : > { %p7766_p4 = scmp.ne.s32.totalorder %s653_s5, %s7765_s21  ;;  %p7774_p10 = scmp.lt.s32.totalorder %s7765_s21, %s7765_s21 }
  0xb2   : > { %p7768_p9 = pnand %p7766_p4, %p8114_p7  ;;  %p7775_p11 = por %p7774_p10, %p7773_p1 }
  0xb4   : > { %p7769_p5 = pneg %p7768_p9 }
  0xb6   : > { %p7776_p3 = pnand %p7775_p11, %p7769_p5 }
  0xb8   : > { %7779 = shalt.err (!%p7776_p3)
}
  0xb9   : > { %s14369_s22 = smov 4   ;;  %s14370_s10 = smov 64  }
  0xba   : > { %6985 = dma.hbm_to_vmem [thread:$0]  (!%p8108_p6), %s13649_s17, 1024, %s653_s5, [#allocation23], %s14370_s10, %s14370_s10, %s14369_s22  }
  0xbb   : > { %s6656_s19 = sshll.u32 %s8188_s24, 6  ;;  %s14371_s28 = sld [smem:[#allocation126_spill]] }
  0xbc   : > { %s673_s0 = scalar_lea.vmem [#allocation4], %s6656_s19  ;;  %s723_s7 = scalar_lea.vmem [#allocation9], %s6656_s19 }
  0xbd   : > { %s686_s21 = sshll.u32 %s673_s0, 4  ;;  %s736_s3 = sshll.u32 %s723_s7, 4  ;;  %s687_s21 = int_to_ptr.vmem [resolvable:$true] %s686_s21  ;;  %s8259_s3 = int_to_ptr.vmem [resolvable:$true] %s736_s3 }
  0xbe   : > { %s670_s14 = scalar_lea.sflag [#allocation5], %s8188_s24  ;;  %s7793_s4 = scalar_lea.vmem %s687_s21, 1024 }
  0xbf   : > { %p7794_p7 = scmp.ne.s32.totalorder %s687_s21, %s7793_s4  ;;  %p14372_p3 = scmp.ne.s32.totalorder %s14366_s27, 0 }
  0xc0   : > { %s7957_s5 = smov [#allocation4]  }
  0xc1   : > { %s685_s20 = scalar_lea.hbm %s14371_s28, %s8191_s26  ;;  %p14373_p0 = pneg %p14372_p3 }
  0xc2   : > { %s7798_s22 = sshll.u32 %s7957_s5, 4  ;;  %s7799_s22 = int_to_ptr.vmem [resolvable:$false] %s7798_s22 }
  0xc3   : > { %p7796_p8 = pnand %p7794_p7, %p14373_p0  ;;  %s7800_s10 = scalar_lea.vmem %s7799_s22, 2048 }
  0xc4   : > { %p7801_p6 = scmp.lt.s32.totalorder %s687_s21, %s7799_s22  ;;  %p7802_p12 = scmp.lt.s32.totalorder %s7800_s10, %s7793_s4 }
  0xc5   : > { %p7797_p13 = pneg %p7796_p8 }
  0xc6   : > { %p7803_p2 = por %p7802_p12, %p7801_p6 }
  0xc8   : > { %p7804_p4 = pnand %p7803_p2, %p7797_p13 }
  0xca   : > { %7807 = shalt.err (!%p7804_p4)
}
  0xcb   : > { %s14374_s7 = smov 8   ;;  %s14375_s12 = smov 128  }
  0xcc   : > { %6989 = dma.hbm_to_vmem [thread:$0]  (!%p14372_p3), %s685_s20, 1024, %s687_s21, %s670_s14, %s14375_s12, %s14375_s12, %s14374_s7  }
  0xcd   : > { %s6742_s24 = sadd.s32 3072, %s8191_s26  ;;  %s14376_s25 = sld [smem:[#allocation128_spill]] }
  0xce   : > { %s7821_s4 = scalar_lea.vmem %s8259_s3, 1024  ;;  %p14377_p5 = pmov %p14373_p0 }
  0xcf   : > { %p7822_p9 = scmp.ne.s32.totalorder %s8259_s3, %s7821_s4  ;;  %s7958_s28 = smov [#allocation9]  }
  0xd0   : > { %s7826_s0 = sshll.u32 %s7958_s28, 4  ;;  %s7827_s0 = int_to_ptr.vmem [resolvable:$false] %s7826_s0 }
  0xd1   : > { %p7824_p1 = pnand %p7822_p9, %p14377_p5  ;;  %s7828_s5 = scalar_lea.vmem %s7827_s0, 2048 }
  0xd2   : > { %p7829_p11 = scmp.lt.s32.totalorder %s8259_s3, %s7827_s0  ;;  %p7830_p7 = scmp.lt.s32.totalorder %s7828_s5, %s7821_s4 }
  0xd3   : > { %s735_s15 = scalar_lea.hbm %s14376_s25, %s6742_s24  ;;  %p7825_p10 = pneg %p7824_p1 }
  0xd4   : > { %p7831_p0 = por %p7830_p7, %p7829_p11 }
  0xd6   : > { %p7832_p8 = pnand %p7831_p0, %p7825_p10 }
  0xd8   : > { %7835 = shalt.err (!%p7832_p8)
}
  0xd9   : > { %6995 = dma.hbm_to_vmem [thread:$0]  (!%p14372_p3), %s735_s15, 1024, %s8259_s3, %s8203_s1, %s14375_s12, %s14375_s12, %s14374_s7  }
  0xda   : > { %p14378_p13 = scmp.ne.s32.totalorder %s14351_s23, 0 }
  0xdc   : > { %748 = sbr.rel (%p14378_p13) target bundleno = 1497 (0x5d9), region = 96 }
  0xe1   : > { %s8290_s26 = sand.u32 1, %s7924_s30   ;;  %p14379_p6 = scmp.ne.s32.totalorder %s14361_s29, 0 }
  0xe2   : > { %s751_s14 = scalar_lea.sflag [#allocation5], %s8290_s26 }
  0xe3   : > { %7887 = dma.done.wait (%p14379_p6), %s751_s14, 1024  }
  0xe4   : > { %7889 = vsyncadd (%p14379_p6), %s751_s14, 4294966272  ;;  %s759_s27 = sand.u32 1, %s8094_s2   ;;  %s6667_s1 = sshll.u32 %s8290_s26, 8 }
  0xe5   : > { %s760_s20 = scalar_lea.sflag [#allocation8], %s759_s27  ;;  %s8301_s23 = scalar_lea.vmem [#allocation7], %s6667_s1 }
  0xe6   : > { %7891 = dma.done.wait (%p14379_p6), %s760_s20, 5120  }
  0xe7   : > { %7893 = vsyncadd (%p14379_p6), %s760_s20, 4294962176  ;;  %p14380_p3 = scmp.eq.s32.totalorder %s8094_s2, 0 }
  0xe9   : > { %7895 = dma.done.wait (%p14380_p3), [#allocation11], 1040   ;;  %p14381_p12 = pmov %p14380_p3 }
  0xea   : > { %p14382_p2 = pmov %p14380_p3 }
  0xeb   : > { %7897 = vsyncadd (%p14381_p12), [#allocation11], 4294966256 }
  0xec   : > { %7899 = dma.done.wait (%p14382_p2), [#allocation14], 80   ;;  %p14383_p4 = pmov %p14382_p2 }
  0xed   : > { %p14384_p9 = pmov %p14382_p2 }
  0xee   : > { %7901 = vsyncadd (%p14383_p4), [#allocation14], 4294967216 }
  0xef   : > { %7903 = dma.done.wait (%p14384_p9), [#allocation17], 80   ;;  %p14385_p5 = pmov %p14382_p2 }
  0xf0   : > { %p14386_p1 = pmov %p14382_p2 }
  0xf1   : > { %7905 = vsyncadd (%p14385_p5), [#allocation17], 4294967216 }
  0xf2   : > { %7907 = dma.done.wait (%p14386_p1), [#allocation20], 144   ;;  %p14387_p10 = pmov %p14386_p1 }
  0xf3   : > { %p14388_p11 = pmov %p14386_p1 }
  0xf4   : > { %7909 = vsyncadd (%p14387_p10), [#allocation20], 4294967152 }
  0xf5   : > { %7911 = dma.done.wait (%p14388_p11), [#allocation23], 1040   ;;  %p14389_p7 = pmov %p14386_p1 }
  0xf6   : > { %v1010_v0 = vlaneseq  ;;  %v7959_v1 = vmov 0.0   ;;  %v7087_v8 = vld [vmem:[#allocation10 + $0x38] sm:$0xff]   ;;  %v7088_v10 = vld [vmem:[#allocation10 + $0x30] sm:$0xff]   ;;  %v7089_v13 = vld [vmem:[#allocation10 + $0x28] sm:$0xff]   ;;  %s14488_s27 = sld [smem:[#allocation133_spill]]  ;;  %s13503_s0 = scalar_lea.vmem [#allocation25], %s6667_s1 }
  0xf7   : > { %7913 = vsyncadd (%p14389_p7), [#allocation23], 4294966256  ;;  %v8327_v2 = vrot.slane %v7959_v1, 7  ;;  %v8331_v4 = vrot.slane %v7959_v1, 1  ;;  %6799 = vmatprep.subr.bf16.mxu0 %v7087_v8  ;;  %v7090_v14 = vld [vmem:[#allocation10 + $0x20] sm:$0xff]   ;;  %v919_v16 = vld [vmem:[%s8301_s23 + $0x8] sm:$0xff] }
  0xf8   : > { %v8329_v3 = vshrl.u32 %v1010_v0, 7  ;;  %6800 = vmatpush3.bf16.msra.mxu0 %v7087_v8  ;;  %v918_v15 = vld [vmem:[%s8301_s23] sm:$0xff]  ;;  %v920_v17 = vld [vmem:[%s8301_s23 + $0x10] sm:$0xff]  ;;  %v1208_v21 = vrot.slane %v919_v16, 7  ;;  %v921_v22 = vld [vmem:[%s8301_s23 + $0x18] sm:$0xff]  ;;  %v1385_v24 = vrot.slane %v919_v16, 1 }
  0xf9   : > { %14390 = vst [vmem:[#allocation42_spill] sm:$0xff] %v8327_v2  ;;  %14392 = vst [vmem:[#allocation44_spill] sm:$0xff] %v8331_v4  ;;  %6801 = vmatprep.subr.bf16.mxu0 %v7088_v10  ;;  %v1384_v18 = vrot.slane %v918_v15, 1  ;;  %v1079_v19 = vadd.f32 %v920_v17, %v918_v15  ;;  %v1207_v20 = vrot.slane %v918_v15, 7  ;;  %v922_v23 = vld [vmem:[%s8301_s23 + $0x20] sm:$0xff]  ;;  %v1080_v25 = vadd.f32 %v921_v22, %v919_v16  ;;  %v7091_v31 = vld [vmem:[#allocation10 + $0x18] sm:$0xff]  }
  0xfa   : > { %14391 = vst [vmem:[#allocation43_spill] sm:$0xff] %v8329_v3  ;;  %v8334_v5 = vadd.s32 8, %v8329_v3  ;;  %vm1019_vm0 = vcmp.ge.s32.totalorder %v8329_v3, 1  ;;  %vm1247_vm2 = vcmp.lt.s32.totalorder %v8329_v3, 1  ;;  %vm1424_vm3 = vcmp.lt.s32.totalorder %v8329_v3, 7  ;;  %v923_v36 = vld [vmem:[%s8301_s23 + $0x28] sm:$0xff] }
  0xfb   : > { %v1292_v6 = vsel %vm1019_vm0, %v8327_v2, 0.0  ;;  %v1081_v26 = vadd.f32 %v922_v23, %v920_v17  ;;  %v1464_v27 = vsel %vm1424_vm3, %v8331_v4, %v1384_v18  ;;  %v1286_v28 = vsel %vm1247_vm2, %v1207_v20, %v1208_v21  ;;  %v924_v48 = vld [vmem:[%s8301_s23 + $0x30] sm:$0xff]  ;;  %v925_v59 = vld [vmem:[%s8301_s23 + $0x38] sm:$0xff]  ;;  %v926_v0 = vld [vmem:[%s8301_s23 + $0x40] sm:$0xff]  ;;  %s14514_s12 = sld [smem:[#allocation136_spill]]  ;;  %s6411_s14 = sshll.u32 %s13503_s0, 4  ;;  %s13583_s14 = int_to_ptr.vmem [resolvable:$true] %s6411_s14 }
  0xfc   : > { %14393 = vst [vmem:[#allocation45_spill] sm:$0xff] %v8334_v5  ;;  %vm1014_vm1 = vcmp.lt.s32.totalorder %v8334_v5, 15  ;;  %v8342_v7 = vadd.f32 %v8331_v4, %v1292_v6  ;;  %6802 = vmatpush3.bf16.msra.mxu0 %v7088_v10  ;;  %v1287_v29 = vsel %vm1247_vm2, %v8327_v2, %v1207_v20  ;;  %v1386_v30 = vrot.slane %v1079_v19, 1  ;;  %v7092_v50 = vld [vmem:[#allocation10 + $0x10] sm:$0xff]   ;;  %v7093_v10 = vld [vmem:[#allocation10 + $0x8] sm:$0xff]   ;;  %s14547_s3 = sld [smem:[#allocation137_spill]] }
  0xfd   : > { %v1470_v9 = vsel %vm1014_vm1, %v8331_v4, 0.0  ;;  %6803 = vmatprep.subr.bf16.mxu0 %v7089_v13  ;;  %v1472_v32 = vsel %vm1014_vm1, %v1464_v27, 0.0  ;;  %v1296_v33 = vsel %vm1019_vm0, %v1287_v29, 0.0  ;;  %v1341_v34 = vadd.f32 %v1286_v28, %v919_v16  ;;  %v6710_v5 = vld [vmem:[#allocation21 + $0x1] ss:$0 sm:$0xff]  ;;  %s15301_s28 = sld [smem:[#allocation138_spill]] }
  0xfe   : > { %v8348_v11 = vadd.f32 %v1470_v9, %v8327_v2  ;;  %v1463_v35 = vsel %vm1424_vm3, %v1384_v18, %v1385_v24  ;;  %v8378_v37 = vadd.f32 %v1472_v32, %v8327_v2  ;;  %v1340_v38 = vadd.f32 %v1296_v33, %v918_v15  ;;  %s15317_s1 = sld [smem:[#allocation36_spill]]  ;;  %s6396_s22 = scalar_lea.sflag [#allocation6], %s8290_s26 }
  0xff   : > { %v1462_v39 = vsel %vm1424_vm3, %v1385_v24, %v1386_v30  ;;  %v1167_v40 = vadd.f32 %v1079_v19, %v922_v23  ;;  %v1209_v42 = vrot.slane %v1079_v19, 7  ;;  %v1210_v43 = vrot.slane %v1080_v25, 7  ;;  %s15318_s29 = sld [smem:[#allocation139_spill]]  ;;  %s7836_s10 = scalar_lea.vmem %s13583_s14, 4096 }
 0x100   : > { %14394 = vst [vmem:[#allocation46_spill] sm:$0xff] %v8348_v11  ;;  %v8352_v12 = vpack.c.bf16 %v8348_v11, %v8342_v7  ;;  %6804 = vmatpush3.bf16.msra.mxu0 %v7089_v13  ;;  %v1474_v41 = vsel %vm1014_vm1, %v1462_v39, 0.0  ;;  %v1387_v44 = vrot.slane %v1080_v25, 1  ;;  %v1558_v45 = vpack.c.bf16 %v8378_v37, %v8342_v7  ;;  %p7837_p0 = scmp.ne.s32.totalorder %s13583_s14, %s7836_s10  ;;  %p15319_p8 = scmp.ne.s32.totalorder %s14362_s16, 0 }
 0x101   : > { %6805 = vmatprep.subr.bf16.mxu0 %v7090_v14  ;;  %v8386_v46 = vadd.f32 %v1463_v35, %v1340_v38  ;;  %v1388_v47 = vrot.slane %v1167_v40, 1  ;;  %v1082_v49 = vadd.f32 %v923_v36, %v921_v22  ;;  %v8389_v51 = vadd.f32 %v1474_v41, %v1341_v34  ;;  %v928_v34 = vld [vmem:[%s8301_s23 + $0x50] sm:$0xff] }
 0x102   : > { %14395 = vst [vmem:[#allocation47_spill] sm:$0xff] %v8352_v12  ;;  %6815 = vmatprep.mubr.bf16.mxu0 %v8352_v12  ;;  %v1284_v52 = vsel %vm1247_vm2, %v1209_v42, %v1210_v43  ;;  %v1285_v53 = vsel %vm1247_vm2, %v1208_v21, %v1209_v42  ;;  %v1168_v54 = vadd.f32 %v1080_v25, %v923_v36  ;;  %v1211_v63 = vrot.slane %v1167_v40, 7  ;;  %v7094_v21 = vld [vmem:[#allocation10] sm:$0xff]   ;;  %p7838_p13 = pnand %p7837_p0, %p15319_p8 }
 0x103   : > { %v1298_v55 = vsel %vm1019_vm0, %v1285_v53, 0.0  ;;  %v1343_v56 = vadd.f32 %v1284_v52, %v1080_v25  ;;  %v1460_v57 = vsel %vm1424_vm3, %v1387_v44, %v1388_v47  ;;  %v1461_v58 = vsel %vm1424_vm3, %v1386_v30, %v1387_v44  ;;  %v929_v53 = vld [vmem:[%s8301_s23 + $0x58] sm:$0xff] }
 0x104   : > { %6806 = vmatpush3.bf16.msra.mxu0 %v7090_v14  ;;  %v1342_v60 = vadd.f32 %v1298_v55, %v1079_v19  ;;  %v1476_v61 = vsel %vm1014_vm1, %v1460_v57, 0.0  ;;  %v1169_v62 = vadd.f32 %v1081_v26, %v924_v48  ;;  %v1212_v6 = vrot.slane %v1168_v54, 7  ;;  %v927_v26 = vld [vmem:[%s8301_s23 + $0x48] sm:$0xff]  ;;  %s6743_s5 = sshll.u32 %s15317_s1, 12  ;;  %p7839_p6 = pneg %p7838_p13 }
 0x105   : > { %6807 = vmatprep.subr.bf16.mxu0 %v7091_v31  ;;  %v8405_v1 = vadd.f32 %v1476_v61, %v1343_v56  ;;  %v1389_v8 = vrot.slane %v1168_v54, 1  ;;  %v1083_v9 = vadd.f32 %v924_v48, %v922_v23  ;;  %v1283_v14 = vsel %vm1247_vm2, %v1210_v43, %v1211_v63  ;;  %s13581_s21 = scalar_lea.hbm %s15318_s29, %s6743_s5 }
 0x106   : > { %v8407_v13 = vadd.f32 %v1461_v58, %v1342_v60  ;;  %v1390_v15 = vrot.slane %v1169_v62, 1  ;;  %v1170_v16 = vadd.f32 %v1082_v49, %v925_v59  ;;  %v1282_v17 = vsel %vm1247_vm2, %v1211_v63, %v1212_v6 }
 0x107   : > { %v1300_v18 = vsel %vm1019_vm0, %v1283_v14, 0.0  ;;  %v1459_v19 = vsel %vm1424_vm3, %v1388_v47, %v1389_v8  ;;  %v1171_v20 = vadd.f32 %v1083_v9, %v926_v0  ;;  %v1559_v22 = vpack.c.bf16 %v8389_v51, %v8386_v46  ;;  %v933_v51 = vld [vmem:[%s8301_s23 + $0x78] sm:$0xff] }
 0x108   : > { %6808 = vmatpush3.bf16.msra.mxu0 %v7091_v31  ;;  %v1344_v23 = vadd.f32 %v1300_v18, %v1167_v40  ;;  %v1345_v24 = vadd.f32 %v1282_v17, %v1168_v54  ;;  %v1458_v25 = vsel %vm1424_vm3, %v1389_v8, %v1390_v15  ;;  %v1213_v28 = vrot.slane %v1169_v62, 7  ;;  %v930_v54 = vld [vmem:[%s8301_s23 + $0x60] sm:$0xff] }
 0x109   : > { %6809 = vmatprep.subr.bf16.mxu0 %v7092_v50  ;;  %v1478_v27 = vsel %vm1014_vm1, %v1458_v25, 0.0  ;;  %v1214_v29 = vrot.slane %v1170_v16, 7  ;;  %v1391_v30 = vrot.slane %v1170_v16, 1  ;;  %v1392_v33 = vrot.slane %v1171_v20, 1 }
 0x10a   : > { %v8424_v31 = vadd.f32 %v1459_v19, %v1344_v23  ;;  %v8426_v32 = vadd.f32 %v1478_v27, %v1345_v24  ;;  %v1084_v35 = vadd.f32 %v925_v59, %v923_v36  ;;  %v1560_v38 = vpack.c.bf16 %v8405_v1, %v8407_v13 }
 0x10b   : > { %v1280_v39 = vsel %vm1247_vm2, %v1213_v28, %v1214_v29  ;;  %v1281_v40 = vsel %vm1247_vm2, %v1212_v6, %v1213_v28  ;;  %v1085_v41 = vadd.f32 %v926_v0, %v924_v48  ;;  %v1456_v44 = vsel %vm1424_vm3, %v1391_v30, %v1392_v33  ;;  %v931_v28 = vld [vmem:[%s8301_s23 + $0x68] sm:$0xff] }
 0x10c   : > { %6810 = vmatpush3.bf16.msra.mxu0 %v7092_v50  ;;  %v1302_v42 = vsel %vm1019_vm0, %v1281_v40, 0.0  ;;  %v1347_v43 = vadd.f32 %v1280_v39, %v1170_v16  ;;  %v1457_v36 = vsel %vm1424_vm3, %v1390_v15, %v1391_v30  ;;  %v1480_v49 = vsel %vm1014_vm1, %v1456_v44, 0.0 }
 0x10d   : > { %6811 = vmatprep.subr.bf16.mxu0 %v7093_v10  ;;  %v1346_v47 = vadd.f32 %v1302_v42, %v1169_v62  ;;  %v1172_v50 = vadd.f32 %v1084_v35, %v927_v26  ;;  %v1173_v52 = vadd.f32 %v1085_v41, %v928_v34  ;;  %v1561_v48 = vpack.c.bf16 %v8426_v32, %v8424_v31  ;;  %v934_v42 = vld [vmem:[%s8301_s23 + $0x80] sm:$0xff] }
 0x10e   : > { %v1215_v55 = vrot.slane %v1171_v20, 7  ;;  %v1086_v56 = vadd.f32 %v927_v26, %v925_v59  ;;  %v1087_v57 = vadd.f32 %v928_v34, %v926_v0  ;;  %v8447_v58 = vadd.f32 %v1480_v49, %v1347_v43 }
 0x10f   : > { %v1216_v60 = vrot.slane %v1172_v50, 7  ;;  %v1393_v61 = vrot.slane %v1172_v50, 1  ;;  %v1394_v63 = vrot.slane %v1173_v52, 1  ;;  %v1217_v9 = vrot.slane %v1173_v52, 7 }
 0x110   : > { %6812 = vmatpush3.bf16.msra.mxu0 %v7093_v10  ;;  %v1279_v62 = vsel %vm1247_vm2, %v1214_v29, %v1215_v55  ;;  %v1174_v6 = vadd.f32 %v1086_v56, %v929_v53  ;;  %v1175_v8 = vadd.f32 %v1087_v57, %v930_v54  ;;  %v8451_v10 = vadd.f32 %v1457_v36, %v1346_v47 }
 0x111   : > { %6813 = vmatprep.subr.bf16.mxu0 %v7094_v21  ;;  %v1278_v14 = vsel %vm1247_vm2, %v1215_v55, %v1216_v60  ;;  %v1304_v59 = vsel %vm1019_vm0, %v1279_v62, 0.0  ;;  %v1454_v0 = vsel %vm1424_vm3, %v1393_v61, %v1394_v63  ;;  %v1455_v17 = vsel %vm1424_vm3, %v1392_v33, %v1393_v61  ;;  %v932_v33 = vld [vmem:[%s8301_s23 + $0x70] sm:$0xff] }
 0x112   : > { %v1348_v15 = vadd.f32 %v1304_v59, %v1171_v20  ;;  %v1349_v16 = vadd.f32 %v1278_v14, %v1172_v50  ;;  %v1482_v18 = vsel %vm1014_vm1, %v1454_v0, 0.0  ;;  %v1218_v19 = vrot.slane %v1174_v6, 7 }
 0x113   : > { %v1395_v23 = vrot.slane %v1174_v6, 1  ;;  %v1396_v24 = vrot.slane %v1175_v8, 1  ;;  %v1088_v29 = vadd.f32 %v929_v53, %v927_v26  ;;  %v1562_v35 = vpack.c.bf16 %v8447_v58, %v8451_v10 }
 0x114   : > { %6814 = vmatpush3.bf16.msra.mxu0 %v7094_v21  ;;  %v1277_v21 = vsel %vm1247_vm2, %v1216_v60, %v1217_v9  ;;  %v8468_v20 = vadd.f32 %v1455_v17, %v1348_v15  ;;  %v8470_v25 = vadd.f32 %v1482_v18, %v1349_v16  ;;  %v1276_v30 = vsel %vm1247_vm2, %v1217_v9, %v1218_v19 }
 0x115   : > { %v1306_v27 = vsel %vm1019_vm0, %v1277_v21, 0.0  ;;  %v1452_v37 = vsel %vm1424_vm3, %v1395_v23, %v1396_v24  ;;  %v1351_v39 = vadd.f32 %v1276_v30, %v1174_v6  ;;  %v1089_v46 = vadd.f32 %v930_v54, %v928_v34 }
 0x116   : > { %v1350_v7 = vadd.f32 %v1306_v27, %v1173_v52  ;;  %v1484_v26 = vsel %vm1014_vm1, %v1452_v37, 0.0  ;;  %v1176_v40 = vadd.f32 %v1088_v29, %v931_v28  ;;  %v1219_v41 = vrot.slane %v1175_v8, 7  ;;  %v937_v29 = vld [vmem:[%s8301_s23 + $0x98] sm:$0xff] }
 0x117   : > { %6816 = vmatmul.mubr.bf16.vlgmr.msra.gmra.mxu0 %v1558_v45  ;;  %v1453_v45 = vsel %vm1424_vm3, %v1394_v63, %v1395_v23  ;;  %v1090_v43 = vadd.f32 %v931_v28, %v929_v53  ;;  %v8495_v36 = vadd.f32 %v1484_v26, %v1351_v39  ;;  %v1177_v47 = vadd.f32 %v1089_v46, %v932_v33 }
 0x118   : > { %6819 = vmatprep.mubr.bf16.mxu0 %v1559_v22  ;;  %v1563_v22 = vpack.c.bf16 %v8470_v25, %v8468_v20  ;;  %v8493_v44 = vadd.f32 %v1453_v45, %v1350_v7  ;;  %v1091_v49 = vadd.f32 %v932_v33, %v930_v54  ;;  %v1220_v50 = vrot.slane %v1176_v40, 7  ;;  %v938_v45 = vld [vmem:[%s8301_s23 + $0xa0] sm:$0xff] }
 0x119   : > { %v1275_v52 = vsel %vm1247_vm2, %v1218_v19, %v1219_v41  ;;  %v1397_v55 = vrot.slane %v1176_v40, 1  ;;  %v1178_v34 = vadd.f32 %v1090_v43, %v933_v51  ;;  %v1398_v57 = vrot.slane %v1177_v47, 1 }
 0x11a   : > { %v1308_v56 = vsel %vm1019_vm0, %v1275_v52, 0.0  ;;  %v1179_v60 = vadd.f32 %v1091_v49, %v934_v42  ;;  %v1092_v61 = vadd.f32 %v933_v51, %v931_v28  ;;  %v1274_v53 = vsel %vm1247_vm2, %v1219_v41, %v1220_v50 }
 0x11b   : > { %v1352_v63 = vadd.f32 %v1308_v56, %v1175_v8  ;;  %v1451_v54 = vsel %vm1424_vm3, %v1396_v24, %v1397_v55  ;;  %v1221_v62 = vrot.slane %v1177_v47, 7  ;;  %v1353_v6 = vadd.f32 %v1274_v53, %v1176_v40 }
 0x11c   : > { %v1450_v9 = vsel %vm1424_vm3, %v1397_v55, %v1398_v57  ;;  %v1222_v14 = vrot.slane %v1178_v34, 7  ;;  %v1399_v59 = vrot.slane %v1178_v34, 1  ;;  %v1400_v13 = vrot.slane %v1179_v60, 1 }
 0x11d   : > { %v1486_v8 = vsel %vm1014_vm1, %v1450_v9, 0.0  ;;  %v8515_v0 = vadd.f32 %v1451_v54, %v1352_v63  ;;  %v1273_v1 = vsel %vm1247_vm2, %v1220_v50, %v1221_v62  ;;  %v1093_v21 = vadd.f32 %v934_v42, %v932_v33 }
 0x11e   : > { %v8520_v15 = vadd.f32 %v1486_v8, %v1353_v6  ;;  %v1272_v16 = vsel %vm1247_vm2, %v1221_v62, %v1222_v14  ;;  %v1310_v31 = vsel %vm1019_vm0, %v1273_v1, 0.0  ;;  %v1449_v32 = vsel %vm1424_vm3, %v1398_v57, %v1399_v59  ;;  %v940_v62 = vld [vmem:[%s8301_s23 + $0xb0] sm:$0xff]  ;;  %v941_v8 = vld [vmem:[%s8301_s23 + $0xb8] sm:$0xff] }
 0x11f   : > { %6820 = vmatmul.mubr.bf16.gmra.mxu0 %v1560_v38  ;;  %v935_v38 = vld [vmem:[%s8301_s23 + $0x88] sm:$0xff]  ;;  %v1354_v17 = vadd.f32 %v1310_v31, %v1177_v47  ;;  %v1355_v18 = vadd.f32 %v1272_v16, %v1178_v34  ;;  %v1448_v19 = vsel %vm1424_vm3, %v1399_v59, %v1400_v13  ;;  %v1564_v23 = vpack.c.bf16 %v8495_v36, %v8493_v44 }
 0x120   : > { %6823 = vmatprep.mubr.bf16.mxu0 %v1561_v48  ;;  %v936_v48 = vld [vmem:[%s8301_s23 + $0x90] sm:$0xff]  ;;  %v1488_v24 = vsel %vm1014_vm1, %v1448_v19, 0.0  ;;  %v1180_v27 = vadd.f32 %v1092_v61, %v935_v38  ;;  %v1223_v28 = vrot.slane %v1179_v60, 7  ;;  %v1565_v30 = vpack.c.bf16 %v8520_v15, %v8515_v0 }
 0x121   : > { %v8538_v7 = vadd.f32 %v1449_v32, %v1354_v17  ;;  %v1181_v37 = vadd.f32 %v1093_v21, %v936_v48  ;;  %v1094_v39 = vadd.f32 %v935_v38, %v933_v51  ;;  %v1095_v40 = vadd.f32 %v936_v48, %v934_v42 }
 0x122   : > { %v1224_v26 = vrot.slane %v1180_v27, 7  ;;  %v1271_v33 = vsel %vm1247_vm2, %v1222_v14, %v1223_v28  ;;  %v1401_v46 = vrot.slane %v1180_v27, 1  ;;  %v8543_v41 = vadd.f32 %v1488_v24, %v1355_v18 }
 0x123   : > { %v1312_v43 = vsel %vm1019_vm0, %v1271_v33, 0.0  ;;  %v1402_v44 = vrot.slane %v1181_v37, 1  ;;  %v1182_v36 = vadd.f32 %v1094_v39, %v937_v29  ;;  %v1183_v42 = vadd.f32 %v1095_v40, %v938_v45 }
 0x124   : > { %v1270_v51 = vsel %vm1247_vm2, %v1223_v28, %v1224_v26  ;;  %v1356_v47 = vadd.f32 %v1312_v43, %v1179_v60  ;;  %v1447_v49 = vsel %vm1424_vm3, %v1400_v13, %v1401_v46  ;;  %v1225_v58 = vrot.slane %v1181_v37, 7 }
 0x125   : > { %v1357_v50 = vadd.f32 %v1270_v51, %v1180_v27  ;;  %v1446_v52 = vsel %vm1424_vm3, %v1401_v46, %v1402_v44  ;;  %v1226_v10 = vrot.slane %v1182_v36, 7  ;;  %v1403_v34 = vrot.slane %v1182_v36, 1 }
 0x126   : > { %v8561_v55 = vadd.f32 %v1447_v49, %v1356_v47  ;;  %v1404_v56 = vrot.slane %v1183_v42, 1  ;;  %v1269_v25 = vsel %vm1247_vm2, %v1224_v26, %v1225_v58  ;;  %v1096_v60 = vadd.f32 %v937_v29, %v935_v38  ;;  %v942_v38 = vld [vmem:[%s8301_s23 + $0xc0] sm:$0xff] }
 0x127   : > { %6824 = vmatmul.mubr.bf16.gmra.mxu0 %v1562_v35  ;;  %v1490_v35 = vsel %vm1014_vm1, %v1446_v52, 0.0  ;;  %v1268_v20 = vsel %vm1247_vm2, %v1225_v58, %v1226_v10  ;;  %v1314_v61 = vsel %vm1019_vm0, %v1269_v25, 0.0  ;;  %v1445_v54 = vsel %vm1424_vm3, %v1402_v44, %v1403_v34  ;;  %v943_v44 = vld [vmem:[%s8301_s23 + $0xc8] sm:$0xff] }
 0x128   : > { %6827 = vmatprep.mubr.bf16.mxu0 %v1563_v22  ;;  %v8563_v57 = vadd.f32 %v1490_v35, %v1357_v50  ;;  %v939_v22 = vld [vmem:[%s8301_s23 + $0xa8] sm:$0xff]  ;;  %v1359_v53 = vadd.f32 %v1268_v20, %v1182_v36  ;;  %v1444_v63 = vsel %vm1424_vm3, %v1403_v34, %v1404_v56  ;;  %v1566_v6 = vpack.c.bf16 %v8543_v41, %v8538_v7 }
 0x129   : > { %v1358_v9 = vadd.f32 %v1314_v61, %v1181_v37  ;;  %v1492_v14 = vsel %vm1014_vm1, %v1444_v63, 0.0  ;;  %v1097_v59 = vadd.f32 %v938_v45, %v936_v48  ;;  %v1184_v1 = vadd.f32 %v1096_v60, %v939_v22  ;;  %v946_v60 = vld [vmem:[%s8301_s23 + $0xe0] sm:$0xff] }
 0x12a   : > { %v1567_v0 = vpack.c.bf16 %v8563_v57, %v8561_v55  ;;  %v1227_v13 = vrot.slane %v1183_v42, 7  ;;  %v1098_v15 = vadd.f32 %v939_v22, %v937_v29  ;;  %v8587_v31 = vadd.f32 %v1492_v14, %v1359_v53  ;;  %v945_v57 = vld [vmem:[%s8301_s23 + $0xd8] sm:$0xff] }
 0x12b   : > { %v8585_v16 = vadd.f32 %v1445_v54, %v1358_v9  ;;  %v1185_v32 = vadd.f32 %v1097_v59, %v940_v62  ;;  %v1099_v17 = vadd.f32 %v940_v62, %v938_v45  ;;  %v1228_v18 = vrot.slane %v1184_v1, 7 }
 0x12c   : > { %v1267_v19 = vsel %vm1247_vm2, %v1226_v10, %v1227_v13  ;;  %v1405_v48 = vrot.slane %v1184_v1, 1  ;;  %v1186_v21 = vadd.f32 %v1098_v15, %v941_v8  ;;  %v1100_v29 = vadd.f32 %v941_v8, %v939_v22 }
 0x12d   : > { %v1316_v24 = vsel %vm1019_vm0, %v1267_v19, 0.0  ;;  %v1406_v27 = vrot.slane %v1185_v32, 1  ;;  %v1187_v28 = vadd.f32 %v1099_v17, %v942_v38  ;;  %v1266_v7 = vsel %vm1247_vm2, %v1227_v13, %v1228_v18 }
 0x12e   : > { %v1360_v37 = vadd.f32 %v1316_v24, %v1183_v42  ;;  %v1229_v45 = vrot.slane %v1185_v32, 7  ;;  %v1361_v39 = vadd.f32 %v1266_v7, %v1184_v1  ;;  %v1230_v26 = vrot.slane %v1186_v21, 7  ;;  %v944_v42 = vld [vmem:[%s8301_s23 + $0xd0] sm:$0xff] }
 0x12f   : > { %6828 = vmatmul.mubr.bf16.gmra.mxu0 %v1564_v23  ;;  %v1443_v23 = vsel %vm1424_vm3, %v1404_v56, %v1405_v48  ;;  %v1407_v33 = vrot.slane %v1186_v21, 1  ;;  %v1408_v43 = vrot.slane %v1187_v28, 1  ;;  %v1101_v10 = vadd.f32 %v942_v38, %v940_v62 }
 0x130   : > { %6831 = vmatprep.mubr.bf16.mxu0 %v1565_v30  ;;  %v1442_v30 = vsel %vm1424_vm3, %v1405_v48, %v1406_v27  ;;  %v1537_v40 = vadd.f32 %v1443_v23, %v1360_v37  ;;  %v1265_v41 = vsel %vm1247_vm2, %v1228_v18, %v1229_v45  ;;  %v1264_v51 = vsel %vm1247_vm2, %v1229_v45, %v1230_v26  ;;  %v8645_v45 = vld [vmem:[%s8301_s23 + $0xf0] sm:$0xff] }
 0x131   : > { %v1494_v46 = vsel %vm1014_vm1, %v1442_v30, 0.0  ;;  %v1318_v47 = vsel %vm1019_vm0, %v1265_v41, 0.0  ;;  %v1441_v49 = vsel %vm1424_vm3, %v1406_v27, %v1407_v33  ;;  %v1363_v52 = vadd.f32 %v1264_v51, %v1186_v21  ;;  %v947_v27 = vld [vmem:[%s8301_s23 + $0xe8] sm:$0xff] }
 0x132   : > { %v1538_v36 = vadd.f32 %v1494_v46, %v1361_v39  ;;  %v1362_v50 = vadd.f32 %v1318_v47, %v1185_v32  ;;  %v1440_v58 = vsel %vm1424_vm3, %v1407_v33, %v1408_v43  ;;  %v1568_v35 = vpack.c.bf16 %v8587_v31, %v8585_v16  ;;  %v8651_v46 = vld [vmem:[%s8301_s23 + $0xf8] sm:$0xff] }
 0x133   : > { %v1496_v55 = vsel %vm1014_vm1, %v1440_v58, 0.0  ;;  %v1188_v34 = vadd.f32 %v1100_v29, %v943_v44  ;;  %v1231_v56 = vrot.slane %v1187_v28, 7  ;;  %v1189_v22 = vadd.f32 %v1101_v10, %v944_v42  ;;  %14396 = vst [vmem:[#allocation48_spill] sm:$0xff] %v8651_v46 }
 0x134   : > { %v1569_v20 = vpack.c.bf16 %v1538_v36, %v1537_v40  ;;  %v8618_v25 = vadd.f32 %v1441_v49, %v1362_v50  ;;  %v1102_v61 = vadd.f32 %v943_v44, %v941_v8  ;;  %v1103_v62 = vadd.f32 %v944_v42, %v942_v38 }
 0x135   : > { %v1232_v53 = vrot.slane %v1188_v34, 7  ;;  %v1263_v63 = vsel %vm1247_vm2, %v1230_v26, %v1231_v56  ;;  %v1409_v54 = vrot.slane %v1188_v34, 1  ;;  %v1540_v9 = vadd.f32 %v1496_v55, %v1363_v52 }
 0x136   : > { %v1320_v14 = vsel %vm1019_vm0, %v1263_v63, 0.0  ;;  %v1410_v59 = vrot.slane %v1189_v22, 1  ;;  %v1190_v1 = vadd.f32 %v1102_v61, %v945_v57  ;;  %v1233_v38 = vrot.slane %v1189_v22, 7 }
 0x137   : > { %6832 = vmatmul.mubr.bf16.gmra.mxu0 %v1566_v6  ;;  %v1262_v6 = vsel %vm1247_vm2, %v1231_v56, %v1232_v53  ;;  %v1364_v13 = vadd.f32 %v1320_v14, %v1187_v28  ;;  %v1439_v8 = vsel %vm1424_vm3, %v1408_v43, %v1409_v54  ;;  %v1104_v28 = vadd.f32 %v945_v57, %v943_v44 }
 0x138   : > { %6835 = vmatprep.mubr.bf16.mxu0 %v1567_v0  ;;  %v1191_v0 = vadd.f32 %v1103_v62, %v946_v60  ;;  %v1365_v15 = vadd.f32 %v1262_v6, %v1188_v34  ;;  %v1438_v16 = vsel %vm1424_vm3, %v1409_v54, %v1410_v59  ;;  %v1234_v31 = vrot.slane %v1190_v1, 7 }
 0x139   : > { %v1498_v32 = vsel %vm1014_vm1, %v1438_v16, 0.0  ;;  %v1541_v17 = vadd.f32 %v1439_v8, %v1364_v13  ;;  %v1411_v18 = vrot.slane %v1190_v1, 1  ;;  %v1261_v24 = vsel %vm1247_vm2, %v1232_v53, %v1233_v38 }
 0x13a   : > { %v1412_v19 = vrot.slane %v1191_v0, 1  ;;  %v1542_v48 = vadd.f32 %v1498_v32, %v1365_v15  ;;  %v1260_v21 = vsel %vm1247_vm2, %v1233_v38, %v1234_v31  ;;  %v1322_v29 = vsel %vm1019_vm0, %v1261_v24, 0.0 }
 0x13b   : > { %v1367_v7 = vadd.f32 %v1260_v21, %v1190_v1  ;;  %v1437_v23 = vsel %vm1424_vm3, %v1410_v59, %v1411_v18  ;;  %v1570_v39 = vpack.c.bf16 %v1540_v9, %v8618_v25  ;;  %v1366_v30 = vadd.f32 %v1322_v29, %v1189_v22 }
 0x13c   : > { %v1436_v37 = vsel %vm1424_vm3, %v1411_v18, %v1412_v19  ;;  %v1105_v33 = vadd.f32 %v946_v60, %v944_v42  ;;  %v1571_v40 = vpack.c.bf16 %v1542_v48, %v1541_v17  ;;  %v1192_v41 = vadd.f32 %v1104_v28, %v947_v27 }
 0x13d   : > { %v1500_v26 = vsel %vm1014_vm1, %v1436_v37, 0.0  ;;  %v1235_v43 = vrot.slane %v1191_v0, 7  ;;  %v1106_v44 = vadd.f32 %v947_v27, %v945_v57  ;;  %v1543_v36 = vadd.f32 %v1437_v23, %v1366_v30 }
 0x13e   : > { %v1544_v51 = vadd.f32 %v1500_v26, %v1367_v7  ;;  %v1193_v47 = vadd.f32 %v1105_v33, %v8645_v45  ;;  %v1107_v49 = vadd.f32 %v8645_v45, %v946_v60  ;;  %v1236_v50 = vrot.slane %v1192_v41, 7 }
 0x13f   : > { %6836 = vmatmul.mubr.bf16.gmra.mxu0 %v1568_v35  ;;  %v1259_v52 = vsel %vm1247_vm2, %v1234_v31, %v1235_v43  ;;  %v1413_v58 = vrot.slane %v1192_v41, 1  ;;  %v1194_v42 = vadd.f32 %v1106_v44, %v8651_v46  ;;  %v1108_v34 = vadd.f32 %v8651_v46, %v947_v27 }
 0x140   : > { %6839 = vmatprep.mubr.bf16.mxu0 %v1569_v20  ;;  %v1324_v10 = vsel %vm1019_vm0, %v1259_v52, 0.0  ;;  %v1414_v35 = vrot.slane %v1193_v47, 1  ;;  %v1237_v55 = vrot.slane %v1193_v47, 7  ;;  %v1258_v56 = vsel %vm1247_vm2, %v1235_v43, %v1236_v50 }
 0x141   : > { %v1368_v57 = vadd.f32 %v1324_v10, %v1191_v0  ;;  %v1435_v20 = vsel %vm1424_vm3, %v1412_v19, %v1413_v58  ;;  %v1238_v25 = vrot.slane %v1194_v42, 7  ;;  %v1369_v22 = vadd.f32 %v1258_v56, %v1192_v41  ;;  %v7099_v56 = vld [vmem:[#allocation24 + $0x18] sm:$0xff]  }
 0x142   : > { %v1434_v60 = vsel %vm1424_vm3, %v1413_v58, %v1414_v35  ;;  %v1257_v61 = vsel %vm1247_vm2, %v1236_v50, %v1237_v55  ;;  %v1415_v53 = vrot.slane %v1194_v42, 1  ;;  %v1416_v59 = vrot.slane %v1107_v49, 1 }
 0x143   : > { %v1502_v63 = vsel %vm1014_vm1, %v1434_v60, 0.0  ;;  %v1326_v54 = vsel %vm1019_vm0, %v1257_v61, 0.0  ;;  %v1545_v62 = vadd.f32 %v1435_v20, %v1368_v57  ;;  %v1256_v14 = vsel %vm1247_vm2, %v1237_v55, %v1238_v25  ;;  %v7096_v55 = vld [vmem:[#allocation24 + $0x30] sm:$0xff]  }
 0x144   : > { %v1546_v9 = vadd.f32 %v1502_v63, %v1369_v22  ;;  %v1239_v1 = vrot.slane %v1107_v49, 7  ;;  %v1240_v6 = vrot.slane %v1108_v34, 7  ;;  %v1417_v13 = vrot.slane %v1108_v34, 1  ;;  %v7100_v57 = vld [vmem:[#allocation24 + $0x10] sm:$0xff]   ;;  %v7101_v22 = vld [vmem:[#allocation24 + $0x8] sm:$0xff]   ;;  %v7102_v63 = vld [vmem:[#allocation24] sm:$0xff]  }
 0x145   : > { %v1572_v8 = vpack.c.bf16 %v1544_v51, %v1543_v36  ;;  %v1370_v0 = vadd.f32 %v1326_v54, %v1193_v47  ;;  %v1432_v15 = vsel %vm1424_vm3, %v1415_v53, %v1416_v59  ;;  %v1418_v16 = vrot.slane %v8645_v45, 1 }
 0x146   : > { %v1371_v38 = vadd.f32 %v1256_v14, %v1194_v42  ;;  %v1433_v31 = vsel %vm1424_vm3, %v1414_v35, %v1415_v53  ;;  %v1254_v32 = vsel %vm1247_vm2, %v1239_v1, %v1240_v6  ;;  %v1255_v17 = vsel %vm1247_vm2, %v1238_v25, %v1239_v1  ;;  %v7095_v35 = vld [vmem:[#allocation24 + $0x38] sm:$0xff]   ;;  %v8714_v53 = vld [vmem:[#allocation12] ss:$0 sm:$0xff] }
 0x147   : > { %6840 = vmatmul.mubr.bf16.gmra.mxu0 %v1570_v39  ;;  %v1573_v18 = vpack.c.bf16 %v1546_v9, %v1545_v62  ;;  %v1504_v19 = vsel %vm1014_vm1, %v1432_v15, 0.0  ;;  %v1328_v48 = vsel %vm1019_vm0, %v1255_v17, 0.0  ;;  %v1430_v21 = vsel %vm1424_vm3, %v1417_v13, %v1418_v16  ;;  %6859 = vmatprep.subr.bf16.mxu1 %v7095_v35 }
 0x148   : > { %6843 = vmatprep.mubr.bf16.mxu0 %v1571_v40  ;;  %v1372_v24 = vadd.f32 %v1328_v48, %v1107_v49  ;;  %v1373_v27 = vadd.f32 %v1254_v32, %v1108_v34  ;;  %v1241_v28 = vrot.slane %v8645_v45, 7  ;;  %v13676_v29 = vrot.slane %v8651_v46, 7  ;;  %6860 = vmatpush3.bf16.msra.mxu1 %v7095_v35  ;;  %v7098_v34 = vld [vmem:[#allocation24 + $0x20] sm:$0xff]  }
 0x149   : > { %v1431_v7 = vsel %vm1424_vm3, %v1416_v59, %v1417_v13  ;;  %v1506_v37 = vsel %vm1014_vm1, %v1430_v21, 0.0  ;;  %v1419_v23 = vrot.slane %v8651_v46, 1  ;;  %v1547_v30 = vadd.f32 %v1433_v31, %v1370_v0  ;;  %6861 = vmatprep.subr.bf16.mxu1 %v7096_v55 }
 0x14a   : > { %v1253_v39 = vsel %vm1247_vm2, %v1240_v6, %v1241_v28  ;;  %v1548_v26 = vadd.f32 %v1504_v19, %v1371_v38  ;;  %v1549_v33 = vadd.f32 %v1431_v7, %v1372_v24  ;;  %v1550_v40 = vadd.f32 %v1506_v37, %v1373_v27 }
 0x14b   : > { %v1252_v41 = vsel %vm1247_vm2, %v1241_v28, %v13676_v29  ;;  %v1330_v43 = vsel %vm1019_vm0, %v1253_v39, 0.0  ;;  %v1428_v44 = vsel %vm1424_vm3, %v1419_v23, %v8331_v4  ;;  %v1429_v50 = vsel %vm1424_vm3, %v1418_v16, %v1419_v23 }
 0x14c   : > { %v1574_v36 = vpack.c.bf16 %v1548_v26, %v1547_v30  ;;  %v1374_v51 = vadd.f32 %v1330_v43, %v8645_v45  ;;  %v1375_v47 = vadd.f32 %v1252_v41, %v8651_v46  ;;  %v1575_v49 = vpack.c.bf16 %v1550_v40, %v1549_v33  ;;  %6862 = vmatpush3.bf16.msra.mxu1 %v7096_v55  ;;  %v7097_v45 = vld [vmem:[#allocation24 + $0x28] sm:$0xff]  }
 0x14d   : > { %v1508_v52 = vsel %vm1014_vm1, %v1428_v44, 0.0  ;;  %6863 = vmatprep.subr.bf16.mxu1 %v7097_v45  ;;  %vm3071_vm4 = vcmp.lt.s32.totalorder %v8329_v3, 2  ;;  %vm3532_vm5 = vcmp.lt.s32.totalorder %v8329_v3, 6  ;;  %vm1021_vm6 = vcmp.ge.s32.totalorder %v8329_v3, 2 }
 0x14e   : > { %v1551_v58 = vadd.f32 %v1429_v50, %v1374_v51  ;;  %v1552_v42 = vadd.f32 %v1508_v52, %v1375_v47  ;;  %vm4292_vm7 = vcmp.lt.s32.totalorder %v8329_v3, 3  ;;  %vm1023_vm8 = vcmp.ge.s32.totalorder %v8329_v3, 3 }
 0x14f   : > { %6844 = vmatmul.mubr.bf16.gmra.mxu0 %v1572_v8  ;;  %vm4939_vm9 = vcmp.lt.s32.totalorder %v8329_v3, 5 }
 0x150   : > { %6847 = vmatprep.mubr.bf16.mxu0 %v1573_v18  ;;  %v1576_v10 = vpack.c.bf16 %v1552_v42, %v1551_v58  ;;  %6864 = vmatpush3.bf16.msra.mxu1 %v7097_v45 }
 0x151   : > { %6865 = vmatprep.subr.bf16.mxu1 %v7098_v34 }
 0x154   : > { %6866 = vmatpush3.bf16.msra.mxu1 %v7098_v34 }
 0x155   : > { %6867 = vmatprep.subr.bf16.mxu1 %v7099_v56 }
 0x157   : > { %6848 = vmatmul.mubr.bf16.gmra.mxu0 %v1574_v36 }
 0x158   : > { %6851 = vmatprep.mubr.bf16.mxu0 %v1575_v49  ;;  %6868 = vmatpush3.bf16.msra.mxu1 %v7099_v56 }
 0x159   : > { %6869 = vmatprep.subr.bf16.mxu1 %v7100_v57 }
 0x15c   : > { %6870 = vmatpush3.bf16.msra.mxu1 %v7100_v57 }
 0x15d   : > { %6871 = vmatprep.subr.bf16.mxu1 %v7101_v22 }
 0x15f   : > { %6852 = vmatmul.mubr.bf16.gmra.mxu0 %v1576_v10 }
 0x160   : > { %6872 = vmatpush3.bf16.msra.mxu1 %v7101_v22 }
 0x161   : > { %6873 = vmatprep.subr.bf16.mxu1 %v7102_v63 }
 0x164   : > { %6874 = vmatpush3.bf16.msra.mxu1 %v7102_v63 }
 0x1d7   : > { %v6817_v20 = vpop.f32.mrf.mxu0 }
 0x1d9   : > { %v1684_v25 = vpop.f32.mrf.mxu0 }
 0x1db   : > { %v6818_v60 = vpop.f32.mrf.mxu0 }
 0x1dd   : > { %v1687_v61 = vpop.f32.mrf.mxu0 }
 0x1df   : > { %v6821_v54 = vpop.f32.mrf.mxu0 }
 0x1e0   : > { %v8717_v62 = vadd.f32 %v6821_v54, %v8714_v53 }
 0x1e1   : > { %v1700_v9 = vpop.f32.mrf.mxu0 }
 0x1e2   : > { %v1865_v14 = vsub.f32 0.0, %v8717_v62 }
 0x1e3   : > { %v6822_v59 = vpop.f32.mrf.mxu0 }
 0x1e4   : > { %v1909_v1 = vmin.f32 %v1865_v14, 80.0  ;;  %v8721_v6 = vadd.f32 %v6822_v59, %v8714_v53 }
 0x1e5   : > { %v1703_v13 = vpop.f32.mrf.mxu0 }
 0x1e6   : > { %v1959_v8 = vmul.f32 1.442695, %v1909_v1  ;;  %v1866_v0 = vsub.f32 0.0, %v8721_v6  ;;  %v8725_v15 = vadd.f32 %v8714_v53, %v1703_v13 }
 0x1e7   : > { %v6825_v16 = vpop.f32.mrf.mxu0 }
 0x1e8   : > { %7103 = vpow2.f32 %v1959_v8  ;;  %v1910_v38 = vmin.f32 %v1866_v0, 80.0  ;;  %v1864_v31 = vsub.f32 0.0, %v8725_v15  ;;  %v8729_v32 = vadd.f32 %v6825_v16, %v8714_v53 }
 0x1e9   : > { %v1716_v17 = vpop.f32.mrf.mxu0 }
 0x1ea   : > { %v1961_v18 = vmul.f32 1.442695, %v1910_v38  ;;  %v1908_v19 = vmin.f32 %v1864_v31, 80.0  ;;  %v1869_v48 = vsub.f32 0.0, %v8729_v32  ;;  %v8733_v21 = vadd.f32 %v8714_v53, %v1716_v17 }
 0x1eb   : > { %v6826_v24 = vpop.f32.mrf.mxu0 }
 0x1ec   : > { %7105 = vpow2.f32 %v1961_v18  ;;  %v1957_v27 = vmul.f32 1.442695, %v1908_v19  ;;  %v1913_v28 = vmin.f32 %v1869_v48, 80.0  ;;  %v1867_v7 = vsub.f32 0.0, %v8733_v21  ;;  %v6703_v48 = vld [vmem:[%s13643_s11] ss:$0 sm:$0xff] }
 0x1ed   : > { %v8737_v37 = vadd.f32 %v6826_v24, %v8714_v53  ;;  %v1719_v23 = vpop.f32.mrf.mxu0 }
 0x1ee   : > { %7107 = vpow2.f32 %v1957_v27  ;;  %v1967_v39 = vmul.f32 1.442695, %v1913_v28  ;;  %v1911_v30 = vmin.f32 %v1867_v7, 80.0  ;;  %v8740_v26 = vadd.f32 %v8714_v53, %v1719_v23 }
 0x1ef   : > { %v1870_v33 = vsub.f32 0.0, %v8737_v37  ;;  %v6829_v40 = vpop.f32.mrf.mxu0 }
 0x1f0   : > { %7109 = vpow2.f32 %v1967_v39  ;;  %v1963_v41 = vmul.f32 1.442695, %v1911_v30  ;;  %v1868_v43 = vsub.f32 0.0, %v8740_v26  ;;  %v8745_v44 = vadd.f32 %v6829_v40, %v8714_v53 }
 0x1f1   : > { %v1914_v36 = vmin.f32 %v1870_v33, 80.0  ;;  %v1732_v51 = vpop.f32.mrf.mxu0  ;;  %v6704_v33 = vld [vmem:[%s13643_s11 + $0x1] ss:$0 sm:$0xff] }
 0x1f2   : > { %7111 = vpow2.f32 %v1963_v41  ;;  %v1912_v47 = vmin.f32 %v1868_v43, 80.0  ;;  %v1873_v49 = vsub.f32 0.0, %v8745_v44  ;;  %v8749_v50 = vadd.f32 %v8714_v53, %v1732_v51 }
 0x1f3   : > { %v1969_v52 = vmul.f32 1.442695, %v1914_v36  ;;  %v6830_v58 = vpop.f32.mrf.mxu0  ;;  %v8781_v51 = vmul.f32 0.0, %v6703_v48 }
 0x1f4   : > { %14397 = vst [vmem:[#allocation49_spill] sm:$0xff] %v8749_v50  ;;  %v1965_v42 = vmul.f32 1.442695, %v1912_v47  ;;  %v1917_v10 = vmin.f32 %v1873_v49, 80.0  ;;  %v1871_v35 = vsub.f32 0.0, %v8749_v50  ;;  %v8753_v55 = vadd.f32 %v6830_v58, %v8714_v53 }
 0x1f5   : > { %v7104_v45 = vpop.eup %7103  ;;  %7113 = vpow2.f32 %v1969_v52  ;;  %v1735_v34 = vpop.f32.mrf.mxu0  ;;  %14404 = vst [vmem:[#allocation56_spill] sm:$0xff] %v8781_v51 }
 0x1f6   : > { %14398 = vst [vmem:[#allocation50_spill] sm:$0xff] %v8753_v55  ;;  %v2041_v56 = vadd.f32 1.0, %v7104_v45  ;;  %7115 = vpow2.f32 %v1965_v42  ;;  %v1975_v57 = vmul.f32 1.442695, %v1917_v10  ;;  %v1915_v20 = vmin.f32 %v1871_v35, 80.0 }
 0x1f7   : > { %v1874_v25 = vsub.f32 0.0, %v8753_v55  ;;  %v8757_v22 = vadd.f32 %v8714_v53, %v1735_v34  ;;  %v6833_v60 = vpop.f32.mrf.mxu0  ;;  %v3900_v35 = vmul.f32 0.0, %v6704_v33 }
 0x1f8   : > { %7117 = vrcp.f32 %v2041_v56  ;;  %v1971_v61 = vmul.f32 1.442695, %v1915_v20  ;;  %v8760_v63 = vadd.f32 %v6833_v60, %v8714_v53 }
 0x1f9   : > { %14399 = vst [vmem:[#allocation51_spill] sm:$0xff] %v8757_v22  ;;  %v7106_v54 = vpop.eup %7105  ;;  %7119 = vpow2.f32 %v1975_v57  ;;  %v1918_v9 = vmin.f32 %v1874_v25, 80.0  ;;  %v1872_v14 = vsub.f32 0.0, %v8757_v22  ;;  %v1748_v59 = vpop.f32.mrf.mxu0  ;;  %v6693_v57 = vld [vmem:[#allocation16] ss:$0 sm:$0xff] }
 0x1fa   : > { %14400 = vst [vmem:[#allocation52_spill] sm:$0xff] %v8760_v63  ;;  %v2042_v1 = vadd.f32 1.0, %v7106_v54  ;;  %7121 = vpow2.f32 %v1971_v61  ;;  %v1877_v13 = vsub.f32 0.0, %v8760_v63  ;;  %v8765_v8 = vadd.f32 %v8714_v53, %v1748_v59  ;;  %v6713_v22 = vld [vmem:[#allocation21 + $0x4] ss:$0 sm:$0xff] }
 0x1fb   : > { %v7108_v0 = vpop.eup %7107  ;;  %v1977_v16 = vmul.f32 1.442695, %v1918_v9  ;;  %v1916_v38 = vmin.f32 %v1872_v14, 80.0  ;;  %v6834_v31 = vpop.f32.mrf.mxu0  ;;  %v8791_v9 = vld [vmem:[#allocation13 + $0x1] ss:$0 sm:$0xff] }
 0x1fc   : > { %14401 = vst [vmem:[#allocation53_spill] sm:$0xff] %v8765_v8  ;;  %7123 = vrcp.f32 %v2042_v1  ;;  %v2040_v17 = vadd.f32 1.0, %v7108_v0  ;;  %v1921_v18 = vmin.f32 %v1877_v13, 80.0  ;;  %v1875_v19 = vsub.f32 0.0, %v8765_v8  ;;  %14407 = vst [vmem:[#allocation59_spill] sm:$0xff] %v8791_v9 }
 0x1fd   : > { %v7110_v24 = vpop.eup %7109  ;;  %7125 = vpow2.f32 %v1977_v16  ;;  %v1973_v27 = vmul.f32 1.442695, %v1916_v38  ;;  %v8772_v28 = vadd.f32 %v6834_v31, %v8714_v53  ;;  %v1751_v7 = vpop.f32.mrf.mxu0  ;;  %v8802_v16 = vld [vmem:[%s13641_s9 + $0x2] ss:$0 sm:$0xff] }
 0x1fe   : > { %7127 = vrcp.f32 %v2040_v17  ;;  %v2045_v23 = vadd.f32 1.0, %v7110_v24  ;;  %v1983_v39 = vmul.f32 1.442695, %v1921_v18  ;;  %v1919_v30 = vmin.f32 %v1875_v19, 80.0  ;;  %14409 = vst [vmem:[#allocation61_spill] sm:$0xff] %v8802_v16 }
 0x1ff   : > { %14402 = vst [vmem:[#allocation54_spill] sm:$0xff] %v8772_v28  ;;  %v7112_v40 = vpop.eup %7111  ;;  %7129 = vpow2.f32 %v1973_v27  ;;  %v1878_v41 = vsub.f32 0.0, %v8772_v28  ;;  %v8779_v43 = vadd.f32 %v8714_v53, %v1751_v7  ;;  %v6837_v36 = vpop.f32.mrf.mxu0  ;;  %v8804_v17 = vmul.f32 0.0, %v6693_v57  ;;  %v6712_v24 = vld [vmem:[#allocation21 + $0x3] ss:$0 sm:$0xff] }
 0x200   : > { %7131 = vrcp.f32 %v2045_v23  ;;  %v2043_v47 = vadd.f32 1.0, %v7112_v40  ;;  %v1979_v49 = vmul.f32 1.442695, %v1919_v30  ;;  %v8784_v52 = vadd.f32 %v6837_v36, %v8714_v53 }
 0x201   : > { %14403 = vst [vmem:[#allocation55_spill] sm:$0xff] %v8779_v43  ;;  %7133 = vpow2.f32 %v1983_v39  ;;  %v1922_v58 = vmin.f32 %v1878_v41, 80.0  ;;  %v1876_v42 = vsub.f32 0.0, %v8779_v43  ;;  %v1764_v10 = vpop.f32.mrf.mxu0  ;;  %14410 = vst [vmem:[#allocation62_spill] sm:$0xff] %v8804_v17  ;;  %v8807_v18 = vadd.f32 %v3900_v35, %v8781_v51  ;;  %v6711_v43 = vld [vmem:[#allocation21 + $0x2] ss:$0 sm:$0xff] }
 0x202   : > { %14405 = vst [vmem:[#allocation57_spill] sm:$0xff] %v8784_v52  ;;  %v7114_v45 = vpop.eup %7113  ;;  %7135 = vrcp.f32 %v2043_v47  ;;  %v1881_v34 = vsub.f32 0.0, %v8784_v52  ;;  %v8789_v56 = vadd.f32 %v8714_v53, %v1764_v10 }
 0x203   : > { %v7116_v20 = vpop.eup %7115  ;;  %v2046_v25 = vadd.f32 1.0, %v7114_v45  ;;  %7137 = vpow2.f32 %v1979_v49  ;;  %v1985_v60 = vmul.f32 1.442695, %v1922_v58  ;;  %v1920_v61 = vmin.f32 %v1876_v42, 80.0  ;;  %v6838_v54 = vpop.f32.mrf.mxu0  ;;  %14411 = vst [vmem:[#allocation63_spill] sm:$0xff] %v8807_v18 }
 0x204   : > { %14406 = vst [vmem:[#allocation58_spill] sm:$0xff] %v8789_v56  ;;  %v2044_v14 = vadd.f32 1.0, %v7116_v20  ;;  %v1925_v59 = vmin.f32 %v1881_v34, 80.0  ;;  %v1879_v1 = vsub.f32 0.0, %v8789_v56  ;;  %v8797_v13 = vadd.f32 %v6838_v54, %v8714_v53 }
 0x205   : > { %v7118_v0 = vpop.eup %7117  ;;  %7139 = vrcp.f32 %v2046_v25  ;;  %v1981_v38 = vmul.f32 1.442695, %v1920_v61  ;;  %v1767_v31 = vpop.f32.mrf.mxu0  ;;  %v8850_v61 = vld [vmem:[%s13641_s9 + $0x1] ss:$0 sm:$0xff] }
 0x206   : > { %14408 = vst [vmem:[#allocation60_spill] sm:$0xff] %v8797_v13  ;;  %v7120_v19 = vpop.eup %7119  ;;  %v8810_v48 = vmul.f32 %v7118_v0, %v8717_v62  ;;  %7141 = vrcp.f32 %v2044_v14  ;;  %v8814_v27 = vmul.f32 1.442695, %v1925_v59  ;;  %v1923_v7 = vmin.f32 %v1879_v1, 80.0  ;;  %14413 = vst [vmem:[#allocation65_spill] sm:$0xff] %v8850_v61 }
 0x207   : > { %v7122_v23 = vpop.eup %7121  ;;  %v2049_v39 = vadd.f32 1.0, %v7120_v19  ;;  %7143 = vpow2.f32 %v1985_v60  ;;  %v1882_v30 = vsub.f32 0.0, %v8797_v13  ;;  %v8818_v33 = vadd.f32 %v8714_v53, %v1767_v31  ;;  %v8820_v40 = vpop.f32.mrf.mxu0 }
 0x208   : > { %14412 = vst [vmem:[#allocation64_spill] sm:$0xff] %v8810_v48  ;;  %v2173_v62 = vrot.slane %v8810_v48, 7  ;;  %v8825_v41 = vmul.f32 %v8791_v9, %v8810_v48  ;;  %v2447_v36 = vrot.slane %v8810_v48, 1  ;;  %v3033_v47 = vrot.slane %v8810_v48, 6 }
 0x209   : > { %v7124_v49 = vpop.eup %7123  ;;  %v8832_v58 = vmul.f32 %v8802_v16, %v8810_v48  ;;  %v3494_v42 = vrot.slane %v8810_v48, 2  ;;  %v4254_v10 = vrot.slane %v8810_v48, 5  ;;  %v8837_v35 = vmul.f32 %v6712_v24, %v8810_v48  ;;  %v8839_v45 = vpop.f32.mrf.mxu0 }
 0x20a   : > { %v7126_v34 = vpop.eup %7125  ;;  %v8842_v57 = vmul.f32 %v7124_v49, %v8721_v6  ;;  %7145 = vrcp.f32 %v2049_v39  ;;  %v8845_v25 = vadd.f32 1.0, %v7122_v23  ;;  %v8854_v14 = vmul.f32 1.442695, %v1923_v7  ;;  %v8876_v39 = vld [vmem:[%s13641_s9] ss:$0 sm:$0xff] }
 0x20b   : > { %v7128_v60 = vpop.eup %7127  ;;  %v8852_v54 = vadd.f32 1.0, %v7126_v34  ;;  %7147 = vpow2.f32 %v1981_v38  ;;  %v8856_v59 = vmin.f32 %v1882_v30, 80.0  ;;  %v8858_v6 = vpop.f32.mrf.mxu0  ;;  %v8869_v38 = vld [vmem:[%s13641_s9 + $0x3] ss:$0 sm:$0xff]  ;;  %14415 = vst [vmem:[#allocation67_spill] sm:$0xff] %v8876_v39 }
 0x20c   : > { %v8860_v1 = vpop.eup %7129  ;;  %v2128_v0 = vmul.f32 %v7128_v60, %v8725_v15  ;;  %v13681_v31 = vrot.slane %v8842_v57, 7  ;;  %v13685_v19 = vrot.slane %v8842_v57, 1  ;;  %14414 = vst [vmem:[#allocation66_spill] sm:$0xff] %v8869_v38  ;;  %v3314_v15 = vmul.f32 %v8802_v16, %v8842_v57  ;;  %v8884_v49 = vld [vmem:[%s13641_s9 + $0x4] ss:$0 sm:$0xff] }
 0x20d   : > { %v8871_v7 = vpop.eup %7131  ;;  %14416 = vst [vmem:[#allocation68_spill] sm:$0xff] %v8884_v49  ;;  %v8888_v60 = vmul.f32 %v6712_v24, %v8842_v57  ;;  %v8891_v29 = vpop.f32.mrf.mxu0  ;;  %v14417_v11 = vrot.slane %v8842_v57, 6  ;;  %v14418_v2 = vrot.slane %v8842_v57, 2  ;;  %7149 = vrcp.f32 %v8845_v25 }
 0x20e   : > { %v8893_v20 = vpop.eup %7133  ;;  %v2172_v23 = vrot.slane %v2128_v0, 7  ;;  %v8899_v30 = vsel %vm1247_vm2, %v2173_v62, %v13681_v31  ;;  %v8905_v34 = vsel %vm1424_vm3, %v2447_v36, %v13685_v19  ;;  %v3032_v24 = vrot.slane %v2128_v0, 6 }
 0x20f   : > { %v7136_v12 = vpop.eup %7135  ;;  %v3108_v4 = vsel %vm3071_vm4, %v3033_v47, %v14417_v11  ;;  %v3221_v46 = vmul.f32 %v8850_v61, %v8899_v30  ;;  %v3406_v31 = vmul.f32 %v8869_v38, %v8905_v34  ;;  %v3569_v51 = vsel %vm3532_vm5, %v3494_v42, %v14418_v2  ;;  %v8919_v36 = vpop.f32.mrf.mxu0  ;;  %v6709_v38 = vld [vmem:[#allocation21] ss:$0 sm:$0xff]  ;;  %v8931_v2 = vld [vmem:[#allocation13] ss:$0 sm:$0xff] }
 0x210   : > { %v8921_v19 = vpop.eup %7137  ;;  %v2248_v18 = vsel %vm1247_vm2, %v2172_v23, %v2173_v62  ;;  %v3109_v11 = vsel %vm3071_vm4, %v3032_v24, %v3033_v47  ;;  %v3172_v16 = vmul.f32 %v8876_v39, %v3108_v4  ;;  %v3632_v17 = vmul.f32 %v8884_v49, %v3569_v51  ;;  %14419 = vst [vmem:[#allocation69_spill] sm:$0xff] %v8931_v2 }
 0x211   : > { %v2261_v9 = vsel %vm1019_vm0, %v2248_v18, 0.0  ;;  %v3122_v42 = vsel %vm1021_vm6, %v3109_v11, 0.0  ;;  %v4253_v13 = vrot.slane %v2128_v0, 5  ;;  %v14420_v62 = vrot.slane %v8842_v57, 5  ;;  %v8939_v23 = vpop.f32.mrf.mxu0 }
 0x212   : > { %14421 = vst [vmem:[#allocation70_spill] sm:$0xff] %v8939_v23  ;;  %v7140_v24 = vpop.eup %7139  ;;  %v2310_v49 = vmul.f32 %v8931_v2, %v2261_v9  ;;  %v3171_v56 = vmul.f32 %v8876_v39, %v3122_v42  ;;  %v3220_v18 = vmul.f32 %v8850_v61, %v2261_v9  ;;  %v3265_v52 = vadd.f32 %v3221_v46, %v3172_v16 }
 0x213   : > { %v4329_v47 = vsel %vm4292_vm7, %v4254_v10, %v14420_v62  ;;  %v7142_v28 = vpop.eup %7141  ;;  %v4330_v0 = vsel %vm4292_vm7, %v4253_v13, %v4254_v10  ;;  %v4441_v8 = vmul.f32 %v6710_v5, %v3122_v42  ;;  %v4442_v63 = vmul.f32 %v6710_v5, %v3108_v4  ;;  %v6714_v62 = vld [vmem:[#allocation21 + $0x5] ss:$0 sm:$0xff]  ;;  %v8946_v55 = vpop.f32.mrf.mxu0 }
 0x214   : > { %v4393_v11 = vmul.f32 %v6709_v38, %v4329_v47  ;;  %v7144_v50 = vpop.eup %7143  ;;  %v8949_v2 = vadd.f32 %v8825_v41, %v2310_v49  ;;  %v3264_v39 = vadd.f32 %v3220_v18, %v3171_v56  ;;  %v8951_v23 = vadd.f32 %v3314_v15, %v3265_v52  ;;  %v6715_v56 = vld [vmem:[#allocation21 + $0x6] ss:$0 sm:$0xff] }
 0x215   : > { %v4343_v46 = vsel %vm1023_vm8, %v4330_v0, 0.0  ;;  %v4534_v13 = vmul.f32 %v6711_v43, %v2261_v9  ;;  %v4535_v10 = vmul.f32 %v6711_v43, %v8899_v30  ;;  %v8956_v4 = vpop.f32.mrf.mxu0  ;;  %v4720_v42 = vmul.f32 %v6713_v22, %v8905_v34 }
 0x216   : > { %v4392_v16 = vmul.f32 %v6709_v38, %v4343_v46  ;;  %v4486_v61 = vadd.f32 %v4442_v63, %v4393_v11  ;;  %v3357_v5 = vadd.f32 %v8832_v58, %v3264_v39  ;;  %v4813_v47 = vmul.f32 %v6714_v62, %v3569_v51 }
 0x217   : > { %v13713_v41 = vrot.slane %v8842_v57, 3  ;;  %v7146_v52 = vpop.eup %7145  ;;  %v8963_v38 = vmul.f32 %v8871_v7, %v8729_v32  ;;  %v8966_v63 = vmul.f32 %v7136_v12, %v8733_v21  ;;  %v8968_v43 = vpop.f32.mrf.mxu0  ;;  %v14424_v22 = vrot.slane %v8810_v48, 3 }
 0x218   : > { %v4485_v15 = vadd.f32 %v4441_v8, %v4392_v16  ;;  %v4579_v49 = vadd.f32 %v4535_v10, %v4486_v61  ;;  %v7148_v9 = vpop.eup %7147  ;;  %v3450_v58 = vadd.f32 %v3406_v31, %v3357_v5  ;;  %v8977_v8 = vmul.f32 %v7140_v24, %v8737_v37 }
 0x219   : > { %14422 = vst [vmem:[#allocation71_spill] sm:$0xff] %v8963_v38  ;;  %14423 = vst [vmem:[#allocation72_spill] sm:$0xff] %v8966_v63  ;;  %v4976_v51 = vsel %vm4939_vm9, %v14424_v22, %v13713_v41  ;;  %v8980_v32 = vmul.f32 %v7142_v28, %v8740_v26  ;;  %v8986_v31 = vmul.f32 %v7146_v52, %v8745_v44  ;;  %v1812_v7 = vpop.f32.mrf.mxu0  ;;  %v2048_v18 = vadd.f32 1.0, %v8860_v1 }
 0x21a   : > { %14425 = vst [vmem:[#allocation73_spill] sm:$0xff] %v8977_v8  ;;  %v4578_v61 = vadd.f32 %v4534_v13, %v4485_v15  ;;  %v8983_v12 = vadd.f32 %v8888_v60, %v4579_v49  ;;  %v5039_v21 = vmul.f32 %v6715_v56, %v4976_v51  ;;  %v8988_v39 = vadd.f32 %v3632_v17, %v3450_v58  ;;  %v14428_v49 = vld [vmem:[#allocation70_spill] sm:$0xff]  ;;  %v14441_v60 = vld [vmem:[#allocation55_spill] sm:$0xff] }
 0x21b   : > { %14426 = vst [vmem:[#allocation74_spill] sm:$0xff] %v8980_v32  ;;  %14427 = vst [vmem:[#allocation75_spill] sm:$0xff] %v8986_v31  ;;  %v2053_v37 = vadd.f32 1.0, %v8893_v20  ;;  %v8997_v0 = vpop.f32.mrf.mxu0  ;;  %7151 = vrcp.f32 %v8852_v54  ;;  %v2051_v44 = vadd.f32 1.0, %v8921_v19  ;;  %v2054_v17 = vadd.f32 1.0, %v7144_v50 }
 0x21c   : > { %v4671_v26 = vadd.f32 %v8837_v35, %v4578_v61  ;;  %v2052_v25 = vadd.f32 1.0, %v7148_v9  ;;  %7153 = vrcp.f32 %v2048_v18  ;;  %v1993_v20 = vmul.f32 1.442695, %v8856_v59 }
 0x21d   : > { %v1880_v35 = vsub.f32 0.0, %v8818_v33  ;;  %v9003_v1 = vpop.f32.mrf.mxu0  ;;  %7155 = vrcp.f32 %v2053_v37  ;;  %v9007_v62 = vadd.f32 %v8820_v40, %v8714_v53  ;;  %v9011_v54 = vadd.f32 %v8714_v53, %v8839_v45 }
 0x21e   : > { %v4764_v11 = vadd.f32 %v4720_v42, %v4671_v26  ;;  %v9015_v50 = vadd.f32 %v8858_v6, %v8714_v53  ;;  %7157 = vrcp.f32 %v2051_v44  ;;  %v9019_v46 = vadd.f32 %v8714_v53, %v8891_v29  ;;  %v7150_v26 = vpop.eup %7149 }
 0x21f   : > { %v1924_v59 = vmin.f32 %v1880_v35, 80.0  ;;  %v9021_v16 = vpop.f32.mrf.mxu0  ;;  %7159 = vrcp.f32 %v2054_v17  ;;  %v1885_v40 = vsub.f32 0.0, %v9007_v62  ;;  %v1883_v13 = vsub.f32 0.0, %v9011_v54 }
 0x220   : > { %v4857_v19 = vadd.f32 %v4813_v47, %v4764_v11  ;;  %v1886_v45 = vsub.f32 0.0, %v9015_v50  ;;  %7161 = vrcp.f32 %v2052_v25  ;;  %v1884_v5 = vsub.f32 0.0, %v9019_v46  ;;  %v14429_v11 = vld [vmem:[#allocation49_spill] sm:$0xff] }
 0x221   : > { %v1989_v6 = vmul.f32 1.442695, %v1924_v59  ;;  %v9029_v42 = vpop.f32.mrf.mxu0  ;;  %7163 = vpow2.f32 %v8814_v27  ;;  %v1929_v29 = vmin.f32 %v1885_v40, 80.0  ;;  %v1927_v47 = vmin.f32 %v1883_v13, 80.0 }
 0x222   : > { %v9026_v10 = vadd.f32 %v5039_v21, %v4857_v19  ;;  %v1930_v56 = vmin.f32 %v1886_v45, 80.0  ;;  %7165 = vpow2.f32 %v8854_v14  ;;  %v1928_v52 = vmin.f32 %v1884_v5, 80.0  ;;  %v14431_v45 = vld [vmem:[#allocation50_spill] sm:$0xff] }
 0x223   : > { %v9035_v15 = vadd.f32 %v8919_v36, %v8714_v53  ;;  %v9039_v9 = vadd.f32 %v8714_v53, %v14428_v49  ;;  %v6854_v58 = vpop.f32.mrf.mxu0  ;;  %7167 = vpow2.f32 %v1993_v20  ;;  %v1999_v22 = vmul.f32 1.442695, %v1929_v29 }
 0x224   : > { %v1995_v51 = vmul.f32 1.442695, %v1927_v47  ;;  %v2001_v61 = vmul.f32 1.442695, %v1930_v56  ;;  %7169 = vpow2.f32 %v1989_v6  ;;  %v1997_v27 = vmul.f32 1.442695, %v1928_v52 }
 0x225   : > { %v1889_v21 = vsub.f32 0.0, %v9035_v15  ;;  %v1887_v14 = vsub.f32 0.0, %v9039_v9  ;;  %7171 = vpow2.f32 %v1999_v22  ;;  %v9045_v36 = vadd.f32 %v8946_v55, %v8714_v53  ;;  %v14433_v47 = vld [vmem:[#allocation51_spill] sm:$0xff] }
 0x226   : > { %v9049_v18 = vadd.f32 %v8714_v53, %v8956_v4  ;;  %v9053_v37 = vadd.f32 %v8968_v43, %v8714_v53  ;;  %7173 = vpow2.f32 %v1995_v51  ;;  %v9056_v25 = vadd.f32 %v8714_v53, %v1812_v7 }
 0x227   : > { %v1933_v44 = vmin.f32 %v1889_v21, 80.0  ;;  %v1931_v17 = vmin.f32 %v1887_v14, 80.0  ;;  %v9059_v20 = vmul.f32 %v7150_v26, %v14429_v11  ;;  %7175 = vpow2.f32 %v2001_v61  ;;  %v14449_v26 = vld [vmem:[#allocation60_spill] sm:$0xff] }
 0x228   : > { %v1890_v55 = vsub.f32 0.0, %v9045_v36  ;;  %v1888_v4 = vsub.f32 0.0, %v9049_v18  ;;  %v7152_v35 = vpop.eup %7151  ;;  %7177 = vpow2.f32 %v1997_v27  ;;  %v1893_v59 = vsub.f32 0.0, %v9053_v37 }
 0x229   : > { %14430 = vst [vmem:[#allocation70_spill] sm:$0xff] %v9059_v20  ;;  %v2007_v19 = vmul.f32 1.442695, %v1933_v44  ;;  %v2003_v43 = vmul.f32 1.442695, %v1931_v17  ;;  %v7154_v40 = vpop.eup %7153  ;;  %v9066_v7 = vmul.f32 %v7152_v35, %v14431_v45  ;;  %v1891_v49 = vsub.f32 0.0, %v9056_v25 }
 0x22a   : > { %v1934_v6 = vmin.f32 %v1890_v55, 80.0  ;;  %v1932_v5 = vmin.f32 %v1888_v4, 80.0  ;;  %v7156_v29 = vpop.eup %7155  ;;  %v9069_v56 = vmul.f32 %v7154_v40, %v14433_v47  ;;  %v1937_v52 = vmin.f32 %v1893_v59, 80.0  ;;  %v14435_v17 = vld [vmem:[#allocation52_spill] sm:$0xff]  ;;  %v14437_v4 = vld [vmem:[#allocation53_spill] sm:$0xff] }
 0x22b   : > { %14432 = vst [vmem:[#allocation49_spill] sm:$0xff] %v9066_v7  ;;  %7179 = vpow2.f32 %v2007_v19  ;;  %v7158_v58 = vpop.eup %7157  ;;  %v9080_v11 = vmul.f32 %v7156_v29, %v14435_v17  ;;  %v14439_v19 = vld [vmem:[#allocation54_spill] sm:$0xff] }
 0x22c   : > { %14434 = vst [vmem:[#allocation50_spill] sm:$0xff] %v9069_v56  ;;  %v7160_v21 = vpop.eup %7159  ;;  %v13714_v14 = vrot.slane %v9069_v56, 7  ;;  %v9083_v35 = vmul.f32 %v7158_v58, %v14437_v4  ;;  %7181 = vpow2.f32 %v2003_v43  ;;  %v2009_v40 = vmul.f32 1.442695, %v1934_v6 }
 0x22d   : > { %14436 = vst [vmem:[#allocation51_spill] sm:$0xff] %v9080_v11  ;;  %v7162_v55 = vpop.eup %7161  ;;  %v9086_v59 = vmul.f32 %v7160_v21, %v14439_v19  ;;  %v2005_v21 = vmul.f32 1.442695, %v1932_v5  ;;  %v2015_v22 = vmul.f32 1.442695, %v1937_v52  ;;  %v9109_v5 = vadd.f32 %v8997_v0, %v8714_v53  ;;  %v14474_v11 = vld [vmem:[#allocation62_spill] sm:$0xff] }
 0x22e   : > { %14438 = vst [vmem:[#allocation52_spill] sm:$0xff] %v9083_v35  ;;  %v7164_v45 = vpop.eup %7163  ;;  %v9101_v61 = vmul.f32 %v7162_v55, %v14441_v60  ;;  %7183 = vpow2.f32 %v2009_v40  ;;  %v9113_v52 = vadd.f32 %v8714_v53, %v9003_v1  ;;  %v1831_v40 = vpop.f32.mrf.mxu0  ;;  %v9123_v0 = vadd.f32 %v8714_v53, %v9029_v42 }
 0x22f   : > { %14440 = vst [vmem:[#allocation53_spill] sm:$0xff] %v9086_v59  ;;  %v7166_v29 = vpop.eup %7165  ;;  %v2057_v17 = vadd.f32 1.0, %v7164_v45  ;;  %v1935_v45 = vmin.f32 %v1891_v49, 80.0  ;;  %v2175_v42 = vrot.slane %v8966_v63, 7 }
 0x230   : > { %v7168_v43 = vpop.eup %7167  ;;  %14442 = vst [vmem:[#allocation54_spill] sm:$0xff] %v9101_v61  ;;  %v2055_v51 = vadd.f32 1.0, %v7166_v29  ;;  %v1892_v49 = vsub.f32 0.0, %v9113_v52 }
 0x231   : > { %v7170_v24 = vpop.eup %7169  ;;  %v2058_v58 = vadd.f32 1.0, %v7168_v43  ;;  %7185 = vrcp.f32 %v2057_v17  ;;  %v2011_v27 = vmul.f32 1.442695, %v1935_v45  ;;  %v9127_v17 = vadd.f32 %v8714_v53, %v1831_v40 }
 0x232   : > { %v7172_v28 = vpop.eup %7171  ;;  %v2056_v4 = vadd.f32 1.0, %v7170_v24  ;;  %7187 = vrcp.f32 %v2055_v51 }
 0x233   : > { %v7174_v41 = vpop.eup %7173  ;;  %v2061_v60 = vadd.f32 1.0, %v7172_v28  ;;  %7189 = vrcp.f32 %v2058_v58  ;;  %v9117_v28 = vadd.f32 %v9021_v16, %v8714_v53  ;;  %v1936_v58 = vmin.f32 %v1892_v49, 80.0 }
 0x234   : > { %v7176_v13 = vpop.eup %7175  ;;  %v2059_v55 = vadd.f32 1.0, %v7174_v41  ;;  %7191 = vrcp.f32 %v2056_v4  ;;  %v1895_v4 = vsub.f32 0.0, %v9123_v0  ;;  %v1896_v47 = vsub.f32 0.0, %v9127_v17 }
 0x235   : > { %v7178_v29 = vpop.eup %7177  ;;  %v2062_v24 = vadd.f32 1.0, %v7176_v13  ;;  %v1894_v13 = vsub.f32 0.0, %v9109_v5  ;;  %7193 = vrcp.f32 %v2061_v60  ;;  %v1897_v51 = vsub.f32 0.0, %v9117_v28 }
 0x236   : > { %v2060_v43 = vadd.f32 1.0, %v7178_v29  ;;  %7195 = vrcp.f32 %v2059_v55  ;;  %v2013_v19 = vmul.f32 1.442695, %v1936_v58  ;;  %v1939_v53 = vmin.f32 %v1895_v4, 80.0 }
 0x237   : > { %v1938_v16 = vmin.f32 %v1894_v13, 80.0  ;;  %7197 = vrcp.f32 %v2062_v24  ;;  %v1941_v29 = vmin.f32 %v1897_v51, 80.0  ;;  %v1940_v40 = vmin.f32 %v1896_v47, 80.0 }
 0x238   : > { %v7180_v41 = vpop.eup %7179  ;;  %7199 = vrcp.f32 %v2060_v43  ;;  %v2176_v55 = vrot.slane %v8980_v32, 7  ;;  %v2177_v13 = vrot.slane %v8963_v38, 7  ;;  %v2178_v24 = vrot.slane %v8977_v8, 7 }
 0x239   : > { %v2065_v1 = vadd.f32 1.0, %v7180_v41  ;;  %v7182_v45 = vpop.eup %7181  ;;  %v2017_v41 = vmul.f32 1.442695, %v1938_v16  ;;  %v2023_v6 = vmul.f32 1.442695, %v1941_v29  ;;  %v2179_v43 = vrot.slane %v9059_v20, 7 }
 0x23a   : > { %v2063_v60 = vadd.f32 1.0, %v7182_v45  ;;  %v2019_v49 = vmul.f32 1.442695, %v1939_v53  ;;  %v9135_v51 = vmul.f32 1.442695, %v1940_v40  ;;  %v2244_v47 = vsel %vm1247_vm2, %v2176_v55, %v2177_v13 }
 0x23b   : > { %7201 = vrcp.f32 %v2065_v1  ;;  %v7184_v45 = vpop.eup %7183  ;;  %v9140_v1 = vsel %vm1247_vm2, %v2177_v13, %v2178_v24  ;;  %v9146_v16 = vsel %vm1247_vm2, %v2175_v42, %v2176_v55  ;;  %v14443_v29 = vrot.slane %v8842_v57, 7  ;;  %v14444_v55 = vld [vmem:[#allocation57_spill] sm:$0xff] }
 0x23c   : > { %7203 = vrcp.f32 %v2063_v60  ;;  %v2066_v58 = vadd.f32 1.0, %v7184_v45  ;;  %v9162_v53 = vsel %vm1019_vm0, %v2244_v47, 0.0  ;;  %v14447_v45 = vld [vmem:[#allocation58_spill] sm:$0xff] }
 0x23d   : > { %7205 = vpow2.f32 %v2005_v21  ;;  %v9152_v21 = vsel %vm1247_vm2, %v2179_v43, %v13714_v14  ;;  %v2246_v60 = vsel %vm1247_vm2, %v14443_v29, %v2175_v42  ;;  %v14454_v14 = vld [vmem:[#allocation59_spill] sm:$0xff] }
 0x23e   : > { %7207 = vpow2.f32 %v2015_v22  ;;  %v2242_v22 = vsel %vm1247_vm2, %v2178_v24, %v2179_v43  ;;  %v7186_v4 = vpop.eup %7185  ;;  %v14446_v24 = vld [vmem:[#allocation69_spill] sm:$0xff]  ;;  %v2361_v44 = vmul.f32 %v14454_v14, %v8966_v63 }
 0x23f   : > { %7209 = vpow2.f32 %v2011_v27  ;;  %v9166_v27 = vsel %vm1019_vm0, %v2242_v22, 0.0  ;;  %v7188_v40 = vpop.eup %7187  ;;  %v9169_v13 = vmul.f32 %v7186_v4, %v14444_v55  ;;  %v9177_v42 = vmul.f32 %v14446_v24, %v8899_v30 }
 0x240   : > { %7211 = vpow2.f32 %v2017_v41  ;;  %v9173_v41 = vsel %vm1019_vm0, %v2246_v60, 0.0  ;;  %v7190_v43 = vpop.eup %7189  ;;  %v9180_v47 = vmul.f32 %v7188_v40, %v14447_v45 }
 0x241   : > { %14445 = vst [vmem:[#allocation55_spill] sm:$0xff] %v9169_v13  ;;  %7213 = vrcp.f32 %v2066_v58  ;;  %v9184_v22 = vmul.f32 %v14446_v24, %v9173_v41  ;;  %v9188_v58 = vmul.f32 %v14446_v24, %v9146_v16  ;;  %v7192_v4 = vpop.eup %7191  ;;  %v9199_v59 = vmul.f32 %v7190_v43, %v14449_v26 }
 0x242   : > { %14448 = vst [vmem:[#allocation57_spill] sm:$0xff] %v9180_v47  ;;  %7215 = vpow2.f32 %v2013_v19  ;;  %v7194_v40 = vpop.eup %7193  ;;  %v9202_v29 = vmul.f32 %v7192_v4, %v8818_v33  ;;  %v2360_v19 = vmul.f32 %v14454_v14, %v8842_v57 }
 0x243   : > { %v7196_v24 = vpop.eup %7195  ;;  %14450 = vst [vmem:[#allocation69_spill] sm:$0xff] %v9199_v59  ;;  %v9205_v30 = vmul.f32 %v7194_v40, %v9007_v62  ;;  %7217 = vpow2.f32 %v2023_v6  ;;  %v2362_v40 = vmul.f32 %v14454_v14, %v8980_v32 }
 0x244   : > { %14451 = vst [vmem:[#allocation58_spill] sm:$0xff] %v9202_v29  ;;  %v7198_v55 = vpop.eup %7197  ;;  %v9208_v60 = vmul.f32 %v7196_v24, %v9011_v54  ;;  %7219 = vpow2.f32 %v2019_v49 }
 0x245   : > { %14452 = vst [vmem:[#allocation60_spill] sm:$0xff] %v9205_v30  ;;  %v7200_v26 = vpop.eup %7199  ;;  %v9231_v24 = vmul.f32 %v7198_v55, %v9015_v50  ;;  %7221 = vpow2.f32 %v9135_v51  ;;  %v2405_v55 = vadd.f32 %v2361_v44, %v9184_v22  ;;  %v2451_v44 = vrot.slane %v8963_v38, 1 }
 0x246   : > { %14453 = vst [vmem:[#allocation76_spill] sm:$0xff] %v9208_v60  ;;  %v9234_v13 = vmul.f32 %v7200_v26, %v9019_v46  ;;  %v2404_v46 = vadd.f32 %v2360_v19, %v9177_v42  ;;  %v2450_v42 = vrot.slane %v8980_v32, 1  ;;  %v2452_v22 = vrot.slane %v8977_v8, 1 }
 0x247   : > { %14455 = vst [vmem:[#allocation59_spill] sm:$0xff] %v9231_v24  ;;  %v2453_v19 = vrot.slane %v9059_v20, 1  ;;  %v3039_v60 = vrot.slane %v9059_v20, 6 }
 0x248   : > { %v7202_v4 = vpop.eup %7201  ;;  %14456 = vst [vmem:[#allocation77_spill] sm:$0xff] %v9234_v13 }
 0x249   : > { %v7204_v45 = vpop.eup %7203  ;;  %v9237_v33 = vmul.f32 %v7202_v4, %v9035_v15 }
 0x24a   : > { %v7206_v47 = vpop.eup %7205  ;;  %v9240_v62 = vmul.f32 %v7204_v45, %v9039_v9  ;;  %v3036_v9 = vrot.slane %v8980_v32, 6 }
 0x24b   : > { %v7208_v59 = vpop.eup %7207  ;;  %14457 = vst [vmem:[#allocation78_spill] sm:$0xff] %v9237_v33  ;;  %v2064_v6 = vadd.f32 1.0, %v7206_v47  ;;  %v9334_v33 = vld [vmem:[#allocation16 + $0x1] ss:$0 sm:$0xff] }
 0x24c   : > { %14458 = vst [vmem:[#allocation79_spill] sm:$0xff] %v9240_v62  ;;  %v7210_v43 = vpop.eup %7209  ;;  %v2069_v54 = vadd.f32 1.0, %v7208_v59  ;;  %14464 = vst [vmem:[#allocation82_spill] sm:$0xff] %v9334_v33  ;;  %v3038_v62 = vrot.slane %v8977_v8, 6 }
 0x24d   : > { %v7212_v49 = vpop.eup %7211  ;;  %7223 = vrcp.f32 %v2064_v6  ;;  %v2067_v51 = vadd.f32 1.0, %v7210_v43 }
 0x24e   : > { %v7214_v26 = vpop.eup %7213  ;;  %v2070_v14 = vadd.f32 1.0, %v7212_v49  ;;  %7225 = vrcp.f32 %v2069_v54  ;;  %v2406_v49 = vadd.f32 %v2362_v40, %v9188_v58  ;;  %v2449_v54 = vrot.slane %v8966_v63, 1 }
 0x24f   : > { %v7216_v45 = vpop.eup %7215  ;;  %v9262_v59 = vmul.f32 %v7214_v26, %v9045_v36  ;;  %7227 = vrcp.f32 %v2067_v51  ;;  %v2454_v26 = vrot.slane %v9069_v56, 1  ;;  %v2518_v58 = vsel %vm1424_vm3, %v2450_v42, %v2451_v44  ;;  %v14462_v36 = vld [vmem:[#allocation45_spill] sm:$0xff] }
 0x250   : > { %v7218_v24 = vpop.eup %7217  ;;  %v2068_v4 = vadd.f32 1.0, %v7216_v45  ;;  %7229 = vrcp.f32 %v2070_v14  ;;  %v9282_v40 = vsel %vm1424_vm3, %v2449_v54, %v2450_v42  ;;  %v2516_v45 = vsel %vm1424_vm3, %v2452_v22, %v2453_v19 }
 0x251   : > { %14459 = vst [vmem:[#allocation80_spill] sm:$0xff] %v9262_v59  ;;  %v7220_v15 = vpop.eup %7219  ;;  %v2073_v6 = vadd.f32 1.0, %v7218_v24  ;;  %v13725_v24 = vrot.slane %v8986_v31, 1  ;;  %v9288_v51 = vsel %vm1424_vm3, %v2453_v19, %v2454_v26  ;;  %v9294_v14 = vsel %vm1424_vm3, %v2451_v44, %v2452_v22 }
 0x252   : > { %v2071_v43 = vadd.f32 1.0, %v7220_v15  ;;  %7231 = vrcp.f32 %v2068_v4  ;;  %v9284_v15 = vld [vmem:[#allocation13 + $0x2] ss:$0 sm:$0xff]  ;;  %v7222_v4 = vpop.eup %7221  ;;  %v14461_v42 = vrot.slane %v8842_v57, 1  ;;  %v9306_v47 = vsel %vm1014_vm1, %v2518_v58, 0.0 }
 0x253   : > { %7233 = vrcp.f32 %v2073_v6  ;;  %14460 = vst [vmem:[#allocation81_spill] sm:$0xff] %v9284_v15  ;;  %v2514_v6 = vsel %vm1424_vm3, %v2454_v26, %v13725_v24  ;;  %v9310_v19 = vsel %vm1014_vm1, %v2516_v45, 0.0  ;;  %v2072_v44 = vadd.f32 1.0, %v7222_v4  ;;  %v9328_v4 = vld [vmem:[#allocation15] ss:$0 sm:$0xff] }
 0x254   : > { %7235 = vrcp.f32 %v2071_v43  ;;  %v2520_v43 = vsel %vm1424_vm3, %v14461_v42, %v2449_v54  ;;  %v9318_v26 = vsel %vm1014_vm1, %v2514_v6, 0.0  ;;  %v2584_v54 = vmul.f32 %v9284_v15, %v8905_v34  ;;  %14463 = vst [vmem:[#allocation45_spill] sm:$0xff] %v9328_v4 }
 0x255   : > { %v9314_v22 = vsel %vm1014_vm1, %v2520_v43, 0.0  ;;  %v2586_v42 = vmul.f32 %v9284_v15, %v9282_v40  ;;  %v2587_v45 = vmul.f32 %v9284_v15, %v9306_v47  ;;  %v3035_v43 = vrot.slane %v8966_v63, 6 }
 0x256   : > { %v2585_v58 = vmul.f32 %v9284_v15, %v9314_v22  ;;  %7237 = vrcp.f32 %v2072_v44  ;;  %v2628_v6 = vadd.f32 %v2584_v54, %v8949_v2  ;;  %v3037_v34 = vrot.slane %v8963_v38, 6 }
 0x257   : > { %v2630_v24 = vadd.f32 %v2586_v42, %v2405_v55  ;;  %v2631_v59 = vadd.f32 %v2587_v45, %v2406_v49  ;;  %v9345_v44 = vsel %vm3071_vm4, %v3035_v43, %v3036_v9  ;;  %v9359_v42 = vld [vmem:[#allocation16 + $0x2] ss:$0 sm:$0xff]  ;;  %vm1016_vm10 = vcmp.lt.s32.totalorder %v14462_v36, 14 }
 0x258   : > { %v2629_v50 = vadd.f32 %v2585_v58, %v2404_v46  ;;  %v9338_v13 = vadd.f32 %v9328_v4, %v2628_v6  ;;  %v3105_v2 = vsel %vm3071_vm4, %v3036_v9, %v3037_v34  ;;  %14470 = vst [vmem:[#allocation88_spill] sm:$0xff] %v9359_v42  ;;  %vm1018_vm11 = vcmp.lt.s32.totalorder %v14462_v36, 13 }
 0x259   : > { %v9354_v54 = vadd.f32 %v9328_v4, %v2630_v24  ;;  %v9357_v58 = vadd.f32 %v9328_v4, %v2631_v59 }
 0x25a   : > { %v7224_v30 = vpop.eup %7223  ;;  %14465 = vst [vmem:[#allocation83_spill] sm:$0xff] %v9338_v13  ;;  %v9351_v49 = vadd.f32 %v9328_v4, %v2629_v50  ;;  %v2853_v9 = vmul.f32 %v9334_v33, %v9338_v13  ;;  %v3103_v50 = vsel %vm3071_vm4, %v3038_v62, %v3039_v60  ;;  %v4257_v13 = vrot.slane %v8980_v32, 5 }
 0x25b   : > { %v7226_v46 = vpop.eup %7225  ;;  %v9348_v55 = vmul.f32 %v7224_v30, %v9049_v18  ;;  %14468 = vst [vmem:[#allocation86_spill] sm:$0xff] %v9354_v54  ;;  %14469 = vst [vmem:[#allocation87_spill] sm:$0xff] %v9357_v58  ;;  %v14472_v18 = vrot.slane %v9069_v56, 6 }
 0x25c   : > { %14467 = vst [vmem:[#allocation85_spill] sm:$0xff] %v9351_v49  ;;  %v9362_v45 = vmul.f32 %v7226_v46, %v9053_v37  ;;  %v7228_v24 = vpop.eup %7227  ;;  %v2885_v61 = vadd.f32 %v2853_v9, %v14474_v11  ;;  %v2925_v37 = vmul.f32 %v9359_v42, %v9357_v58  ;;  %v9391_v46 = vld [vmem:[#allocation18] ss:$0 sm:$0xff] }
 0x25d   : > { %14466 = vst [vmem:[#allocation84_spill] sm:$0xff] %v9348_v55  ;;  %v9370_v30 = vsel %vm3071_vm4, %v3039_v60, %v14472_v18  ;;  %v9379_v29 = vmul.f32 %v7228_v24, %v9056_v25  ;;  %v2854_v18 = vmul.f32 %v9334_v33, %v9351_v49  ;;  %v2924_v60 = vmul.f32 %v9359_v42, %v9354_v54  ;;  %v9458_v55 = vld [vmem:[%s13641_s9 + $0x2] ss:$0 sm:$0xff] }
 0x25e   : > { %14471 = vst [vmem:[#allocation89_spill] sm:$0xff] %v9362_v45  ;;  %v7230_v45 = vpop.eup %7229  ;;  %14476 = vst [vmem:[#allocation91_spill] sm:$0xff] %v9391_v46  ;;  %v9395_v25 = vsel %vm3071_vm4, %v3037_v34, %v3038_v62  ;;  %v14477_v24 = vrot.slane %v8842_v57, 6  ;;  %v9419_v34 = vsel %vm1021_vm6, %v3103_v50, 0.0 }
 0x25f   : > { %14473 = vst [vmem:[#allocation90_spill] sm:$0xff] %v9379_v29  ;;  %v7232_v48 = vpop.eup %7231  ;;  %v9387_v59 = vmul.f32 %v7230_v45, %v9109_v5  ;;  %v2886_v45 = vadd.f32 %v2854_v18, %v14474_v11 }
 0x260   : > { %v3107_v9 = vsel %vm3071_vm4, %v14477_v24, %v3035_v43  ;;  %v7234_v6 = vpop.eup %7233  ;;  %v9403_v5 = vmul.f32 %v7232_v48, %v9113_v52  ;;  %v9415_v43 = vsel %vm1021_vm6, %v3105_v2, 0.0  ;;  %v14481_v52 = vld [vmem:[#allocation67_spill] sm:$0xff]  ;;  %v14483_v2 = vld [vmem:[#allocation61_spill] sm:$0xff] }
 0x261   : > { %14475 = vst [vmem:[#allocation62_spill] sm:$0xff] %v9387_v59  ;;  %v2956_v59 = vadd.f32 %v2924_v60, %v2885_v61  ;;  %v7236_v42 = vpop.eup %7235  ;;  %v9407_v4 = vmul.f32 %v7234_v6, %v9117_v28  ;;  %v9411_v62 = vsel %vm1021_vm6, %v3107_v9, 0.0  ;;  %v2957_v61 = vadd.f32 %v2925_v37, %v2886_v45  ;;  %v14482_v37 = vld [vmem:[#allocation65_spill] sm:$0xff] }
 0x262   : > { %14478 = vst [vmem:[#allocation92_spill] sm:$0xff] %v9403_v5  ;;  %v9422_v48 = vmul.f32 %v7236_v42, %v9123_v0  ;;  %v3173_v28 = vmul.f32 %v14481_v52, %v9411_v62  ;;  %v3174_v50 = vmul.f32 %v14481_v52, %v9345_v44  ;;  %v3175_v42 = vmul.f32 %v14481_v52, %v9415_v43 }
 0x263   : > { %14479 = vst [vmem:[#allocation93_spill] sm:$0xff] %v9407_v4  ;;  %v9425_v11 = vadd.f32 %v9391_v46, %v2956_v59  ;;  %v9436_v0 = vadd.f32 %v9391_v46, %v2957_v61  ;;  %v3176_v59 = vmul.f32 %v14481_v52, %v9395_v25  ;;  %v3222_v60 = vmul.f32 %v14482_v37, %v9173_v41  ;;  %v7238_v24 = vpop.eup %7237 }
 0x264   : > { %14480 = vst [vmem:[#allocation94_spill] sm:$0xff] %v9422_v48  ;;  %v3223_v9 = vmul.f32 %v14482_v37, %v9146_v16  ;;  %v3224_v45 = vmul.f32 %v14482_v37, %v9162_v53  ;;  %v3225_v61 = vmul.f32 %v14482_v37, %v9140_v1  ;;  %v3315_v18 = vmul.f32 %v14483_v2, %v8966_v63 }
 0x265   : > { %v9453_v6 = vmul.f32 %v7238_v24, %v9127_v17  ;;  %v3266_v52 = vadd.f32 %v3222_v60, %v3173_v28  ;;  %14485 = vst [vmem:[#allocation65_spill] sm:$0xff] %v9458_v55  ;;  %v3316_v4 = vmul.f32 %v9458_v55, %v8980_v32  ;;  %v3317_v48 = vmul.f32 %v9458_v55, %v8963_v38  ;;  %v14486_v28 = vld [vmem:[#allocation66_spill] sm:$0xff] }
 0x266   : > { %v3267_v5 = vadd.f32 %v3223_v9, %v3174_v50  ;;  %v3268_v37 = vadd.f32 %v3224_v45, %v3175_v42  ;;  %v3269_v29 = vadd.f32 %v3225_v61, %v3176_v59  ;;  %v3318_v2 = vmul.f32 %v9458_v55, %v8977_v8 }
 0x267   : > { %14484 = vst [vmem:[#allocation67_spill] sm:$0xff] %v9453_v6  ;;  %v3359_v17 = vadd.f32 %v3315_v18, %v3266_v52  ;;  %v3407_v60 = vmul.f32 %v14486_v28, %v9314_v22  ;;  %v3408_v24 = vmul.f32 %v14486_v28, %v9282_v40  ;;  %v3409_v6 = vmul.f32 %v14486_v28, %v9306_v47 }
 0x268   : > { %v3360_v46 = vadd.f32 %v3316_v4, %v3267_v5  ;;  %v3361_v58 = vadd.f32 %v3317_v48, %v3268_v37  ;;  %v3362_v33 = vadd.f32 %v3318_v2, %v3269_v29  ;;  %v3410_v50 = vmul.f32 %v14486_v28, %v9294_v14 }
 0x269   : > { %v3411_v42 = vmul.f32 %v14486_v28, %v9310_v19  ;;  %v3451_v18 = vadd.f32 %v3407_v60, %v8951_v23  ;;  %v3452_v59 = vadd.f32 %v3408_v24, %v3359_v17  ;;  %v3496_v9 = vrot.slane %v8966_v63, 2  ;;  %v9511_v60 = vld [vmem:[%s14488_s27] ss:$0 sm:$0xff] }
 0x26a   : > { %v3453_v45 = vadd.f32 %v3409_v6, %v3360_v46  ;;  %v3454_v61 = vadd.f32 %v3410_v50, %v3361_v58  ;;  %v3497_v52 = vrot.slane %v8980_v32, 2  ;;  %v3498_v55 = vrot.slane %v8963_v38, 2  ;;  %14489 = vst [vmem:[#allocation61_spill] sm:$0xff] %v9511_v60 }
 0x26b   : > { %v3455_v4 = vadd.f32 %v3411_v42, %v3362_v33  ;;  %v3499_v29 = vrot.slane %v8977_v8, 2  ;;  %v3500_v5 = vrot.slane %v9059_v20, 2  ;;  %v3501_v48 = vrot.slane %v9069_v56, 2  ;;  %v14490_v42 = vld [vmem:[#allocation68_spill] sm:$0xff] }
 0x26c   : > { %v13768_v37 = vrot.slane %v8986_v31, 2  ;;  %v3566_v23 = vsel %vm3532_vm5, %v3497_v52, %v3498_v55  ;;  %v9488_v46 = vsel %vm3532_vm5, %v3496_v9, %v3497_v52  ;;  %v14487_v58 = vrot.slane %v8842_v57, 2 }
 0x26d   : > { %v9496_v6 = vsel %vm3532_vm5, %v3500_v5, %v3501_v48  ;;  %v3564_v2 = vsel %vm3532_vm5, %v3499_v29, %v3500_v5  ;;  %v9502_v17 = vsel %vm3532_vm5, %v3498_v55, %v3499_v29  ;;  %v9519_v50 = vsel %vm1016_vm10, %v3566_v23, 0.0  ;;  %v9540_v23 = vld [vmem:[%s13643_s11 + $0x2] ss:$0 sm:$0xff] }
 0x26e   : > { %v3568_v33 = vsel %vm3532_vm5, %v14487_v58, %v3496_v9  ;;  %v3562_v24 = vsel %vm3532_vm5, %v3501_v48, %v13768_v37  ;;  %v9523_v55 = vsel %vm1016_vm10, %v3564_v2, 0.0  ;;  %v3634_v29 = vmul.f32 %v14490_v42, %v9488_v46  ;;  %14491 = vst [vmem:[#allocation66_spill] sm:$0xff] %v9540_v23 }
 0x26f   : > { %v9506_v28 = vsel %vm1016_vm10, %v3568_v33, 0.0  ;;  %v9529_v52 = vsel %vm1016_vm10, %v3562_v24, 0.0  ;;  %v3635_v5 = vmul.f32 %v14490_v42, %v9519_v50  ;;  %v3636_v48 = vmul.f32 %v14490_v42, %v9502_v17 }
 0x270   : > { %v3633_v9 = vmul.f32 %v14490_v42, %v9506_v28  ;;  %v3637_v58 = vmul.f32 %v14490_v42, %v9523_v55  ;;  %v9546_v2 = vadd.f32 %v9511_v60, %v8988_v39  ;;  %v4256_v24 = vrot.slane %v8966_v63, 5  ;;  %v9563_v39 = vld [vmem:[%s13643_s11 + $0x4] ss:$0 sm:$0xff] }
 0x271   : > { %v3678_v37 = vadd.f32 %v3634_v29, %v3452_v59  ;;  %v3679_v54 = vadd.f32 %v3635_v5, %v3453_v45  ;;  %v3680_v49 = vadd.f32 %v3636_v48, %v3454_v61  ;;  %14495 = vst [vmem:[#allocation97_spill] sm:$0xff] %v9563_v39  ;;  %v4258_v59 = vrot.slane %v8963_v38, 5  ;;  %v14500_v5 = vld [vmem:[#allocation63_spill] sm:$0xff] }
 0x272   : > { %v3677_v33 = vadd.f32 %v3633_v9, %v3451_v18  ;;  %14492 = vst [vmem:[#allocation68_spill] sm:$0xff] %v9546_v2  ;;  %v3681_v15 = vadd.f32 %v3637_v58, %v3455_v4  ;;  %v3971_v7 = vmul.f32 %v9540_v23, %v9546_v2  ;;  %v9558_v18 = vld [vmem:[%s13643_s11 + $0x3] ss:$0 sm:$0xff]  ;;  %v4259_v42 = vrot.slane %v8977_v8, 5 }
 0x273   : > { %14494 = vst [vmem:[#allocation96_spill] sm:$0xff] %v9558_v18  ;;  %v9567_v45 = vadd.f32 %v9511_v60, %v3678_v37  ;;  %v9570_v61 = vadd.f32 %v9511_v60, %v3679_v54  ;;  %v9573_v4 = vadd.f32 %v9511_v60, %v3680_v49  ;;  %v14501_v58 = vrot.slane %v9069_v56, 5 }
 0x274   : > { %v9551_v35 = vadd.f32 %v9511_v60, %v3677_v33  ;;  %v9577_v9 = vadd.f32 %v9511_v60, %v3681_v15  ;;  %v4003_v48 = vadd.f32 %v3971_v7, %v14500_v5  ;;  %v14502_v37 = vrot.slane %v9059_v20, 5 }
 0x275   : > { %14496 = vst [vmem:[#allocation98_spill] sm:$0xff] %v9567_v45  ;;  %14497 = vst [vmem:[#allocation99_spill] sm:$0xff] %v9570_v61  ;;  %v4042_v49 = vmul.f32 %v9558_v18, %v9567_v45  ;;  %v4043_v33 = vmul.f32 %v9558_v18, %v9570_v61  ;;  %v4113_v15 = vmul.f32 %v9563_v39, %v9573_v4  ;;  %v14504_v61 = vrot.slane %v8842_v57, 5 }
 0x276   : > { %14493 = vst [vmem:[#allocation95_spill] sm:$0xff] %v9551_v35  ;;  %14498 = vst [vmem:[#allocation100_spill] sm:$0xff] %v9573_v4  ;;  %v3972_v29 = vmul.f32 %v9540_v23, %v9551_v35  ;;  %v4323_v54 = vsel %vm4292_vm7, %v14502_v37, %v14501_v58  ;;  %v14503_v60 = vmov %v14502_v37  ;;  %v4114_v35 = vmul.f32 %v9563_v39, %v9577_v9  ;;  %v9613_v39 = vld [vmem:[#allocation19] ss:$0 sm:$0xff] }
 0x277   : > { %14499 = vst [vmem:[#allocation101_spill] sm:$0xff] %v9577_v9  ;;  %v4324_v7 = vsel %vm4292_vm7, %v4259_v42, %v14503_v60  ;;  %v4325_v58 = vsel %vm4292_vm7, %v4258_v59, %v4259_v42  ;;  %v4326_v37 = vsel %vm4292_vm7, %v4257_v13, %v4258_v59  ;;  %v4074_v18 = vadd.f32 %v4042_v49, %v4003_v48  ;;  %v9619_v48 = vld [vmem:[#allocation21] ss:$0 sm:$0xff] }
 0x278   : > { %v4004_v23 = vadd.f32 %v3972_v29, %v14500_v5  ;;  %v4327_v4 = vsel %vm4292_vm7, %v4256_v24, %v4257_v13  ;;  %v4328_v60 = vsel %vm4292_vm7, %v14504_v61, %v4256_v24  ;;  %v4347_v29 = vsel %vm1023_vm8, %v4326_v37, 0.0  ;;  %14505 = vst [vmem:[#allocation63_spill] sm:$0xff] %v9613_v39  ;;  %14506 = vst [vmem:[#allocation102_spill] sm:$0xff] %v9619_v48 }
 0x279   : > { %v4345_v42 = vsel %vm1023_vm8, %v4328_v60, 0.0  ;;  %v4349_v59 = vsel %vm1023_vm8, %v4324_v7, 0.0  ;;  %v4395_v13 = vmul.f32 %v9619_v48, %v4327_v4  ;;  %v4145_v49 = vadd.f32 %v4113_v15, %v4074_v18  ;;  %v9627_v60 = vld [vmem:[#allocation21 + $0x1] ss:$0 sm:$0xff] }
 0x27a   : > { %v4075_v5 = vadd.f32 %v4043_v33, %v4004_v23  ;;  %v4394_v9 = vmul.f32 %v9619_v48, %v4345_v42  ;;  %v4396_v24 = vmul.f32 %v9619_v48, %v4347_v29  ;;  %v4397_v61 = vmul.f32 %v9619_v48, %v4325_v58  ;;  %14507 = vst [vmem:[#allocation103_spill] sm:$0xff] %v9627_v60 }
 0x27b   : > { %v4398_v33 = vmul.f32 %v9619_v48, %v4349_v59  ;;  %v4399_v37 = vmul.f32 %v9619_v48, %v4323_v54  ;;  %v4443_v7 = vmul.f32 %v9627_v60, %v9411_v62  ;;  %v4184_v45 = vadd.f32 %v9613_v39, %v4145_v49  ;;  %v9649_v49 = vld [vmem:[#allocation21 + $0x2] ss:$0 sm:$0xff] }
 0x27c   : > { %v4146_v23 = vadd.f32 %v4114_v35, %v4075_v5  ;;  %v4444_v18 = vmul.f32 %v9627_v60, %v9345_v44  ;;  %v4445_v4 = vmul.f32 %v9627_v60, %v9415_v43  ;;  %v4446_v35 = vmul.f32 %v9627_v60, %v9395_v25  ;;  %14508 = vst [vmem:[#allocation104_spill] sm:$0xff] %v9649_v49 }
 0x27d   : > { %v4447_v54 = vmul.f32 %v9627_v60, %v9419_v34  ;;  %v4448_v58 = vmul.f32 %v9627_v60, %v9370_v30  ;;  %v4487_v62 = vadd.f32 %v4443_v7, %v4394_v9  ;;  %v9644_v29 = vmul.f32 %v4184_v45, %v9425_v11 }
 0x27e   : > { %v4185_v15 = vadd.f32 %v9613_v39, %v4146_v23  ;;  %v4488_v5 = vadd.f32 %v4444_v18, %v4395_v13  ;;  %v4489_v44 = vadd.f32 %v4445_v4, %v4396_v24  ;;  %v4490_v42 = vadd.f32 %v4446_v35, %v4397_v61  ;;  %v9663_v24 = vld [vmem:[#allocation21 + $0x3] ss:$0 sm:$0xff] }
 0x27f   : > { %v4491_v59 = vadd.f32 %v4447_v54, %v4398_v33  ;;  %v4492_v25 = vadd.f32 %v4448_v58, %v4399_v37  ;;  %v4536_v23 = vmul.f32 %v9649_v49, %v9173_v41  ;;  %v4537_v39 = vmul.f32 %v9649_v49, %v9146_v16 }
 0x280   : > { %v9647_v43 = vmul.f32 %v4185_v15, %v9436_v0  ;;  %v4538_v11 = vmul.f32 %v9649_v49, %v9162_v53  ;;  %v4539_v45 = vmul.f32 %v9649_v49, %v9140_v1  ;;  %v4540_v0 = vmul.f32 %v9649_v49, %v9166_v27 }
 0x281   : > { %v4541_v9 = vmul.f32 %v9649_v49, %v9152_v21  ;;  %v4580_v13 = vadd.f32 %v4536_v23, %v4487_v62  ;;  %v4629_v41 = vmul.f32 %v9663_v24, %v8966_v63  ;;  %v4630_v16 = vmul.f32 %v9663_v24, %v8980_v32  ;;  %v9677_v23 = vld [vmem:[#allocation21 + $0x4] ss:$0 sm:$0xff] }
 0x282   : > { %v4581_v61 = vadd.f32 %v4537_v39, %v4488_v5  ;;  %v4582_v33 = vadd.f32 %v4538_v11, %v4489_v44  ;;  %v4583_v37 = vadd.f32 %v4539_v45, %v4490_v42  ;;  %v4584_v7 = vadd.f32 %v4540_v0, %v4491_v59  ;;  %14509 = vst [vmem:[#allocation105_spill] sm:$0xff] %v9677_v23 }
 0x283   : > { %v4585_v18 = vadd.f32 %v4541_v9, %v4492_v25  ;;  %v4631_v4 = vmul.f32 %v9663_v24, %v8963_v38  ;;  %v4632_v35 = vmul.f32 %v9663_v24, %v8977_v8  ;;  %v4633_v15 = vmul.f32 %v9663_v24, %v9059_v20 }
 0x284   : > { %v4634_v54 = vmul.f32 %v9663_v24, %v9069_v56  ;;  %v4673_v58 = vadd.f32 %v4629_v41, %v4580_v13  ;;  %v4674_v62 = vadd.f32 %v4630_v16, %v4581_v61  ;;  %v4721_v39 = vmul.f32 %v9677_v23, %v9314_v22 }
 0x285   : > { %v4675_v5 = vadd.f32 %v4631_v4, %v4582_v33  ;;  %v4676_v44 = vadd.f32 %v4632_v35, %v4583_v37  ;;  %v4677_v42 = vadd.f32 %v4633_v15, %v4584_v7  ;;  %v4722_v59 = vmul.f32 %v9677_v23, %v9282_v40  ;;  %v9695_v33 = vld [vmem:[#allocation21 + $0x5] ss:$0 sm:$0xff] }
 0x286   : > { %v4678_v25 = vadd.f32 %v4634_v54, %v4585_v18  ;;  %v4723_v11 = vmul.f32 %v9677_v23, %v9306_v47  ;;  %v4724_v45 = vmul.f32 %v9677_v23, %v9294_v14  ;;  %v4725_v0 = vmul.f32 %v9677_v23, %v9310_v19  ;;  %14510 = vst [vmem:[#allocation106_spill] sm:$0xff] %v9695_v33 }
 0x287   : > { %v4726_v22 = vmul.f32 %v9677_v23, %v9288_v51  ;;  %v4727_v9 = vmul.f32 %v9677_v23, %v9318_v26  ;;  %v4765_v13 = vadd.f32 %v4721_v39, %v8983_v12  ;;  %v4766_v41 = vadd.f32 %v4722_v59, %v4673_v58 }
 0x288   : > { %v4767_v40 = vadd.f32 %v4723_v11, %v4674_v62  ;;  %v4768_v16 = vadd.f32 %v4724_v45, %v4675_v5  ;;  %v4769_v61 = vadd.f32 %v4725_v0, %v4676_v44  ;;  %v4814_v47 = vmul.f32 %v9695_v33, %v9506_v28 }
 0x289   : > { %v4770_v37 = vadd.f32 %v4726_v22, %v4677_v42  ;;  %v4771_v7 = vadd.f32 %v4727_v9, %v4678_v25  ;;  %v4815_v18 = vmul.f32 %v9695_v33, %v9488_v46  ;;  %v4816_v4 = vmul.f32 %v9695_v33, %v9519_v50  ;;  %v9716_v25 = vld [vmem:[#allocation22] ss:$0 sm:$0xff] }
 0x28a   : > { %v4817_v12 = vmul.f32 %v9695_v33, %v9502_v17  ;;  %v4818_v35 = vmul.f32 %v9695_v33, %v9523_v55  ;;  %v4819_v15 = vmul.f32 %v9695_v33, %v9496_v6  ;;  %v4820_v28 = vmul.f32 %v9695_v33, %v9529_v52  ;;  %14511 = vst [vmem:[#allocation107_spill] sm:$0xff] %v9716_v25 }
 0x28b   : > { %v4858_v54 = vadd.f32 %v4814_v47, %v4765_v13  ;;  %v4859_v58 = vadd.f32 %v4815_v18, %v4766_v41  ;;  %v4860_v62 = vadd.f32 %v4816_v4, %v4767_v40  ;;  %v4903_v46 = vrot.slane %v8966_v63, 3 }
 0x28c   : > { %v4861_v39 = vadd.f32 %v4817_v12, %v4768_v16  ;;  %v4862_v5 = vadd.f32 %v4818_v35, %v4769_v61  ;;  %v4863_v50 = vadd.f32 %v4819_v15, %v4770_v37  ;;  %v4864_v44 = vadd.f32 %v4820_v28, %v4771_v7  ;;  %v9749_v7 = vld [vmem:[%s14514_s12] ss:$0 sm:$0xff]  ;;  %v9755_v12 = vld [vmem:[#allocation21 + $0x6] ss:$0 sm:$0xff] }
 0x28d   : > { %v4904_v17 = vrot.slane %v8980_v32, 3  ;;  %v4905_v42 = vrot.slane %v8963_v38, 3  ;;  %v4906_v55 = vrot.slane %v8977_v8, 3  ;;  %v4907_v59 = vrot.slane %v9059_v20, 3  ;;  %14515 = vst [vmem:[#allocation109_spill] sm:$0xff] %v9749_v7  ;;  %14516 = vst [vmem:[#allocation110_spill] sm:$0xff] %v9755_v12 }
 0x28e   : > { %v4908_v11 = vrot.slane %v9069_v56, 3  ;;  %v13799_v45 = vrot.slane %v8986_v31, 3  ;;  %v14512_v0 = vrot.slane %v8842_v57, 3  ;;  %v9726_v9 = vadd.f32 %v9716_v25, %v9026_v10 }
 0x28f   : > { %v4971_v13 = vsel %vm4939_vm9, %v4906_v55, %v4907_v59  ;;  %v4972_v41 = vsel %vm4939_vm9, %v4905_v42, %v4906_v55  ;;  %v4973_v40 = vsel %vm4939_vm9, %v4904_v17, %v4905_v42  ;;  %v4974_v16 = vsel %vm4939_vm9, %v4903_v46, %v4904_v17  ;;  %v9766_v55 = vld [vmem:[%s14514_s12 + $0x1] ss:$0 sm:$0xff] }
 0x290   : > { %v4975_v22 = vsel %vm4939_vm9, %v14512_v0, %v4903_v46  ;;  %14513 = vst [vmem:[#allocation108_spill] sm:$0xff] %v9726_v9  ;;  %v4969_v61 = vsel %vm4939_vm9, %v4908_v11, %v13799_v45  ;;  %v4970_v10 = vsel %vm4939_vm9, %v4907_v59, %v4908_v11  ;;  %v4993_v37 = vsel %vm1018_vm11, %v4973_v40, 0.0  ;;  %14517 = vst [vmem:[#allocation111_spill] sm:$0xff] %v9766_v55 }
 0x291   : > { %v4991_v47 = vsel %vm1018_vm11, %v4975_v22, 0.0  ;;  %v4995_v18 = vsel %vm1018_vm11, %v4971_v13, 0.0  ;;  %v4997_v4 = vsel %vm1018_vm11, %v4969_v61, 0.0  ;;  %v5041_v15 = vmul.f32 %v9755_v12, %v4974_v16  ;;  %v9775_v61 = vld [vmem:[%s14514_s12 + $0x2] ss:$0 sm:$0xff] }
 0x292   : > { %v5040_v35 = vmul.f32 %v9755_v12, %v4991_v47  ;;  %v5042_v28 = vmul.f32 %v9755_v12, %v4993_v37  ;;  %v5043_v46 = vmul.f32 %v9755_v12, %v4972_v41  ;;  %v5044_v17 = vmul.f32 %v9755_v12, %v4995_v18  ;;  %14519 = vst [vmem:[#allocation113_spill] sm:$0xff] %v9775_v61  ;;  %v9809_v18 = vld [vmem:[%s14514_s12 + $0x5] ss:$0 sm:$0xff] }
 0x293   : > { %v5045_v42 = vmul.f32 %v9755_v12, %v4970_v10  ;;  %v5046_v59 = vmul.f32 %v9755_v12, %v4997_v4  ;;  %v5085_v0 = vadd.f32 %v5041_v15, %v4859_v58  ;;  %v9770_v22 = vmul.f32 0.0, %v9749_v7  ;;  %v9787_v58 = vld [vmem:[%s14514_s12 + $0x3] ss:$0 sm:$0xff]  ;;  %14527 = vst [vmem:[#allocation121_spill] sm:$0xff] %v9809_v18  ;;  %v9814_v4 = vld [vmem:[%s14514_s12 + $0x6] ss:$0 sm:$0xff] }
 0x294   : > { %v5084_v11 = vadd.f32 %v5040_v35, %v4858_v54  ;;  %v5086_v13 = vadd.f32 %v5042_v28, %v4860_v62  ;;  %v5087_v40 = vadd.f32 %v5043_v46, %v4861_v39  ;;  %v5088_v16 = vadd.f32 %v5044_v17, %v4862_v5  ;;  %14522 = vst [vmem:[#allocation116_spill] sm:$0xff] %v9787_v58  ;;  %v9792_v62 = vld [vmem:[%s14514_s12 + $0x4] ss:$0 sm:$0xff] }
 0x295   : > { %14518 = vst [vmem:[#allocation112_spill] sm:$0xff] %v9770_v22  ;;  %v5089_v41 = vadd.f32 %v5045_v42, %v4863_v50  ;;  %v5090_v10 = vadd.f32 %v5046_v59, %v4864_v44  ;;  %v9781_v37 = vadd.f32 %v9716_v25, %v5085_v0  ;;  %v5307_v54 = vmul.f32 0.0, %v9766_v55  ;;  %14523 = vst [vmem:[#allocation117_spill] sm:$0xff] %v9792_v62  ;;  %v9854_v55 = vld [vmem:[#allocation13] ss:$0 sm:$0xff] }
 0x296   : > { %v9778_v47 = vadd.f32 %v9716_v25, %v5084_v11  ;;  %v9795_v39 = vadd.f32 %v9716_v25, %v5086_v13  ;;  %v9798_v5 = vadd.f32 %v9716_v25, %v5087_v40  ;;  %v9801_v50 = vadd.f32 %v9716_v25, %v5088_v16  ;;  %14528 = vst [vmem:[#allocation122_spill] sm:$0xff] %v9814_v4 }
 0x297   : > { %14521 = vst [vmem:[#allocation115_spill] sm:$0xff] %v9781_v37  ;;  %v9804_v44 = vadd.f32 %v9716_v25, %v5089_v41  ;;  %v9817_v35 = vadd.f32 %v9716_v25, %v5090_v10  ;;  %v9820_v15 = vadd.f32 %v5307_v54, %v9770_v22  ;;  %v5378_v28 = vmul.f32 0.0, %v9775_v61  ;;  %v14530_v41 = vld [vmem:[#allocation49_spill] sm:$0xff]  ;;  %14535 = vst [vmem:[#allocation124_spill] sm:$0xff] %v9854_v55 }
 0x298   : > { %14520 = vst [vmem:[#allocation114_spill] sm:$0xff] %v9778_v47  ;;  %14524 = vst [vmem:[#allocation118_spill] sm:$0xff] %v9798_v5  ;;  %v5449_v46 = vmul.f32 %v9787_v58, %v9726_v9  ;;  %v5450_v17 = vmul.f32 %v9787_v58, %v9778_v47  ;;  %v5520_v42 = vmul.f32 %v9792_v62, %v9781_v37  ;;  %v14531_v10 = vrot.slane %v14530_v41, 7 }
 0x299   : > { %14525 = vst [vmem:[#allocation119_spill] sm:$0xff] %v9801_v50  ;;  %14526 = vst [vmem:[#allocation120_spill] sm:$0xff] %v9804_v44  ;;  %v5521_v59 = vmul.f32 %v9792_v62, %v9795_v39  ;;  %v5591_v11 = vmul.f32 %v9809_v18, %v9798_v5  ;;  %v5410_v0 = vadd.f32 %v5378_v28, %v9820_v15  ;;  %v14532_v54 = vrot.slane %v8986_v31, 7  ;;  %v14543_v62 = vld [vmem:[#allocation83_spill] sm:$0xff] }
 0x29a   : > { %14529 = vst [vmem:[#allocation123_spill] sm:$0xff] %v9817_v35  ;;  %v5592_v13 = vmul.f32 %v9809_v18, %v9801_v50  ;;  %v5692_v40 = vmul.f32 %v9814_v4, %v9804_v44  ;;  %v5693_v16 = vmul.f32 %v9814_v4, %v9817_v35  ;;  %v14534_v28 = vrot.slane %v9069_v56, 7 }
 0x29b   : > { %v9846_v45 = vsel %vm1247_vm2, %v14532_v54, %v14531_v10  ;;  %v14533_v7 = vmov %v14532_v54  ;;  %v2314_v32 = vmul.f32 %v9854_v55, %v9162_v53  ;;  %v2315_v63 = vmul.f32 %v9854_v55, %v9140_v1  ;;  %v9864_v54 = vld [vmem:[#allocation13 + $0x1] ss:$0 sm:$0xff] }
 0x29c   : > { %v2240_v22 = vsel %vm1247_vm2, %v14534_v28, %v14533_v7  ;;  %v5481_v4 = vadd.f32 %v5449_v46, %v5410_v0  ;;  %v5482_v25 = vadd.f32 %v5450_v17, %v5410_v0  ;;  %14536 = vst [vmem:[#allocation125_spill] sm:$0xff] %v9864_v54  ;;  %v2363_v35 = vmul.f32 %v9864_v54, %v8963_v38  ;;  %v14537_v28 = vld [vmem:[#allocation52_spill] sm:$0xff]  ;;  %v14542_v0 = vld [vmem:[#allocation81_spill] sm:$0xff] }
 0x29d   : > { %v9862_v10 = vsel %vm1019_vm0, %v2240_v22, 0.0  ;;  %v2364_v7 = vmul.f32 %v9864_v54, %v8977_v8  ;;  %v14538_v18 = vrot.slane %v14537_v28, 1  ;;  %v14539_v53 = vrot.slane %v14530_v41, 1 }
 0x29e   : > { %v14541_v22 = vrot.slane %v8986_v31, 1  ;;  %v2588_v38 = vmul.f32 %v14542_v0, %v9294_v14  ;;  %v5552_v55 = vadd.f32 %v5520_v42, %v5481_v4  ;;  %v5553_v8 = vadd.f32 %v5521_v59, %v5482_v25  ;;  %v14549_v59 = vld [vmem:[#allocation87_spill] sm:$0xff] }
 0x29f   : > { %v2512_v1 = vsel %vm1424_vm3, %v14539_v53, %v14538_v18  ;;  %v14540_v46 = vmov %v14539_v53  ;;  %v2407_v54 = vadd.f32 %v2363_v35, %v2314_v32  ;;  %v2408_v50 = vadd.f32 %v2364_v7, %v2315_v63  ;;  %v9892_v53 = vld [vmem:[#allocation16] ss:$0 sm:$0xff]  ;;  %v14545_v32 = vld [vmem:[#allocation86_spill] sm:$0xff] }
 0x2a0   : > { %v9882_v17 = vsel %vm1424_vm3, %v14541_v22, %v14540_v46  ;;  %v9888_v44 = vsel %vm1014_vm1, %v2512_v1, 0.0  ;;  %v2589_v18 = vmul.f32 %v14542_v0, %v9310_v19  ;;  %v2816_v46 = vmul.f32 %v9892_v53, %v14543_v62  ;;  %v14544_v22 = vld [vmem:[#allocation85_spill] sm:$0xff]  ;;  %v14546_v35 = vld [vmem:[#allocation82_spill] sm:$0xff] }
 0x2a1   : > { %v2817_v5 = vmul.f32 %v9892_v53, %v14544_v22  ;;  %v5623_v14 = vadd.f32 %v5591_v11, %v5552_v55  ;;  %v5624_v4 = vadd.f32 %v5592_v13, %v5553_v8  ;;  %v2632_v25 = vadd.f32 %v2588_v38, %v2407_v54  ;;  %v9903_v63 = vld [vmem:[%s14547_s3] ss:$0 sm:$0xff]  ;;  %v14554_v54 = vld [vmem:[#allocation45_spill] sm:$0xff] }
 0x2a2   : > { %v2855_v42 = vmul.f32 %v14546_v35, %v14545_v32  ;;  %14548 = vst [vmem:[#allocation81_spill] sm:$0xff] %v9903_v63  ;;  %v2633_v19 = vadd.f32 %v2589_v18, %v2408_v50  ;;  %v2856_v7 = vmul.f32 %v14546_v35, %v14549_v59  ;;  %v14550_v62 = vrot.slane %v14530_v41, 6 }
 0x2a3   : > { %v14551_v1 = vrot.slane %v8986_v31, 6  ;;  %v14553_v55 = vrot.slane %v9069_v56, 6  ;;  %v5724_v13 = vadd.f32 %v5692_v40, %v5623_v14  ;;  %v5725_v50 = vadd.f32 %v5693_v16, %v5624_v4  ;;  %v14557_v14 = vld [vmem:[#allocation88_spill] sm:$0xff] }
 0x2a4   : > { %v9922_v18 = vadd.f32 %v14554_v54, %v2632_v25  ;;  %v2887_v22 = vadd.f32 %v2855_v42, %v2816_v46  ;;  %v9925_v35 = vadd.f32 %v14554_v54, %v2633_v19  ;;  %v2888_v59 = vadd.f32 %v2856_v7, %v2817_v5  ;;  %v9949_v42 = vld [vmem:[%s13641_s9 + $0x1] ss:$0 sm:$0xff]  ;;  %v14559_v7 = vld [vmem:[#allocation65_spill] sm:$0xff]  ;;  %v9964_v54 = vld [vmem:[%s13641_s9 + $0x3] ss:$0 sm:$0xff] }
 0x2a5   : > { %v9913_v8 = vsel %vm3071_vm4, %v14551_v1, %v14550_v62  ;;  %v14552_v38 = vmov %v14551_v1  ;;  %v9934_v1 = vld [vmem:[%s13641_s9] ss:$0 sm:$0xff]  ;;  %v5763_v16 = vadd.f32 %v9903_v63, %v5724_v13  ;;  %v5764_v46 = vadd.f32 %v9903_v63, %v5725_v50  ;;  %14558 = vst [vmem:[#allocation86_spill] sm:$0xff] %v9949_v42  ;;  %v14560_v63 = vld [vmem:[#allocation64_spill] sm:$0xff] }
 0x2a6   : > { %v3101_v11 = vsel %vm3071_vm4, %v14553_v55, %v14552_v38  ;;  %14555 = vst [vmem:[#allocation83_spill] sm:$0xff] %v9925_v35  ;;  %14556 = vst [vmem:[#allocation85_spill] sm:$0xff] %v9934_v1  ;;  %v3177_v40 = vmul.f32 %v9934_v1, %v9419_v34  ;;  %v2926_v4 = vmul.f32 %v14557_v14, %v9922_v18 }
 0x2a7   : > { %v9929_v62 = vsel %vm1021_vm6, %v3101_v11, 0.0  ;;  %v3178_v5 = vmul.f32 %v9934_v1, %v9370_v30  ;;  %v2927_v25 = vmul.f32 %v14557_v14, %v9925_v35  ;;  %v3226_v34 = vmul.f32 %v9949_v42, %v9166_v27 }
 0x2a8   : > { %v3227_v19 = vmul.f32 %v9949_v42, %v9152_v21  ;;  %v3319_v38 = vmul.f32 %v14559_v7, %v9059_v20  ;;  %v5795_v55 = vmul.f32 %v5763_v16, %v9644_v29  ;;  %v5796_v30 = vmul.f32 %v5764_v46, %v9647_v43  ;;  %v14561_v43 = vld [vmem:[#allocation91_spill] sm:$0xff] }
 0x2a9   : > { %v2958_v11 = vadd.f32 %v2926_v4, %v2887_v22  ;;  %v3320_v13 = vmul.f32 %v14559_v7, %v9069_v56  ;;  %v2959_v50 = vadd.f32 %v2927_v25, %v2888_v59  ;;  %v3270_v14 = vadd.f32 %v3226_v34, %v3177_v40 }
 0x2aa   : > { %v3271_v1 = vadd.f32 %v3227_v19, %v3178_v5  ;;  %v3412_v42 = vmul.f32 %v9964_v54, %v9288_v51  ;;  %v5827_v35 = vadd.f32 %v5795_v55, %v14560_v63  ;;  %v5828_v29 = vadd.f32 %v5796_v30, %v8842_v57  ;;  %v9981_v63 = vld [vmem:[%s13641_s9 + $0x4] ss:$0 sm:$0xff]  ;;  %v14566_v30 = vld [vmem:[#allocation98_spill] sm:$0xff] }
 0x2ab   : > { %v2997_v22 = vadd.f32 %v14561_v43, %v2958_v11  ;;  %v3413_v16 = vmul.f32 %v9964_v54, %v9318_v26  ;;  %v9974_v59 = vadd.f32 %v14561_v43, %v2959_v50  ;;  %v3363_v40 = vadd.f32 %v3319_v38, %v3270_v14  ;;  %14562 = vst [vmem:[#allocation65_spill] sm:$0xff] %v9981_v63  ;;  %v9996_v14 = vld [vmem:[%s13643_s11 + $0x1] ss:$0 sm:$0xff]  ;;  %v14568_v50 = vld [vmem:[#allocation99_spill] sm:$0xff] }
 0x2ac   : > { %v3364_v46 = vadd.f32 %v3320_v13, %v3271_v1  ;;  %v3503_v4 = vrot.slane %v14530_v41, 2  ;;  %v5859_v5 = vpack.c.bf16 %v5828_v29, %v5827_v35  ;;  %v13842_v25 = vrot.slane %v14537_v28, 2  ;;  %14564 = vst [vmem:[#allocation64_spill] sm:$0xff] %v9996_v14  ;;  %v14567_v11 = vld [vmem:[#allocation66_spill] sm:$0xff] }
 0x2ad   : > { %v3638_v57 = vmul.f32 %v9981_v63, %v9496_v6  ;;  %v3639_v34 = vmul.f32 %v9981_v63, %v9529_v52  ;;  %v3456_v19 = vadd.f32 %v3412_v42, %v3363_v40  ;;  %v14563_v1 = vrot.slane %v8986_v31, 2  ;;  %v14565_v52 = vld [vmem:[#allocation95_spill] sm:$0xff] }
 0x2ae   : > { %v3457_v55 = vadd.f32 %v3413_v16, %v3364_v46  ;;  %v3902_v38 = vmul.f32 %v9996_v14, %v9546_v2  ;;  %6875 = vmatprep.mubr.bf16.mxu1 %v5859_v5  ;;  %v3560_v6 = vsel %vm3532_vm5, %v3503_v4, %v13842_v25  ;;  %v3903_v42 = vmul.f32 %v9996_v14, %v14565_v52  ;;  %v14569_v5 = vld [vmem:[#allocation56_spill] sm:$0xff]  ;;  %v14572_v14 = vld [vmem:[#allocation101_spill] sm:$0xff] }
 0x2af   : > { %v9991_v35 = vsel %vm3532_vm5, %v14563_v1, %v3503_v4  ;;  %v3973_v13 = vmul.f32 %v14567_v11, %v14566_v30  ;;  %v3974_v29 = vmul.f32 %v14567_v11, %v14568_v50  ;;  %v10012_v16 = vsel %vm1016_vm10, %v3560_v6, 0.0  ;;  %v14570_v4 = vld [vmem:[#allocation100_spill] sm:$0xff]  ;;  %v14575_v50 = vld [vmem:[#allocation61_spill] sm:$0xff] }
 0x2b0   : > { %v3682_v40 = vadd.f32 %v3638_v57, %v3456_v19  ;;  %v3683_v46 = vadd.f32 %v3639_v34, %v3457_v55  ;;  %v3934_v1 = vadd.f32 %v3902_v38, %v14569_v5  ;;  %v3935_v2 = vadd.f32 %v3903_v42, %v14569_v5  ;;  %v14571_v25 = vld [vmem:[#allocation96_spill] sm:$0xff] }
 0x2b1   : > { %v4044_v63 = vmul.f32 %v14571_v25, %v14570_v4  ;;  %v4045_v52 = vmul.f32 %v14571_v25, %v14572_v14  ;;  %v14573_v30 = vrot.slane %v14530_v41, 5  ;;  %v14574_v11 = vrot.slane %v8986_v31, 5 }
 0x2b2   : > { %v10027_v57 = vadd.f32 %v14575_v50, %v3682_v40  ;;  %v10030_v34 = vadd.f32 %v14575_v50, %v3683_v46  ;;  %v4005_v19 = vadd.f32 %v3973_v13, %v3934_v1  ;;  %v14579_v38 = vrot.slane %v9069_v56, 5  ;;  %v14580_v46 = vld [vmem:[#allocation97_spill] sm:$0xff] }
 0x2b3   : > { %v4321_v6 = vsel %vm4292_vm7, %v14574_v11, %v14573_v30  ;;  %v14578_v55 = vmov %v14574_v11  ;;  %v4006_v5 = vadd.f32 %v3974_v29, %v3935_v2  ;;  %v4449_v11 = vmul.f32 %v9627_v60, %v9929_v62 }
 0x2b4   : > { %14576 = vst [vmem:[#allocation91_spill] sm:$0xff] %v10027_v57  ;;  %14577 = vst [vmem:[#allocation56_spill] sm:$0xff] %v10030_v34  ;;  %v4322_v42 = vsel %vm4292_vm7, %v14579_v38, %v14578_v55  ;;  %v4401_v30 = vmul.f32 %v9619_v48, %v4321_v6  ;;  %v4076_v40 = vadd.f32 %v4044_v63, %v4005_v19 }
 0x2b5   : > { %v4351_v25 = vsel %vm1023_vm8, %v4322_v42, 0.0  ;;  %v4115_v13 = vmul.f32 %v14580_v46, %v10027_v57  ;;  %v4116_v1 = vmul.f32 %v14580_v46, %v10030_v34  ;;  %v4077_v14 = vadd.f32 %v4045_v52, %v4006_v5 }
 0x2b6   : > { %v4400_v50 = vmul.f32 %v9619_v48, %v4351_v25  ;;  %v4450_v2 = vmul.f32 %v9627_v60, %v9913_v8  ;;  %v4542_v29 = vmul.f32 %v9649_v49, %v9862_v10  ;;  %v4543_v6 = vmul.f32 %v9649_v49, %v9846_v45  ;;  %v14581_v60 = vld [vmem:[#allocation63_spill] sm:$0xff] }
 0x2b7   : > { %v4147_v55 = vadd.f32 %v4115_v13, %v4076_v40  ;;  %v4635_v19 = vmul.f32 %v9663_v24, %v8986_v31  ;;  %v4636_v38 = vmul.f32 %v9663_v24, %v14530_v41  ;;  %v4148_v42 = vadd.f32 %v4116_v1, %v4077_v14 }
 0x2b8   : > { %v4493_v63 = vadd.f32 %v4449_v11, %v4400_v50  ;;  %v4494_v25 = vadd.f32 %v4450_v2, %v4401_v30  ;;  %v4728_v52 = vmul.f32 %v9677_v23, %v9882_v17  ;;  %v4729_v5 = vmul.f32 %v9677_v23, %v9888_v44 }
 0x2b9   : > { %v4186_v46 = vadd.f32 %v14581_v60, %v4147_v55  ;;  %v4821_v50 = vmul.f32 %v9695_v33, %v9991_v35  ;;  %v4822_v11 = vmul.f32 %v9695_v33, %v10012_v16  ;;  %v4187_v40 = vadd.f32 %v14581_v60, %v4148_v42 }
 0x2ba   : > { %v4586_v48 = vadd.f32 %v4542_v29, %v4493_v63  ;;  %v4587_v13 = vadd.f32 %v4543_v6, %v4494_v25  ;;  %v4910_v14 = vrot.slane %v14530_v41, 3  ;;  %v13857_v30 = vrot.slane %v14537_v28, 3 }
 0x2bb   : > { %v10070_v1 = vmul.f32 %v4186_v46, %v2997_v22  ;;  %v5380_v55 = vmul.f32 %v9775_v61, %v9726_v9  ;;  %v5381_v29 = vmul.f32 %v9775_v61, %v9778_v47  ;;  %v10077_v63 = vmul.f32 %v4187_v40, %v9974_v59 }
 0x2bc   : > { %v4679_v2 = vadd.f32 %v4635_v19, %v4586_v48  ;;  %v4680_v33 = vadd.f32 %v4636_v38, %v4587_v13  ;;  %v4967_v6 = vsel %vm4939_vm9, %v4910_v14, %v13857_v30  ;;  %v14582_v42 = vrot.slane %v8986_v31, 3 }
 0x2bd   : > { %v4999_v46 = vsel %vm1018_vm11, %v4967_v6, 0.0  ;;  %v5412_v59 = vadd.f32 %v5380_v55, %v9820_v15  ;;  %v5413_v40 = vadd.f32 %v5381_v29, %v9820_v15  ;;  %v5451_v13 = vmul.f32 %v9787_v58, %v9781_v37  ;;  %v14585_v6 = vld [vmem:[#allocation119_spill] sm:$0xff] }
 0x2be   : > { %v4968_v48 = vsel %vm4939_vm9, %v14582_v42, %v4910_v14  ;;  %v4772_v22 = vadd.f32 %v4728_v52, %v4679_v2  ;;  %v4773_v25 = vadd.f32 %v4729_v5, %v4680_v33  ;;  %v5048_v38 = vmul.f32 %v9755_v12, %v4999_v46  ;;  %v14583_v52 = vld [vmem:[#allocation118_spill] sm:$0xff]  ;;  %v14584_v2 = vld [vmem:[#allocation117_spill] sm:$0xff]  ;;  %v14586_v33 = vld [vmem:[#allocation120_spill] sm:$0xff] }
 0x2bf   : > { %v5047_v19 = vmul.f32 %v9755_v12, %v4968_v48  ;;  %v5452_v14 = vmul.f32 %v9787_v58, %v9795_v39  ;;  %v5522_v42 = vmul.f32 %v14584_v2, %v14583_v52  ;;  %v5523_v48 = vmul.f32 %v14584_v2, %v14585_v6  ;;  %v14587_v5 = vld [vmem:[#allocation121_spill] sm:$0xff]  ;;  %v14588_v12 = vld [vmem:[#allocation123_spill] sm:$0xff] }
 0x2c0   : > { %v4865_v30 = vadd.f32 %v4821_v50, %v4772_v22  ;;  %v4866_v61 = vadd.f32 %v4822_v11, %v4773_v25  ;;  %v5483_v55 = vadd.f32 %v5451_v13, %v5412_v59  ;;  %v5593_v46 = vmul.f32 %v14587_v5, %v14586_v33  ;;  %v14589_v50 = vld [vmem:[#allocation54_spill] sm:$0xff] }
 0x2c1   : > { %v5594_v15 = vmul.f32 %v14587_v5, %v14588_v12  ;;  %v5484_v37 = vadd.f32 %v5452_v14, %v5413_v40  ;;  %v14590_v22 = vrot.slane %v14589_v50, 7  ;;  %v14591_v58 = vrot.slane %v14537_v28, 7  ;;  %v14595_v14 = vld [vmem:[#allocation107_spill] sm:$0xff]  ;;  %v14597_v12 = vld [vmem:[#allocation125_spill] sm:$0xff] }
 0x2c2   : > { %v5091_v29 = vadd.f32 %v5047_v19, %v4865_v30  ;;  %v14593_v11 = vrot.slane %v14530_v41, 7  ;;  %v5092_v25 = vadd.f32 %v5048_v38, %v4866_v61  ;;  %v5554_v13 = vadd.f32 %v5522_v42, %v5483_v55  ;;  %v14594_v19 = vld [vmem:[#allocation124_spill] sm:$0xff]  ;;  %v14599_v42 = vld [vmem:[#allocation51_spill] sm:$0xff] }
 0x2c3   : > { %v10111_v52 = vsel %vm1247_vm2, %v14591_v58, %v14590_v22  ;;  %v14592_v2 = vmov %v14591_v58  ;;  %v2316_v40 = vmul.f32 %v14594_v19, %v9166_v27  ;;  %v5555_v58 = vadd.f32 %v5523_v48, %v5484_v37 }
 0x2c4   : > { %v2238_v59 = vsel %vm1247_vm2, %v14593_v11, %v14592_v2  ;;  %v10126_v5 = vadd.f32 %v14595_v14, %v5091_v29  ;;  %v2317_v22 = vmul.f32 %v14594_v19, %v9152_v21  ;;  %v2365_v33 = vmul.f32 %v14597_v12, %v9059_v20  ;;  %v14602_v21 = vld [vmem:[#allocation122_spill] sm:$0xff] }
 0x2c5   : > { %v10121_v30 = vsel %vm1019_vm0, %v2238_v59, 0.0  ;;  %v10133_v61 = vadd.f32 %v14595_v14, %v5092_v25  ;;  %v5625_v38 = vadd.f32 %v5593_v46, %v5554_v13  ;;  %v2366_v2 = vmul.f32 %v14597_v12, %v9069_v56  ;;  %v14608_v12 = vld [vmem:[#allocation81_spill] sm:$0xff] }
 0x2c6   : > { %14596 = vst [vmem:[#allocation63_spill] sm:$0xff] %v10126_v5  ;;  %v14600_v55 = vrot.slane %v14599_v42, 1  ;;  %v14601_v27 = vrot.slane %v14589_v50, 1  ;;  %v5626_v48 = vadd.f32 %v5594_v15, %v5555_v58  ;;  %v5694_v29 = vmul.f32 %v14602_v21, %v10126_v5 }
 0x2c7   : > { %14598 = vst [vmem:[#allocation119_spill] sm:$0xff] %v10133_v61  ;;  %v2409_v11 = vadd.f32 %v2365_v33, %v2316_v40  ;;  %v14604_v25 = vrot.slane %v14537_v28, 1  ;;  %v5695_v13 = vmul.f32 %v14602_v21, %v10133_v61  ;;  %v2410_v56 = vadd.f32 %v2366_v2, %v2317_v22  ;;  %v14606_v22 = vld [vmem:[#allocation82_spill] sm:$0xff] }
 0x2c8   : > { %v2510_v37 = vsel %vm1424_vm3, %v14601_v27, %v14600_v55  ;;  %v14603_v59 = vmov %v14601_v27  ;;  %v2590_v15 = vmul.f32 %v14542_v0, %v9288_v51  ;;  %v5726_v33 = vadd.f32 %v5694_v29, %v5625_v38  ;;  %v14605_v27 = vld [vmem:[#allocation87_spill] sm:$0xff] }
 0x2c9   : > { %v10151_v46 = vsel %vm1424_vm3, %v14604_v25, %v14603_v59  ;;  %v10157_v55 = vsel %vm1014_vm1, %v2510_v37, 0.0  ;;  %v2591_v40 = vmul.f32 %v14542_v0, %v9318_v26  ;;  %v2818_v58 = vmul.f32 %v9892_v53, %v14545_v32  ;;  %v14607_v37 = vld [vmem:[#allocation83_spill] sm:$0xff] }
 0x2ca   : > { %v2819_v59 = vmul.f32 %v9892_v53, %v14605_v27  ;;  %v5727_v25 = vadd.f32 %v5695_v13, %v5626_v48  ;;  %v2634_v20 = vadd.f32 %v2590_v15, %v2409_v11  ;;  %v2857_v2 = vmul.f32 %v14606_v22, %v9922_v18  ;;  %v14613_v15 = vld [vmem:[#allocation45_spill] sm:$0xff] }
 0x2cb   : > { %v2858_v21 = vmul.f32 %v14606_v22, %v14607_v37  ;;  %v5765_v51 = vadd.f32 %v14608_v12, %v5726_v33  ;;  %v2635_v38 = vadd.f32 %v2591_v40, %v2410_v56  ;;  %v14609_v29 = vrot.slane %v14589_v50, 6 }
 0x2cc   : > { %v14610_v26 = vrot.slane %v14537_v28, 6  ;;  %v14612_v48 = vrot.slane %v14530_v41, 6  ;;  %v5766_v13 = vadd.f32 %v14608_v12, %v5727_v25  ;;  %v10188_v33 = vadd.f32 %v14613_v15, %v2634_v20  ;;  %v14616_v25 = vld [vmem:[#allocation88_spill] sm:$0xff] }
 0x2cd   : > { %v2889_v56 = vadd.f32 %v2857_v2, %v2818_v58  ;;  %v2890_v40 = vadd.f32 %v2858_v21, %v2819_v59  ;;  %v5797_v27 = vmul.f32 %v5765_v51, %v10070_v1  ;;  %v10192_v22 = vadd.f32 %v14613_v15, %v2635_v38  ;;  %v14617_v1 = vld [vmem:[#allocation86_spill] sm:$0xff]  ;;  %v14618_v59 = vld [vmem:[#allocation72_spill] sm:$0xff] }
 0x2ce   : > { %v10178_v0 = vsel %vm3071_vm4, %v14610_v26, %v14609_v29  ;;  %v14611_v32 = vmov %v14610_v26  ;;  %v14615_v26 = vld [vmem:[#allocation85_spill] sm:$0xff]  ;;  %v2928_v20 = vmul.f32 %v14616_v25, %v10188_v33  ;;  %v3228_v58 = vmul.f32 %v14617_v1, %v9862_v10 }
 0x2cf   : > { %v3099_v11 = vsel %vm3071_vm4, %v14612_v48, %v14611_v32  ;;  %14614 = vst [vmem:[#allocation87_spill] sm:$0xff] %v10192_v22  ;;  %v3179_v37 = vmul.f32 %v14615_v26, %v9929_v62  ;;  %v5798_v32 = vmul.f32 %v5766_v13, %v10077_v63  ;;  %v3180_v21 = vmul.f32 %v14615_v26, %v9913_v8  ;;  %v14619_v63 = vld [vmem:[#allocation74_spill] sm:$0xff] }
 0x2d0   : > { %v10196_v29 = vsel %vm1021_vm6, %v3099_v11, 0.0  ;;  %v5829_v2 = vadd.f32 %v5797_v27, %v14618_v59  ;;  %v2929_v51 = vmul.f32 %v14616_v25, %v10192_v22  ;;  %v3229_v38 = vmul.f32 %v14617_v1, %v9846_v45 }
 0x2d1   : > { %v3321_v62 = vmul.f32 %v14559_v7, %v8986_v31  ;;  %v5830_v48 = vadd.f32 %v5798_v32, %v14619_v63  ;;  %v2960_v11 = vadd.f32 %v2928_v20, %v2889_v56  ;;  %v3272_v13 = vadd.f32 %v3228_v58, %v3179_v37  ;;  %v14625_v63 = vld [vmem:[#allocation98_spill] sm:$0xff] }
 0x2d2   : > { %v3322_v8 = vmul.f32 %v14559_v7, %v14530_v41  ;;  %v2961_v15 = vadd.f32 %v2929_v51, %v2890_v40  ;;  %v3273_v26 = vadd.f32 %v3229_v38, %v3180_v21  ;;  %v3414_v27 = vmul.f32 %v9964_v54, %v9882_v17  ;;  %v14620_v7 = vld [vmem:[#allocation65_spill] sm:$0xff]  ;;  %v14624_v38 = vld [vmem:[#allocation95_spill] sm:$0xff] }
 0x2d3   : > { %v3415_v25 = vmul.f32 %v9964_v54, %v9888_v44  ;;  %v5860_v59 = vpack.c.bf16 %v5830_v48, %v5829_v2  ;;  %v2999_v1 = vadd.f32 %v14561_v43, %v2960_v11  ;;  %v3365_v12 = vadd.f32 %v3321_v62, %v3272_v13  ;;  %v14626_v48 = vld [vmem:[#allocation64_spill] sm:$0xff] }
 0x2d4   : > { %v3505_v22 = vrot.slane %v14589_v50, 2  ;;  %v3000_v56 = vadd.f32 %v14561_v43, %v2961_v15  ;;  %v3366_v37 = vadd.f32 %v3322_v8, %v3273_v26  ;;  %v13877_v32 = vrot.slane %v14599_v42, 2  ;;  %v10238_v43 = vld [vmem:[%s13643_s11] ss:$0 sm:$0xff]  ;;  %v14623_v26 = vld [vmem:[#allocation68_spill] sm:$0xff]  ;;  %v14627_v8 = vld [vmem:[#allocation99_spill] sm:$0xff] }
 0x2d5   : > { %v3640_v40 = vmul.f32 %v14620_v7, %v9991_v35  ;;  %6876 = vmatmul.mubr.bf16.vlgmr.msra.gmra.mxu1 %v5860_v59  ;;  %v3458_v20 = vadd.f32 %v3414_v27, %v3365_v12  ;;  %v14621_v21 = vrot.slane %v14537_v28, 2  ;;  %v3641_v2 = vmul.f32 %v14620_v7, %v10012_v16  ;;  %14622 = vst [vmem:[#allocation82_spill] sm:$0xff] %v10238_v43  ;;  %v14628_v27 = vld [vmem:[#allocation66_spill] sm:$0xff] }
 0x2d6   : > { %v3865_v51 = vmul.f32 %v10238_v43, %v14623_v26  ;;  %v3459_v35 = vadd.f32 %v3415_v25, %v3366_v37  ;;  %v3558_v12 = vsel %vm3532_vm5, %v3505_v22, %v13877_v32  ;;  %v3866_v62 = vmul.f32 %v10238_v43, %v14624_v38  ;;  %v14630_v26 = vld [vmem:[#allocation96_spill] sm:$0xff]  ;;  %v14631_v32 = vld [vmem:[#allocation61_spill] sm:$0xff] }
 0x2d7   : > { %v10231_v58 = vsel %vm3532_vm5, %v14621_v21, %v3505_v22  ;;  %v3904_v16 = vmul.f32 %v14626_v48, %v14625_v63  ;;  %v10252_v11 = vsel %vm1016_vm10, %v3558_v12, 0.0  ;;  %v3684_v13 = vadd.f32 %v3640_v40, %v3458_v20  ;;  %v14629_v22 = vld [vmem:[#allocation101_spill] sm:$0xff] }
 0x2d8   : > { %v3905_v15 = vmul.f32 %v14626_v48, %v14627_v8  ;;  %v3975_v25 = vmul.f32 %v14628_v27, %v14570_v4  ;;  %v3685_v59 = vadd.f32 %v3641_v2, %v3459_v35  ;;  %v3976_v21 = vmul.f32 %v14628_v27, %v14629_v22 }
 0x2d9   : > { %v3936_v37 = vadd.f32 %v3904_v16, %v3865_v51  ;;  %v4046_v38 = vmul.f32 %v14630_v26, %v10027_v57  ;;  %v10263_v43 = vadd.f32 %v14631_v32, %v3684_v13  ;;  %v4047_v40 = vmul.f32 %v14630_v26, %v10030_v34  ;;  %v14639_v34 = vld [vmem:[#allocation97_spill] sm:$0xff] }
 0x2da   : > { %v3937_v12 = vadd.f32 %v3905_v15, %v3866_v62  ;;  %v14633_v20 = vrot.slane %v14589_v50, 5  ;;  %v14634_v48 = vrot.slane %v14537_v28, 5  ;;  %v10274_v51 = vadd.f32 %v14631_v32, %v3685_v59  ;;  %v14638_v15 = vld [vmem:[#allocation102_spill] sm:$0xff]  ;;  %v14640_v32 = vld [vmem:[#allocation103_spill] sm:$0xff] }
 0x2db   : > { %14632 = vst [vmem:[#allocation45_spill] sm:$0xff] %v10263_v43  ;;  %v4007_v35 = vadd.f32 %v3975_v25, %v3936_v37  ;;  %v14637_v13 = vrot.slane %v14530_v41, 5  ;;  %v4117_v57 = vmul.f32 %v14639_v34, %v10263_v43  ;;  %v4451_v59 = vmul.f32 %v14640_v32, %v10196_v29 }
 0x2dc   : > { %v4319_v2 = vsel %vm4292_vm7, %v14634_v48, %v14633_v20  ;;  %14635 = vst [vmem:[#allocation88_spill] sm:$0xff] %v10274_v51  ;;  %v14636_v16 = vmov %v14634_v48  ;;  %v4008_v26 = vadd.f32 %v3976_v21, %v3937_v12  ;;  %v4118_v37 = vmul.f32 %v14639_v34, %v10274_v51 }
 0x2dd   : > { %v4320_v62 = vsel %vm4292_vm7, %v14637_v13, %v14636_v16  ;;  %v4403_v27 = vmul.f32 %v14638_v15, %v4319_v2  ;;  %v4078_v25 = vadd.f32 %v4046_v38, %v4007_v35  ;;  %v4452_v16 = vmul.f32 %v14640_v32, %v10178_v0 }
 0x2de   : > { %v4353_v48 = vsel %vm1023_vm8, %v4320_v62, 0.0  ;;  %v4079_v2 = vadd.f32 %v4047_v40, %v4008_v26  ;;  %v4544_v21 = vmul.f32 %v9649_v49, %v10121_v30  ;;  %v4545_v12 = vmul.f32 %v9649_v49, %v10111_v52  ;;  %v14641_v26 = vld [vmem:[#allocation106_spill] sm:$0xff] }
 0x2df   : > { %v4402_v20 = vmul.f32 %v14638_v15, %v4353_v48  ;;  %v4637_v13 = vmul.f32 %v9663_v24, %v14537_v28  ;;  %v4149_v62 = vadd.f32 %v4117_v57, %v4078_v25  ;;  %v4496_v35 = vadd.f32 %v4452_v16, %v4403_v27 }
 0x2e0   : > { %v4638_v34 = vmul.f32 %v9663_v24, %v14589_v50  ;;  %v4150_v15 = vadd.f32 %v4118_v37, %v4079_v2  ;;  %v4730_v48 = vmul.f32 %v9677_v23, %v10151_v46  ;;  %v4731_v40 = vmul.f32 %v9677_v23, %v10157_v55  ;;  %v14642_v37 = vld [vmem:[#allocation111_spill] sm:$0xff] }
 0x2e1   : > { %v4495_v38 = vadd.f32 %v4451_v59, %v4402_v20  ;;  %v4823_v32 = vmul.f32 %v14641_v26, %v10231_v58  ;;  %v4188_v49 = vadd.f32 %v14581_v60, %v4149_v62  ;;  %v4589_v43 = vadd.f32 %v4545_v12, %v4496_v35  ;;  %v14644_v35 = vld [vmem:[#allocation112_spill] sm:$0xff] }
 0x2e2   : > { %v4824_v57 = vmul.f32 %v14641_v26, %v10252_v11  ;;  %v4189_v27 = vadd.f32 %v14581_v60, %v4150_v15  ;;  %v4912_v59 = vrot.slane %v14589_v50, 3  ;;  %v13893_v25 = vrot.slane %v14599_v42, 3 }
 0x2e3   : > { %v4588_v51 = vadd.f32 %v4544_v21, %v4495_v38  ;;  %v5311_v20 = vmul.f32 %v14642_v37, %v9726_v9  ;;  %v10316_v16 = vmul.f32 %v4188_v49, %v2999_v1  ;;  %v4682_v23 = vadd.f32 %v4638_v34, %v4589_v43 }
 0x2e4   : > { %v5312_v21 = vmul.f32 %v14642_v37, %v9778_v47  ;;  %v10320_v12 = vmul.f32 %v4189_v27, %v3000_v56  ;;  %v4965_v60 = vsel %vm4939_vm9, %v4912_v59, %v13893_v25  ;;  %v14643_v62 = vrot.slane %v14537_v28, 3  ;;  %v14646_v27 = vld [vmem:[#allocation115_spill] sm:$0xff]  ;;  %v14647_v25 = vld [vmem:[#allocation113_spill] sm:$0xff] }
 0x2e5   : > { %v4681_v2 = vadd.f32 %v4637_v13, %v4588_v51  ;;  %v5343_v49 = vadd.f32 %v5311_v20, %v14644_v35  ;;  %v4775_v51 = vadd.f32 %v4731_v40, %v4682_v23  ;;  %v5001_v43 = vsel %vm1018_vm11, %v4965_v60, 0.0  ;;  %v14645_v13 = vld [vmem:[#allocation110_spill] sm:$0xff] }
 0x2e6   : > { %v4966_v38 = vsel %vm4939_vm9, %v14643_v62, %v4912_v59  ;;  %v5050_v34 = vmul.f32 %v14645_v13, %v5001_v43  ;;  %v5344_v15 = vadd.f32 %v5312_v21, %v14644_v35  ;;  %v5382_v37 = vmul.f32 %v14647_v25, %v14646_v27  ;;  %v14648_v20 = vld [vmem:[#allocation118_spill] sm:$0xff]  ;;  %v14651_v43 = vld [vmem:[#allocation117_spill] sm:$0xff]  ;;  %v14652_v21 = vld [vmem:[#allocation123_spill] sm:$0xff] }
 0x2e7   : > { %v4774_v1 = vadd.f32 %v4730_v48, %v4681_v2  ;;  %v5049_v56 = vmul.f32 %v14645_v13, %v4966_v38  ;;  %v5383_v47 = vmul.f32 %v14647_v25, %v9795_v39  ;;  %v4868_v62 = vadd.f32 %v4824_v57, %v4775_v51  ;;  %v14649_v48 = vld [vmem:[#allocation116_spill] sm:$0xff]  ;;  %v14653_v25 = vld [vmem:[#allocation121_spill] sm:$0xff] }
 0x2e8   : > { %v5453_v23 = vmul.f32 %v14649_v48, %v14648_v20  ;;  %v5454_v40 = vmul.f32 %v14649_v48, %v14585_v6  ;;  %v5414_v2 = vadd.f32 %v5382_v37, %v5343_v49  ;;  %v14650_v38 = vld [vmem:[#allocation120_spill] sm:$0xff]  ;;  %v5525_v35 = vmul.f32 %v14651_v43, %v14652_v21  ;;  %v14654_v20 = vld [vmem:[#allocation53_spill] sm:$0xff] }
 0x2e9   : > { %v4867_v59 = vadd.f32 %v4823_v32, %v4774_v1  ;;  %v5415_v60 = vadd.f32 %v5383_v47, %v5344_v15  ;;  %v5524_v13 = vmul.f32 %v14651_v43, %v14650_v38  ;;  %v5094_v9 = vadd.f32 %v5050_v34, %v4868_v62 }
 0x2ea   : > { %v5595_v32 = vmul.f32 %v14653_v25, %v10126_v5  ;;  %v5596_v57 = vmul.f32 %v14653_v25, %v10133_v61  ;;  %v5485_v1 = vadd.f32 %v5453_v23, %v5414_v2  ;;  %v14655_v48 = vrot.slane %v14654_v20, 7 }
 0x2eb   : > { %v5093_v27 = vadd.f32 %v5049_v56, %v4867_v59  ;;  %v5486_v51 = vadd.f32 %v5454_v40, %v5415_v60  ;;  %v14656_v47 = vrot.slane %v14599_v42, 7  ;;  %v14658_v56 = vrot.slane %v14589_v50, 7  ;;  %v14660_v60 = vld [vmem:[#allocation125_spill] sm:$0xff] }
 0x2ec   : > { %v10370_v59 = vadd.f32 %v14595_v14, %v5094_v9  ;;  %v5556_v23 = vadd.f32 %v5524_v13, %v5485_v1  ;;  %v2319_v2 = vmul.f32 %v14594_v19, %v9846_v45 }
 0x2ed   : > { %v10358_v37 = vsel %vm1247_vm2, %v14656_v47, %v14655_v48  ;;  %v14657_v49 = vmov %v14656_v47  ;;  %v10367_v15 = vadd.f32 %v14595_v14, %v5093_v27  ;;  %v2318_v48 = vmul.f32 %v14594_v19, %v9862_v10  ;;  %v14661_v27 = vld [vmem:[#allocation122_spill] sm:$0xff] }
 0x2ee   : > { %v2236_v34 = vsel %vm1247_vm2, %v14658_v56, %v14657_v49  ;;  %v5557_v40 = vadd.f32 %v5525_v35, %v5486_v51  ;;  %v2367_v47 = vmul.f32 %v14660_v60, %v8986_v31  ;;  %v5697_v9 = vmul.f32 %v14661_v27, %v10370_v59 }
 0x2ef   : > { %14659 = vst [vmem:[#allocation72_spill] sm:$0xff] %v10367_v15  ;;  %v10374_v62 = vsel %vm1019_vm0, %v2236_v34, 0.0  ;;  %v5696_v49 = vmul.f32 %v14661_v27, %v10367_v15  ;;  %v2368_v56 = vmul.f32 %v14660_v60, %v14530_v41  ;;  %v14662_v34 = vld [vmem:[#allocation57_spill] sm:$0xff]  ;;  %v14664_v10 = vrot.slane %v14654_v20, 1  ;;  %v10406_v60 = vld [vmem:[#allocation13 + $0x2] ss:$0 sm:$0xff] }
 0x2f0   : > { %v14663_v14 = vrot.slane %v14662_v34, 1  ;;  %v5627_v45 = vadd.f32 %v5595_v32, %v5556_v23  ;;  %v5628_v35 = vadd.f32 %v5596_v57, %v5557_v40  ;;  %v2411_v1 = vadd.f32 %v2367_v47, %v2318_v48 }
 0x2f1   : > { %v14665_v51 = vmov %v14664_v10  ;;  %v14666_v31 = vrot.slane %v14599_v42, 1  ;;  %v2412_v19 = vadd.f32 %v2368_v56, %v2319_v2  ;;  %v2593_v32 = vmul.f32 %v10406_v60, %v9888_v44  ;;  %v10416_v56 = vld [vmem:[#allocation16 + $0x1] ss:$0 sm:$0xff] }
 0x2f2   : > { %v2508_v13 = vsel %vm1424_vm3, %v14664_v10, %v14663_v14  ;;  %v2592_v14 = vmul.f32 %v10406_v60, %v9882_v17  ;;  %v5728_v57 = vadd.f32 %v5696_v49, %v5627_v45  ;;  %v5729_v48 = vadd.f32 %v5697_v9, %v5628_v35  ;;  %14668 = vst [vmem:[#allocation74_spill] sm:$0xff] %v10416_v56 }
 0x2f3   : > { %v10400_v27 = vsel %vm1424_vm3, %v14666_v31, %v14665_v51  ;;  %v10404_v41 = vsel %vm1014_vm1, %v2508_v13, 0.0  ;;  %v2820_v23 = vmul.f32 %v9892_v53, %v9922_v18  ;;  %v14667_v31 = vld [vmem:[#allocation83_spill] sm:$0xff]  ;;  %v2637_v47 = vadd.f32 %v2593_v32, %v2412_v19  ;;  %v14670_v51 = vld [vmem:[#allocation81_spill] sm:$0xff] }
 0x2f4   : > { %v2821_v40 = vmul.f32 %v9892_v53, %v14667_v31  ;;  %v2636_v2 = vadd.f32 %v2592_v14, %v2411_v1  ;;  %v2859_v10 = vmul.f32 %v10416_v56, %v10188_v33  ;;  %v14669_v13 = vld [vmem:[#allocation87_spill] sm:$0xff]  ;;  %v5767_v44 = vadd.f32 %v14670_v51, %v5728_v57 }
 0x2f5   : > { %v2860_v17 = vmul.f32 %v10416_v56, %v14669_v13  ;;  %v5768_v49 = vadd.f32 %v14670_v51, %v5729_v48  ;;  %v14671_v9 = vrot.slane %v14654_v20, 6  ;;  %v14672_v18 = vrot.slane %v14599_v42, 6  ;;  %v10438_v14 = vld [vmem:[#allocation15] ss:$0 sm:$0xff]  ;;  %v10454_v56 = vld [vmem:[#allocation16 + $0x2] ss:$0 sm:$0xff] }
 0x2f6   : > { %v14674_v35 = vrot.slane %v14589_v50, 6  ;;  %14675 = vst [vmem:[#allocation65_spill] sm:$0xff] %v10438_v14  ;;  %v10441_v32 = vadd.f32 %v10438_v14, %v2636_v2  ;;  %v10444_v57 = vadd.f32 %v10438_v14, %v2637_v47  ;;  %v2891_v48 = vadd.f32 %v2859_v10, %v2820_v23  ;;  %14678 = vst [vmem:[#allocation95_spill] sm:$0xff] %v10454_v56  ;;  %v14680_v47 = vld [vmem:[#allocation71_spill] sm:$0xff] }
 0x2f7   : > { %v10430_v45 = vsel %vm3071_vm4, %v14672_v18, %v14671_v9  ;;  %v14673_v19 = vmov %v14672_v18  ;;  %v2892_v31 = vadd.f32 %v2860_v17, %v2821_v40  ;;  %v5799_v9 = vmul.f32 %v5767_v44, %v10316_v16  ;;  %v14681_v17 = vld [vmem:[#allocation73_spill] sm:$0xff] }
 0x2f8   : > { %v3097_v1 = vsel %vm3071_vm4, %v14674_v35, %v14673_v19  ;;  %14676 = vst [vmem:[#allocation68_spill] sm:$0xff] %v10444_v57  ;;  %v5800_v18 = vmul.f32 %v5768_v49, %v10320_v12  ;;  %v14677_v19 = vld [vmem:[#allocation85_spill] sm:$0xff]  ;;  %v2930_v2 = vmul.f32 %v10454_v56, %v10441_v32  ;;  %v2931_v23 = vmul.f32 %v10454_v56, %v10444_v57  ;;  %v14679_v12 = vld [vmem:[#allocation86_spill] sm:$0xff]  ;;  %v10471_v49 = vld [vmem:[%s13641_s9 + $0x2] ss:$0 sm:$0xff] }
 0x2f9   : > { %v10450_v51 = vsel %vm1021_vm6, %v3097_v1, 0.0  ;;  %v3181_v35 = vmul.f32 %v14677_v19, %v10196_v29  ;;  %v3182_v16 = vmul.f32 %v14677_v19, %v10178_v0  ;;  %v3230_v40 = vmul.f32 %v14679_v12, %v10121_v30  ;;  %14682 = vst [vmem:[#allocation98_spill] sm:$0xff] %v10471_v49 }
 0x2fa   : > { %v5831_v10 = vadd.f32 %v5799_v9, %v14680_v47  ;;  %v5832_v44 = vadd.f32 %v5800_v18, %v14681_v17  ;;  %v3231_v29 = vmul.f32 %v14679_v12, %v10111_v52  ;;  %v3323_v1 = vmul.f32 %v10471_v49, %v14537_v28  ;;  %v10481_v12 = vld [vmem:[#allocation18] ss:$0 sm:$0xff] }
 0x2fb   : > { %v2962_v56 = vadd.f32 %v2930_v2, %v2891_v48  ;;  %v2963_v0 = vadd.f32 %v2931_v23, %v2892_v31  ;;  %v3274_v19 = vadd.f32 %v3230_v40, %v3181_v35  ;;  %v3324_v14 = vmul.f32 %v10471_v49, %v14589_v50  ;;  %14683 = vst [vmem:[#allocation99_spill] sm:$0xff] %v10481_v12 }
 0x2fc   : > { %v5861_v9 = vpack.c.bf16 %v5832_v44, %v5831_v10  ;;  %v3275_v47 = vadd.f32 %v3231_v29, %v3182_v16  ;;  %v3416_v18 = vmul.f32 %v9964_v54, %v10151_v46  ;;  %v3417_v17 = vmul.f32 %v9964_v54, %v10157_v55 }
 0x2fd   : > { %v10484_v57 = vadd.f32 %v10481_v12, %v2962_v56  ;;  %v10487_v48 = vadd.f32 %v10481_v12, %v2963_v0  ;;  %v3367_v31 = vadd.f32 %v3323_v1, %v3274_v19  ;;  %v3507_v35 = vrot.slane %v14654_v20, 2  ;;  %v14685_v19 = vld [vmem:[#allocation82_spill] sm:$0xff] }
 0x2fe   : > { %6879 = vmatprep.mubr.bf16.mxu1 %v5861_v9  ;;  %v3368_v2 = vadd.f32 %v3324_v14, %v3275_v47  ;;  %v13917_v23 = vrot.slane %v14662_v34, 2  ;;  %v3642_v16 = vmul.f32 %v14620_v7, %v10231_v58  ;;  %v3643_v40 = vmul.f32 %v14620_v7, %v10252_v11  ;;  %v14686_v11 = vld [vmem:[#allocation64_spill] sm:$0xff] }
 0x2ff   : > { %v3460_v10 = vadd.f32 %v3416_v18, %v3367_v31  ;;  %v14684_v56 = vrot.slane %v14599_v42, 2  ;;  %v3867_v29 = vmul.f32 %v14685_v19, %v14625_v63  ;;  %v3868_v14 = vmul.f32 %v14685_v19, %v14627_v8  ;;  %v10520_v8 = vld [vmem:[%s13643_s11 + $0x2] ss:$0 sm:$0xff]  ;;  %v14690_v31 = vld [vmem:[#allocation56_spill] sm:$0xff] }
 0x300   : > { %v3461_v1 = vadd.f32 %v3417_v17, %v3368_v2  ;;  %v3556_v58 = vsel %vm3532_vm5, %v3507_v35, %v13917_v23  ;;  %v3906_v0 = vmul.f32 %v14686_v11, %v14570_v4  ;;  %v3907_v9 = vmul.f32 %v14686_v11, %v14629_v22  ;;  %14688 = vst [vmem:[#allocation96_spill] sm:$0xff] %v10520_v8  ;;  %v14689_v18 = vld [vmem:[#allocation91_spill] sm:$0xff]  ;;  %v10536_v11 = vld [vmem:[%s14488_s27] ss:$0 sm:$0xff] }
 0x301   : > { %v10499_v44 = vsel %vm3532_vm5, %v14684_v56, %v3507_v35  ;;  %v10515_v47 = vsel %vm1016_vm10, %v3556_v58, 0.0  ;;  %v3686_v63 = vadd.f32 %v3642_v16, %v3460_v10  ;;  %v3977_v17 = vmul.f32 %v10520_v8, %v14689_v18  ;;  %v10529_v58 = vld [vmem:[%s13643_s11 + $0x3] ss:$0 sm:$0xff]  ;;  %v14692_v16 = vld [vmem:[#allocation45_spill] sm:$0xff]  ;;  %14693 = vst [vmem:[#allocation102_spill] sm:$0xff] %v10536_v11 }
 0x302   : > { %14687 = vst [vmem:[#allocation66_spill] sm:$0xff] %v10515_v47  ;;  %v3978_v35 = vmul.f32 %v10520_v8, %v14690_v31  ;;  %v3687_v2 = vadd.f32 %v3643_v40, %v3461_v1  ;;  %v3938_v56 = vadd.f32 %v3906_v0, %v3867_v29  ;;  %v3939_v23 = vadd.f32 %v3907_v9, %v3868_v14  ;;  %v14695_v8 = vld [vmem:[#allocation88_spill] sm:$0xff] }
 0x303   : > { %14691 = vst [vmem:[#allocation61_spill] sm:$0xff] %v10529_v58  ;;  %v4048_v10 = vmul.f32 %v10529_v58, %v14692_v16  ;;  %v10539_v18 = vadd.f32 %v10536_v11, %v3686_v63  ;;  %v4049_v40 = vmul.f32 %v10529_v58, %v14695_v8  ;;  %v14696_v29 = vrot.slane %v14654_v20, 5  ;;  %v10563_v8 = vld [vmem:[%s13643_s11 + $0x4] ss:$0 sm:$0xff] }
 0x304   : > { %v14697_v14 = vrot.slane %v14599_v42, 5  ;;  %v14699_v9 = vrot.slane %v14589_v50, 5  ;;  %v10556_v63 = vadd.f32 %v10536_v11, %v3687_v2  ;;  %v4009_v31 = vadd.f32 %v3977_v17, %v3938_v56  ;;  %14701 = vst [vmem:[#allocation106_spill] sm:$0xff] %v10563_v8 }
 0x305   : > { %14694 = vst [vmem:[#allocation97_spill] sm:$0xff] %v10539_v18  ;;  %v4010_v22 = vadd.f32 %v3978_v35, %v3939_v23 }
 0x306   : > { %v4317_v1 = vsel %vm4292_vm7, %v14697_v14, %v14696_v29  ;;  %v14698_v0 = vmov %v14697_v14  ;;  %14700 = vst [vmem:[#allocation103_spill] sm:$0xff] %v10556_v63  ;;  %v4119_v29 = vmul.f32 %v10563_v8, %v10539_v18  ;;  %v10567_v14 = vld [vmem:[#allocation21] ss:$0 sm:$0xff]  ;;  %v4080_v17 = vadd.f32 %v4048_v10, %v4009_v31 }
 0x307   : > { %v4318_v16 = vsel %vm4292_vm7, %v14699_v9, %v14698_v0  ;;  %14702 = vst [vmem:[#allocation112_spill] sm:$0xff] %v10567_v14  ;;  %v4405_v2 = vmul.f32 %v10567_v14, %v4317_v1  ;;  %v10571_v9 = vld [vmem:[#allocation21 + $0x1] ss:$0 sm:$0xff]  ;;  %v4081_v35 = vadd.f32 %v4049_v40, %v4010_v22  ;;  %v4120_v56 = vmul.f32 %v10563_v8, %v10556_v63  ;;  %v14705_v40 = vld [vmem:[#allocation105_spill] sm:$0xff] }
 0x308   : > { %v4355_v58 = vsel %vm1023_vm8, %v4318_v16, 0.0  ;;  %14703 = vst [vmem:[#allocation117_spill] sm:$0xff] %v10571_v9  ;;  %v4453_v23 = vmul.f32 %v10571_v9, %v10450_v51  ;;  %v4454_v16 = vmul.f32 %v10571_v9, %v10430_v45  ;;  %v14704_v18 = vld [vmem:[#allocation104_spill] sm:$0xff]  ;;  %v4639_v1 = vmul.f32 %v9663_v24, %v14599_v42 }
 0x309   : > { %v4404_v0 = vmul.f32 %v10567_v14, %v4355_v58  ;;  %v4546_v19 = vmul.f32 %v14704_v18, %v10374_v62  ;;  %v4547_v58 = vmul.f32 %v14704_v18, %v10358_v37  ;;  %v4151_v14 = vadd.f32 %v4119_v29, %v4080_v17  ;;  %v10593_v18 = vld [vmem:[#allocation19] ss:$0 sm:$0xff] }
 0x30a   : > { %v4152_v4 = vadd.f32 %v4120_v56, %v4081_v35  ;;  %v4498_v31 = vadd.f32 %v4454_v16, %v4405_v2  ;;  %v4640_v22 = vmul.f32 %v9663_v24, %v14654_v20  ;;  %v4732_v9 = vmul.f32 %v14705_v40, %v10400_v27  ;;  %14706 = vst [vmem:[#allocation121_spill] sm:$0xff] %v10593_v18  ;;  %v14707_v35 = vld [vmem:[#allocation108_spill] sm:$0xff]  ;;  %v14708_v56 = vld [vmem:[#allocation109_spill] sm:$0xff] }
 0x30b   : > { %v4497_v11 = vadd.f32 %v4453_v23, %v4404_v0  ;;  %v4733_v0 = vmul.f32 %v14705_v40, %v10404_v41  ;;  %v4825_v23 = vmul.f32 %v14641_v26, %v10499_v44  ;;  %v4190_v8 = vadd.f32 %v10593_v18, %v4151_v14 }
 0x30c   : > { %v4191_v29 = vadd.f32 %v10593_v18, %v4152_v4  ;;  %v4591_v2 = vadd.f32 %v4547_v58, %v4498_v31  ;;  %v4826_v24 = vmul.f32 %v14641_v26, %v10515_v47  ;;  %v13938_v17 = vrot.slane %v14662_v34, 3  ;;  %v14709_v4 = vld [vmem:[#allocation114_spill] sm:$0xff]  ;;  %v14715_v18 = vld [vmem:[#allocation113_spill] sm:$0xff] }
 0x30d   : > { %v4590_v10 = vadd.f32 %v4546_v19, %v4497_v11  ;;  %v4914_v11 = vrot.slane %v14654_v20, 3  ;;  %v5274_v16 = vmul.f32 %v14708_v56, %v14707_v35  ;;  %v10604_v40 = vmul.f32 %v4190_v8, %v10484_v57  ;;  %v14711_v57 = vld [vmem:[#allocation115_spill] sm:$0xff] }
 0x30e   : > { %v10607_v63 = vmul.f32 %v4191_v29, %v10487_v48  ;;  %v4684_v14 = vadd.f32 %v4640_v22, %v4591_v2  ;;  %v5275_v58 = vmul.f32 %v14708_v56, %v14709_v4  ;;  %v14712_v8 = vld [vmem:[#allocation111_spill] sm:$0xff]  ;;  %v14713_v29 = vld [vmem:[#allocation110_spill] sm:$0xff] }
 0x30f   : > { %v4683_v19 = vadd.f32 %v4639_v1, %v4590_v10  ;;  %v4963_v26 = vsel %vm4939_vm9, %v4914_v11, %v13938_v17  ;;  %v14710_v1 = vrot.slane %v14599_v42, 3  ;;  %v5313_v35 = vmul.f32 %v14712_v8, %v14711_v57  ;;  %v14714_v17 = vld [vmem:[#allocation118_spill] sm:$0xff] }
 0x310   : > { %v4777_v48 = vadd.f32 %v4733_v0, %v4684_v14  ;;  %v5003_v22 = vsel %vm1018_vm11, %v4963_v26, 0.0  ;;  %v5384_v47 = vmul.f32 %v14715_v18, %v14714_v17  ;;  %v5385_v0 = vmul.f32 %v14715_v18, %v14585_v6  ;;  %v14716_v14 = vld [vmem:[#allocation116_spill] sm:$0xff]  ;;  %v14717_v18 = vld [vmem:[#allocation107_spill] sm:$0xff] }
 0x311   : > { %v4776_v31 = vadd.f32 %v4732_v9, %v4683_v19  ;;  %v4964_v10 = vsel %vm4939_vm9, %v14710_v1, %v4914_v11  ;;  %v5314_v9 = vmul.f32 %v14712_v8, %v9795_v39  ;;  %v5052_v56 = vmul.f32 %v14713_v29, %v5003_v22  ;;  %v14719_v22 = vld [vmem:[#allocation58_spill] sm:$0xff] }
 0x312   : > { %v5051_v2 = vmul.f32 %v14713_v29, %v4964_v10  ;;  %v5345_v4 = vadd.f32 %v5313_v35, %v5274_v16  ;;  %v4870_v11 = vadd.f32 %v4826_v24, %v4777_v48  ;;  %v5455_v26 = vmul.f32 %v14716_v14, %v14650_v38 }
 0x313   : > { %v4869_v19 = vadd.f32 %v4825_v23, %v4776_v31  ;;  %v5346_v1 = vadd.f32 %v5314_v9, %v5275_v58  ;;  %v5456_v8 = vmul.f32 %v14716_v14, %v14652_v21  ;;  %v5526_v23 = vmul.f32 %v14651_v43, %v10126_v5 }
 0x314   : > { %v5416_v10 = vadd.f32 %v5384_v47, %v5345_v4  ;;  %v5096_v16 = vadd.f32 %v5052_v56, %v4870_v11  ;;  %v5527_v24 = vmul.f32 %v14651_v43, %v10133_v61  ;;  %v5597_v58 = vmul.f32 %v14653_v25, %v10367_v15 }
 0x315   : > { %v5095_v57 = vadd.f32 %v5051_v2, %v4869_v19  ;;  %v5417_v31 = vadd.f32 %v5385_v0, %v5346_v1  ;;  %v5598_v47 = vmul.f32 %v14653_v25, %v10370_v59  ;;  %v14720_v29 = vrot.slane %v14719_v22, 7  ;;  %v14725_v25 = vld [vmem:[#allocation124_spill] sm:$0xff]  ;;  %v14726_v0 = vld [vmem:[#allocation122_spill] sm:$0xff] }
 0x316   : > { %v5487_v48 = vadd.f32 %v5455_v26, %v5416_v10  ;;  %v14721_v2 = vrot.slane %v14662_v34, 7  ;;  %v10655_v43 = vadd.f32 %v14717_v18, %v5096_v16  ;;  %v2320_v11 = vmul.f32 %v14725_v25, %v10121_v30 }
 0x317   : > { %v10642_v35 = vadd.f32 %v14717_v18, %v5095_v57  ;;  %v5488_v19 = vadd.f32 %v5456_v8, %v5417_v31  ;;  %v14724_v57 = vrot.slane %v14654_v20, 7  ;;  %v2321_v10 = vmul.f32 %v14725_v25, %v10111_v52  ;;  %v14727_v31 = vld [vmem:[#allocation125_spill] sm:$0xff] }
 0x318   : > { %v10652_v9 = vsel %vm1247_vm2, %v14721_v2, %v14720_v29  ;;  %14722 = vst [vmem:[#allocation87_spill] sm:$0xff] %v10655_v43  ;;  %v14723_v56 = vmov %v14721_v2  ;;  %v5558_v1 = vadd.f32 %v5526_v23, %v5487_v48  ;;  %v5699_v16 = vmul.f32 %v14726_v0, %v10655_v43  ;;  %v14728_v48 = vld [vmem:[#allocation55_spill] sm:$0xff] }
 0x319   : > { %14718 = vst [vmem:[#allocation83_spill] sm:$0xff] %v10642_v35  ;;  %v2234_v4 = vsel %vm1247_vm2, %v14724_v57, %v14723_v56  ;;  %v5698_v14 = vmul.f32 %v14726_v0, %v10642_v35  ;;  %v5559_v8 = vadd.f32 %v5527_v24, %v5488_v19  ;;  %v2369_v18 = vmul.f32 %v14727_v31, %v14537_v28 }
 0x31a   : > { %v10669_v26 = vsel %vm1019_vm0, %v2234_v4, 0.0  ;;  %v2370_v30 = vmul.f32 %v14727_v31, %v14589_v50  ;;  %v5629_v23 = vadd.f32 %v5597_v58, %v5558_v1  ;;  %v14729_v29 = vrot.slane %v14728_v48, 1 }
 0x31b   : > { %v14730_v2 = vrot.slane %v14719_v22, 1  ;;  %v14732_v24 = vrot.slane %v14662_v34, 1  ;;  %v2594_v57 = vmul.f32 %v10406_v60, %v10151_v46  ;;  %v5630_v4 = vadd.f32 %v5598_v47, %v5559_v8  ;;  %v14733_v46 = vld [vmem:[#allocation74_spill] sm:$0xff]  ;;  %v14735_v8 = vld [vmem:[#allocation81_spill] sm:$0xff] }
 0x31c   : > { %v2413_v58 = vadd.f32 %v2369_v18, %v2320_v11  ;;  %v2414_v25 = vadd.f32 %v2370_v30, %v2321_v10  ;;  %v5730_v0 = vadd.f32 %v5698_v14, %v5629_v23  ;;  %v2595_v31 = vmul.f32 %v10406_v60, %v10157_v55  ;;  %v14734_v11 = vld [vmem:[#allocation68_spill] sm:$0xff] }
 0x31d   : > { %v2506_v56 = vsel %vm1424_vm3, %v14730_v2, %v14729_v29  ;;  %v14731_v52 = vmov %v14730_v2  ;;  %v2822_v29 = vmul.f32 %v9892_v53, %v10188_v33  ;;  %v2823_v2 = vmul.f32 %v9892_v53, %v14669_v13 }
 0x31e   : > { %v10691_v19 = vsel %vm1424_vm3, %v14732_v24, %v14731_v52  ;;  %v10697_v1 = vsel %vm1014_vm1, %v2506_v56, 0.0  ;;  %v5731_v52 = vadd.f32 %v5699_v16, %v5630_v4  ;;  %v2638_v24 = vadd.f32 %v2594_v57, %v2413_v58  ;;  %v14740_v56 = vld [vmem:[#allocation65_spill] sm:$0xff] }
 0x31f   : > { %v2861_v47 = vmul.f32 %v14733_v46, %v10441_v32  ;;  %v2862_v10 = vmul.f32 %v14733_v46, %v14734_v11  ;;  %v5769_v18 = vadd.f32 %v14735_v8, %v5730_v0  ;;  %v2639_v14 = vadd.f32 %v2595_v31, %v2414_v25 }
 0x320   : > { %v14736_v30 = vrot.slane %v14719_v22, 6  ;;  %v14737_v55 = vrot.slane %v14662_v34, 6  ;;  %v14739_v13 = vrot.slane %v14654_v20, 6  ;;  %v5770_v23 = vadd.f32 %v14735_v8, %v5731_v52  ;;  %v14742_v52 = vld [vmem:[#allocation95_spill] sm:$0xff] }
 0x321   : > { %v10726_v57 = vadd.f32 %v14740_v56, %v2638_v24  ;;  %v2893_v4 = vadd.f32 %v2861_v47, %v2822_v29  ;;  %v2894_v58 = vadd.f32 %v2862_v10, %v2823_v2  ;;  %v5801_v25 = vmul.f32 %v5769_v18, %v10604_v40  ;;  %v14743_v40 = vld [vmem:[#allocation86_spill] sm:$0xff] }
 0x322   : > { %v10716_v33 = vsel %vm3071_vm4, %v14737_v55, %v14736_v30  ;;  %v14738_v53 = vmov %v14737_v55  ;;  %v10730_v0 = vadd.f32 %v14740_v56, %v2639_v14  ;;  %v14741_v30 = vld [vmem:[#allocation85_spill] sm:$0xff]  ;;  %v3232_v2 = vmul.f32 %v14743_v40, %v10374_v62  ;;  %v14744_v47 = vld [vmem:[#allocation70_spill] sm:$0xff] }
 0x323   : > { %v3095_v16 = vsel %vm3071_vm4, %v14739_v13, %v14738_v53  ;;  %v3183_v55 = vmul.f32 %v14741_v30, %v10450_v51  ;;  %v5802_v53 = vmul.f32 %v5770_v23, %v10607_v63  ;;  %v2932_v24 = vmul.f32 %v14742_v52, %v10726_v57  ;;  %v14745_v63 = vld [vmem:[#allocation50_spill] sm:$0xff] }
 0x324   : > { %v10734_v31 = vsel %vm1021_vm6, %v3095_v16, 0.0  ;;  %v3184_v29 = vmul.f32 %v14741_v30, %v10430_v45  ;;  %v5833_v10 = vadd.f32 %v5801_v25, %v14744_v47  ;;  %v2933_v8 = vmul.f32 %v14742_v52, %v10730_v0  ;;  %v14761_v52 = vld [vmem:[#allocation103_spill] sm:$0xff] }
 0x325   : > { %v3233_v18 = vmul.f32 %v14743_v40, %v10358_v37  ;;  %v3325_v51 = vmul.f32 %v10471_v49, %v14599_v42  ;;  %v5834_v14 = vadd.f32 %v5802_v53, %v14745_v63  ;;  %v2964_v13 = vadd.f32 %v2932_v24, %v2893_v4 }
 0x326   : > { %v3276_v16 = vadd.f32 %v3232_v2, %v3183_v55  ;;  %v3326_v45 = vmul.f32 %v10471_v49, %v14654_v20  ;;  %v2965_v23 = vadd.f32 %v2933_v8, %v2894_v58  ;;  %v3418_v25 = vmul.f32 %v9964_v54, %v10400_v27 }
 0x327   : > { %v3277_v30 = vadd.f32 %v3233_v18, %v3184_v29  ;;  %v3419_v47 = vmul.f32 %v9964_v54, %v10404_v41  ;;  %v5862_v50 = vpack.c.bf16 %v5834_v14, %v5833_v10  ;;  %v10760_v40 = vadd.f32 %v10481_v12, %v2964_v13  ;;  %v14747_v10 = vld [vmem:[#allocation66_spill] sm:$0xff]  ;;  %v14748_v18 = vld [vmem:[#allocation100_spill] sm:$0xff]  ;;  %v14751_v13 = vld [vmem:[#allocation91_spill] sm:$0xff] }
 0x328   : > { %v3369_v28 = vadd.f32 %v3325_v51, %v3276_v16  ;;  %v3509_v53 = vrot.slane %v14719_v22, 2  ;;  %v10764_v4 = vadd.f32 %v10481_v12, %v2965_v23  ;;  %v13944_v58 = vrot.slane %v14728_v48, 2  ;;  %v14749_v51 = vld [vmem:[#allocation82_spill] sm:$0xff]  ;;  %v14752_v16 = vld [vmem:[#allocation64_spill] sm:$0xff] }
 0x329   : > { %v3370_v55 = vadd.f32 %v3326_v45, %v3277_v30  ;;  %v3644_v24 = vmul.f32 %v14620_v7, %v10499_v44  ;;  %6880 = vmatmul.mubr.bf16.gmra.mxu1 %v5862_v50  ;;  %v14746_v54 = vrot.slane %v14662_v34, 2  ;;  %v3645_v8 = vmul.f32 %v14620_v7, %v14747_v10  ;;  %v14750_v50 = vld [vmem:[#allocation101_spill] sm:$0xff]  ;;  %v14753_v30 = vld [vmem:[#allocation56_spill] sm:$0xff] }
 0x32a   : > { %v3462_v29 = vadd.f32 %v3418_v25, %v3369_v28  ;;  %v3869_v63 = vmul.f32 %v14749_v51, %v14748_v18  ;;  %v3554_v44 = vsel %vm3532_vm5, %v3509_v53, %v13944_v58  ;;  %v3870_v28 = vmul.f32 %v14749_v51, %v14750_v50  ;;  %v14757_v50 = vld [vmem:[#allocation97_spill] sm:$0xff] }
 0x32b   : > { %v10773_v2 = vsel %vm3532_vm5, %v14746_v54, %v3509_v53  ;;  %v3463_v14 = vadd.f32 %v3419_v47, %v3370_v55  ;;  %v3908_v45 = vmul.f32 %v14752_v16, %v14751_v13  ;;  %v10789_v23 = vsel %vm1016_vm10, %v3554_v44, 0.0  ;;  %v14754_v47 = vld [vmem:[#allocation45_spill] sm:$0xff]  ;;  %v14755_v55 = vld [vmem:[#allocation96_spill] sm:$0xff]  ;;  %v14759_v13 = vld [vmem:[#allocation102_spill] sm:$0xff] }
 0x32c   : > { %v3688_v7 = vadd.f32 %v3644_v24, %v3462_v29  ;;  %v3909_v25 = vmul.f32 %v14752_v16, %v14753_v30  ;;  %v3979_v54 = vmul.f32 %v14755_v55, %v14754_v47  ;;  %v14756_v53 = vld [vmem:[#allocation88_spill] sm:$0xff]  ;;  %v14758_v51 = vld [vmem:[#allocation61_spill] sm:$0xff]  ;;  %v14762_v29 = vrot.slane %v14719_v22, 5 }
 0x32d   : > { %v3689_v10 = vadd.f32 %v3645_v8, %v3463_v14  ;;  %v3940_v18 = vadd.f32 %v3908_v45, %v3869_v63  ;;  %v3980_v58 = vmul.f32 %v14755_v55, %v14756_v53  ;;  %v4050_v12 = vmul.f32 %v14758_v51, %v14757_v50  ;;  %v14768_v55 = vld [vmem:[#allocation106_spill] sm:$0xff] }
 0x32e   : > { %v10800_v49 = vadd.f32 %v14759_v13, %v3688_v7  ;;  %v3941_v44 = vadd.f32 %v3909_v25, %v3870_v28  ;;  %v4051_v24 = vmul.f32 %v14758_v51, %v14761_v52  ;;  %v14763_v16 = vrot.slane %v14662_v34, 5  ;;  %v14767_v25 = vld [vmem:[#allocation112_spill] sm:$0xff] }
 0x32f   : > { %v10811_v63 = vadd.f32 %v14759_v13, %v3689_v10  ;;  %v4011_v14 = vadd.f32 %v3979_v54, %v3940_v18  ;;  %v14766_v7 = vrot.slane %v14654_v20, 5  ;;  %v14769_v10 = vld [vmem:[#allocation117_spill] sm:$0xff] }
 0x330   : > { %14760 = vst [vmem:[#allocation71_spill] sm:$0xff] %v10800_v49  ;;  %v4315_v8 = vsel %vm4292_vm7, %v14763_v16, %v14762_v29  ;;  %v14765_v45 = vmov %v14763_v16  ;;  %v4012_v52 = vadd.f32 %v3980_v58, %v3941_v44  ;;  %v4121_v50 = vmul.f32 %v14768_v55, %v10800_v49  ;;  %v10831_v58 = vld [vmem:[#allocation21 + $0x2] ss:$0 sm:$0xff] }
 0x331   : > { %14764 = vst [vmem:[#allocation73_spill] sm:$0xff] %v10811_v63  ;;  %v4316_v28 = vsel %vm4292_vm7, %v14766_v7, %v14765_v45  ;;  %v4407_v51 = vmul.f32 %v14767_v25, %v4315_v8  ;;  %v4455_v16 = vmul.f32 %v14769_v10, %v10734_v31  ;;  %v4082_v54 = vadd.f32 %v4050_v12, %v4011_v14 }
 0x332   : > { %v4357_v29 = vsel %vm1023_vm8, %v4316_v28, 0.0  ;;  %v4122_v18 = vmul.f32 %v14768_v55, %v10811_v63  ;;  %v4456_v45 = vmul.f32 %v14769_v10, %v10716_v33  ;;  %v4083_v8 = vadd.f32 %v4051_v24, %v4012_v52  ;;  %14770 = vst [vmem:[#allocation104_spill] sm:$0xff] %v10831_v58  ;;  %v10837_v28 = vld [vmem:[#allocation21 + $0x3] ss:$0 sm:$0xff]  ;;  %v10843_v24 = vld [vmem:[#allocation21 + $0x4] ss:$0 sm:$0xff] }
 0x333   : > { %v4406_v13 = vmul.f32 %v14767_v25, %v4357_v29  ;;  %v4548_v44 = vmul.f32 %v10831_v58, %v10669_v26  ;;  %v4549_v7 = vmul.f32 %v10831_v58, %v10652_v9  ;;  %14771 = vst [vmem:[#allocation105_spill] sm:$0xff] %v10837_v28  ;;  %v4641_v12 = vmul.f32 %v10837_v28, %v14662_v34  ;;  %v10849_v63 = vld [vmem:[#allocation21 + $0x5] ss:$0 sm:$0xff] }
 0x334   : > { %v4153_v14 = vadd.f32 %v4121_v50, %v4082_v54  ;;  %v4500_v29 = vadd.f32 %v4456_v45, %v4407_v51  ;;  %v4642_v25 = vmul.f32 %v10837_v28, %v14719_v22  ;;  %v4154_v52 = vadd.f32 %v4122_v18, %v4083_v8  ;;  %14772 = vst [vmem:[#allocation108_spill] sm:$0xff] %v10843_v24  ;;  %v14774_v50 = vld [vmem:[#allocation121_spill] sm:$0xff]  ;;  %v14776_v28 = vld [vmem:[#allocation115_spill] sm:$0xff] }
 0x335   : > { %v4499_v55 = vadd.f32 %v4455_v16, %v4406_v13  ;;  %v4734_v10 = vmul.f32 %v10843_v24, %v10691_v19  ;;  %v4735_v58 = vmul.f32 %v10843_v24, %v10697_v1  ;;  %14773 = vst [vmem:[#allocation109_spill] sm:$0xff] %v10849_v63  ;;  %v4827_v49 = vmul.f32 %v10849_v63, %v10773_v2  ;;  %v10862_v24 = vld [vmem:[%s14514_s12] ss:$0 sm:$0xff] }
 0x336   : > { %v4192_v13 = vadd.f32 %v14774_v50, %v4153_v14  ;;  %v4593_v16 = vadd.f32 %v4549_v7, %v4500_v29  ;;  %v4828_v54 = vmul.f32 %v10849_v63, %v10789_v23  ;;  %v4193_v18 = vadd.f32 %v14774_v50, %v4154_v52  ;;  %14775 = vst [vmem:[#allocation114_spill] sm:$0xff] %v10862_v24 }
 0x337   : > { %v4592_v51 = vadd.f32 %v4548_v44, %v4499_v55  ;;  %v4916_v45 = vrot.slane %v14719_v22, 3  ;;  %v13968_v8 = vrot.slane %v14728_v48, 3  ;;  %v5276_v53 = vmul.f32 %v10862_v24, %v14776_v28 }
 0x338   : > { %v10867_v55 = vmul.f32 %v4192_v13, %v10760_v40  ;;  %v4686_v7 = vadd.f32 %v4642_v25, %v4593_v16  ;;  %v5277_v14 = vmul.f32 %v10862_v24, %v9795_v39  ;;  %v10872_v29 = vmul.f32 %v4193_v18, %v10764_v4  ;;  %v10885_v40 = vld [vmem:[%s14514_s12 + $0x1] ss:$0 sm:$0xff]  ;;  %v10891_v13 = vld [vmem:[#allocation21 + $0x6] ss:$0 sm:$0xff] }
 0x339   : > { %v4685_v44 = vadd.f32 %v4641_v12, %v4592_v51  ;;  %v4961_v52 = vsel %vm4939_vm9, %v4916_v45, %v13968_v8  ;;  %v14777_v50 = vrot.slane %v14662_v34, 3  ;;  %14778 = vst [vmem:[#allocation111_spill] sm:$0xff] %v10885_v40  ;;  %v5315_v39 = vmul.f32 %v10885_v40, %v14714_v17  ;;  %14779 = vst [vmem:[#allocation110_spill] sm:$0xff] %v10891_v13 }
 0x33a   : > { %v4779_v25 = vadd.f32 %v4735_v58, %v4686_v7  ;;  %v5005_v12 = vsel %vm1018_vm11, %v4961_v52, 0.0  ;;  %v10909_v52 = vld [vmem:[%s14514_s12 + $0x3] ss:$0 sm:$0xff] }
 0x33b   : > { %v4962_v28 = vsel %vm4939_vm9, %v14777_v50, %v4916_v45  ;;  %v4778_v4 = vadd.f32 %v4734_v10, %v4685_v44  ;;  %v5054_v16 = vmul.f32 %v10891_v13, %v5005_v12  ;;  %v5316_v50 = vmul.f32 %v10885_v40, %v14585_v6  ;;  %v10900_v45 = vld [vmem:[%s14514_s12 + $0x2] ss:$0 sm:$0xff]  ;;  %14781 = vst [vmem:[#allocation113_spill] sm:$0xff] %v10909_v52 }
 0x33c   : > { %v5053_v51 = vmul.f32 %v10891_v13, %v4962_v28  ;;  %v5347_v18 = vadd.f32 %v5315_v39, %v5276_v53  ;;  %14780 = vst [vmem:[#allocation118_spill] sm:$0xff] %v10900_v45  ;;  %v5386_v10 = vmul.f32 %v10900_v45, %v14650_v38  ;;  %v4872_v44 = vadd.f32 %v4828_v54, %v4779_v25 }
 0x33d   : > { %v4871_v58 = vadd.f32 %v4827_v49, %v4778_v4  ;;  %v5387_v7 = vmul.f32 %v10900_v45, %v14652_v21  ;;  %v5457_v53 = vmul.f32 %v10909_v52, %v10126_v5  ;;  %v5348_v28 = vadd.f32 %v5316_v50, %v5277_v14  ;;  %v10918_v49 = vld [vmem:[%s14514_s12 + $0x4] ss:$0 sm:$0xff]  ;;  %v10927_v14 = vld [vmem:[%s14514_s12 + $0x5] ss:$0 sm:$0xff] }
 0x33e   : > { %v5418_v39 = vadd.f32 %v5386_v10, %v5347_v18  ;;  %v5458_v12 = vmul.f32 %v10909_v52, %v10133_v61  ;;  %14782 = vst [vmem:[#allocation116_spill] sm:$0xff] %v10918_v49  ;;  %v5528_v54 = vmul.f32 %v10918_v49, %v10367_v15  ;;  %v5098_v25 = vadd.f32 %v5054_v16, %v4872_v44  ;;  %v14784_v61 = vld [vmem:[#allocation69_spill] sm:$0xff] }
 0x33f   : > { %v5097_v4 = vadd.f32 %v5053_v51, %v4871_v58  ;;  %v5529_v8 = vmul.f32 %v10918_v49, %v10370_v59  ;;  %14783 = vst [vmem:[#allocation107_spill] sm:$0xff] %v10927_v14  ;;  %v5599_v50 = vmul.f32 %v10927_v14, %v10642_v35  ;;  %v5419_v18 = vadd.f32 %v5387_v7, %v5348_v28  ;;  %v10941_v58 = vld [vmem:[#allocation22] ss:$0 sm:$0xff] }
 0x340   : > { %v5489_v10 = vadd.f32 %v5457_v53, %v5418_v39  ;;  %v5600_v52 = vmul.f32 %v10927_v14, %v10655_v43  ;;  %v14785_v15 = vrot.slane %v14784_v61, 7  ;;  %v14786_v51 = vrot.slane %v14728_v48, 7  ;;  %14787 = vst [vmem:[#allocation124_spill] sm:$0xff] %v10941_v58  ;;  %v10955_v39 = vld [vmem:[#allocation13] ss:$0 sm:$0xff] }
 0x341   : > { %v10944_v44 = vadd.f32 %v10941_v58, %v5097_v4  ;;  %v10947_v49 = vadd.f32 %v10941_v58, %v5098_v25  ;;  %v14791_v53 = vrot.slane %v14719_v22, 7  ;;  %14792 = vst [vmem:[#allocation74_spill] sm:$0xff] %v10955_v39  ;;  %v2323_v25 = vmul.f32 %v10955_v39, %v10358_v37  ;;  %v10968_v58 = vld [vmem:[%s14514_s12 + $0x6] ss:$0 sm:$0xff] }
 0x342   : > { %v10939_v16 = vsel %vm1247_vm2, %v14786_v51, %v14785_v15  ;;  %v14790_v7 = vmov %v14786_v51  ;;  %v2322_v15 = vmul.f32 %v10955_v39, %v10374_v62  ;;  %v5490_v51 = vadd.f32 %v5458_v12, %v5419_v18  ;;  %14793 = vst [vmem:[#allocation68_spill] sm:$0xff] %v10968_v58  ;;  %v10974_v12 = vld [vmem:[#allocation13 + $0x1] ss:$0 sm:$0xff] }
 0x343   : > { %14788 = vst [vmem:[#allocation122_spill] sm:$0xff] %v10944_v44  ;;  %14789 = vst [vmem:[#allocation125_spill] sm:$0xff] %v10947_v49  ;;  %v2232_v28 = vsel %vm1247_vm2, %v14791_v53, %v14790_v7  ;;  %v5560_v14 = vadd.f32 %v5528_v54, %v5489_v10  ;;  %v5700_v7 = vmul.f32 %v10968_v58, %v10944_v44  ;;  %v14795_v53 = vld [vmem:[#allocation76_spill] sm:$0xff]  ;;  %v14797_v39 = vrot.slane %v14784_v61, 1 }
 0x344   : > { %v10961_v4 = vsel %vm1019_vm0, %v2232_v28, 0.0  ;;  %v5701_v62 = vmul.f32 %v10968_v58, %v10947_v49  ;;  %14794 = vst [vmem:[#allocation81_spill] sm:$0xff] %v10974_v12  ;;  %v2371_v54 = vmul.f32 %v10974_v12, %v14599_v42  ;;  %v2372_v18 = vmul.f32 %v10974_v12, %v14654_v20 }
 0x345   : > { %v5561_v37 = vadd.f32 %v5529_v8, %v5490_v51  ;;  %v5631_v10 = vadd.f32 %v5599_v50, %v5560_v14  ;;  %v14796_v28 = vrot.slane %v14795_v53, 1  ;;  %v14798_v43 = vmov %v14797_v39 }
 0x346   : > { %v14799_v58 = vrot.slane %v14728_v48, 1  ;;  %v2415_v42 = vadd.f32 %v2371_v54, %v2322_v15  ;;  %v2416_v35 = vadd.f32 %v2372_v18, %v2323_v25  ;;  %v2596_v14 = vmul.f32 %v10406_v60, %v10400_v27 }
 0x347   : > { %v2504_v44 = vsel %vm1424_vm3, %v14797_v39, %v14796_v28  ;;  %v5632_v50 = vadd.f32 %v5600_v52, %v5561_v37  ;;  %v5732_v51 = vadd.f32 %v5700_v7, %v5631_v10  ;;  %v2597_v39 = vmul.f32 %v10406_v60, %v10404_v41  ;;  %v11002_v28 = vld [vmem:[#allocation16] ss:$0 sm:$0xff]  ;;  %v11015_v41 = vld [vmem:[%s14547_s3] ss:$0 sm:$0xff] }
 0x348   : > { %v10992_v49 = vsel %vm1424_vm3, %v14799_v58, %v14798_v43  ;;  %v10996_v8 = vsel %vm1014_vm1, %v2504_v44, 0.0  ;;  %v2824_v43 = vmul.f32 %v11002_v28, %v10441_v32  ;;  %v2640_v58 = vadd.f32 %v2596_v14, %v2415_v42  ;;  %14800 = vst [vmem:[#allocation85_spill] sm:$0xff] %v11015_v41 }
 0x349   : > { %v2825_v15 = vmul.f32 %v11002_v28, %v14734_v11  ;;  %v2863_v44 = vmul.f32 %v14733_v46, %v10726_v57  ;;  %v2864_v27 = vmul.f32 %v14733_v46, %v10730_v0  ;;  %v5733_v52 = vadd.f32 %v5701_v62, %v5632_v50 }
 0x34a   : > { %v5771_v25 = vadd.f32 %v11015_v41, %v5732_v51  ;;  %v2641_v7 = vadd.f32 %v2597_v39, %v2416_v35  ;;  %v14801_v42 = vrot.slane %v14784_v61, 6  ;;  %v14802_v32 = vrot.slane %v14728_v48, 6 }
 0x34b   : > { %v11027_v54 = vadd.f32 %v14740_v56, %v2640_v58  ;;  %v2895_v62 = vadd.f32 %v2863_v44, %v2824_v43  ;;  %v2896_v18 = vadd.f32 %v2864_v27, %v2825_v15  ;;  %v14804_v10 = vrot.slane %v14719_v22, 6  ;;  %v14805_v43 = vld [vmem:[#allocation95_spill] sm:$0xff]  ;;  %v11049_v15 = vld [vmem:[%s13641_s9] ss:$0 sm:$0xff]  ;;  %v11058_v27 = vld [vmem:[%s13641_s9 + $0x1] ss:$0 sm:$0xff] }
 0x34c   : > { %v11024_v11 = vsel %vm3071_vm4, %v14802_v32, %v14801_v42  ;;  %v14803_v37 = vmov %v14802_v32  ;;  %v5772_v14 = vadd.f32 %v11015_v41, %v5733_v52  ;;  %v5803_v50 = vmul.f32 %v5771_v25, %v10867_v55  ;;  %14806 = vst [vmem:[#allocation86_spill] sm:$0xff] %v11049_v15  ;;  %14807 = vst [vmem:[#allocation70_spill] sm:$0xff] %v11058_v27 }
 0x34d   : > { %v3093_v35 = vsel %vm3071_vm4, %v14804_v10, %v14803_v37  ;;  %v11038_v51 = vadd.f32 %v14740_v56, %v2641_v7  ;;  %v2934_v58 = vmul.f32 %v14805_v43, %v11027_v54  ;;  %v3185_v44 = vmul.f32 %v11049_v15, %v10734_v31  ;;  %v14808_v7 = vld [vmem:[#allocation75_spill] sm:$0xff]  ;;  %v14809_v10 = vld [vmem:[#allocation98_spill] sm:$0xff] }
 0x34e   : > { %v11042_v39 = vsel %vm1021_vm6, %v3093_v35, 0.0  ;;  %v3186_v55 = vmul.f32 %v11049_v15, %v10716_v33  ;;  %v3234_v52 = vmul.f32 %v11058_v27, %v10669_v26  ;;  %v5804_v25 = vmul.f32 %v5772_v14, %v10872_v29  ;;  %v14810_v15 = vld [vmem:[#allocation49_spill] sm:$0xff]  ;;  %v11076_v14 = vld [vmem:[%s13641_s9 + $0x3] ss:$0 sm:$0xff] }
 0x34f   : > { %v5835_v42 = vadd.f32 %v5803_v50, %v14808_v7  ;;  %v2935_v32 = vmul.f32 %v14805_v43, %v11038_v51  ;;  %v3235_v31 = vmul.f32 %v11058_v27, %v10652_v9  ;;  %v2966_v37 = vadd.f32 %v2934_v58, %v2895_v62  ;;  %14811 = vst [vmem:[#allocation50_spill] sm:$0xff] %v11076_v14  ;;  %v14812_v62 = vld [vmem:[#allocation99_spill] sm:$0xff]  ;;  %v14826_v43 = vld [vmem:[#allocation73_spill] sm:$0xff] }
 0x350   : > { %v3278_v33 = vadd.f32 %v3234_v52, %v3185_v44  ;;  %v3327_v35 = vmul.f32 %v14809_v10, %v14662_v34  ;;  %v3328_v20 = vmul.f32 %v14809_v10, %v14719_v22  ;;  %v5836_v41 = vadd.f32 %v5804_v25, %v14810_v15 }
 0x351   : > { %v2967_v56 = vadd.f32 %v2935_v32, %v2896_v18  ;;  %v3279_v29 = vadd.f32 %v3235_v31, %v3186_v55  ;;  %v3420_v50 = vmul.f32 %v11076_v14, %v10691_v19  ;;  %v11081_v58 = vadd.f32 %v14812_v62, %v2966_v37 }
 0x352   : > { %v3371_v44 = vadd.f32 %v3327_v35, %v3278_v33  ;;  %v3421_v52 = vmul.f32 %v11076_v14, %v10697_v1  ;;  %v3511_v7 = vrot.slane %v14784_v61, 2  ;;  %v5863_v15 = vpack.c.bf16 %v5836_v41, %v5835_v42  ;;  %v11099_v33 = vld [vmem:[%s13641_s9 + $0x4] ss:$0 sm:$0xff]  ;;  %v14824_v14 = vld [vmem:[#allocation102_spill] sm:$0xff] }
 0x353   : > { %v11087_v18 = vadd.f32 %v14812_v62, %v2967_v56  ;;  %v3372_v55 = vadd.f32 %v3328_v20, %v3279_v29  ;;  %v14000_v25 = vrot.slane %v14795_v53, 2  ;;  %v14813_v31 = vrot.slane %v14728_v48, 2  ;;  %14814 = vst [vmem:[#allocation66_spill] sm:$0xff] %v11099_v33  ;;  %v14815_v35 = vld [vmem:[#allocation91_spill] sm:$0xff]  ;;  %v14816_v29 = vld [vmem:[#allocation82_spill] sm:$0xff] }
 0x354   : > { %v3464_v32 = vadd.f32 %v3420_v50, %v3371_v44  ;;  %v3646_v41 = vmul.f32 %v11099_v33, %v10773_v2  ;;  %v3647_v20 = vmul.f32 %v11099_v33, %v10789_v23  ;;  %6883 = vmatprep.mubr.bf16.mxu1 %v5863_v15  ;;  %v3871_v50 = vmul.f32 %v14816_v29, %v14815_v35  ;;  %v11120_v23 = vld [vmem:[%s13643_s11 + $0x1] ss:$0 sm:$0xff]  ;;  %v14819_v35 = vld [vmem:[#allocation97_spill] sm:$0xff]  ;;  %v14822_v33 = vld [vmem:[#allocation71_spill] sm:$0xff] }
 0x355   : > { %v11094_v37 = vsel %vm3532_vm5, %v14813_v31, %v3511_v7  ;;  %v3465_v56 = vadd.f32 %v3421_v52, %v3372_v55  ;;  %v3552_v42 = vsel %vm3532_vm5, %v3511_v7, %v14000_v25  ;;  %v3872_v44 = vmul.f32 %v14816_v29, %v14753_v30  ;;  %14817 = vst [vmem:[#allocation100_spill] sm:$0xff] %v11120_v23  ;;  %v14818_v7 = vld [vmem:[#allocation88_spill] sm:$0xff]  ;;  %v14821_v29 = vld [vmem:[#allocation103_spill] sm:$0xff] }
 0x356   : > { %v11115_v31 = vsel %vm1016_vm10, %v3552_v42, 0.0  ;;  %v3690_v2 = vadd.f32 %v3646_v41, %v3464_v32  ;;  %v3910_v52 = vmul.f32 %v11120_v23, %v14754_v47  ;;  %v3911_v15 = vmul.f32 %v11120_v23, %v14818_v7  ;;  %v14820_v25 = vld [vmem:[#allocation96_spill] sm:$0xff]  ;;  %v14823_v32 = vld [vmem:[#allocation61_spill] sm:$0xff] }
 0x357   : > { %v3691_v55 = vadd.f32 %v3647_v20, %v3465_v56  ;;  %v3981_v30 = vmul.f32 %v14820_v25, %v14819_v35  ;;  %v3982_v42 = vmul.f32 %v14820_v25, %v14821_v29  ;;  %v4052_v41 = vmul.f32 %v14823_v32, %v14822_v33 }
 0x358   : > { %v11133_v62 = vadd.f32 %v14824_v14, %v3690_v2  ;;  %v3942_v10 = vadd.f32 %v3910_v52, %v3871_v50  ;;  %v3943_v27 = vadd.f32 %v3911_v15, %v3872_v44  ;;  %v4053_v47 = vmul.f32 %v14823_v32, %v14826_v43  ;;  %v14832_v44 = vld [vmem:[#allocation117_spill] sm:$0xff]  ;;  %v14833_v32 = vld [vmem:[#allocation106_spill] sm:$0xff] }
 0x359   : > { %v11138_v23 = vadd.f32 %v14824_v14, %v3691_v55  ;;  %v14828_v20 = vrot.slane %v14784_v61, 5  ;;  %v14829_v56 = vrot.slane %v14728_v48, 5  ;;  %v14831_v2 = vrot.slane %v14719_v22, 5 }
 0x35a   : > { %14825 = vst [vmem:[#allocation101_spill] sm:$0xff] %v11133_v62  ;;  %v4457_v52 = vmul.f32 %v14832_v44, %v11042_v39  ;;  %v4013_v15 = vadd.f32 %v3981_v30, %v3942_v10  ;;  %v4014_v55 = vadd.f32 %v3982_v42, %v3943_v27  ;;  %v4123_v14 = vmul.f32 %v14833_v32, %v11133_v62  ;;  %v14835_v27 = vld [vmem:[#allocation104_spill] sm:$0xff]  ;;  %v14836_v62 = vld [vmem:[#allocation105_spill] sm:$0xff] }
 0x35b   : > { %14827 = vst [vmem:[#allocation64_spill] sm:$0xff] %v11138_v23  ;;  %v4313_v25 = vsel %vm4292_vm7, %v14829_v56, %v14828_v20  ;;  %v14830_v33 = vmov %v14829_v56  ;;  %v4124_v20 = vmul.f32 %v14833_v32, %v11138_v23  ;;  %v14834_v56 = vld [vmem:[#allocation112_spill] sm:$0xff]  ;;  %v4550_v10 = vmul.f32 %v14835_v27, %v10961_v4 }
 0x35c   : > { %v4314_v50 = vsel %vm4292_vm7, %v14831_v2, %v14830_v33  ;;  %v4409_v35 = vmul.f32 %v14834_v56, %v4313_v25  ;;  %v4458_v33 = vmul.f32 %v14832_v44, %v11024_v11  ;;  %v4084_v2 = vadd.f32 %v4052_v41, %v4013_v15  ;;  %v14837_v44 = vld [vmem:[#allocation108_spill] sm:$0xff] }
 0x35d   : > { %v4359_v43 = vsel %vm1023_vm8, %v4314_v50, 0.0  ;;  %v4085_v7 = vadd.f32 %v4053_v47, %v4014_v55  ;;  %v4551_v30 = vmul.f32 %v14835_v27, %v10939_v16  ;;  %v4643_v32 = vmul.f32 %v14836_v62, %v14728_v48 }
 0x35e   : > { %v4408_v29 = vmul.f32 %v14834_v56, %v4359_v43  ;;  %v4502_v50 = vadd.f32 %v4458_v33, %v4409_v35  ;;  %v4644_v43 = vmul.f32 %v14836_v62, %v14784_v61  ;;  %v4155_v25 = vadd.f32 %v4123_v14, %v4084_v2 }
 0x35f   : > { %v4156_v56 = vadd.f32 %v4124_v20, %v4085_v7  ;;  %v4736_v41 = vmul.f32 %v14837_v44, %v10992_v49  ;;  %v4737_v47 = vmul.f32 %v14837_v44, %v10996_v8  ;;  %v4830_v35 = vmul.f32 %v10849_v63, %v11115_v31 }
 0x360   : > { %v4501_v42 = vadd.f32 %v4457_v52, %v4408_v29  ;;  %v4595_v55 = vadd.f32 %v4551_v30, %v4502_v50  ;;  %v4829_v29 = vmul.f32 %v10849_v63, %v11094_v37  ;;  %v14838_v52 = vld [vmem:[#allocation121_spill] sm:$0xff]  ;;  %v4918_v14 = vrot.slane %v14784_v61, 3 }
 0x361   : > { %v4194_v33 = vadd.f32 %v14838_v52, %v4155_v25  ;;  %v4195_v62 = vadd.f32 %v14838_v52, %v4156_v56  ;;  %v14022_v7 = vrot.slane %v14795_v53, 3  ;;  %v5279_v30 = vmul.f32 %v10862_v24, %v14585_v6 }
 0x362   : > { %v4594_v15 = vadd.f32 %v4550_v10, %v4501_v42  ;;  %v4688_v2 = vadd.f32 %v4644_v43, %v4595_v55  ;;  %v5278_v10 = vmul.f32 %v10862_v24, %v14714_v17  ;;  %v5388_v55 = vmul.f32 %v10900_v45, %v10126_v5  ;;  %v14848_v5 = vld [vmem:[#allocation125_spill] sm:$0xff] }
 0x363   : > { %v11189_v42 = vmul.f32 %v4194_v33, %v11081_v58  ;;  %v11192_v50 = vmul.f32 %v4195_v62, %v11087_v18  ;;  %v4959_v56 = vsel %vm4939_vm9, %v4918_v14, %v14022_v7  ;;  %v5317_v18 = vmul.f32 %v10885_v40, %v14650_v38  ;;  %v14843_v7 = vld [vmem:[#allocation83_spill] sm:$0xff] }
 0x364   : > { %v4687_v20 = vadd.f32 %v4643_v32, %v4594_v15  ;;  %v14839_v32 = vrot.slane %v14728_v48, 3  ;;  %v4781_v25 = vadd.f32 %v4737_v47, %v4688_v2  ;;  %v5007_v6 = vsel %vm1018_vm11, %v4959_v56, 0.0  ;;  %v14842_v2 = vld [vmem:[#allocation113_spill] sm:$0xff]  ;;  %v14845_v38 = vld [vmem:[#allocation87_spill] sm:$0xff] }
 0x365   : > { %v5056_v62 = vmul.f32 %v10891_v13, %v5007_v6  ;;  %v5318_v15 = vmul.f32 %v10885_v40, %v14652_v21  ;;  %v5460_v6 = vmul.f32 %v14842_v2, %v10370_v59 }
 0x366   : > { %v4960_v43 = vsel %vm4939_vm9, %v14839_v32, %v4918_v14  ;;  %v4780_v17 = vadd.f32 %v4736_v41, %v4687_v20  ;;  %v4874_v14 = vadd.f32 %v4830_v35, %v4781_v25  ;;  %v14840_v41 = vld [vmem:[#allocation119_spill] sm:$0xff]  ;;  %v14841_v20 = vld [vmem:[#allocation72_spill] sm:$0xff]  ;;  %v5349_v32 = vadd.f32 %v5317_v18, %v5278_v10  ;;  %v14846_v35 = vld [vmem:[#allocation122_spill] sm:$0xff] }
 0x367   : > { %v5055_v58 = vmul.f32 %v10891_v13, %v4960_v43  ;;  %v5389_v47 = vmul.f32 %v10900_v45, %v14840_v41  ;;  %v5459_v56 = vmul.f32 %v14842_v2, %v14841_v20  ;;  %v5350_v43 = vadd.f32 %v5318_v15, %v5279_v30  ;;  %v14844_v13 = vld [vmem:[#allocation116_spill] sm:$0xff]  ;;  %v14849_v30 = vld [vmem:[#allocation77_spill] sm:$0xff] }
 0x368   : > { %v4873_v33 = vadd.f32 %v4829_v29, %v4780_v17  ;;  %v5530_v24 = vmul.f32 %v14844_v13, %v14843_v7  ;;  %v5100_v21 = vadd.f32 %v5056_v62, %v4874_v14  ;;  %v5531_v29 = vmul.f32 %v14844_v13, %v14845_v38  ;;  %v14847_v17 = vld [vmem:[#allocation107_spill] sm:$0xff] }
 0x369   : > { %v5601_v25 = vmul.f32 %v14847_v17, %v14846_v35  ;;  %v5420_v45 = vadd.f32 %v5388_v55, %v5349_v32  ;;  %v5421_v41 = vadd.f32 %v5389_v47, %v5350_v43  ;;  %v5602_v10 = vmul.f32 %v14847_v17, %v14848_v5  ;;  %v14857_v32 = vld [vmem:[#allocation74_spill] sm:$0xff] }
 0x36a   : > { %v5099_v40 = vadd.f32 %v5055_v58, %v4873_v33  ;;  %v14850_v18 = vrot.slane %v14849_v30, 7  ;;  %v14851_v15 = vrot.slane %v14795_v53, 7  ;;  %v14852_v58 = vld [vmem:[#allocation124_spill] sm:$0xff]  ;;  %v14856_v14 = vrot.slane %v14784_v61, 7 }
 0x36b   : > { %v11238_v33 = vadd.f32 %v14852_v58, %v5100_v21  ;;  %v2324_v43 = vmul.f32 %v14857_v32, %v10669_v26  ;;  %v5491_v17 = vadd.f32 %v5459_v56, %v5420_v45  ;;  %v5492_v5 = vadd.f32 %v5460_v6, %v5421_v41  ;;  %v14859_v56 = vld [vmem:[#allocation60_spill] sm:$0xff] }
 0x36c   : > { %v11232_v2 = vsel %vm1247_vm2, %v14851_v15, %v14850_v18  ;;  %v11235_v62 = vadd.f32 %v14852_v58, %v5099_v40  ;;  %v14855_v55 = vmov %v14851_v15  ;;  %v2325_v21 = vmul.f32 %v14857_v32, %v10652_v9  ;;  %v14858_v40 = vld [vmem:[#allocation68_spill] sm:$0xff] }
 0x36d   : > { %14854 = vst [vmem:[#allocation115_spill] sm:$0xff] %v11238_v33  ;;  %v2230_v47 = vsel %vm1247_vm2, %v14856_v14, %v14855_v55  ;;  %v5703_v58 = vmul.f32 %v14858_v40, %v11238_v33  ;;  %v2373_v55 = vmul.f32 %v10974_v12, %v14662_v34  ;;  %v2374_v26 = vmul.f32 %v10974_v12, %v14719_v22 }
 0x36e   : > { %14853 = vst [vmem:[#allocation56_spill] sm:$0xff] %v11235_v62  ;;  %v11250_v18 = vsel %vm1019_vm0, %v2230_v47, 0.0  ;;  %v5702_v15 = vmul.f32 %v14858_v40, %v11235_v62  ;;  %v5562_v45 = vadd.f32 %v5530_v24, %v5491_v17  ;;  %v5563_v41 = vadd.f32 %v5531_v29, %v5492_v5 }
 0x36f   : > { %v14860_v6 = vrot.slane %v14859_v56, 1  ;;  %v14861_v14 = vrot.slane %v14849_v30, 1  ;;  %v14863_v32 = vrot.slane %v14795_v53, 1  ;;  %v2417_v34 = vadd.f32 %v2373_v55, %v2324_v43 }
 0x370   : > { %v2418_v33 = vadd.f32 %v2374_v26, %v2325_v21  ;;  %v2598_v24 = vmul.f32 %v10406_v60, %v10691_v19  ;;  %v5633_v29 = vadd.f32 %v5601_v25, %v5562_v45  ;;  %v5634_v17 = vadd.f32 %v5602_v10, %v5563_v41 }
 0x371   : > { %v2502_v9 = vsel %vm1424_vm3, %v14861_v14, %v14860_v6  ;;  %v14862_v47 = vmov %v14861_v14  ;;  %v2599_v6 = vmul.f32 %v10406_v60, %v10697_v1  ;;  %v2826_v14 = vmul.f32 %v11002_v28, %v10726_v57 }
 0x372   : > { %v11274_v40 = vsel %vm1424_vm3, %v14863_v32, %v14862_v47  ;;  %v11278_v5 = vsel %vm1014_vm1, %v2502_v9, 0.0  ;;  %v2642_v22 = vadd.f32 %v2598_v24, %v2417_v34  ;;  %v2827_v32 = vmul.f32 %v11002_v28, %v10730_v0  ;;  %v14866_v34 = vld [vmem:[#allocation65_spill] sm:$0xff]  ;;  %v14870_v47 = vld [vmem:[#allocation95_spill] sm:$0xff] }
 0x373   : > { %v2865_v43 = vmul.f32 %v14733_v46, %v11027_v54  ;;  %v2866_v21 = vmul.f32 %v14733_v46, %v11038_v51  ;;  %v5734_v55 = vadd.f32 %v5702_v15, %v5633_v29  ;;  %v5735_v19 = vadd.f32 %v5703_v58, %v5634_v17  ;;  %v14871_v29 = vld [vmem:[#allocation86_spill] sm:$0xff] }
 0x374   : > { %v2643_v25 = vadd.f32 %v2599_v6, %v2418_v33  ;;  %v14864_v10 = vrot.slane %v14849_v30, 6  ;;  %v14865_v60 = vrot.slane %v14795_v53, 6  ;;  %v11301_v57 = vadd.f32 %v14866_v34, %v2642_v22  ;;  %v14869_v33 = vld [vmem:[#allocation85_spill] sm:$0xff] }
 0x375   : > { %v2897_v0 = vadd.f32 %v2865_v43, %v2826_v14  ;;  %v2898_v26 = vadd.f32 %v2866_v21, %v2827_v32  ;;  %v14868_v46 = vrot.slane %v14784_v61, 6  ;;  %v5773_v15 = vadd.f32 %v14869_v33, %v5734_v55  ;;  %v14872_v14 = vld [vmem:[#allocation70_spill] sm:$0xff] }
 0x376   : > { %v11298_v1 = vsel %vm3071_vm4, %v14865_v60, %v14864_v10  ;;  %v14867_v45 = vmov %v14865_v60  ;;  %v5774_v41 = vadd.f32 %v14869_v33, %v5735_v19  ;;  %v11312_v9 = vadd.f32 %v14866_v34, %v2643_v25  ;;  %v14874_v34 = vld [vmem:[#allocation52_spill] sm:$0xff] }
 0x377   : > { %v3091_v58 = vsel %vm3071_vm4, %v14868_v46, %v14867_v45  ;;  %v2936_v24 = vmul.f32 %v14870_v47, %v11301_v57  ;;  %v3187_v17 = vmul.f32 %v14871_v29, %v11042_v39  ;;  %v3188_v6 = vmul.f32 %v14871_v29, %v11024_v11  ;;  %v14873_v39 = vld [vmem:[#allocation98_spill] sm:$0xff] }
 0x378   : > { %v11316_v22 = vsel %vm1021_vm6, %v3091_v58, 0.0  ;;  %v3236_v32 = vmul.f32 %v14872_v14, %v10961_v4  ;;  %v5805_v43 = vmul.f32 %v5773_v15, %v11189_v42  ;;  %v5806_v21 = vmul.f32 %v5774_v41, %v11192_v50  ;;  %v14875_v46 = vld [vmem:[#allocation54_spill] sm:$0xff]  ;;  %v14876_v15 = vld [vmem:[#allocation99_spill] sm:$0xff] }
 0x379   : > { %v2937_v55 = vmul.f32 %v14870_v47, %v11312_v9  ;;  %v3237_v19 = vmul.f32 %v14872_v14, %v10939_v16  ;;  %v2968_v25 = vadd.f32 %v2936_v24, %v2897_v0  ;;  %v3329_v60 = vmul.f32 %v14873_v39, %v14728_v48  ;;  %v14877_v14 = vld [vmem:[#allocation50_spill] sm:$0xff] }
 0x37a   : > { %v3280_v10 = vadd.f32 %v3236_v32, %v3187_v17  ;;  %v3330_v11 = vmul.f32 %v14873_v39, %v14784_v61  ;;  %v5837_v45 = vadd.f32 %v5805_v43, %v14874_v34  ;;  %v5838_v42 = vadd.f32 %v5806_v21, %v14875_v46 }
 0x37b   : > { %v2969_v58 = vadd.f32 %v2937_v55, %v2898_v26  ;;  %v3281_v50 = vadd.f32 %v3237_v19, %v3188_v6  ;;  %v11339_v41 = vadd.f32 %v14876_v15, %v2968_v25  ;;  %v3422_v0 = vmul.f32 %v14877_v14, %v10992_v49  ;;  %v14878_v6 = vld [vmem:[#allocation66_spill] sm:$0xff] }
 0x37c   : > { %v3373_v47 = vadd.f32 %v3329_v60, %v3280_v10  ;;  %v3423_v24 = vmul.f32 %v14877_v14, %v10996_v8  ;;  %v5864_v17 = vpack.c.bf16 %v5838_v42, %v5837_v45  ;;  %v3513_v43 = vrot.slane %v14849_v30, 2  ;;  %v11361_v60 = vld [vmem:[%s13643_s11] ss:$0 sm:$0xff] }
 0x37d   : > { %v3008_v32 = vadd.f32 %v14876_v15, %v2969_v58  ;;  %v3374_v39 = vadd.f32 %v3330_v11, %v3281_v50  ;;  %v14048_v26 = vrot.slane %v14859_v56, 2  ;;  %v3648_v21 = vmul.f32 %v14878_v6, %v11094_v37  ;;  %14880 = vst [vmem:[#allocation75_spill] sm:$0xff] %v11361_v60  ;;  %v14881_v11 = vld [vmem:[#allocation45_spill] sm:$0xff]  ;;  %v14882_v37 = vld [vmem:[#allocation88_spill] sm:$0xff] }
 0x37e   : > { %v3466_v34 = vadd.f32 %v3422_v0, %v3373_v47  ;;  %v3649_v55 = vmul.f32 %v14878_v6, %v11115_v31  ;;  %6884 = vmatmul.mubr.bf16.gmra.mxu1 %v5864_v17  ;;  %v14879_v25 = vrot.slane %v14795_v53, 2  ;;  %v3873_v45 = vmul.f32 %v11361_v60, %v14881_v11  ;;  %v14883_v58 = vld [vmem:[#allocation97_spill] sm:$0xff]  ;;  %v14884_v50 = vld [vmem:[#allocation100_spill] sm:$0xff]  ;;  %v14885_v47 = vld [vmem:[#allocation103_spill] sm:$0xff] }
 0x37f   : > { %v3467_v19 = vadd.f32 %v3423_v24, %v3374_v39  ;;  %v3874_v46 = vmul.f32 %v11361_v60, %v14882_v37  ;;  %v3550_v31 = vsel %vm3532_vm5, %v3513_v43, %v14048_v26  ;;  %v3912_v15 = vmul.f32 %v14884_v50, %v14883_v58  ;;  %v14886_v39 = vld [vmem:[#allocation71_spill] sm:$0xff]  ;;  %v14888_v37 = vld [vmem:[#allocation73_spill] sm:$0xff]  ;;  %v14889_v6 = vld [vmem:[#allocation102_spill] sm:$0xff] }
 0x380   : > { %v11356_v10 = vsel %vm3532_vm5, %v14879_v25, %v3513_v43  ;;  %v3692_v42 = vadd.f32 %v3648_v21, %v3466_v34  ;;  %v3913_v0 = vmul.f32 %v14884_v50, %v14885_v47  ;;  %v11377_v24 = vsel %vm1016_vm10, %v3550_v31, 0.0  ;;  %v14887_v25 = vld [vmem:[#allocation96_spill] sm:$0xff]  ;;  %v14891_v26 = vld [vmem:[#allocation101_spill] sm:$0xff] }
 0x381   : > { %v3693_v17 = vadd.f32 %v3649_v55, %v3467_v19  ;;  %v3983_v11 = vmul.f32 %v14887_v25, %v14886_v39  ;;  %v3984_v60 = vmul.f32 %v14887_v25, %v14888_v37  ;;  %v3944_v34 = vadd.f32 %v3912_v15, %v3873_v45  ;;  %v14892_v58 = vld [vmem:[#allocation61_spill] sm:$0xff] }
 0x382   : > { %v11384_v43 = vadd.f32 %v14889_v6, %v3692_v42  ;;  %v3945_v21 = vadd.f32 %v3913_v0, %v3874_v46  ;;  %v4054_v14 = vmul.f32 %v14892_v58, %v14891_v26  ;;  %v4055_v55 = vmul.f32 %v14892_v58, %v11138_v23  ;;  %v14898_v0 = vld [vmem:[#allocation106_spill] sm:$0xff]  ;;  %v14899_v26 = vld [vmem:[#allocation112_spill] sm:$0xff]  ;;  %v14900_v37 = vld [vmem:[#allocation117_spill] sm:$0xff] }
 0x383   : > { %v11389_v50 = vadd.f32 %v14889_v6, %v3693_v17  ;;  %v14894_v19 = vrot.slane %v14849_v30, 5  ;;  %v14895_v31 = vrot.slane %v14795_v53, 5  ;;  %v14897_v45 = vrot.slane %v14784_v61, 5 }
 0x384   : > { %14890 = vst [vmem:[#allocation49_spill] sm:$0xff] %v11384_v43  ;;  %v4015_v15 = vadd.f32 %v3983_v11, %v3944_v34  ;;  %v4016_v6 = vadd.f32 %v3984_v60, %v3945_v21  ;;  %v4125_v17 = vmul.f32 %v14898_v0, %v11384_v43  ;;  %v4459_v39 = vmul.f32 %v14900_v37, %v11316_v22 }
 0x385   : > { %14893 = vst [vmem:[#allocation91_spill] sm:$0xff] %v11389_v50  ;;  %v4311_v25 = vsel %vm4292_vm7, %v14895_v31, %v14894_v19  ;;  %v14896_v42 = vmov %v14895_v31  ;;  %v4126_v23 = vmul.f32 %v14898_v0, %v11389_v50  ;;  %v4460_v60 = vmul.f32 %v14900_v37, %v11298_v1 }
 0x386   : > { %v4312_v46 = vsel %vm4292_vm7, %v14897_v45, %v14896_v42  ;;  %v4411_v31 = vmul.f32 %v14899_v26, %v4311_v25  ;;  %v4086_v47 = vadd.f32 %v4054_v14, %v4015_v15  ;;  %v4087_v42 = vadd.f32 %v4055_v55, %v4016_v6  ;;  %v14901_v45 = vld [vmem:[#allocation105_spill] sm:$0xff] }
 0x387   : > { %v4361_v58 = vsel %vm1023_vm8, %v4312_v46, 0.0  ;;  %v4552_v11 = vmul.f32 %v14835_v27, %v11250_v18  ;;  %v4553_v21 = vmul.f32 %v14835_v27, %v11232_v2  ;;  %v4645_v46 = vmul.f32 %v14901_v45, %v14795_v53 }
 0x388   : > { %v4410_v19 = vmul.f32 %v14899_v26, %v4361_v58  ;;  %v4646_v26 = vmul.f32 %v14901_v45, %v14849_v30  ;;  %v4157_v25 = vadd.f32 %v4125_v17, %v4086_v47  ;;  %v4158_v0 = vadd.f32 %v4126_v23, %v4087_v42  ;;  %v14902_v42 = vld [vmem:[#allocation120_spill] sm:$0xff] }
 0x389   : > { %v4504_v14 = vadd.f32 %v4460_v60, %v4411_v31  ;;  %v4738_v55 = vmul.f32 %v14837_v44, %v11274_v40  ;;  %v4739_v15 = vmul.f32 %v14837_v44, %v11278_v5  ;;  %v4832_v6 = vmul.f32 %v10849_v63, %v11377_v24  ;;  %v14903_v60 = vld [vmem:[#allocation114_spill] sm:$0xff] }
 0x38a   : > { %v4503_v34 = vadd.f32 %v4459_v39, %v4410_v19  ;;  %v4831_v39 = vmul.f32 %v10849_v63, %v11356_v10  ;;  %v4196_v58 = vadd.f32 %v14838_v52, %v4157_v25  ;;  %v4197_v19 = vadd.f32 %v14838_v52, %v4158_v0 }
 0x38b   : > { %v4597_v47 = vadd.f32 %v4553_v21, %v4504_v14  ;;  %v4920_v23 = vrot.slane %v14849_v30, 3  ;;  %v14058_v31 = vrot.slane %v14859_v56, 3  ;;  %v14905_v52 = vrot.slane %v14795_v53, 3  ;;  %v14906_v14 = vld [vmem:[#allocation110_spill] sm:$0xff] }
 0x38c   : > { %v4596_v37 = vadd.f32 %v4552_v11, %v4503_v34  ;;  %v5280_v11 = vmul.f32 %v14903_v60, %v14902_v42  ;;  %v14904_v34 = vld [vmem:[#allocation123_spill] sm:$0xff]  ;;  %v11442_v45 = vmul.f32 %v4196_v58, %v11339_v41  ;;  %v11444_v63 = vmul.f32 %v4197_v19, %v3008_v32 }
 0x38d   : > { %v5281_v44 = vmul.f32 %v14903_v60, %v14904_v34  ;;  %v4690_v25 = vadd.f32 %v4646_v26, %v4597_v47  ;;  %v4958_v21 = vsel %vm4939_vm9, %v14905_v52, %v4920_v23  ;;  %v4957_v0 = vsel %vm4939_vm9, %v4920_v23, %v14058_v31  ;;  %v14907_v42 = vld [vmem:[#allocation63_spill] sm:$0xff]  ;;  %v14910_v47 = vld [vmem:[#allocation118_spill] sm:$0xff] }
 0x38e   : > { %v4689_v17 = vadd.f32 %v4645_v46, %v4596_v37  ;;  %v5057_v37 = vmul.f32 %v14906_v14, %v4958_v21  ;;  %v14908_v34 = vld [vmem:[#allocation111_spill] sm:$0xff]  ;;  %v5009_v32 = vsel %vm1018_vm11, %v4957_v0, 0.0  ;;  %v5391_v23 = vmul.f32 %v14910_v47, %v10370_v59 }
 0x38f   : > { %v5319_v41 = vmul.f32 %v14908_v34, %v14907_v42  ;;  %v4783_v58 = vadd.f32 %v4739_v15, %v4690_v25  ;;  %v14909_v26 = vld [vmem:[#allocation119_spill] sm:$0xff]  ;;  %v5058_v52 = vmul.f32 %v14906_v14, %v5009_v32  ;;  %v14911_v15 = vld [vmem:[#allocation113_spill] sm:$0xff] }
 0x390   : > { %v4782_v46 = vadd.f32 %v4738_v55, %v4689_v17  ;;  %v5320_v19 = vmul.f32 %v14908_v34, %v14909_v26  ;;  %v5390_v55 = vmul.f32 %v14910_v47, %v14841_v20  ;;  %v5461_v25 = vmul.f32 %v14911_v15, %v14843_v7  ;;  %v14913_v32 = vld [vmem:[#allocation107_spill] sm:$0xff] }
 0x391   : > { %v5351_v60 = vadd.f32 %v5319_v41, %v5280_v11  ;;  %v4876_v21 = vadd.f32 %v4832_v6, %v4783_v58  ;;  %v5462_v0 = vmul.f32 %v14911_v15, %v14845_v38  ;;  %v5532_v20 = vmul.f32 %v14844_v13, %v14846_v35 }
 0x392   : > { %v4875_v17 = vadd.f32 %v4831_v39, %v4782_v46  ;;  %v5352_v31 = vadd.f32 %v5320_v19, %v5281_v44  ;;  %v14912_v39 = vld [vmem:[#allocation125_spill] sm:$0xff]  ;;  %v5603_v6 = vmul.f32 %v14913_v32, %v11235_v62  ;;  %v14914_v44 = vld [vmem:[#allocation115_spill] sm:$0xff]  ;;  %v14915_v19 = vld [vmem:[#allocation124_spill] sm:$0xff] }
 0x393   : > { %v5422_v34 = vadd.f32 %v5390_v55, %v5351_v60  ;;  %v5533_v46 = vmul.f32 %v14844_v13, %v14912_v39  ;;  %v5102_v11 = vadd.f32 %v5058_v52, %v4876_v21  ;;  %v5604_v58 = vmul.f32 %v14913_v32, %v14914_v44 }
 0x394   : > { %v5101_v42 = vadd.f32 %v5057_v37, %v4875_v17  ;;  %v5423_v41 = vadd.f32 %v5391_v23, %v5352_v31  ;;  %v14917_v37 = vld [vmem:[#allocation59_spill] sm:$0xff]  ;;  %v14919_v55 = vrot.slane %v14859_v56, 7  ;;  %v14921_v52 = vrot.slane %v14849_v30, 7 }
 0x395   : > { %v5493_v15 = vadd.f32 %v5461_v25, %v5422_v34  ;;  %v14918_v60 = vrot.slane %v14917_v37, 7  ;;  %v11496_v21 = vadd.f32 %v14915_v19, %v5102_v11  ;;  %v14922_v25 = vld [vmem:[#allocation74_spill] sm:$0xff] }
 0x396   : > { %v11479_v47 = vadd.f32 %v14915_v19, %v5101_v42  ;;  %v14920_v31 = vmov %v14919_v55  ;;  %v5494_v42 = vadd.f32 %v5462_v0, %v5423_v41  ;;  %v2326_v32 = vmul.f32 %v14922_v25, %v10961_v4 }
 0x397   : > { %v11487_v17 = vsel %vm1247_vm2, %v14919_v55, %v14918_v60  ;;  %v2228_v23 = vsel %vm1247_vm2, %v14921_v52, %v14920_v31  ;;  %v5564_v60 = vadd.f32 %v5532_v20, %v5493_v15  ;;  %v14923_v55 = vld [vmem:[#allocation68_spill] sm:$0xff]  ;;  %v2327_v13 = vmul.f32 %v14922_v25, %v10939_v16  ;;  %v14924_v52 = vld [vmem:[#allocation79_spill] sm:$0xff] }
 0x398   : > { %14916 = vst [vmem:[#allocation82_spill] sm:$0xff] %v11479_v47  ;;  %v11500_v34 = vsel %vm1019_vm0, %v2228_v23, 0.0  ;;  %v5704_v44 = vmul.f32 %v14923_v55, %v11479_v47  ;;  %v2375_v31 = vmul.f32 %v10974_v12, %v14728_v48  ;;  %v5565_v11 = vadd.f32 %v5533_v46, %v5494_v42 }
 0x399   : > { %v5705_v0 = vmul.f32 %v14923_v55, %v11496_v21  ;;  %v2376_v41 = vmul.f32 %v10974_v12, %v14784_v61  ;;  %v14925_v23 = vrot.slane %v14924_v52, 1  ;;  %v14926_v4 = vrot.slane %v14917_v37, 1  ;;  %v11532_v55 = vld [vmem:[#allocation13 + $0x2] ss:$0 sm:$0xff] }
 0x39a   : > { %v5635_v15 = vadd.f32 %v5603_v6, %v5564_v60  ;;  %v2419_v19 = vadd.f32 %v2375_v31, %v2326_v32  ;;  %v14928_v48 = vrot.slane %v14859_v56, 1  ;;  %v5636_v61 = vadd.f32 %v5604_v58, %v5565_v11 }
 0x39b   : > { %v2500_v20 = vsel %vm1424_vm3, %v14926_v4, %v14925_v23  ;;  %v14927_v16 = vmov %v14926_v4  ;;  %v2420_v12 = vadd.f32 %v2376_v41, %v2327_v13  ;;  %v2600_v6 = vmul.f32 %v11532_v55, %v10992_v49  ;;  %v11542_v23 = vld [vmem:[#allocation16 + $0x1] ss:$0 sm:$0xff] }
 0x39c   : > { %v11526_v46 = vsel %vm1424_vm3, %v14928_v48, %v14927_v16  ;;  %v11530_v42 = vsel %vm1014_vm1, %v2500_v20, 0.0  ;;  %v2601_v32 = vmul.f32 %v11532_v55, %v10996_v8  ;;  %v5736_v60 = vadd.f32 %v5704_v44, %v5635_v15  ;;  %14929 = vst [vmem:[#allocation104_spill] sm:$0xff] %v11542_v23 }
 0x39d   : > { %v2828_v31 = vmul.f32 %v11002_v28, %v11027_v54  ;;  %v2829_v48 = vmul.f32 %v11002_v28, %v11038_v51  ;;  %v2867_v13 = vmul.f32 %v11542_v23, %v11301_v57  ;;  %v5737_v58 = vadd.f32 %v5705_v0, %v5636_v61  ;;  %v11564_v0 = vld [vmem:[#allocation15] ss:$0 sm:$0xff] }
 0x39e   : > { %v2644_v11 = vadd.f32 %v2600_v6, %v2419_v19  ;;  %v2645_v41 = vadd.f32 %v2601_v32, %v2420_v12  ;;  %v2868_v49 = vmul.f32 %v11542_v23, %v11312_v9  ;;  %v5775_v8 = vadd.f32 %v14869_v33, %v5736_v60  ;;  %14934 = vst [vmem:[#allocation121_spill] sm:$0xff] %v11564_v0 }
 0x39f   : > { %v2899_v44 = vadd.f32 %v2867_v13, %v2828_v31  ;;  %v14930_v4 = vrot.slane %v14917_v37, 6  ;;  %v14931_v54 = vrot.slane %v14859_v56, 6  ;;  %v14933_v61 = vrot.slane %v14849_v30, 6 }
 0x3a0   : > { %v5776_v19 = vadd.f32 %v14869_v33, %v5737_v58  ;;  %v11567_v15 = vadd.f32 %v11564_v0, %v2644_v11  ;;  %v11570_v16 = vadd.f32 %v11564_v0, %v2645_v41  ;;  %v2900_v6 = vadd.f32 %v2868_v49, %v2829_v48  ;;  %v11582_v11 = vld [vmem:[#allocation16 + $0x2] ss:$0 sm:$0xff]  ;;  %v14937_v48 = vld [vmem:[#allocation70_spill] sm:$0xff] }
 0x3a1   : > { %v11555_v51 = vsel %vm3071_vm4, %v14931_v54, %v14930_v4  ;;  %v14932_v20 = vmov %v14931_v54  ;;  %v5807_v32 = vmul.f32 %v5775_v8, %v11442_v45  ;;  %v3189_v31 = vmul.f32 %v14871_v29, %v11316_v22  ;;  %14936 = vst [vmem:[#allocation87_spill] sm:$0xff] %v11582_v11  ;;  %v14938_v8 = vld [vmem:[#allocation51_spill] sm:$0xff] }
 0x3a2   : > { %v3089_v12 = vsel %vm3071_vm4, %v14933_v61, %v14932_v20  ;;  %14935 = vst [vmem:[#allocation83_spill] sm:$0xff] %v11570_v16  ;;  %v3190_v13 = vmul.f32 %v14871_v29, %v11298_v1  ;;  %v5808_v58 = vmul.f32 %v5776_v19, %v11444_v63  ;;  %v2938_v41 = vmul.f32 %v11582_v11, %v11567_v15  ;;  %v11596_v63 = vld [vmem:[%s13641_s9 + $0x2] ss:$0 sm:$0xff]  ;;  %v14940_v20 = vld [vmem:[#allocation53_spill] sm:$0xff] }
 0x3a3   : > { %v11575_v60 = vsel %vm1021_vm6, %v3089_v12, 0.0  ;;  %v2939_v45 = vmul.f32 %v11582_v11, %v11570_v16  ;;  %v3238_v49 = vmul.f32 %v14937_v48, %v11250_v18  ;;  %v5839_v4 = vadd.f32 %v5807_v32, %v14938_v8  ;;  %14939 = vst [vmem:[#allocation65_spill] sm:$0xff] %v11596_v63  ;;  %v14941_v8 = vld [vmem:[#allocation50_spill] sm:$0xff]  ;;  %v11608_v16 = vld [vmem:[#allocation18] ss:$0 sm:$0xff] }
 0x3a4   : > { %v3239_v22 = vmul.f32 %v14937_v48, %v11232_v2  ;;  %v3331_v1 = vmul.f32 %v11596_v63, %v14795_v53  ;;  %v3332_v54 = vmul.f32 %v11596_v63, %v14849_v30  ;;  %v5840_v61 = vadd.f32 %v5808_v58, %v14940_v20  ;;  %14942 = vst [vmem:[#allocation95_spill] sm:$0xff] %v11608_v16  ;;  %v14945_v20 = vld [vmem:[#allocation97_spill] sm:$0xff] }
 0x3a5   : > { %v2970_v12 = vadd.f32 %v2938_v41, %v2899_v44  ;;  %v2971_v19 = vadd.f32 %v2939_v45, %v2900_v6  ;;  %v3282_v11 = vadd.f32 %v3238_v49, %v3189_v31  ;;  %v3424_v48 = vmul.f32 %v14941_v8, %v11274_v40  ;;  %v14944_v45 = vld [vmem:[#allocation66_spill] sm:$0xff] }
 0x3a6   : > { %v3283_v32 = vadd.f32 %v3239_v22, %v3190_v13  ;;  %v3425_v29 = vmul.f32 %v14941_v8, %v11278_v5  ;;  %v3515_v0 = vrot.slane %v14917_v37, 2  ;;  %v5865_v33 = vpack.c.bf16 %v5840_v61, %v5839_v4  ;;  %v14946_v61 = vld [vmem:[#allocation75_spill] sm:$0xff] }
 0x3a7   : > { %v11611_v23 = vadd.f32 %v11608_v16, %v2970_v12  ;;  %v11614_v58 = vadd.f32 %v11608_v16, %v2971_v19  ;;  %v3375_v44 = vadd.f32 %v3331_v1, %v3282_v11  ;;  %v14082_v31 = vrot.slane %v14924_v52, 2  ;;  %v14947_v1 = vld [vmem:[#allocation103_spill] sm:$0xff] }
 0x3a8   : > { %v3376_v6 = vadd.f32 %v3332_v54, %v3283_v32  ;;  %v14943_v13 = vrot.slane %v14859_v56, 2  ;;  %v3650_v49 = vmul.f32 %v14944_v45, %v11356_v10  ;;  %6887 = vmatprep.mubr.bf16.mxu1 %v5865_v33  ;;  %v3651_v22 = vmul.f32 %v14944_v45, %v11377_v24  ;;  %v14948_v32 = vld [vmem:[#allocation71_spill] sm:$0xff]  ;;  %v14950_v33 = vld [vmem:[#allocation73_spill] sm:$0xff] }
 0x3a9   : > { %v3468_v4 = vadd.f32 %v3424_v48, %v3375_v44  ;;  %v3875_v11 = vmul.f32 %v14946_v61, %v14945_v20  ;;  %v3876_v54 = vmul.f32 %v14946_v61, %v14947_v1  ;;  %v3548_v19 = vsel %vm3532_vm5, %v3515_v0, %v14082_v31 }
 0x3aa   : > { %v11621_v41 = vsel %vm3532_vm5, %v14943_v13, %v3515_v0  ;;  %v3469_v12 = vadd.f32 %v3425_v29, %v3376_v6  ;;  %v14949_v13 = vld [vmem:[#allocation100_spill] sm:$0xff]  ;;  %v11641_v24 = vsel %vm1016_vm10, %v3548_v19, 0.0  ;;  %v11646_v29 = vld [vmem:[%s13643_s11 + $0x2] ss:$0 sm:$0xff]  ;;  %v14952_v6 = vld [vmem:[#allocation101_spill] sm:$0xff] }
 0x3ab   : > { %v3914_v10 = vmul.f32 %v14949_v13, %v14948_v32  ;;  %v3915_v48 = vmul.f32 %v14949_v13, %v14950_v33  ;;  %v3694_v44 = vadd.f32 %v3650_v49, %v3468_v4  ;;  %14951 = vst [vmem:[#allocation98_spill] sm:$0xff] %v11646_v29  ;;  %v3985_v20 = vmul.f32 %v11646_v29, %v14952_v6  ;;  %v14953_v0 = vld [vmem:[#allocation64_spill] sm:$0xff]  ;;  %v11655_v19 = vld [vmem:[%s13643_s11 + $0x3] ss:$0 sm:$0xff]  ;;  %v11662_v4 = vld [vmem:[%s14488_s27] ss:$0 sm:$0xff] }
 0x3ac   : > { %v3986_v1 = vmul.f32 %v11646_v29, %v14953_v0  ;;  %v3695_v31 = vadd.f32 %v3651_v22, %v3469_v12  ;;  %14954 = vst [vmem:[#allocation52_spill] sm:$0xff] %v11655_v19  ;;  %v4056_v49 = vmul.f32 %v11655_v19, %v11384_v43  ;;  %14955 = vst [vmem:[#allocation54_spill] sm:$0xff] %v11662_v4 }
 0x3ad   : > { %v3946_v61 = vadd.f32 %v3914_v10, %v3875_v11  ;;  %v3947_v32 = vadd.f32 %v3915_v48, %v3876_v54  ;;  %v11665_v13 = vadd.f32 %v11662_v4, %v3694_v44  ;;  %v4057_v22 = vmul.f32 %v11655_v19, %v11389_v50  ;;  %v11689_v50 = vld [vmem:[%s13643_s11 + $0x4] ss:$0 sm:$0xff] }
 0x3ae   : > { %v14957_v11 = vrot.slane %v14917_v37, 5  ;;  %v14958_v54 = vrot.slane %v14859_v56, 5  ;;  %v14960_v48 = vrot.slane %v14849_v30, 5  ;;  %v11682_v44 = vadd.f32 %v11662_v4, %v3695_v31  ;;  %14962 = vst [vmem:[#allocation88_spill] sm:$0xff] %v11689_v50 }
 0x3af   : > { %14956 = vst [vmem:[#allocation99_spill] sm:$0xff] %v11665_v13  ;;  %v4017_v43 = vadd.f32 %v3985_v20, %v3946_v61  ;;  %v4018_v0 = vadd.f32 %v3986_v1, %v3947_v32 }
 0x3b0   : > { %v4309_v12 = vsel %vm4292_vm7, %v14958_v54, %v14957_v11  ;;  %v14959_v10 = vmov %v14958_v54  ;;  %14961 = vst [vmem:[#allocation45_spill] sm:$0xff] %v11682_v44  ;;  %v4127_v11 = vmul.f32 %v11689_v50, %v11665_v13  ;;  %v11693_v54 = vld [vmem:[#allocation21] ss:$0 sm:$0xff]  ;;  %v4128_v20 = vmul.f32 %v11689_v50, %v11682_v44 }
 0x3b1   : > { %v4310_v29 = vsel %vm4292_vm7, %v14960_v48, %v14959_v10  ;;  %14963 = vst [vmem:[#allocation96_spill] sm:$0xff] %v11693_v54  ;;  %v4413_v31 = vmul.f32 %v11693_v54, %v4309_v12  ;;  %v11697_v48 = vld [vmem:[#allocation21 + $0x1] ss:$0 sm:$0xff]  ;;  %v4088_v32 = vadd.f32 %v4056_v49, %v4017_v43  ;;  %v4554_v13 = vmul.f32 %v14835_v27, %v11500_v34  ;;  %v14965_v12 = vld [vmem:[#allocation105_spill] sm:$0xff] }
 0x3b2   : > { %v4363_v19 = vsel %vm1023_vm8, %v4310_v29, 0.0  ;;  %14964 = vst [vmem:[#allocation102_spill] sm:$0xff] %v11697_v48  ;;  %v4461_v61 = vmul.f32 %v11697_v48, %v11575_v60  ;;  %v4089_v29 = vadd.f32 %v4057_v22, %v4018_v0  ;;  %v4462_v1 = vmul.f32 %v11697_v48, %v11555_v51  ;;  %v14966_v22 = vld [vmem:[#allocation108_spill] sm:$0xff] }
 0x3b3   : > { %v4412_v10 = vmul.f32 %v11693_v54, %v4363_v19  ;;  %v4555_v19 = vmul.f32 %v14835_v27, %v11487_v17  ;;  %v4647_v54 = vmul.f32 %v14965_v12, %v14859_v56  ;;  %v4159_v6 = vadd.f32 %v4127_v11, %v4088_v32  ;;  %v11719_v27 = vld [vmem:[#allocation19] ss:$0 sm:$0xff] }
 0x3b4   : > { %v4160_v33 = vadd.f32 %v4128_v20, %v4089_v29  ;;  %v4506_v43 = vadd.f32 %v4462_v1, %v4413_v31  ;;  %v4648_v0 = vmul.f32 %v14965_v12, %v14917_v37  ;;  %v4740_v48 = vmul.f32 %v14966_v22, %v11526_v46  ;;  %14968 = vst [vmem:[#allocation61_spill] sm:$0xff] %v11719_v27  ;;  %v14969_v20 = vld [vmem:[#allocation63_spill] sm:$0xff]  ;;  %v14970_v1 = vld [vmem:[#allocation114_spill] sm:$0xff] }
 0x3b5   : > { %v4505_v4 = vadd.f32 %v4461_v61, %v4412_v10  ;;  %v4741_v10 = vmul.f32 %v14966_v22, %v11530_v42  ;;  %v14967_v61 = vld [vmem:[#allocation109_spill] sm:$0xff]  ;;  %v4198_v44 = vadd.f32 %v11719_v27, %v4159_v6  ;;  %v14106_v29 = vrot.slane %v14924_v52, 3 }
 0x3b6   : > { %v4833_v50 = vmul.f32 %v14967_v61, %v11621_v41  ;;  %v4199_v11 = vadd.f32 %v11719_v27, %v4160_v33  ;;  %v4599_v31 = vadd.f32 %v4555_v19, %v4506_v43  ;;  %v4834_v32 = vmul.f32 %v14967_v61, %v11641_v24 }
 0x3b7   : > { %v4598_v49 = vadd.f32 %v4554_v13, %v4505_v4  ;;  %v4922_v4 = vrot.slane %v14917_v37, 3  ;;  %v5282_v12 = vmul.f32 %v14970_v1, %v14969_v20  ;;  %v11730_v22 = vmul.f32 %v4198_v44, %v11611_v23  ;;  %v14972_v23 = vld [vmem:[#allocation72_spill] sm:$0xff]  ;;  %v14973_v44 = vld [vmem:[#allocation111_spill] sm:$0xff]  ;;  %v14974_v20 = vld [vmem:[#allocation118_spill] sm:$0xff] }
 0x3b8   : > { %v11733_v45 = vmul.f32 %v4199_v11, %v11614_v58  ;;  %v4692_v6 = vadd.f32 %v4648_v0, %v4599_v31  ;;  %v5283_v33 = vmul.f32 %v14970_v1, %v14909_v26  ;;  %v14971_v43 = vrot.slane %v14859_v56, 3 }
 0x3b9   : > { %v4691_v13 = vadd.f32 %v4647_v54, %v4598_v49  ;;  %v4955_v54 = vsel %vm4939_vm9, %v4922_v4, %v14106_v29  ;;  %v5321_v61 = vmul.f32 %v14973_v44, %v14972_v23  ;;  %v5392_v1 = vmul.f32 %v14974_v20, %v14843_v7 }
 0x3ba   : > { %v4956_v49 = vsel %vm4939_vm9, %v14971_v43, %v4922_v4  ;;  %v4785_v58 = vadd.f32 %v4741_v10, %v4692_v6  ;;  %v5011_v0 = vsel %vm1018_vm11, %v4955_v54, 0.0  ;;  %v5393_v10 = vmul.f32 %v14974_v20, %v14845_v38  ;;  %v14975_v6 = vld [vmem:[#allocation113_spill] sm:$0xff] }
 0x3bb   : > { %v4784_v19 = vadd.f32 %v4740_v48, %v4691_v13  ;;  %v5059_v26 = vmul.f32 %v14906_v14, %v4956_v49  ;;  %v5322_v48 = vmul.f32 %v14973_v44, %v10370_v59  ;;  %v5060_v31 = vmul.f32 %v14906_v14, %v5011_v0  ;;  %v14979_v0 = vld [vmem:[#allocation124_spill] sm:$0xff] }
 0x3bc   : > { %v5353_v13 = vadd.f32 %v5321_v61, %v5282_v12  ;;  %v4878_v4 = vadd.f32 %v4834_v32, %v4785_v58  ;;  %v5463_v54 = vmul.f32 %v14975_v6, %v14846_v35  ;;  %v5464_v44 = vmul.f32 %v14975_v6, %v14912_v39  ;;  %v14977_v61 = vld [vmem:[#allocation115_spill] sm:$0xff] }
 0x3bd   : > { %v4877_v11 = vadd.f32 %v4833_v50, %v4784_v19  ;;  %v5354_v43 = vadd.f32 %v5322_v48, %v5283_v33  ;;  %v14976_v50 = vld [vmem:[#allocation116_spill] sm:$0xff]  ;;  %v14978_v33 = vld [vmem:[#allocation107_spill] sm:$0xff] }
 0x3be   : > { %v5424_v49 = vadd.f32 %v5392_v1, %v5353_v13  ;;  %v5534_v14 = vmul.f32 %v14976_v50, %v11235_v62  ;;  %v5104_v12 = vadd.f32 %v5060_v31, %v4878_v4  ;;  %v5535_v32 = vmul.f32 %v14976_v50, %v14977_v61  ;;  %v14987_v50 = vld [vmem:[#allocation68_spill] sm:$0xff] }
 0x3bf   : > { %v5103_v29 = vadd.f32 %v5059_v26, %v4877_v11  ;;  %v5425_v19 = vadd.f32 %v5393_v10, %v5354_v43  ;;  %v5605_v58 = vmul.f32 %v14978_v33, %v11479_v47  ;;  %v5606_v26 = vmul.f32 %v14978_v33, %v11496_v21  ;;  %v14981_v11 = vld [vmem:[#allocation84_spill] sm:$0xff] }
 0x3c0   : > { %v5495_v20 = vadd.f32 %v5463_v54, %v5424_v49  ;;  %v14982_v13 = vrot.slane %v14981_v11, 7  ;;  %v14983_v1 = vrot.slane %v14924_v52, 7  ;;  %v11781_v4 = vadd.f32 %v14979_v0, %v5104_v12 }
 0x3c1   : > { %v11768_v48 = vadd.f32 %v14979_v0, %v5103_v29  ;;  %v5496_v43 = vadd.f32 %v5464_v44, %v5425_v19  ;;  %v14986_v29 = vrot.slane %v14917_v37, 7  ;;  %v2328_v54 = vmul.f32 %v14922_v25, %v11250_v18  ;;  %v14988_v0 = vld [vmem:[#allocation81_spill] sm:$0xff] }
 0x3c2   : > { %v11778_v31 = vsel %vm1247_vm2, %v14983_v1, %v14982_v13  ;;  %14984 = vst [vmem:[#allocation112_spill] sm:$0xff] %v11781_v4  ;;  %v14985_v10 = vmov %v14983_v1  ;;  %v5566_v49 = vadd.f32 %v5534_v14, %v5495_v20  ;;  %v2329_v44 = vmul.f32 %v14922_v25, %v11232_v2  ;;  %v14989_v20 = vld [vmem:[#allocation78_spill] sm:$0xff] }
 0x3c3   : > { %14980 = vst [vmem:[#allocation106_spill] sm:$0xff] %v11768_v48  ;;  %v2226_v6 = vsel %vm1247_vm2, %v14986_v29, %v14985_v10  ;;  %v5706_v33 = vmul.f32 %v14987_v50, %v11768_v48  ;;  %v5567_v12 = vadd.f32 %v5535_v32, %v5496_v43  ;;  %v5707_v19 = vmul.f32 %v14987_v50, %v11781_v4 }
 0x3c4   : > { %v11795_v13 = vsel %vm1019_vm0, %v2226_v6, 0.0  ;;  %v2377_v1 = vmul.f32 %v14988_v0, %v14795_v53  ;;  %v2378_v18 = vmul.f32 %v14988_v0, %v14849_v30  ;;  %v5637_v14 = vadd.f32 %v5605_v58, %v5566_v49 }
 0x3c5   : > { %v14990_v10 = vrot.slane %v14989_v20, 1  ;;  %v14991_v29 = vrot.slane %v14981_v11, 1  ;;  %v14993_v25 = vrot.slane %v14924_v52, 1  ;;  %v2602_v43 = vmul.f32 %v11532_v55, %v11274_v40  ;;  %v14994_v40 = vld [vmem:[#allocation104_spill] sm:$0xff] }
 0x3c6   : > { %v5638_v50 = vadd.f32 %v5606_v26, %v5567_v12  ;;  %v2421_v58 = vadd.f32 %v2377_v1, %v2328_v54  ;;  %v2422_v49 = vadd.f32 %v2378_v18, %v2329_v44  ;;  %v5738_v30 = vadd.f32 %v5706_v33, %v5637_v14  ;;  %v14995_v54 = vld [vmem:[#allocation83_spill] sm:$0xff]  ;;  %v14996_v12 = vld [vmem:[#allocation85_spill] sm:$0xff] }
 0x3c7   : > { %v2498_v6 = vsel %vm1424_vm3, %v14991_v29, %v14990_v10  ;;  %v14992_v2 = vmov %v14991_v29  ;;  %v2603_v10 = vmul.f32 %v11532_v55, %v11278_v5  ;;  %v2830_v29 = vmul.f32 %v11002_v28, %v11301_v57 }
 0x3c8   : > { %v11817_v32 = vsel %vm1424_vm3, %v14993_v25, %v14992_v2  ;;  %v11823_v0 = vsel %vm1014_vm1, %v2498_v6, 0.0  ;;  %v2831_v2 = vmul.f32 %v11002_v28, %v11312_v9  ;;  %v5739_v25 = vadd.f32 %v5707_v19, %v5638_v50  ;;  %v15001_v6 = vld [vmem:[#allocation121_spill] sm:$0xff] }
 0x3c9   : > { %v2646_v53 = vadd.f32 %v2602_v43, %v2421_v58  ;;  %v2869_v26 = vmul.f32 %v14994_v40, %v11567_v15  ;;  %v2870_v44 = vmul.f32 %v14994_v40, %v14995_v54  ;;  %v5777_v1 = vadd.f32 %v14996_v12, %v5738_v30 }
 0x3ca   : > { %v2647_v33 = vadd.f32 %v2603_v10, %v2422_v49  ;;  %v14997_v18 = vrot.slane %v14981_v11, 6  ;;  %v14998_v5 = vrot.slane %v14924_v52, 6  ;;  %v15000_v9 = vrot.slane %v14917_v37, 6 }
 0x3cb   : > { %v5778_v14 = vadd.f32 %v14996_v12, %v5739_v25  ;;  %v11852_v30 = vadd.f32 %v15001_v6, %v2646_v53  ;;  %v2901_v43 = vadd.f32 %v2869_v26, %v2830_v29  ;;  %v2902_v50 = vadd.f32 %v2870_v44, %v2831_v2  ;;  %v15004_v25 = vld [vmem:[#allocation87_spill] sm:$0xff]  ;;  %v15006_v26 = vld [vmem:[#allocation57_spill] sm:$0xff] }
 0x3cc   : > { %v11842_v57 = vsel %vm3071_vm4, %v14998_v5, %v14997_v18  ;;  %v14999_v28 = vmov %v14998_v5  ;;  %v5809_v58 = vmul.f32 %v5777_v1, %v11730_v22  ;;  %v11856_v49 = vadd.f32 %v15001_v6, %v2647_v33  ;;  %v15003_v18 = vld [vmem:[#allocation86_spill] sm:$0xff] }
 0x3cd   : > { %v3087_v19 = vsel %vm3071_vm4, %v15000_v9, %v14999_v28  ;;  %v3191_v5 = vmul.f32 %v15003_v18, %v11575_v60  ;;  %v5810_v28 = vmul.f32 %v5778_v14, %v11733_v45  ;;  %v2940_v53 = vmul.f32 %v15004_v25, %v11852_v30  ;;  %v15005_v22 = vld [vmem:[#allocation70_spill] sm:$0xff] }
 0x3ce   : > { %15002 = vst [vmem:[#allocation117_spill] sm:$0xff] %v11856_v49  ;;  %v11860_v10 = vsel %vm1021_vm6, %v3087_v19, 0.0  ;;  %v3192_v29 = vmul.f32 %v15003_v18, %v11555_v51  ;;  %v3240_v2 = vmul.f32 %v15005_v22, %v11500_v34  ;;  %v5841_v44 = vadd.f32 %v5809_v58, %v15006_v26  ;;  %v15007_v45 = vld [vmem:[#allocation58_spill] sm:$0xff] }
 0x3cf   : > { %v2941_v12 = vmul.f32 %v15004_v25, %v11856_v49  ;;  %v3241_v1 = vmul.f32 %v15005_v22, %v11487_v17  ;;  %v3333_v60 = vmul.f32 %v11596_v63, %v14859_v56  ;;  %v5842_v33 = vadd.f32 %v5810_v28, %v15007_v45  ;;  %v15023_v49 = vld [vmem:[#allocation45_spill] sm:$0xff] }
 0x3d0   : > { %v2972_v9 = vadd.f32 %v2940_v53, %v2901_v43  ;;  %v3284_v19 = vadd.f32 %v3240_v2, %v3191_v5  ;;  %v3334_v51 = vmul.f32 %v11596_v63, %v14917_v37  ;;  %v3426_v58 = vmul.f32 %v14941_v8, %v11526_v46  ;;  %v15008_v53 = vld [vmem:[#allocation66_spill] sm:$0xff] }
 0x3d1   : > { %v2973_v14 = vadd.f32 %v2941_v12, %v2902_v50  ;;  %v3285_v18 = vadd.f32 %v3241_v1, %v3192_v29  ;;  %v3427_v26 = vmul.f32 %v14941_v8, %v11530_v42  ;;  %v5866_v25 = vpack.c.bf16 %v5842_v33, %v5841_v44  ;;  %v15010_v1 = vld [vmem:[#allocation71_spill] sm:$0xff] }
 0x3d2   : > { %v11886_v22 = vadd.f32 %v11608_v16, %v2972_v9  ;;  %v3377_v6 = vadd.f32 %v3333_v60, %v3284_v19  ;;  %v3517_v28 = vrot.slane %v14981_v11, 2  ;;  %v14111_v50 = vrot.slane %v14989_v20, 2  ;;  %v15011_v60 = vld [vmem:[#allocation75_spill] sm:$0xff]  ;;  %v15013_v9 = vld [vmem:[#allocation101_spill] sm:$0xff]  ;;  %v15014_v19 = vld [vmem:[#allocation100_spill] sm:$0xff] }
 0x3d3   : > { %v11890_v43 = vadd.f32 %v11608_v16, %v2973_v14  ;;  %v3378_v5 = vadd.f32 %v3334_v51, %v3285_v18  ;;  %v3652_v29 = vmul.f32 %v15008_v53, %v11621_v41  ;;  %6888 = vmatmul.mubr.bf16.gmra.mxu1 %v5866_v25  ;;  %v15009_v8 = vrot.slane %v14924_v52, 2  ;;  %v15012_v25 = vld [vmem:[#allocation73_spill] sm:$0xff]  ;;  %v15015_v18 = vld [vmem:[#allocation64_spill] sm:$0xff] }
 0x3d4   : > { %v3470_v2 = vadd.f32 %v3426_v58, %v3377_v6  ;;  %v3653_v12 = vmul.f32 %v15008_v53, %v11641_v24  ;;  %v3877_v45 = vmul.f32 %v15011_v60, %v15010_v1  ;;  %v3546_v41 = vsel %vm3532_vm5, %v3517_v28, %v14111_v50 }
 0x3d5   : > { %v11899_v44 = vsel %vm3532_vm5, %v15009_v8, %v3517_v28  ;;  %v3471_v33 = vadd.f32 %v3427_v26, %v3378_v5  ;;  %v3878_v6 = vmul.f32 %v15011_v60, %v15012_v25  ;;  %v3916_v51 = vmul.f32 %v15014_v19, %v15013_v9  ;;  %v15016_v26 = vld [vmem:[#allocation49_spill] sm:$0xff]  ;;  %v15017_v5 = vld [vmem:[#allocation98_spill] sm:$0xff]  ;;  %v15018_v28 = vld [vmem:[#allocation91_spill] sm:$0xff] }
 0x3d6   : > { %v11915_v14 = vsel %vm1016_vm10, %v3546_v41, 0.0  ;;  %v3696_v24 = vadd.f32 %v3652_v29, %v3470_v2  ;;  %v3917_v58 = vmul.f32 %v15014_v19, %v15015_v18  ;;  %v3987_v53 = vmul.f32 %v15017_v5, %v15016_v26  ;;  %v15019_v25 = vld [vmem:[#allocation99_spill] sm:$0xff]  ;;  %v15020_v60 = vld [vmem:[#allocation52_spill] sm:$0xff]  ;;  %v15021_v9 = vld [vmem:[#allocation54_spill] sm:$0xff] }
 0x3d7   : > { %v3697_v8 = vadd.f32 %v3653_v12, %v3471_v33  ;;  %v3948_v1 = vadd.f32 %v3916_v51, %v3877_v45  ;;  %v3988_v50 = vmul.f32 %v15017_v5, %v15018_v28  ;;  %v4058_v16 = vmul.f32 %v15020_v60, %v15019_v25  ;;  %v15030_v5 = vld [vmem:[#allocation88_spill] sm:$0xff] }
 0x3d8   : > { %v11926_v63 = vadd.f32 %v15021_v9, %v3696_v24  ;;  %v3949_v41 = vadd.f32 %v3917_v58, %v3878_v6  ;;  %v4059_v29 = vmul.f32 %v15020_v60, %v15023_v49  ;;  %v15024_v2 = vrot.slane %v14981_v11, 5  ;;  %v15029_v58 = vld [vmem:[#allocation96_spill] sm:$0xff] }
 0x3d9   : > { %v15025_v19 = vrot.slane %v14924_v52, 5  ;;  %v11937_v45 = vadd.f32 %v15021_v9, %v3697_v8  ;;  %v4019_v33 = vadd.f32 %v3987_v53, %v3948_v1  ;;  %v15028_v24 = vrot.slane %v14917_v37, 5  ;;  %v15031_v8 = vld [vmem:[#allocation102_spill] sm:$0xff] }
 0x3da   : > { %15022 = vst [vmem:[#allocation120_spill] sm:$0xff] %v11926_v63  ;;  %v4020_v49 = vadd.f32 %v3988_v50, %v3949_v41  ;;  %v4129_v25 = vmul.f32 %v15030_v5, %v11926_v63  ;;  %v11957_v50 = vld [vmem:[#allocation21 + $0x2] ss:$0 sm:$0xff] }
 0x3db   : > { %v4307_v12 = vsel %vm4292_vm7, %v15025_v19, %v15024_v2  ;;  %15026 = vst [vmem:[#allocation123_spill] sm:$0xff] %v11937_v45  ;;  %v15027_v51 = vmov %v15025_v19  ;;  %v4463_v19 = vmul.f32 %v15031_v8, %v11860_v10  ;;  %v4090_v53 = vadd.f32 %v4058_v16, %v4019_v33  ;;  %15032 = vst [vmem:[#allocation110_spill] sm:$0xff] %v11957_v50 }
 0x3dc   : > { %v4308_v6 = vsel %vm4292_vm7, %v15028_v24, %v15027_v51  ;;  %v4415_v60 = vmul.f32 %v15029_v58, %v4307_v12  ;;  %v4130_v1 = vmul.f32 %v15030_v5, %v11937_v45  ;;  %v4464_v51 = vmul.f32 %v15031_v8, %v11842_v57  ;;  %v11975_v45 = vld [vmem:[#allocation21 + $0x5] ss:$0 sm:$0xff] }
 0x3dd   : > { %v4365_v2 = vsel %vm1023_vm8, %v4308_v6, 0.0  ;;  %v4091_v12 = vadd.f32 %v4059_v29, %v4020_v49  ;;  %v4556_v41 = vmul.f32 %v11957_v50, %v11795_v13  ;;  %v4557_v24 = vmul.f32 %v11957_v50, %v11778_v31  ;;  %v11963_v6 = vld [vmem:[#allocation21 + $0x3] ss:$0 sm:$0xff]  ;;  %v11969_v29 = vld [vmem:[#allocation21 + $0x4] ss:$0 sm:$0xff]  ;;  %15035 = vst [vmem:[#allocation51_spill] sm:$0xff] %v11975_v45 }
 0x3de   : > { %v4414_v9 = vmul.f32 %v15029_v58, %v4365_v2  ;;  %15033 = vst [vmem:[#allocation119_spill] sm:$0xff] %v11963_v6  ;;  %v4649_v16 = vmul.f32 %v11963_v6, %v14924_v52  ;;  %v4161_v33 = vadd.f32 %v4129_v25, %v4090_v53  ;;  %v4508_v2 = vadd.f32 %v4464_v51, %v4415_v60 }
 0x3df   : > { %v4650_v58 = vmul.f32 %v11963_v6, %v14981_v11  ;;  %v4162_v49 = vadd.f32 %v4130_v1, %v4091_v12  ;;  %15034 = vst [vmem:[#allocation74_spill] sm:$0xff] %v11969_v29  ;;  %v4742_v8 = vmul.f32 %v11969_v29, %v11817_v32  ;;  %v4743_v50 = vmul.f32 %v11969_v29, %v11823_v0  ;;  %v11988_v12 = vld [vmem:[%s14514_s12] ss:$0 sm:$0xff] }
 0x3e0   : > { %v4507_v5 = vadd.f32 %v4463_v19, %v4414_v9  ;;  %v4835_v63 = vmul.f32 %v11975_v45, %v11899_v44  ;;  %v4200_v9 = vadd.f32 %v11719_v27, %v4161_v33  ;;  %v4601_v25 = vadd.f32 %v4557_v24, %v4508_v2  ;;  %15036 = vst [vmem:[#allocation53_spill] sm:$0xff] %v11988_v12 }
 0x3e1   : > { %v4836_v19 = vmul.f32 %v11975_v45, %v11915_v14  ;;  %v4201_v53 = vadd.f32 %v11719_v27, %v4162_v49  ;;  %v4924_v1 = vrot.slane %v14981_v11, 3  ;;  %v14135_v51 = vrot.slane %v14989_v20, 3 }
 0x3e2   : > { %v4600_v60 = vadd.f32 %v4556_v41, %v4507_v5  ;;  %v5284_v29 = vmul.f32 %v11988_v12, %v14972_v23  ;;  %v11993_v5 = vmul.f32 %v4200_v9, %v11886_v22  ;;  %v4694_v24 = vadd.f32 %v4650_v58, %v4601_v25  ;;  %v12011_v22 = vld [vmem:[%s14514_s12 + $0x1] ss:$0 sm:$0xff]  ;;  %v12017_v9 = vld [vmem:[#allocation21 + $0x6] ss:$0 sm:$0xff] }
 0x3e3   : > { %v5285_v33 = vmul.f32 %v11988_v12, %v10370_v59  ;;  %v11998_v2 = vmul.f32 %v4201_v53, %v11890_v43  ;;  %v4953_v49 = vsel %vm4939_vm9, %v4924_v1, %v14135_v51  ;;  %v15037_v27 = vrot.slane %v14924_v52, 3  ;;  %15038 = vst [vmem:[#allocation50_spill] sm:$0xff] %v12011_v22  ;;  %15039 = vst [vmem:[#allocation97_spill] sm:$0xff] %v12017_v9 }
 0x3e4   : > { %v4693_v41 = vadd.f32 %v4649_v16, %v4600_v60  ;;  %v5323_v59 = vmul.f32 %v12011_v22, %v14843_v7  ;;  %v4787_v58 = vadd.f32 %v4743_v50, %v4694_v24  ;;  %v5013_v16 = vsel %vm1018_vm11, %v4953_v49, 0.0  ;;  %v12035_v49 = vld [vmem:[%s14514_s12 + $0x3] ss:$0 sm:$0xff] }
 0x3e5   : > { %v4954_v23 = vsel %vm4939_vm9, %v15037_v27, %v4924_v1  ;;  %v5062_v25 = vmul.f32 %v12017_v9, %v5013_v16  ;;  %v5324_v27 = vmul.f32 %v12011_v22, %v14845_v38  ;;  %v12026_v1 = vld [vmem:[%s14514_s12 + $0x2] ss:$0 sm:$0xff]  ;;  %15041 = vst [vmem:[#allocation105_spill] sm:$0xff] %v12035_v49  ;;  %v5466_v16 = vmul.f32 %v12035_v49, %v14977_v61  ;;  %v15044_v61 = vld [vmem:[#allocation80_spill] sm:$0xff] }
 0x3e6   : > { %v4786_v43 = vadd.f32 %v4742_v8, %v4693_v41  ;;  %v5061_v60 = vmul.f32 %v12017_v9, %v4954_v23  ;;  %v5355_v53 = vadd.f32 %v5323_v59, %v5284_v29  ;;  %15040 = vst [vmem:[#allocation103_spill] sm:$0xff] %v12026_v1  ;;  %v5394_v8 = vmul.f32 %v12026_v1, %v14846_v35 }
 0x3e7   : > { %v4880_v41 = vadd.f32 %v4836_v19, %v4787_v58  ;;  %v5395_v24 = vmul.f32 %v12026_v1, %v14912_v39  ;;  %v5465_v29 = vmul.f32 %v12035_v49, %v11235_v62  ;;  %v5356_v23 = vadd.f32 %v5324_v27, %v5285_v33  ;;  %v12053_v33 = vld [vmem:[%s14514_s12 + $0x5] ss:$0 sm:$0xff] }
 0x3e8   : > { %v4879_v50 = vadd.f32 %v4835_v63, %v4786_v43  ;;  %v5426_v59 = vadd.f32 %v5394_v8, %v5355_v53  ;;  %v12044_v63 = vld [vmem:[%s14514_s12 + $0x4] ss:$0 sm:$0xff]  ;;  %15043 = vst [vmem:[#allocation109_spill] sm:$0xff] %v12053_v33  ;;  %v5607_v27 = vmul.f32 %v12053_v33, %v11768_v48  ;;  %v5608_v49 = vmul.f32 %v12053_v33, %v11781_v4 }
 0x3e9   : > { %15042 = vst [vmem:[#allocation108_spill] sm:$0xff] %v12044_v63  ;;  %v5536_v19 = vmul.f32 %v12044_v63, %v11479_v47  ;;  %v5106_v58 = vadd.f32 %v5062_v25, %v4880_v41  ;;  %v5537_v51 = vmul.f32 %v12044_v63, %v11496_v21  ;;  %v5427_v53 = vadd.f32 %v5395_v24, %v5356_v23 }
 0x3ea   : > { %v5105_v43 = vadd.f32 %v5061_v60, %v4879_v50  ;;  %v5497_v8 = vadd.f32 %v5465_v29, %v5426_v59  ;;  %v15045_v47 = vrot.slane %v15044_v61, 7  ;;  %v15046_v60 = vrot.slane %v14989_v20, 7  ;;  %v12067_v50 = vld [vmem:[#allocation22] ss:$0 sm:$0xff]  ;;  %v12081_v59 = vld [vmem:[#allocation13] ss:$0 sm:$0xff] }
 0x3eb   : > { %15047 = vst [vmem:[#allocation63_spill] sm:$0xff] %v12067_v50  ;;  %v12073_v63 = vadd.f32 %v12067_v50, %v5106_v58  ;;  %v15051_v29 = vrot.slane %v14981_v11, 7  ;;  %15052 = vst [vmem:[#allocation111_spill] sm:$0xff] %v12081_v59  ;;  %v2331_v58 = vmul.f32 %v12081_v59, %v11487_v17 }
 0x3ec   : > { %v12065_v25 = vsel %vm1247_vm2, %v15046_v60, %v15045_v47  ;;  %v12070_v41 = vadd.f32 %v12067_v50, %v5105_v43  ;;  %v15050_v24 = vmov %v15046_v60  ;;  %v2330_v47 = vmul.f32 %v12081_v59, %v11500_v34  ;;  %v12094_v50 = vld [vmem:[%s14514_s12 + $0x6] ss:$0 sm:$0xff] }
 0x3ed   : > { %15049 = vst [vmem:[#allocation72_spill] sm:$0xff] %v12073_v63  ;;  %v2224_v23 = vsel %vm1247_vm2, %v15051_v29, %v15050_v24  ;;  %v5498_v60 = vadd.f32 %v5466_v16, %v5427_v53  ;;  %v5568_v33 = vadd.f32 %v5536_v19, %v5497_v8  ;;  %15053 = vst [vmem:[#allocation118_spill] sm:$0xff] %v12094_v50  ;;  %v12100_v16 = vld [vmem:[#allocation13 + $0x1] ss:$0 sm:$0xff]  ;;  %v15054_v29 = vld [vmem:[#allocation90_spill] sm:$0xff]  ;;  %v15056_v59 = vrot.slane %v15044_v61, 1 }
 0x3ee   : > { %15048 = vst [vmem:[#allocation114_spill] sm:$0xff] %v12070_v41  ;;  %v12087_v43 = vsel %vm1019_vm0, %v2224_v23, 0.0  ;;  %v5708_v24 = vmul.f32 %v12094_v50, %v12070_v41  ;;  %v5709_v34 = vmul.f32 %v12094_v50, %v12073_v63  ;;  %v2379_v19 = vmul.f32 %v12100_v16, %v14859_v56 }
 0x3ef   : > { %v2380_v53 = vmul.f32 %v12100_v16, %v14917_v37  ;;  %v5569_v17 = vadd.f32 %v5537_v51, %v5498_v60  ;;  %v5639_v8 = vadd.f32 %v5607_v27, %v5568_v33  ;;  %v15055_v23 = vrot.slane %v15054_v29, 1 }
 0x3f0   : > { %v15057_v4 = vmov %v15056_v59  ;;  %v15058_v50 = vrot.slane %v14989_v20, 1  ;;  %v2423_v56 = vadd.f32 %v2379_v19, %v2330_v47  ;;  %v2604_v33 = vmul.f32 %v11532_v55, %v11526_v46 }
 0x3f1   : > { %v2496_v41 = vsel %vm1424_vm3, %v15056_v59, %v15055_v23  ;;  %v2424_v48 = vadd.f32 %v2380_v53, %v2331_v58  ;;  %v5640_v27 = vadd.f32 %v5608_v49, %v5569_v17  ;;  %v5740_v60 = vadd.f32 %v5708_v24, %v5639_v8  ;;  %v12128_v23 = vld [vmem:[#allocation16] ss:$0 sm:$0xff]  ;;  %v15059_v58 = vld [vmem:[#allocation117_spill] sm:$0xff] }
 0x3f2   : > { %v12118_v63 = vsel %vm1424_vm3, %v15058_v50, %v15057_v4  ;;  %v12122_v51 = vsel %vm1014_vm1, %v2496_v41, 0.0  ;;  %v2605_v59 = vmul.f32 %v11532_v55, %v11530_v42  ;;  %v2832_v4 = vmul.f32 %v12128_v23, %v11567_v15  ;;  %v12141_v42 = vld [vmem:[%s14547_s3] ss:$0 sm:$0xff]  ;;  %v15063_v53 = vld [vmem:[#allocation121_spill] sm:$0xff] }
 0x3f3   : > { %v2648_v50 = vadd.f32 %v2604_v33, %v2423_v56  ;;  %v2833_v47 = vmul.f32 %v12128_v23, %v14995_v54  ;;  %v2871_v41 = vmul.f32 %v14994_v40, %v11852_v30  ;;  %v2872_v46 = vmul.f32 %v14994_v40, %v15059_v58  ;;  %15060 = vst [vmem:[#allocation113_spill] sm:$0xff] %v12141_v42 }
 0x3f4   : > { %v5741_v49 = vadd.f32 %v5709_v34, %v5640_v27  ;;  %v5779_v24 = vadd.f32 %v12141_v42, %v5740_v60  ;;  %v2649_v19 = vadd.f32 %v2605_v59, %v2424_v48  ;;  %v15061_v56 = vrot.slane %v15044_v61, 6 }
 0x3f5   : > { %v15062_v15 = vrot.slane %v14989_v20, 6  ;;  %v12153_v17 = vadd.f32 %v15063_v53, %v2648_v50  ;;  %v2903_v34 = vadd.f32 %v2871_v41, %v2832_v4  ;;  %v2904_v8 = vadd.f32 %v2872_v46, %v2833_v47  ;;  %v15067_v4 = vld [vmem:[#allocation87_spill] sm:$0xff]  ;;  %v12175_v41 = vld [vmem:[%s13641_s9] ss:$0 sm:$0xff] }
 0x3f6   : > { %v15066_v27 = vrot.slane %v14981_v11, 6  ;;  %v5780_v60 = vadd.f32 %v12141_v42, %v5741_v49  ;;  %v5811_v59 = vmul.f32 %v5779_v24, %v11993_v5  ;;  %v12164_v37 = vadd.f32 %v15063_v53, %v2649_v19  ;;  %15068 = vst [vmem:[#allocation107_spill] sm:$0xff] %v12175_v41  ;;  %v12184_v49 = vld [vmem:[%s13641_s9 + $0x1] ss:$0 sm:$0xff]  ;;  %v15072_v42 = vld [vmem:[#allocation69_spill] sm:$0xff] }
 0x3f7   : > { %v12150_v54 = vsel %vm3071_vm4, %v15062_v15, %v15061_v56  ;;  %15064 = vst [vmem:[#allocation116_spill] sm:$0xff] %v12153_v17  ;;  %v15065_v33 = vmov %v15062_v15  ;;  %v2942_v47 = vmul.f32 %v15067_v4, %v12153_v17  ;;  %v3193_v46 = vmul.f32 %v12175_v41, %v11860_v10  ;;  %15069 = vst [vmem:[#allocation124_spill] sm:$0xff] %v12184_v49  ;;  %v15070_v56 = vld [vmem:[#allocation55_spill] sm:$0xff] }
 0x3f8   : > { %v3085_v48 = vsel %vm3071_vm4, %v15066_v27, %v15065_v33  ;;  %v3194_v5 = vmul.f32 %v12175_v41, %v11842_v57  ;;  %v3242_v24 = vmul.f32 %v12184_v49, %v11795_v13  ;;  %v5812_v19 = vmul.f32 %v5780_v60, %v11998_v2  ;;  %v12202_v60 = vld [vmem:[%s13641_s9 + $0x3] ss:$0 sm:$0xff] }
 0x3f9   : > { %v12168_v50 = vsel %vm1021_vm6, %v3085_v48, 0.0  ;;  %v5843_v15 = vadd.f32 %v5811_v59, %v15070_v56  ;;  %v2943_v33 = vmul.f32 %v15067_v4, %v12164_v37  ;;  %v3243_v10 = vmul.f32 %v12184_v49, %v11778_v31  ;;  %v15071_v48 = vld [vmem:[#allocation65_spill] sm:$0xff]  ;;  %15073 = vst [vmem:[#allocation68_spill] sm:$0xff] %v12202_v60  ;;  %v15087_v49 = vld [vmem:[#allocation123_spill] sm:$0xff] }
 0x3fa   : > { %v2974_v27 = vadd.f32 %v2942_v47, %v2903_v34  ;;  %v3286_v57 = vadd.f32 %v3242_v24, %v3193_v46  ;;  %v3335_v41 = vmul.f32 %v15071_v48, %v14924_v52  ;;  %v3336_v53 = vmul.f32 %v15071_v48, %v14981_v11  ;;  %v15074_v34 = vld [vmem:[#allocation95_spill] sm:$0xff] }
 0x3fb   : > { %v5844_v40 = vadd.f32 %v5812_v19, %v15072_v42  ;;  %v2975_v17 = vadd.f32 %v2943_v33, %v2904_v8  ;;  %v3287_v2 = vadd.f32 %v3243_v10, %v3194_v5  ;;  %v3428_v59 = vmul.f32 %v12202_v60, %v11817_v32 }
 0x3fc   : > { %v12207_v47 = vadd.f32 %v15074_v34, %v2974_v27  ;;  %v3379_v46 = vadd.f32 %v3335_v41, %v3286_v57  ;;  %v3429_v24 = vmul.f32 %v12202_v60, %v11823_v0  ;;  %v3519_v56 = vrot.slane %v15044_v61, 2  ;;  %v12225_v41 = vld [vmem:[%s13641_s9 + $0x4] ss:$0 sm:$0xff]  ;;  %v15077_v57 = vld [vmem:[#allocation101_spill] sm:$0xff] }
 0x3fd   : > { %v5867_v42 = vpack.c.bf16 %v5844_v40, %v5843_v15  ;;  %v12213_v8 = vadd.f32 %v15074_v34, %v2975_v17  ;;  %v3380_v5 = vadd.f32 %v3336_v53, %v3287_v2  ;;  %v14169_v19 = vrot.slane %v15054_v29, 2  ;;  %15076 = vst [vmem:[#allocation81_spill] sm:$0xff] %v12225_v41  ;;  %v15078_v2 = vld [vmem:[#allocation75_spill] sm:$0xff] }
 0x3fe   : > { %v3472_v33 = vadd.f32 %v3428_v59, %v3379_v46  ;;  %v15075_v10 = vrot.slane %v14989_v20, 2  ;;  %v3654_v40 = vmul.f32 %v12225_v41, %v11899_v44  ;;  %v3655_v53 = vmul.f32 %v12225_v41, %v11915_v14  ;;  %v12246_v14 = vld [vmem:[%s13643_s11 + $0x1] ss:$0 sm:$0xff] }
 0x3ff   : > { %6891 = vmatprep.mubr.bf16.mxu1 %v5867_v42  ;;  %v3473_v17 = vadd.f32 %v3429_v24, %v3380_v5  ;;  %v3544_v15 = vsel %vm3532_vm5, %v3519_v56, %v14169_v19  ;;  %v3879_v59 = vmul.f32 %v15078_v2, %v15077_v57  ;;  %v3880_v46 = vmul.f32 %v15078_v2, %v15015_v18  ;;  %v15080_v5 = vld [vmem:[#allocation99_spill] sm:$0xff]  ;;  %v15081_v57 = vld [vmem:[#allocation98_spill] sm:$0xff]  ;;  %v15082_v2 = vld [vmem:[#allocation45_spill] sm:$0xff] }
 0x400   : > { %v12220_v27 = vsel %vm3532_vm5, %v15075_v10, %v3519_v56  ;;  %v12241_v10 = vsel %vm1016_vm10, %v3544_v15, 0.0  ;;  %v3698_v44 = vadd.f32 %v3654_v40, %v3472_v33  ;;  %15079 = vst [vmem:[#allocation83_spill] sm:$0xff] %v12246_v14  ;;  %v3918_v24 = vmul.f32 %v12246_v14, %v15016_v26  ;;  %v15083_v19 = vld [vmem:[#allocation120_spill] sm:$0xff]  ;;  %v15085_v41 = vld [vmem:[#allocation54_spill] sm:$0xff] }
 0x401   : > { %v3919_v56 = vmul.f32 %v12246_v14, %v15018_v28  ;;  %v3699_v42 = vadd.f32 %v3655_v53, %v3473_v17  ;;  %v3989_v18 = vmul.f32 %v15081_v57, %v15080_v5  ;;  %v3990_v15 = vmul.f32 %v15081_v57, %v15082_v2  ;;  %v15084_v33 = vld [vmem:[#allocation52_spill] sm:$0xff] }
 0x402   : > { %v4060_v40 = vmul.f32 %v15084_v33, %v15083_v19  ;;  %v12259_v60 = vadd.f32 %v15085_v41, %v3698_v44  ;;  %v3950_v34 = vadd.f32 %v3918_v24, %v3879_v59  ;;  %v4061_v26 = vmul.f32 %v15084_v33, %v15087_v49 }
 0x403   : > { %v3951_v48 = vadd.f32 %v3919_v56, %v3880_v46  ;;  %v12264_v14 = vadd.f32 %v15085_v41, %v3699_v42  ;;  %v15089_v53 = vrot.slane %v15044_v61, 5  ;;  %v15090_v17 = vrot.slane %v14989_v20, 5  ;;  %v15093_v46 = vld [vmem:[#allocation102_spill] sm:$0xff]  ;;  %v15094_v41 = vld [vmem:[#allocation88_spill] sm:$0xff] }
 0x404   : > { %15086 = vst [vmem:[#allocation85_spill] sm:$0xff] %v12259_v60  ;;  %v15092_v44 = vrot.slane %v14981_v11, 5  ;;  %v4465_v24 = vmul.f32 %v15093_v46, %v12168_v50  ;;  %v4021_v56 = vadd.f32 %v3989_v18, %v3950_v34  ;;  %v4131_v33 = vmul.f32 %v15094_v41, %v12259_v60 }
 0x405   : > { %15088 = vst [vmem:[#allocation86_spill] sm:$0xff] %v12264_v14  ;;  %v4305_v57 = vsel %vm4292_vm7, %v15090_v17, %v15089_v53  ;;  %v15091_v19 = vmov %v15090_v17  ;;  %v4022_v42 = vadd.f32 %v3990_v15, %v3951_v48  ;;  %v4132_v53 = vmul.f32 %v15094_v41, %v12264_v14  ;;  %v15095_v17 = vld [vmem:[#allocation96_spill] sm:$0xff]  ;;  %v15096_v48 = vld [vmem:[#allocation110_spill] sm:$0xff] }
 0x406   : > { %v4306_v59 = vsel %vm4292_vm7, %v15092_v44, %v15091_v19  ;;  %v4417_v5 = vmul.f32 %v15095_v17, %v4305_v57  ;;  %v4466_v19 = vmul.f32 %v15093_v46, %v12150_v54  ;;  %v4092_v44 = vadd.f32 %v4060_v40, %v4021_v56  ;;  %v15097_v46 = vld [vmem:[#allocation74_spill] sm:$0xff] }
 0x407   : > { %v4367_v49 = vsel %vm1023_vm8, %v4306_v59, 0.0  ;;  %v4093_v28 = vadd.f32 %v4061_v26, %v4022_v42  ;;  %v4558_v34 = vmul.f32 %v15096_v48, %v12087_v43  ;;  %v4559_v18 = vmul.f32 %v15096_v48, %v12065_v25 }
 0x408   : > { %v4416_v2 = vmul.f32 %v15095_v17, %v4367_v49  ;;  %v4510_v59 = vadd.f32 %v4466_v19, %v4417_v5  ;;  %v4651_v41 = vmul.f32 %v11963_v6, %v14989_v20  ;;  %v4652_v49 = vmul.f32 %v11963_v6, %v15044_v61 }
 0x409   : > { %v4163_v57 = vadd.f32 %v4131_v33, %v4092_v44  ;;  %v4164_v17 = vadd.f32 %v4132_v53, %v4093_v28  ;;  %v4744_v40 = vmul.f32 %v15097_v46, %v12118_v63  ;;  %v4745_v26 = vmul.f32 %v15097_v46, %v12122_v51 }
 0x40a   : > { %v4509_v15 = vadd.f32 %v4465_v24, %v4416_v2  ;;  %v4603_v42 = vadd.f32 %v4559_v18, %v4510_v59  ;;  %v4837_v2 = vmul.f32 %v11975_v45, %v12220_v27  ;;  %v4838_v5 = vmul.f32 %v11975_v45, %v12241_v10  ;;  %v15098_v24 = vld [vmem:[#allocation61_spill] sm:$0xff] }
 0x40b   : > { %v4202_v19 = vadd.f32 %v15098_v24, %v4163_v57  ;;  %v4203_v6 = vadd.f32 %v15098_v24, %v4164_v17  ;;  %v4926_v28 = vrot.slane %v15044_v61, 3  ;;  %v14190_v33 = vrot.slane %v15054_v29, 3 }
 0x40c   : > { %v4602_v56 = vadd.f32 %v4558_v34, %v4509_v15  ;;  %v4696_v44 = vadd.f32 %v4652_v49, %v4603_v42  ;;  %v5286_v34 = vmul.f32 %v11988_v12, %v14843_v7  ;;  %v5287_v18 = vmul.f32 %v11988_v12, %v14845_v38 }
 0x40d   : > { %v12315_v15 = vmul.f32 %v4202_v19, %v12207_v47  ;;  %v12318_v59 = vmul.f32 %v4203_v6, %v12213_v8  ;;  %v4951_v17 = vsel %vm4939_vm9, %v4926_v28, %v14190_v33  ;;  %v5325_v8 = vmul.f32 %v12011_v22, %v14846_v35  ;;  %v15103_v33 = vld [vmem:[#allocation106_spill] sm:$0xff]  ;;  %v15105_v35 = vld [vmem:[#allocation112_spill] sm:$0xff] }
 0x40e   : > { %v4695_v53 = vadd.f32 %v4651_v41, %v4602_v56  ;;  %v15099_v41 = vrot.slane %v14989_v20, 3  ;;  %v4789_v57 = vadd.f32 %v4745_v26, %v4696_v44  ;;  %v5015_v38 = vsel %vm1018_vm11, %v4951_v17, 0.0  ;;  %v15102_v44 = vld [vmem:[#allocation105_spill] sm:$0xff] }
 0x40f   : > { %v5064_v6 = vmul.f32 %v12017_v9, %v5015_v38  ;;  %v5326_v56 = vmul.f32 %v12011_v22, %v14912_v39  ;;  %v5396_v42 = vmul.f32 %v12026_v1, %v11235_v62  ;;  %v5468_v38 = vmul.f32 %v15102_v44, %v11496_v21  ;;  %v15108_v62 = vld [vmem:[#allocation72_spill] sm:$0xff] }
 0x410   : > { %v4952_v49 = vsel %vm4939_vm9, %v15099_v41, %v4926_v28  ;;  %v4788_v7 = vadd.f32 %v4744_v40, %v4695_v53  ;;  %v4882_v28 = vadd.f32 %v4838_v5, %v4789_v57  ;;  %v15100_v40 = vld [vmem:[#allocation115_spill] sm:$0xff]  ;;  %v15101_v53 = vld [vmem:[#allocation82_spill] sm:$0xff]  ;;  %v5357_v41 = vadd.f32 %v5325_v8, %v5286_v34 }
 0x411   : > { %v5063_v47 = vmul.f32 %v12017_v9, %v4952_v49  ;;  %v5397_v26 = vmul.f32 %v12026_v1, %v15100_v40  ;;  %v5467_v17 = vmul.f32 %v15102_v44, %v15101_v53  ;;  %v5358_v49 = vadd.f32 %v5326_v56, %v5287_v18  ;;  %v15104_v9 = vld [vmem:[#allocation108_spill] sm:$0xff]  ;;  %v15106_v5 = vld [vmem:[#allocation114_spill] sm:$0xff]  ;;  %v15109_v8 = vld [vmem:[#allocation63_spill] sm:$0xff] }
 0x412   : > { %v4881_v19 = vadd.f32 %v4837_v2, %v4788_v7  ;;  %v5538_v12 = vmul.f32 %v15104_v9, %v15103_v33  ;;  %v5108_v39 = vadd.f32 %v5064_v6, %v4882_v28  ;;  %v5539_v2 = vmul.f32 %v15104_v9, %v15105_v35  ;;  %v15107_v7 = vld [vmem:[#allocation109_spill] sm:$0xff] }
 0x413   : > { %v5609_v57 = vmul.f32 %v15107_v7, %v15106_v5  ;;  %v5428_v1 = vadd.f32 %v5396_v42, %v5357_v41  ;;  %v5429_v40 = vadd.f32 %v5397_v26, %v5358_v49  ;;  %v5610_v34 = vmul.f32 %v15107_v7, %v15108_v62 }
 0x414   : > { %v5107_v22 = vadd.f32 %v5063_v47, %v4881_v19  ;;  %v2199_v18 = vrot.slane %v15054_v29, 7  ;;  %v12357_v44 = vadd.f32 %v15109_v8, %v5108_v39  ;;  %v15111_v47 = vld [vmem:[#allocation92_spill] sm:$0xff]  ;;  %v15112_v19 = vld [vmem:[#allocation111_spill] sm:$0xff]  ;;  %v15113_v42 = vrot.slane %v15044_v61, 7 }
 0x415   : > { %v14207_v6 = vrot.slane %v15111_v47, 7  ;;  %v2332_v28 = vmul.f32 %v15112_v19, %v11795_v13  ;;  %v5499_v9 = vadd.f32 %v5467_v17, %v5428_v1  ;;  %v5500_v5 = vadd.f32 %v5468_v38, %v5429_v40 }
 0x416   : > { %v12354_v56 = vadd.f32 %v15109_v8, %v5107_v22  ;;  %v2222_v26 = vsel %vm1247_vm2, %v15113_v42, %v2199_v18  ;;  %v2333_v41 = vmul.f32 %v15112_v19, %v11778_v31  ;;  %v15114_v22 = vld [vmem:[#allocation118_spill] sm:$0xff]  ;;  %v2381_v31 = vmul.f32 %v12100_v16, %v14924_v52 }
 0x417   : > { %v5711_v39 = vmul.f32 %v15114_v22, %v12357_v44  ;;  %v12376_v13 = vsel %vm1247_vm2, %v2199_v18, %v14207_v6  ;;  %v12380_v1 = vsel %vm1019_vm0, %v2222_v26, 0.0  ;;  %v5570_v40 = vadd.f32 %v5538_v12, %v5499_v9 }
 0x418   : > { %15110 = vst [vmem:[#allocation70_spill] sm:$0xff] %v12354_v56  ;;  %v5710_v49 = vmul.f32 %v15114_v22, %v12354_v56  ;;  %v5571_v17 = vadd.f32 %v5539_v2, %v5500_v5  ;;  %v2382_v38 = vmul.f32 %v12100_v16, %v14981_v11  ;;  %v2474_v42 = vrot.slane %v15111_v47, 1  ;;  %v15115_v22 = vld [vmem:[#allocation89_spill] sm:$0xff] }
 0x419   : > { %v14211_v19 = vrot.slane %v15115_v22, 1  ;;  %v2606_v18 = vmul.f32 %v11532_v55, %v11817_v32  ;;  %v2607_v6 = vmul.f32 %v11532_v55, %v11823_v0  ;;  %v5641_v26 = vadd.f32 %v5609_v57, %v5570_v40  ;;  %v15117_v40 = vld [vmem:[#allocation116_spill] sm:$0xff] }
 0x41a   : > { %v5642_v8 = vadd.f32 %v5610_v34, %v5571_v17  ;;  %v2425_v12 = vadd.f32 %v2381_v31, %v2332_v28  ;;  %v2426_v9 = vadd.f32 %v2382_v38, %v2333_v41  ;;  %v15116_v5 = vrot.slane %v15054_v29, 1  ;;  %v15118_v17 = vld [vmem:[#allocation104_spill] sm:$0xff] }
 0x41b   : > { %v2494_v2 = vsel %vm1424_vm3, %v2474_v42, %v14211_v19  ;;  %v2834_v32 = vmul.f32 %v12128_v23, %v11852_v30  ;;  %v2835_v55 = vmul.f32 %v12128_v23, %v15059_v58  ;;  %v5742_v0 = vadd.f32 %v5710_v49, %v5641_v26  ;;  %v15119_v30 = vld [vmem:[#allocation113_spill] sm:$0xff] }
 0x41c   : > { %v12400_v11 = vsel %vm1424_vm3, %v15116_v5, %v2474_v42  ;;  %v5743_v57 = vadd.f32 %v5711_v39, %v5642_v8  ;;  %v12408_v34 = vsel %vm1014_vm1, %v2494_v2, 0.0  ;;  %v2650_v28 = vadd.f32 %v2606_v18, %v2425_v12  ;;  %v15120_v49 = vld [vmem:[#allocation121_spill] sm:$0xff] }
 0x41d   : > { %v2651_v41 = vadd.f32 %v2607_v6, %v2426_v9  ;;  %v2873_v31 = vmul.f32 %v15118_v17, %v15117_v40  ;;  %v2874_v38 = vmul.f32 %v15118_v17, %v12164_v37  ;;  %v3059_v42 = vrot.slane %v15054_v29, 6  ;;  %v15125_v17 = vld [vmem:[#allocation76_spill] sm:$0xff] }
 0x41e   : > { %v5781_v5 = vadd.f32 %v15119_v30, %v5742_v0  ;;  %v5782_v58 = vadd.f32 %v15119_v30, %v5743_v57  ;;  %v12418_v8 = vadd.f32 %v15120_v49, %v2650_v28  ;;  %v14210_v39 = vrot.slane %v15111_v47, 6 }
 0x41f   : > { %v12422_v18 = vadd.f32 %v15120_v49, %v2651_v41  ;;  %v2905_v6 = vadd.f32 %v2873_v31, %v2834_v32  ;;  %v2906_v26 = vadd.f32 %v2874_v38, %v2835_v55  ;;  %v15123_v12 = vrot.slane %v15044_v61, 6  ;;  %v15126_v38 = vld [vmem:[#allocation77_spill] sm:$0xff] }
 0x420   : > { %15121 = vst [vmem:[#allocation57_spill] sm:$0xff] %v12418_v8  ;;  %v5813_v2 = vmul.f32 %v5781_v5, %v12315_v15  ;;  %v5814_v0 = vmul.f32 %v5782_v58, %v12318_v59  ;;  %v2944_v57 = vmul.f32 %v15067_v4, %v12418_v8  ;;  %v12436_v28 = vsel %vm3071_vm4, %v3059_v42, %v14210_v39  ;;  %v15124_v15 = vld [vmem:[#allocation107_spill] sm:$0xff] }
 0x421   : > { %15122 = vst [vmem:[#allocation58_spill] sm:$0xff] %v12422_v18  ;;  %v3083_v9 = vsel %vm3071_vm4, %v15123_v12, %v3059_v42  ;;  %v2945_v32 = vmul.f32 %v15067_v4, %v12422_v18  ;;  %v3195_v41 = vmul.f32 %v15124_v15, %v12168_v50  ;;  %v3196_v59 = vmul.f32 %v15124_v15, %v12150_v54  ;;  %v15127_v42 = vld [vmem:[#allocation124_spill] sm:$0xff]  ;;  %v15129_v54 = vld [vmem:[#allocation95_spill] sm:$0xff]  ;;  %v15140_v15 = vld [vmem:[#allocation98_spill] sm:$0xff] }
 0x422   : > { %v12442_v55 = vsel %vm1021_vm6, %v3083_v9, 0.0  ;;  %v5845_v31 = vadd.f32 %v5813_v2, %v15125_v17  ;;  %v5846_v5 = vadd.f32 %v5814_v0, %v15126_v38  ;;  %v2976_v58 = vadd.f32 %v2944_v57, %v2905_v6  ;;  %v15128_v9 = vld [vmem:[#allocation65_spill] sm:$0xff]  ;;  %v15130_v6 = vld [vmem:[#allocation68_spill] sm:$0xff] }
 0x423   : > { %v3244_v49 = vmul.f32 %v15127_v42, %v12087_v43  ;;  %v2977_v12 = vadd.f32 %v2945_v32, %v2906_v26  ;;  %v3245_v4 = vmul.f32 %v15127_v42, %v12065_v25  ;;  %v3337_v39 = vmul.f32 %v15128_v9, %v14989_v20 }
 0x424   : > { %v3338_v50 = vmul.f32 %v15128_v9, %v15044_v61  ;;  %v5868_v19 = vpack.c.bf16 %v5846_v5, %v5845_v31  ;;  %v12459_v52 = vadd.f32 %v15129_v54, %v2976_v58  ;;  %v3430_v0 = vmul.f32 %v15130_v6, %v12118_v63  ;;  %v15131_v5 = vld [vmem:[#allocation81_spill] sm:$0xff]  ;;  %v15135_v9 = vld [vmem:[#allocation91_spill] sm:$0xff] }
 0x425   : > { %v3288_v2 = vadd.f32 %v3244_v49, %v3195_v41  ;;  %v12464_v57 = vadd.f32 %v15129_v54, %v2977_v12  ;;  %v3289_v26 = vadd.f32 %v3245_v4, %v3196_v59  ;;  %v3431_v32 = vmul.f32 %v15130_v6, %v12122_v51 }
 0x426   : > { %v3521_v17 = vrot.slane %v15111_v47, 2  ;;  %6892 = vmatmul.mubr.bf16.gmra.mxu1 %v5868_v19  ;;  %v14221_v31 = vrot.slane %v15115_v22, 2  ;;  %v3656_v58 = vmul.f32 %v15131_v5, %v12220_v27  ;;  %v3657_v41 = vmul.f32 %v15131_v5, %v12241_v10  ;;  %v12483_v19 = vld [vmem:[%s13643_s11] ss:$0 sm:$0xff] }
 0x427   : > { %v3381_v38 = vadd.f32 %v3337_v39, %v3288_v2  ;;  %v3382_v49 = vadd.f32 %v3338_v50, %v3289_v26  ;;  %v15132_v12 = vrot.slane %v15054_v29, 2  ;;  %15133 = vst [vmem:[#allocation66_spill] sm:$0xff] %v12483_v19  ;;  %v15134_v39 = vld [vmem:[#allocation49_spill] sm:$0xff]  ;;  %v3882_v27 = vmul.f32 %v12483_v19, %v15135_v9  ;;  %v15136_v50 = vld [vmem:[#allocation99_spill] sm:$0xff] }
 0x428   : > { %v3881_v4 = vmul.f32 %v12483_v19, %v15134_v39  ;;  %v3542_v10 = vsel %vm3532_vm5, %v3521_v17, %v14221_v31  ;;  %v15137_v2 = vld [vmem:[#allocation83_spill] sm:$0xff]  ;;  %v15139_v39 = vld [vmem:[#allocation120_spill] sm:$0xff] }
 0x429   : > { %v12478_v59 = vsel %vm3532_vm5, %v15132_v12, %v3521_v17  ;;  %v3474_v54 = vadd.f32 %v3430_v0, %v3381_v38  ;;  %v3920_v26 = vmul.f32 %v15137_v2, %v15136_v50  ;;  %v15138_v12 = vld [vmem:[#allocation45_spill] sm:$0xff]  ;;  %v3475_v6 = vadd.f32 %v3431_v32, %v3382_v49  ;;  %v15141_v0 = vld [vmem:[#allocation123_spill] sm:$0xff]  ;;  %v15142_v31 = vld [vmem:[#allocation52_spill] sm:$0xff] }
 0x42a   : > { %v3921_v5 = vmul.f32 %v15137_v2, %v15138_v12  ;;  %v12499_v42 = vsel %vm1016_vm10, %v3542_v10, 0.0  ;;  %v3991_v9 = vmul.f32 %v15140_v15, %v15139_v39  ;;  %v3992_v38 = vmul.f32 %v15140_v15, %v15141_v0  ;;  %v15143_v2 = vld [vmem:[#allocation54_spill] sm:$0xff] }
 0x42b   : > { %v3700_v19 = vadd.f32 %v3656_v58, %v3474_v54  ;;  %v3952_v18 = vadd.f32 %v3920_v26, %v3881_v4  ;;  %v4062_v50 = vmul.f32 %v15142_v31, %v12259_v60  ;;  %v3701_v8 = vadd.f32 %v3657_v41, %v3475_v6  ;;  %v15145_v15 = vld [vmem:[#allocation102_spill] sm:$0xff]  ;;  %v15149_v26 = vld [vmem:[#allocation96_spill] sm:$0xff] }
 0x42c   : > { %v3953_v17 = vadd.f32 %v3921_v5, %v3882_v27  ;;  %v4063_v32 = vmul.f32 %v15142_v31, %v12264_v14  ;;  %v4280_v49 = vrot.slane %v15054_v29, 5  ;;  %v14226_v10 = vrot.slane %v15111_v47, 5  ;;  %v15148_v27 = vld [vmem:[#allocation88_spill] sm:$0xff] }
 0x42d   : > { %v12512_v12 = vadd.f32 %v15143_v2, %v3700_v19  ;;  %v4023_v39 = vadd.f32 %v3991_v9, %v3952_v18  ;;  %v4467_v58 = vmul.f32 %v15145_v15, %v12442_v55  ;;  %v12517_v5 = vadd.f32 %v15143_v2, %v3701_v8 }
 0x42e   : > { %v4024_v30 = vadd.f32 %v3992_v38, %v3953_v17  ;;  %v4303_v6 = vsel %vm4292_vm7, %v4280_v49, %v14226_v10  ;;  %v15147_v31 = vrot.slane %v15044_v61, 5  ;;  %v4468_v18 = vmul.f32 %v15145_v15, %v12436_v28 }
 0x42f   : > { %15144 = vst [vmem:[#allocation71_spill] sm:$0xff] %v12512_v12  ;;  %15146 = vst [vmem:[#allocation73_spill] sm:$0xff] %v12517_v5  ;;  %v4094_v19 = vadd.f32 %v4062_v50, %v4023_v39  ;;  %v4133_v54 = vmul.f32 %v15148_v27, %v12512_v12  ;;  %v4134_v2 = vmul.f32 %v15148_v27, %v12517_v5  ;;  %v15150_v50 = vld [vmem:[#allocation119_spill] sm:$0xff]  ;;  %v15160_v5 = vld [vmem:[#allocation105_spill] sm:$0xff] }
 0x430   : > { %v4304_v41 = vsel %vm4292_vm7, %v15147_v31, %v4280_v49  ;;  %v4095_v4 = vadd.f32 %v4063_v32, %v4024_v30  ;;  %v4419_v38 = vmul.f32 %v15149_v26, %v4303_v6  ;;  %v4560_v17 = vmul.f32 %v15096_v48, %v12380_v1 }
 0x431   : > { %v4369_v8 = vsel %vm1023_vm8, %v4304_v41, 0.0  ;;  %v4165_v49 = vadd.f32 %v4133_v54, %v4094_v19  ;;  %v4561_v30 = vmul.f32 %v15096_v48, %v12376_v13  ;;  %v4653_v39 = vmul.f32 %v15150_v50, %v15054_v29 }
 0x432   : > { %v4418_v9 = vmul.f32 %v15149_v26, %v4369_v8  ;;  %v4654_v32 = vmul.f32 %v15150_v50, %v15111_v47  ;;  %v4166_v15 = vadd.f32 %v4134_v2, %v4095_v4  ;;  %v4512_v41 = vadd.f32 %v4468_v18, %v4419_v38  ;;  %v15152_v38 = vld [vmem:[#allocation53_spill] sm:$0xff] }
 0x433   : > { %v4746_v27 = vmul.f32 %v15097_v46, %v12400_v11  ;;  %v4204_v6 = vadd.f32 %v15098_v24, %v4165_v49  ;;  %v4747_v19 = vmul.f32 %v15097_v46, %v12408_v34  ;;  %v4839_v54 = vmul.f32 %v11975_v45, %v12478_v59  ;;  %v15153_v46 = vld [vmem:[#allocation125_spill] sm:$0xff] }
 0x434   : > { %v4511_v31 = vadd.f32 %v4467_v58, %v4418_v9  ;;  %v4840_v8 = vmul.f32 %v11975_v45, %v12499_v42  ;;  %v4205_v26 = vadd.f32 %v15098_v24, %v4166_v15  ;;  %v4605_v4 = vadd.f32 %v4561_v30, %v4512_v41  ;;  %v15151_v9 = vld [vmem:[#allocation122_spill] sm:$0xff]  ;;  %v15155_v15 = vld [vmem:[#allocation97_spill] sm:$0xff]  ;;  %v15156_v41 = vld [vmem:[#allocation56_spill] sm:$0xff] }
 0x435   : > { %v4928_v58 = vrot.slane %v15111_v47, 3  ;;  %v12557_v18 = vmul.f32 %v4204_v6, %v12459_v52  ;;  %v14233_v2 = vrot.slane %v15115_v22, 3  ;;  %v5288_v49 = vmul.f32 %v15152_v38, %v15151_v9  ;;  %v15157_v6 = vld [vmem:[#allocation50_spill] sm:$0xff]  ;;  %v15158_v9 = vld [vmem:[#allocation115_spill] sm:$0xff] }
 0x436   : > { %v4604_v10 = vadd.f32 %v4560_v17, %v4511_v31  ;;  %v5289_v50 = vmul.f32 %v15152_v38, %v15153_v46  ;;  %v12565_v48 = vmul.f32 %v4205_v26, %v12464_v57  ;;  %v4698_v24 = vadd.f32 %v4654_v32, %v4605_v4  ;;  %v15159_v26 = vld [vmem:[#allocation103_spill] sm:$0xff] }
 0x437   : > { %v15154_v17 = vrot.slane %v15054_v29, 3  ;;  %v4949_v52 = vsel %vm4939_vm9, %v4928_v58, %v14233_v2  ;;  %v5327_v46 = vmul.f32 %v15157_v6, %v15156_v41  ;;  %v5328_v57 = vmul.f32 %v15157_v6, %v15158_v9 }
 0x438   : > { %v4697_v45 = vadd.f32 %v4653_v39, %v4604_v10  ;;  %v4791_v39 = vadd.f32 %v4747_v19, %v4698_v24  ;;  %v5017_v32 = vsel %vm1018_vm11, %v4949_v52, 0.0  ;;  %v5398_v4 = vmul.f32 %v15159_v26, %v15101_v53  ;;  %v15161_v24 = vld [vmem:[#allocation114_spill] sm:$0xff]  ;;  %v15162_v52 = vld [vmem:[#allocation108_spill] sm:$0xff] }
 0x439   : > { %v4950_v30 = vsel %vm4939_vm9, %v15154_v17, %v4928_v58  ;;  %v5066_v17 = vmul.f32 %v15155_v15, %v5017_v32  ;;  %v5359_v38 = vadd.f32 %v5327_v46, %v5288_v49  ;;  %v5360_v58 = vadd.f32 %v5328_v57, %v5289_v50 }
 0x43a   : > { %v5065_v31 = vmul.f32 %v15155_v15, %v4950_v30  ;;  %v4790_v10 = vadd.f32 %v4746_v27, %v4697_v45  ;;  %v5399_v30 = vmul.f32 %v15159_v26, %v11496_v21  ;;  %v4884_v41 = vadd.f32 %v4840_v8, %v4791_v39 }
 0x43b   : > { %v5469_v6 = vmul.f32 %v15160_v5, %v15103_v33  ;;  %v5470_v45 = vmul.f32 %v15160_v5, %v15105_v35  ;;  %v5430_v27 = vadd.f32 %v5398_v4, %v5359_v38  ;;  %v5540_v53 = vmul.f32 %v15162_v52, %v15161_v24  ;;  %v15163_v38 = vld [vmem:[#allocation62_spill] sm:$0xff]  ;;  %v15164_v4 = vld [vmem:[#allocation63_spill] sm:$0xff] }
 0x43c   : > { %v4883_v2 = vadd.f32 %v4839_v54, %v4790_v10  ;;  %v5431_v19 = vadd.f32 %v5399_v30, %v5360_v58  ;;  %v5541_v49 = vmul.f32 %v15162_v52, %v15108_v62  ;;  %v5110_v46 = vadd.f32 %v5066_v17, %v4884_v41 }
 0x43d   : > { %v5611_v54 = vmul.f32 %v15107_v7, %v12354_v56  ;;  %v5612_v8 = vmul.f32 %v15107_v7, %v12357_v44  ;;  %v5501_v57 = vadd.f32 %v5469_v6, %v5430_v27  ;;  %v2201_v39 = vrot.slane %v15115_v22, 7 }
 0x43e   : > { %v5109_v50 = vadd.f32 %v5065_v31, %v4883_v2  ;;  %v5502_v10 = vadd.f32 %v5470_v45, %v5431_v19  ;;  %v14239_v32 = vrot.slane %v15163_v38, 7  ;;  %v12605_v30 = vadd.f32 %v15164_v4, %v5110_v46  ;;  %v15165_v2 = vld [vmem:[#allocation111_spill] sm:$0xff]  ;;  %v15167_v19 = vld [vmem:[#allocation118_spill] sm:$0xff] }
 0x43f   : > { %v2334_v31 = vmul.f32 %v15165_v2, %v12087_v43  ;;  %v2335_v41 = vmul.f32 %v15165_v2, %v12065_v25  ;;  %v5572_v17 = vadd.f32 %v5540_v53, %v5501_v57  ;;  %v15166_v45 = vrot.slane %v15111_v47, 7  ;;  %v12635_v2 = vld [vmem:[#allocation13 + $0x2] ss:$0 sm:$0xff] }
 0x440   : > { %v12602_v58 = vadd.f32 %v15164_v4, %v5109_v50  ;;  %v5573_v7 = vadd.f32 %v5541_v49, %v5502_v10  ;;  %v12615_v6 = vsel %vm1247_vm2, %v2201_v39, %v14239_v32  ;;  %v5713_v43 = vmul.f32 %v15167_v19, %v12605_v30 }
 0x441   : > { %v2220_v27 = vsel %vm1247_vm2, %v15166_v45, %v2201_v39  ;;  %v2383_v53 = vmul.f32 %v12100_v16, %v14989_v20  ;;  %v5643_v49 = vadd.f32 %v5611_v54, %v5572_v17  ;;  %v2384_v57 = vmul.f32 %v12100_v16, %v15044_v61  ;;  %v15168_v45 = vld [vmem:[#allocation94_spill] sm:$0xff] }
 0x442   : > { %v5712_v50 = vmul.f32 %v15167_v19, %v12602_v58  ;;  %v12627_v25 = vsel %vm1019_vm0, %v2220_v27, 0.0  ;;  %v5644_v46 = vadd.f32 %v5612_v8, %v5573_v7  ;;  %v2476_v10 = vrot.slane %v15163_v38, 1 }
 0x443   : > { %v2427_v39 = vadd.f32 %v2383_v53, %v2334_v31  ;;  %v14244_v32 = vrot.slane %v15168_v45, 1  ;;  %v2608_v19 = vmul.f32 %v12635_v2, %v12118_v63  ;;  %v2609_v27 = vmul.f32 %v12635_v2, %v12122_v51 }
 0x444   : > { %v5744_v4 = vadd.f32 %v5712_v50, %v5643_v49  ;;  %v5745_v20 = vadd.f32 %v5713_v43, %v5644_v46  ;;  %v2428_v54 = vadd.f32 %v2384_v57, %v2335_v41  ;;  %v15169_v7 = vrot.slane %v15115_v22, 1  ;;  %v15170_v50 = vld [vmem:[#allocation113_spill] sm:$0xff]  ;;  %v12661_v46 = vld [vmem:[#allocation15] ss:$0 sm:$0xff] }
 0x445   : > { %v2492_v31 = vsel %vm1424_vm3, %v2476_v10, %v14244_v32  ;;  %v2652_v17 = vadd.f32 %v2608_v19, %v2427_v39  ;;  %v2836_v63 = vmul.f32 %v12128_v23, %v15117_v40  ;;  %v2837_v51 = vmul.f32 %v12128_v23, %v12164_v37  ;;  %15171 = vst [vmem:[#allocation100_spill] sm:$0xff] %v12661_v46  ;;  %v12666_v19 = vld [vmem:[#allocation16 + $0x1] ss:$0 sm:$0xff]  ;;  %v15174_v40 = vld [vmem:[#allocation57_spill] sm:$0xff]  ;;  %v15175_v37 = vld [vmem:[#allocation58_spill] sm:$0xff] }
 0x446   : > { %v12645_v8 = vsel %vm1424_vm3, %v15169_v7, %v2476_v10  ;;  %v5783_v41 = vadd.f32 %v15170_v50, %v5744_v4  ;;  %v5784_v43 = vadd.f32 %v15170_v50, %v5745_v20  ;;  %v12659_v53 = vsel %vm1014_vm1, %v2492_v31, 0.0  ;;  %15173 = vst [vmem:[#allocation117_spill] sm:$0xff] %v12666_v19  ;;  %v12679_v32 = vld [vmem:[#allocation16 + $0x2] ss:$0 sm:$0xff] }
 0x447   : > { %v2653_v49 = vadd.f32 %v2609_v27, %v2428_v54  ;;  %v12664_v57 = vadd.f32 %v12661_v46, %v2652_v17  ;;  %v2875_v10 = vmul.f32 %v12666_v19, %v15174_v40  ;;  %v2876_v4 = vmul.f32 %v12666_v19, %v15175_v37  ;;  %15177 = vst [vmem:[#allocation55_spill] sm:$0xff] %v12679_v32  ;;  %v15187_v37 = vld [vmem:[#allocation99_spill] sm:$0xff] }
 0x448   : > { %v3061_v20 = vrot.slane %v15115_v22, 6  ;;  %v5815_v39 = vmul.f32 %v5783_v41, %v12557_v18  ;;  %v5816_v7 = vmul.f32 %v5784_v43, %v12565_v48  ;;  %v14251_v54 = vrot.slane %v15163_v38, 6  ;;  %v15179_v18 = vld [vmem:[#allocation60_spill] sm:$0xff]  ;;  %v15180_v48 = vld [vmem:[#allocation59_spill] sm:$0xff] }
 0x449   : > { %15172 = vst [vmem:[#allocation64_spill] sm:$0xff] %v12664_v57  ;;  %v12676_v27 = vadd.f32 %v12661_v46, %v2653_v49  ;;  %v2907_v31 = vadd.f32 %v2875_v10, %v2836_v63  ;;  %v2908_v17 = vadd.f32 %v2876_v4, %v2837_v51  ;;  %v2946_v61 = vmul.f32 %v12679_v32, %v12664_v57  ;;  %v15186_v46 = vld [vmem:[#allocation81_spill] sm:$0xff] }
 0x44a   : > { %v15178_v19 = vrot.slane %v15111_v47, 6  ;;  %v5847_v41 = vadd.f32 %v5815_v39, %v15179_v18  ;;  %v5848_v43 = vadd.f32 %v5816_v7, %v15180_v48  ;;  %v12695_v63 = vsel %vm3071_vm4, %v3061_v20, %v14251_v54  ;;  %v15182_v48 = vld [vmem:[#allocation124_spill] sm:$0xff] }
 0x44b   : > { %15176 = vst [vmem:[#allocation87_spill] sm:$0xff] %v12676_v27  ;;  %v2947_v49 = vmul.f32 %v12679_v32, %v12676_v27  ;;  %v2978_v51 = vadd.f32 %v2946_v61, %v2907_v31  ;;  %v3246_v32 = vmul.f32 %v15182_v48, %v12380_v1  ;;  %v12709_v54 = vld [vmem:[#allocation18] ss:$0 sm:$0xff]  ;;  %v3658_v27 = vmul.f32 %v15186_v46, %v12478_v59 }
 0x44c   : > { %v3081_v50 = vsel %vm3071_vm4, %v15178_v19, %v3061_v20  ;;  %v15181_v19 = vld [vmem:[#allocation107_spill] sm:$0xff]  ;;  %v5869_v7 = vpack.c.bf16 %v5848_v43, %v5847_v41  ;;  %v3247_v20 = vmul.f32 %v15182_v48, %v12376_v13  ;;  %15183 = vst [vmem:[#allocation69_spill] sm:$0xff] %v12709_v54  ;;  %v15185_v31 = vld [vmem:[#allocation68_spill] sm:$0xff]  ;;  %v3523_v48 = vrot.slane %v15163_v38, 2 }
 0x44d   : > { %v12699_v10 = vsel %vm1021_vm6, %v3081_v50, 0.0  ;;  %v3197_v4 = vmul.f32 %v15181_v19, %v12442_v55  ;;  %v3198_v39 = vmul.f32 %v15181_v19, %v12436_v28  ;;  %v2979_v18 = vadd.f32 %v2947_v49, %v2908_v17  ;;  %v12717_v55 = vld [vmem:[%s13641_s9 + $0x2] ss:$0 sm:$0xff] }
 0x44e   : > { %v12712_v61 = vadd.f32 %v12709_v54, %v2978_v51  ;;  %15184 = vst [vmem:[#allocation101_spill] sm:$0xff] %v12717_v55  ;;  %v3339_v28 = vmul.f32 %v12717_v55, %v15054_v29  ;;  %v3340_v50 = vmul.f32 %v12717_v55, %v15111_v47  ;;  %v3432_v17 = vmul.f32 %v15185_v31, %v12400_v11 }
 0x44f   : > { %6895 = vmatprep.mubr.bf16.mxu1 %v5869_v7  ;;  %v12726_v41 = vadd.f32 %v12709_v54, %v2979_v18  ;;  %v3290_v43 = vadd.f32 %v3246_v32, %v3197_v4  ;;  %v3291_v49 = vadd.f32 %v3247_v20, %v3198_v39  ;;  %v3433_v51 = vmul.f32 %v15185_v31, %v12408_v34  ;;  %v15188_v18 = vld [vmem:[#allocation66_spill] sm:$0xff]  ;;  %v15189_v32 = vld [vmem:[#allocation45_spill] sm:$0xff] }
 0x450   : > { %v14264_v19 = vrot.slane %v15168_v45, 2  ;;  %v3659_v55 = vmul.f32 %v15186_v46, %v12499_v42  ;;  %v3883_v54 = vmul.f32 %v15188_v18, %v15187_v37  ;;  %v3884_v4 = vmul.f32 %v15188_v18, %v15189_v32  ;;  %v15191_v42 = vld [vmem:[#allocation120_spill] sm:$0xff] }
 0x451   : > { %v3383_v57 = vadd.f32 %v3339_v28, %v3290_v43  ;;  %v3384_v7 = vadd.f32 %v3340_v50, %v3291_v49  ;;  %v15190_v20 = vrot.slane %v15115_v22, 2  ;;  %v15192_v28 = vld [vmem:[#allocation83_spill] sm:$0xff]  ;;  %v12834_v46 = vld [vmem:[#allocation19] ss:$0 sm:$0xff] }
 0x452   : > { %v3540_v39 = vsel %vm3532_vm5, %v3523_v48, %v14264_v19  ;;  %v3922_v50 = vmul.f32 %v15192_v28, %v15191_v42  ;;  %v3923_v37 = vmul.f32 %v15192_v28, %v15141_v0  ;;  %v12761_v19 = vld [vmem:[%s13643_s11 + $0x2] ss:$0 sm:$0xff] }
 0x453   : > { %v12748_v59 = vsel %vm3532_vm5, %v15190_v20, %v3523_v48  ;;  %v3476_v43 = vadd.f32 %v3432_v17, %v3383_v57  ;;  %v3477_v49 = vadd.f32 %v3433_v51, %v3384_v7  ;;  %v12756_v32 = vsel %vm1016_vm10, %v3540_v39, 0.0  ;;  %15194 = vst [vmem:[#allocation61_spill] sm:$0xff] %v12761_v19  ;;  %v12770_v57 = vld [vmem:[%s13643_s11 + $0x3] ss:$0 sm:$0xff]  ;;  %v15196_v39 = vld [vmem:[#allocation73_spill] sm:$0xff] }
 0x454   : > { %15193 = vst [vmem:[#allocation75_spill] sm:$0xff] %v12756_v32  ;;  %v3993_v48 = vmul.f32 %v12761_v19, %v12259_v60  ;;  %v3954_v20 = vadd.f32 %v3922_v50, %v3883_v54  ;;  %v3955_v18 = vadd.f32 %v3923_v37, %v3884_v4  ;;  %v3994_v42 = vmul.f32 %v12761_v19, %v12264_v14  ;;  %v12778_v37 = vld [vmem:[#allocation21 + $0x1] ss:$0 sm:$0xff] }
 0x455   : > { %15195 = vst [vmem:[#allocation106_spill] sm:$0xff] %v12770_v57  ;;  %v4064_v17 = vmul.f32 %v12770_v57, %v12512_v12  ;;  %v3702_v51 = vadd.f32 %v3658_v27, %v3476_v43  ;;  %v3703_v7 = vadd.f32 %v3659_v55, %v3477_v49  ;;  %v4065_v28 = vmul.f32 %v12770_v57, %v15196_v39  ;;  %v12785_v12 = vld [vmem:[%s14488_s27] ss:$0 sm:$0xff] }
 0x456   : > { %v4282_v60 = vrot.slane %v15115_v22, 5  ;;  %v4025_v54 = vadd.f32 %v3993_v48, %v3954_v20  ;;  %v4026_v4 = vadd.f32 %v3994_v42, %v3955_v18  ;;  %v14273_v50 = vrot.slane %v15163_v38, 5  ;;  %15197 = vst [vmem:[#allocation112_spill] sm:$0xff] %v12778_v37  ;;  %15198 = vst [vmem:[#allocation72_spill] sm:$0xff] %v12785_v12 }
 0x457   : > { %v4469_v19 = vmul.f32 %v12778_v37, %v12699_v10  ;;  %v12788_v27 = vadd.f32 %v12785_v12, %v3702_v51  ;;  %v12791_v55 = vadd.f32 %v12785_v12, %v3703_v7  ;;  %v15201_v18 = vrot.slane %v15111_v47, 5  ;;  %v12808_v7 = vld [vmem:[%s13643_s11 + $0x4] ss:$0 sm:$0xff] }
 0x458   : > { %v4470_v43 = vmul.f32 %v12778_v37, %v12695_v63  ;;  %v4096_v49 = vadd.f32 %v4064_v17, %v4025_v54  ;;  %v4097_v48 = vadd.f32 %v4065_v28, %v4026_v4  ;;  %v4301_v20 = vsel %vm4292_vm7, %v4282_v60, %v14273_v50  ;;  %15202 = vst [vmem:[#allocation121_spill] sm:$0xff] %v12808_v7  ;;  %v12814_v28 = vld [vmem:[#allocation21] ss:$0 sm:$0xff]  ;;  %v15204_v4 = vld [vmem:[#allocation110_spill] sm:$0xff]  ;;  %v15205_v37 = vld [vmem:[#allocation119_spill] sm:$0xff] }
 0x459   : > { %15199 = vst [vmem:[#allocation116_spill] sm:$0xff] %v12788_v27  ;;  %15200 = vst [vmem:[#allocation104_spill] sm:$0xff] %v12791_v55  ;;  %v4302_v42 = vsel %vm4292_vm7, %v15201_v18, %v4282_v60  ;;  %v4135_v18 = vmul.f32 %v12808_v7, %v12788_v27  ;;  %v4136_v17 = vmul.f32 %v12808_v7, %v12791_v55 }
 0x45a   : > { %v4371_v51 = vsel %vm1023_vm8, %v4302_v42, 0.0  ;;  %15203 = vst [vmem:[#allocation76_spill] sm:$0xff] %v12814_v28  ;;  %v4421_v60 = vmul.f32 %v12814_v28, %v4301_v20  ;;  %v4562_v42 = vmul.f32 %v15204_v4, %v12627_v25  ;;  %v4563_v50 = vmul.f32 %v15204_v4, %v12615_v6 }
 0x45b   : > { %v4420_v54 = vmul.f32 %v12814_v28, %v4371_v51  ;;  %v4655_v12 = vmul.f32 %v15205_v37, %v15115_v22  ;;  %v4656_v57 = vmul.f32 %v15205_v37, %v15163_v38  ;;  %v4167_v27 = vadd.f32 %v4135_v18, %v4096_v49  ;;  %v15206_v51 = vld [vmem:[#allocation74_spill] sm:$0xff]  ;;  %v15207_v28 = vld [vmem:[#allocation51_spill] sm:$0xff] }
 0x45c   : > { %v4168_v7 = vadd.f32 %v4136_v17, %v4097_v48  ;;  %v4514_v39 = vadd.f32 %v4470_v43, %v4421_v60  ;;  %v4748_v14 = vmul.f32 %v15206_v51, %v12645_v8  ;;  %v4749_v20 = vmul.f32 %v15206_v51, %v12659_v53  ;;  %v15208_v17 = vld [vmem:[#allocation56_spill] sm:$0xff] }
 0x45d   : > { %v4513_v55 = vadd.f32 %v4469_v19, %v4420_v54  ;;  %v4841_v0 = vmul.f32 %v15207_v28, %v12748_v59  ;;  %v4842_v4 = vmul.f32 %v15207_v28, %v12756_v32  ;;  %v4206_v37 = vadd.f32 %v12834_v46, %v4167_v27  ;;  %v15209_v54 = vld [vmem:[#allocation53_spill] sm:$0xff] }
 0x45e   : > { %v4207_v49 = vadd.f32 %v12834_v46, %v4168_v7  ;;  %v4607_v43 = vadd.f32 %v4563_v50, %v4514_v39  ;;  %v4930_v48 = vrot.slane %v15163_v38, 3  ;;  %v14293_v18 = vrot.slane %v15168_v45, 3 }
 0x45f   : > { %v4606_v19 = vadd.f32 %v4562_v42, %v4513_v55  ;;  %v5290_v60 = vmul.f32 %v15209_v54, %v15208_v17  ;;  %v5291_v51 = vmul.f32 %v15209_v54, %v15158_v9  ;;  %v12845_v28 = vmul.f32 %v4206_v37, %v12712_v61  ;;  %v15211_v42 = vld [vmem:[#allocation82_spill] sm:$0xff] }
 0x460   : > { %v12848_v32 = vmul.f32 %v4207_v49, %v12726_v41  ;;  %v4700_v7 = vadd.f32 %v4656_v57, %v4607_v43  ;;  %v4947_v39 = vsel %vm4939_vm9, %v4930_v48, %v14293_v18  ;;  %v15210_v50 = vrot.slane %v15115_v22, 3  ;;  %v15212_v9 = vld [vmem:[#allocation50_spill] sm:$0xff] }
 0x461   : > { %v4699_v27 = vadd.f32 %v4655_v12, %v4606_v19  ;;  %v5329_v17 = vmul.f32 %v15212_v9, %v15211_v42  ;;  %v5330_v61 = vmul.f32 %v15212_v9, %v11496_v21  ;;  %v5019_v12 = vsel %vm1018_vm11, %v4947_v39, 0.0 }
 0x462   : > { %v4948_v55 = vsel %vm4939_vm9, %v15210_v50, %v4930_v48  ;;  %v4793_v37 = vadd.f32 %v4749_v20, %v4700_v7  ;;  %v5068_v49 = vmul.f32 %v15155_v15, %v5019_v12  ;;  %v5400_v48 = vmul.f32 %v15159_v26, %v15103_v33 }
 0x463   : > { %v4792_v41 = vadd.f32 %v4748_v14, %v4699_v27  ;;  %v5067_v57 = vmul.f32 %v15155_v15, %v4948_v55  ;;  %v5361_v19 = vadd.f32 %v5329_v17, %v5290_v60  ;;  %v5362_v43 = vadd.f32 %v5330_v61, %v5291_v51  ;;  %v15214_v17 = vld [vmem:[#allocation67_spill] sm:$0xff] }
 0x464   : > { %v4886_v50 = vadd.f32 %v4842_v4, %v4793_v37  ;;  %v5401_v18 = vmul.f32 %v15159_v26, %v15105_v35  ;;  %v5471_v14 = vmul.f32 %v15160_v5, %v15161_v24  ;;  %v5472_v27 = vmul.f32 %v15160_v5, %v15108_v62  ;;  %v15213_v4 = vld [vmem:[#allocation109_spill] sm:$0xff]  ;;  %v15215_v61 = vld [vmem:[#allocation63_spill] sm:$0xff] }
 0x465   : > { %v4885_v54 = vadd.f32 %v4841_v0, %v4792_v41  ;;  %v5432_v20 = vadd.f32 %v5400_v48, %v5361_v19  ;;  %v5542_v15 = vmul.f32 %v15162_v52, %v12354_v56  ;;  %v5543_v60 = vmul.f32 %v15162_v52, %v12357_v44 }
 0x466   : > { %v5112_v7 = vadd.f32 %v5068_v49, %v4886_v50  ;;  %v5433_v0 = vadd.f32 %v5401_v18, %v5362_v43  ;;  %v5613_v39 = vmul.f32 %v15213_v4, %v12602_v58  ;;  %v5614_v55 = vmul.f32 %v15213_v4, %v12605_v30  ;;  %v15216_v18 = vld [vmem:[#allocation111_spill] sm:$0xff]  ;;  %v15218_v50 = vld [vmem:[#allocation118_spill] sm:$0xff] }
 0x467   : > { %v5111_v51 = vadd.f32 %v5067_v57, %v4885_v54  ;;  %v5503_v26 = vadd.f32 %v5471_v14, %v5432_v20  ;;  %v2203_v9 = vrot.slane %v15168_v45, 7  ;;  %v2204_v5 = vrot.slane %v15214_v17, 7 }
 0x468   : > { %v12888_v37 = vadd.f32 %v15215_v61, %v5112_v7  ;;  %v5504_v52 = vadd.f32 %v5472_v27, %v5433_v0  ;;  %v2336_v12 = vmul.f32 %v15216_v18, %v12380_v1  ;;  %v15217_v19 = vrot.slane %v15163_v38, 7 }
 0x469   : > { %v12885_v41 = vadd.f32 %v15215_v61, %v5111_v51  ;;  %v5574_v57 = vadd.f32 %v5542_v15, %v5503_v26  ;;  %v12894_v49 = vsel %vm1247_vm2, %v2203_v9, %v2204_v5  ;;  %v2337_v48 = vmul.f32 %v15216_v18, %v12376_v13  ;;  %v15219_v5 = vld [vmem:[#allocation93_spill] sm:$0xff] }
 0x46a   : > { %v2218_v43 = vsel %vm1247_vm2, %v15217_v19, %v2203_v9  ;;  %v5575_v54 = vadd.f32 %v5543_v60, %v5504_v52  ;;  %v5715_v1 = vmul.f32 %v15218_v50, %v12888_v37  ;;  %v2385_v15 = vmul.f32 %v12100_v16, %v15054_v29 }
 0x46b   : > { %v5714_v14 = vmul.f32 %v15218_v50, %v12885_v41  ;;  %v12908_v20 = vsel %vm1019_vm0, %v2218_v43, 0.0  ;;  %v5645_v27 = vadd.f32 %v5613_v39, %v5574_v57  ;;  %v2386_v51 = vmul.f32 %v12100_v16, %v15111_v47  ;;  %v15240_v47 = vld [vmem:[#allocation66_spill] sm:$0xff] }
 0x46c   : > { %v2478_v13 = vrot.slane %v15214_v17, 1  ;;  %v5646_v60 = vadd.f32 %v5614_v55, %v5575_v54  ;;  %v2610_v7 = vmul.f32 %v12635_v2, %v12400_v11  ;;  %v2611_v0 = vmul.f32 %v12635_v2, %v12408_v34  ;;  %v15225_v54 = vld [vmem:[#allocation117_spill] sm:$0xff] }
 0x46d   : > { %v2838_v4 = vmul.f32 %v12128_v23, %v15174_v40  ;;  %v5746_v26 = vadd.f32 %v5714_v14, %v5645_v27  ;;  %v2429_v39 = vadd.f32 %v2385_v15, %v2336_v12  ;;  %v2430_v9 = vadd.f32 %v2386_v51, %v2337_v48  ;;  %v15222_v40 = vld [vmem:[#allocation58_spill] sm:$0xff]  ;;  %v15223_v12 = vld [vmem:[#allocation113_spill] sm:$0xff]  ;;  %v15224_v48 = vld [vmem:[#allocation64_spill] sm:$0xff] }
 0x46e   : > { %v15220_v61 = vrot.slane %v15219_v5, 1  ;;  %v5747_v52 = vadd.f32 %v5715_v1, %v5646_v60  ;;  %v15221_v55 = vrot.slane %v15168_v45, 1  ;;  %v2839_v18 = vmul.f32 %v12128_v23, %v15222_v40  ;;  %v15226_v1 = vld [vmem:[#allocation87_spill] sm:$0xff]  ;;  %v15227_v60 = vld [vmem:[#allocation100_spill] sm:$0xff] }
 0x46f   : > { %v5785_v57 = vadd.f32 %v15223_v12, %v5746_v26  ;;  %v2654_v19 = vadd.f32 %v2610_v7, %v2429_v39  ;;  %v2655_v43 = vadd.f32 %v2611_v0, %v2430_v9  ;;  %v2877_v50 = vmul.f32 %v15225_v54, %v15224_v48 }
 0x470   : > { %v2490_v16 = vsel %vm1424_vm3, %v2478_v13, %v15220_v61  ;;  %v12929_v11 = vsel %vm1424_vm3, %v15221_v55, %v2478_v13  ;;  %v5786_v14 = vadd.f32 %v15223_v12, %v5747_v52  ;;  %v2878_v27 = vmul.f32 %v15225_v54, %v15226_v1  ;;  %v15231_v55 = vld [vmem:[#allocation55_spill] sm:$0xff] }
 0x471   : > { %v12933_v34 = vsel %vm1014_vm1, %v2490_v16, 0.0  ;;  %v3063_v15 = vrot.slane %v15168_v45, 6  ;;  %v3064_v51 = vrot.slane %v15214_v17, 6  ;;  %v5817_v13 = vmul.f32 %v5785_v57, %v12845_v28  ;;  %v15230_v28 = vld [vmem:[#allocation79_spill] sm:$0xff] }
 0x472   : > { %v12947_v23 = vadd.f32 %v15227_v60, %v2654_v19  ;;  %v12950_v7 = vadd.f32 %v15227_v60, %v2655_v43  ;;  %v2909_v0 = vadd.f32 %v2877_v50, %v2838_v4  ;;  %v5818_v26 = vmul.f32 %v5786_v14, %v12848_v32  ;;  %v15233_v57 = vld [vmem:[#allocation107_spill] sm:$0xff]  ;;  %v15234_v50 = vld [vmem:[#allocation124_spill] sm:$0xff] }
 0x473   : > { %v2910_v39 = vadd.f32 %v2878_v27, %v2839_v18  ;;  %v12955_v9 = vsel %vm3071_vm4, %v3063_v15, %v3064_v51  ;;  %v15229_v61 = vrot.slane %v15163_v38, 6  ;;  %v5849_v52 = vadd.f32 %v5817_v13, %v15230_v28  ;;  %v15232_v18 = vld [vmem:[#allocation84_spill] sm:$0xff]  ;;  %v15235_v13 = vld [vmem:[#allocation101_spill] sm:$0xff] }
 0x474   : > { %15228 = vst [vmem:[#allocation77_spill] sm:$0xff] %v12950_v7  ;;  %v2948_v40 = vmul.f32 %v15231_v55, %v12947_v23  ;;  %v2949_v4 = vmul.f32 %v15231_v55, %v12950_v7  ;;  %v5850_v12 = vadd.f32 %v5818_v26, %v15232_v18  ;;  %v3199_v19 = vmul.f32 %v15233_v57, %v12699_v10  ;;  %v15250_v60 = vld [vmem:[#allocation116_spill] sm:$0xff] }
 0x475   : > { %v3079_v16 = vsel %vm3071_vm4, %v15229_v61, %v3063_v15  ;;  %v3200_v43 = vmul.f32 %v15233_v57, %v12695_v63  ;;  %v3248_v14 = vmul.f32 %v15234_v50, %v12627_v25  ;;  %v3249_v51 = vmul.f32 %v15234_v50, %v12615_v6  ;;  %v15236_v63 = vld [vmem:[#allocation69_spill] sm:$0xff] }
 0x476   : > { %v12968_v32 = vsel %vm1021_vm6, %v3079_v16, 0.0  ;;  %v2980_v27 = vadd.f32 %v2948_v40, %v2909_v0  ;;  %v2981_v15 = vadd.f32 %v2949_v4, %v2910_v39  ;;  %v3341_v61 = vmul.f32 %v15235_v13, %v15115_v22 }
 0x477   : > { %v5870_v16 = vpack.c.bf16 %v5850_v12, %v5849_v52  ;;  %v3292_v28 = vadd.f32 %v3248_v14, %v3199_v19  ;;  %v3342_v26 = vmul.f32 %v15235_v13, %v15163_v38  ;;  %v3434_v10 = vmul.f32 %v15185_v31, %v12645_v8  ;;  %v15237_v12 = vld [vmem:[#allocation81_spill] sm:$0xff]  ;;  %v15238_v19 = vld [vmem:[#allocation75_spill] sm:$0xff] }
 0x478   : > { %v12986_v18 = vadd.f32 %v15236_v63, %v2980_v27  ;;  %v12989_v0 = vadd.f32 %v15236_v63, %v2981_v15  ;;  %v3293_v39 = vadd.f32 %v3249_v51, %v3200_v43  ;;  %v3435_v40 = vmul.f32 %v15185_v31, %v12659_v53  ;;  %v15239_v27 = vld [vmem:[#allocation120_spill] sm:$0xff]  ;;  %v15241_v15 = vld [vmem:[#allocation123_spill] sm:$0xff]  ;;  %v15242_v51 = vld [vmem:[#allocation85_spill] sm:$0xff] }
 0x479   : > { %6896 = vmatmul.mubr.bf16.gmra.mxu1 %v5870_v16  ;;  %v3385_v4 = vadd.f32 %v3341_v61, %v3292_v28  ;;  %v3525_v52 = vrot.slane %v15214_v17, 2  ;;  %v3660_v57 = vmul.f32 %v15237_v12, %v12748_v59  ;;  %v3661_v50 = vmul.f32 %v15237_v12, %v15238_v19  ;;  %v15243_v63 = vld [vmem:[#allocation83_spill] sm:$0xff]  ;;  %v15249_v13 = vld [vmem:[#allocation73_spill] sm:$0xff] }
 0x47a   : > { %v3386_v14 = vadd.f32 %v3342_v26, %v3293_v39  ;;  %v3885_v29 = vmul.f32 %v15240_v47, %v15239_v27  ;;  %v3886_v43 = vmul.f32 %v15240_v47, %v15241_v15  ;;  %v3924_v31 = vmul.f32 %v15243_v63, %v15242_v51  ;;  %v15246_v39 = vld [vmem:[#allocation86_spill] sm:$0xff]  ;;  %v15248_v15 = vld [vmem:[#allocation61_spill] sm:$0xff] }
 0x47b   : > { %v3478_v16 = vadd.f32 %v3434_v10, %v3385_v4  ;;  %v15244_v61 = vrot.slane %v15219_v5, 2  ;;  %v15245_v59 = vrot.slane %v15168_v45, 2  ;;  %v3925_v12 = vmul.f32 %v15243_v63, %v15246_v39  ;;  %v15247_v4 = vld [vmem:[#allocation71_spill] sm:$0xff]  ;;  %v15252_v63 = vld [vmem:[#allocation104_spill] sm:$0xff] }
 0x47c   : > { %v3479_v19 = vadd.f32 %v3435_v40, %v3386_v14  ;;  %v3956_v10 = vadd.f32 %v3924_v31, %v3885_v29  ;;  %v3995_v47 = vmul.f32 %v15248_v15, %v15247_v4  ;;  %v3996_v55 = vmul.f32 %v15248_v15, %v15249_v13  ;;  %v7471_v13 = vld [vmem:[#allocation21 + $0x4] ss:$0 sm:$0xff] }
 0x47d   : > { %v3538_v28 = vsel %vm3532_vm5, %v3525_v52, %v15244_v61  ;;  %v13012_v26 = vsel %vm3532_vm5, %v15245_v59, %v3525_v52  ;;  %v3704_v51 = vadd.f32 %v3660_v57, %v3478_v16  ;;  %v3957_v61 = vadd.f32 %v3925_v12, %v3886_v43  ;;  %v15251_v52 = vld [vmem:[#allocation106_spill] sm:$0xff]  ;;  %v15255_v43 = vld [vmem:[#allocation112_spill] sm:$0xff] }
 0x47e   : > { %v13018_v27 = vsel %vm1016_vm10, %v3538_v28, 0.0  ;;  %v4066_v59 = vmul.f32 %v15251_v52, %v15250_v60  ;;  %v3705_v7 = vadd.f32 %v3661_v50, %v3479_v19  ;;  %v4027_v54 = vadd.f32 %v3995_v47, %v3956_v10  ;;  %v15253_v28 = vld [vmem:[#allocation72_spill] sm:$0xff] }
 0x47f   : > { %v4067_v40 = vmul.f32 %v15251_v52, %v15252_v63  ;;  %v4284_v14 = vrot.slane %v15168_v45, 5  ;;  %v13030_v29 = vadd.f32 %v15253_v28, %v3704_v51  ;;  %v4028_v31 = vadd.f32 %v3996_v55, %v3957_v61  ;;  %v15258_v55 = vld [vmem:[#allocation121_spill] sm:$0xff] }
 0x480   : > { %v4285_v57 = vrot.slane %v15214_v17, 5  ;;  %v4471_v16 = vmul.f32 %v15255_v43, %v12968_v32  ;;  %v13036_v12 = vadd.f32 %v15253_v28, %v3705_v7  ;;  %v4098_v15 = vadd.f32 %v4066_v59, %v4027_v54  ;;  %v15259_v59 = vld [vmem:[#allocation76_spill] sm:$0xff]  ;;  %v7469_v52 = vld [vmem:[#allocation21 + $0x2] ss:$0 sm:$0xff] }
 0x481   : > { %15254 = vst [vmem:[#allocation65_spill] sm:$0xff] %v13030_v29  ;;  %v15257_v47 = vrot.slane %v15163_v38, 5  ;;  %v4472_v19 = vmul.f32 %v15255_v43, %v12955_v9  ;;  %v4099_v51 = vadd.f32 %v4067_v40, %v4028_v31  ;;  %v4137_v10 = vmul.f32 %v15258_v55, %v13030_v29  ;;  %v7470_v29 = vld [vmem:[#allocation21 + $0x3] ss:$0 sm:$0xff] }
 0x482   : > { %15256 = vst [vmem:[#allocation95_spill] sm:$0xff] %v13036_v12  ;;  %v4299_v61 = vsel %vm4292_vm7, %v4284_v14, %v4285_v57  ;;  %v4138_v54 = vmul.f32 %v15258_v55, %v13036_v12  ;;  %v4564_v43 = vmul.f32 %v7469_v52, %v12908_v20  ;;  %v4565_v31 = vmul.f32 %v7469_v52, %v12894_v49 }
 0x483   : > { %v4300_v50 = vsel %vm4292_vm7, %v15257_v47, %v4284_v14  ;;  %v4423_v47 = vmul.f32 %v15259_v59, %v4299_v61  ;;  %v4169_v40 = vadd.f32 %v4137_v10, %v4098_v15  ;;  %v4657_v63 = vmul.f32 %v7470_v29, %v15168_v45 }
 0x484   : > { %v4373_v7 = vsel %vm1023_vm8, %v4300_v50, 0.0  ;;  %v4658_v14 = vmul.f32 %v7470_v29, %v15214_v17  ;;  %v4170_v57 = vadd.f32 %v4138_v54, %v4099_v51  ;;  %v4750_v55 = vmul.f32 %v7471_v13, %v12929_v11 }
 0x485   : > { %v4422_v28 = vmul.f32 %v15259_v59, %v4373_v7  ;;  %v4516_v60 = vadd.f32 %v4472_v19, %v4423_v47  ;;  %v4208_v7 = vadd.f32 %v12834_v46, %v4169_v40  ;;  %v4751_v61 = vmul.f32 %v7471_v13, %v12933_v34  ;;  %v7472_v59 = vld [vmem:[#allocation21 + $0x5] ss:$0 sm:$0xff] }
 0x486   : > { %v4843_v15 = vmul.f32 %v7472_v59, %v13012_v26  ;;  %v4844_v52 = vmul.f32 %v7472_v59, %v13018_v27  ;;  %v4209_v10 = vadd.f32 %v12834_v46, %v4170_v57  ;;  %v4932_v29 = vrot.slane %v15214_v17, 3 }
 0x487   : > { %v4515_v50 = vadd.f32 %v4471_v16, %v4422_v28  ;;  %v4609_v4 = vadd.f32 %v4565_v31, %v4516_v60  ;;  %v13066_v28 = vmul.f32 %v4208_v7, %v12986_v18  ;;  %v13071_v16 = vld [vmem:[%s14514_s12] ss:$0 sm:$0xff]  ;;  %v13080_v60 = vld [vmem:[%s14514_s12 + $0x1] ss:$0 sm:$0xff]  ;;  %v13102_v7 = vld [vmem:[%s14514_s12 + $0x2] ss:$0 sm:$0xff] }
 0x488   : > { %15260 = vst [vmem:[#allocation49_spill] sm:$0xff] %v13071_v16  ;;  %v5292_v13 = vmul.f32 %v13071_v16, %v15211_v42  ;;  %v5293_v19 = vmul.f32 %v13071_v16, %v11496_v21  ;;  %15261 = vst [vmem:[#allocation91_spill] sm:$0xff] %v13080_v60  ;;  %v5331_v18 = vmul.f32 %v13080_v60, %v15103_v33  ;;  %v15263_v21 = vrot.slane %v15168_v45, 3 }
 0x489   : > { %v4608_v12 = vadd.f32 %v4564_v43, %v4515_v50  ;;  %v13085_v51 = vmul.f32 %v4209_v10, %v12989_v0  ;;  %v4702_v47 = vadd.f32 %v4658_v14, %v4609_v4  ;;  %v15262_v43 = vrot.slane %v15219_v5, 3  ;;  %v7475_v4 = vld [vmem:[#allocation21 + $0x6] ss:$0 sm:$0xff] }
 0x48a   : > { %v4946_v40 = vsel %vm4939_vm9, %v15263_v21, %v4932_v29  ;;  %v5332_v57 = vmul.f32 %v13080_v60, %v15105_v35  ;;  %v5363_v0 = vadd.f32 %v5331_v18, %v5292_v13  ;;  %v5402_v59 = vmul.f32 %v13102_v7, %v15161_v24 }
 0x48b   : > { %v4701_v54 = vadd.f32 %v4657_v63, %v4608_v12  ;;  %v4945_v42 = vsel %vm4939_vm9, %v4932_v29, %v15262_v43  ;;  %v4795_v63 = vadd.f32 %v4751_v61, %v4702_v47  ;;  %v5069_v12 = vmul.f32 %v7475_v4, %v4946_v40 }
 0x48c   : > { %v5021_v31 = vsel %vm1018_vm11, %v4945_v42, 0.0  ;;  %v5364_v14 = vadd.f32 %v5332_v57, %v5293_v19  ;;  %v5403_v36 = vmul.f32 %v13102_v7, %v15108_v62  ;;  %v13120_v19 = vld [vmem:[%s14514_s12 + $0x4] ss:$0 sm:$0xff] }
 0x48d   : > { %v4794_v50 = vadd.f32 %v4750_v55, %v4701_v54  ;;  %v5070_v5 = vmul.f32 %v7475_v4, %v5021_v31  ;;  %v13111_v55 = vld [vmem:[%s14514_s12 + $0x3] ss:$0 sm:$0xff]  ;;  %v4888_v29 = vadd.f32 %v4844_v52, %v4795_v63  ;;  %v5544_v18 = vmul.f32 %v13120_v19, %v12602_v58  ;;  %v13135_v31 = vld [vmem:[#allocation13] ss:$0 sm:$0xff] }
 0x48e   : > { %v5473_v61 = vmul.f32 %v13111_v55, %v12354_v56  ;;  %v5474_v13 = vmul.f32 %v13111_v55, %v12357_v44  ;;  %v5434_v54 = vadd.f32 %v5402_v59, %v5363_v0  ;;  %v5435_v47 = vadd.f32 %v5403_v36, %v5364_v14  ;;  %v13141_v4 = vld [vmem:[#allocation13 + $0x1] ss:$0 sm:$0xff] }
 0x48f   : > { %v4887_v10 = vadd.f32 %v4843_v15, %v4794_v50  ;;  %v5545_v43 = vmul.f32 %v13120_v19, %v12605_v30  ;;  %v13129_v15 = vld [vmem:[%s14514_s12 + $0x5] ss:$0 sm:$0xff]  ;;  %v5114_v21 = vadd.f32 %v5070_v5, %v4888_v29  ;;  %v2338_v57 = vmul.f32 %v13135_v31, %v12627_v25 }
 0x490   : > { %v5615_v52 = vmul.f32 %v13129_v15, %v12885_v41  ;;  %v5616_v40 = vmul.f32 %v13129_v15, %v12888_v37  ;;  %v5505_v0 = vadd.f32 %v5473_v61, %v5434_v54  ;;  %v5506_v50 = vadd.f32 %v5474_v13, %v5435_v47  ;;  %v13158_v13 = vld [vmem:[%s14514_s12 + $0x6] ss:$0 sm:$0xff] }
 0x491   : > { %v5113_v42 = vadd.f32 %v5069_v12, %v4887_v10  ;;  %v2339_v63 = vmul.f32 %v13135_v31, %v12615_v6  ;;  %v2387_v14 = vmul.f32 %v13141_v4, %v15115_v22  ;;  %v7482_v12 = vld [vmem:[#allocation22] ss:$0 sm:$0xff]  ;;  %v2388_v36 = vmul.f32 %v13141_v4, %v15163_v38 }
 0x492   : > { %v13147_v59 = vadd.f32 %v7482_v12, %v5114_v21  ;;  %v2612_v25 = vmul.f32 %v12635_v2, %v12645_v8  ;;  %v5576_v61 = vadd.f32 %v5544_v18, %v5505_v0  ;;  %v5577_v10 = vadd.f32 %v5545_v43, %v5506_v50  ;;  %v13164_v21 = vld [vmem:[#allocation16] ss:$0 sm:$0xff]  ;;  %v15264_v50 = vld [vmem:[#allocation117_spill] sm:$0xff] }
 0x493   : > { %v13145_v5 = vadd.f32 %v7482_v12, %v5113_v42  ;;  %v2431_v29 = vadd.f32 %v2387_v14, %v2338_v57  ;;  %v2613_v6 = vmul.f32 %v12635_v2, %v12659_v53  ;;  %v2432_v42 = vadd.f32 %v2388_v36, %v2339_v63  ;;  %v15265_v12 = vld [vmem:[#allocation77_spill] sm:$0xff]  ;;  %v7485_v63 = vld [vmem:[%s13641_s9] ss:$0 sm:$0xff] }
 0x494   : > { %v5717_v47 = vmul.f32 %v13158_v13, %v13147_v59  ;;  %v2840_v8 = vmul.f32 %v13164_v21, %v15224_v48  ;;  %v5647_v18 = vadd.f32 %v5615_v52, %v5576_v61  ;;  %v5648_v43 = vadd.f32 %v5616_v40, %v5577_v10  ;;  %v15266_v40 = vld [vmem:[#allocation100_spill] sm:$0xff] }
 0x495   : > { %v5716_v54 = vmul.f32 %v13158_v13, %v13145_v5  ;;  %v2656_v53 = vadd.f32 %v2612_v25, %v2431_v29  ;;  %v2841_v57 = vmul.f32 %v13164_v21, %v15226_v1  ;;  %v2657_v0 = vadd.f32 %v2613_v6, %v2432_v42  ;;  %v7486_v6 = vld [vmem:[%s13641_s9 + $0x1] ss:$0 sm:$0xff] }
 0x496   : > { %v2879_v14 = vmul.f32 %v15264_v50, %v12947_v23  ;;  %v2880_v3 = vmul.f32 %v15264_v50, %v15265_v12  ;;  %v3201_v36 = vmul.f32 %v7485_v63, %v12968_v32  ;;  %v5749_v52 = vadd.f32 %v5717_v47, %v5648_v43  ;;  %v13192_v32 = vld [vmem:[%s14547_s3] ss:$0 sm:$0xff]  ;;  %v15269_v47 = vld [vmem:[#allocation55_spill] sm:$0xff] }
 0x497   : > { %v5748_v48 = vadd.f32 %v5716_v54, %v5647_v18  ;;  %v13179_v25 = vadd.f32 %v15266_v40, %v2656_v53  ;;  %v3202_v1 = vmul.f32 %v7485_v63, %v12955_v9  ;;  %v13183_v61 = vadd.f32 %v15266_v40, %v2657_v0  ;;  %15268 = vst [vmem:[#allocation52_spill] sm:$0xff] %v13192_v32  ;;  %v15270_v53 = vld [vmem:[#allocation101_spill] sm:$0xff]  ;;  %v15272_v40 = vld [vmem:[#allocation80_spill] sm:$0xff] }
 0x498   : > { %v2911_v10 = vadd.f32 %v2879_v14, %v2840_v8  ;;  %v2912_v29 = vadd.f32 %v2880_v3, %v2841_v57  ;;  %v3250_v42 = vmul.f32 %v7486_v6, %v12908_v20  ;;  %v5788_v9 = vadd.f32 %v13192_v32, %v5749_v52 }
 0x499   : > { %15267 = vst [vmem:[#allocation98_spill] sm:$0xff] %v13183_v61  ;;  %v5787_v54 = vadd.f32 %v13192_v32, %v5748_v48  ;;  %v2950_v18 = vmul.f32 %v15269_v47, %v13179_v25  ;;  %v3251_v3 = vmul.f32 %v7486_v6, %v12894_v49  ;;  %v2951_v8 = vmul.f32 %v15269_v47, %v13183_v61  ;;  %v7488_v6 = vld [vmem:[%s13641_s9 + $0x3] ss:$0 sm:$0xff]  ;;  %v15271_v47 = vld [vmem:[#allocation78_spill] sm:$0xff]  ;;  %v15273_v61 = vld [vmem:[#allocation69_spill] sm:$0xff] }
 0x49a   : > { %v3294_v43 = vadd.f32 %v3250_v42, %v3201_v36  ;;  %v3343_v57 = vmul.f32 %v15270_v53, %v15168_v45  ;;  %v3344_v0 = vmul.f32 %v15270_v53, %v15214_v17  ;;  %v5820_v63 = vmul.f32 %v5788_v9, %v13085_v51 }
 0x49b   : > { %v5819_v14 = vmul.f32 %v5787_v54, %v13066_v28  ;;  %v2982_v48 = vadd.f32 %v2950_v18, %v2911_v10  ;;  %v3295_v52 = vadd.f32 %v3251_v3, %v3202_v1  ;;  %v2983_v38 = vadd.f32 %v2951_v8, %v2912_v29  ;;  %v7489_v29 = vld [vmem:[%s13641_s9 + $0x4] ss:$0 sm:$0xff]  ;;  %v15274_v3 = vld [vmem:[#allocation85_spill] sm:$0xff] }
 0x49c   : > { %v3387_v22 = vadd.f32 %v3343_v57, %v3294_v43  ;;  %v3436_v36 = vmul.f32 %v7488_v6, %v12929_v11  ;;  %v3437_v42 = vmul.f32 %v7488_v6, %v12933_v34  ;;  %v5852_v53 = vadd.f32 %v5820_v63, %v15272_v40  ;;  %v15275_v40 = vld [vmem:[#allocation66_spill] sm:$0xff]  ;;  %v15281_v6 = vld [vmem:[#allocation65_spill] sm:$0xff] }
 0x49d   : > { %v5851_v32 = vadd.f32 %v5819_v14, %v15271_v47  ;;  %v13215_v28 = vadd.f32 %v15273_v61, %v2982_v48  ;;  %v3388_v51 = vadd.f32 %v3344_v0, %v3295_v52  ;;  %v13218_v1 = vadd.f32 %v15273_v61, %v2983_v38  ;;  %v15276_v38 = vld [vmem:[#allocation71_spill] sm:$0xff]  ;;  %v15279_v14 = vld [vmem:[#allocation61_spill] sm:$0xff]  ;;  %v15280_v52 = vld [vmem:[#allocation104_spill] sm:$0xff] }
 0x49e   : > { %v3480_v10 = vadd.f32 %v3436_v36, %v3387_v22  ;;  %v3662_v54 = vmul.f32 %v7489_v29, %v13012_v26  ;;  %v3663_v9 = vmul.f32 %v7489_v29, %v13018_v27  ;;  %v3887_v8 = vmul.f32 %v15275_v40, %v15274_v3  ;;  %v13232_v22 = vld [vmem:[%s13643_s11 + $0x1] ss:$0 sm:$0xff]  ;;  %v15277_v26 = vld [vmem:[#allocation73_spill] sm:$0xff]  ;;  %v15285_v29 = vld [vmem:[#allocation72_spill] sm:$0xff] }
 0x49f   : > { %v5871_v18 = vpack.c.bf16 %v5852_v53, %v5851_v32  ;;  %v3481_v47 = vadd.f32 %v3437_v42, %v3388_v51  ;;  %v3888_v43 = vmul.f32 %v15275_v40, %v15246_v39  ;;  %v3926_v0 = vmul.f32 %v13232_v22, %v15276_v38  ;;  %v15278_v32 = vld [vmem:[#allocation116_spill] sm:$0xff]  ;;  %v15282_v36 = vld [vmem:[#allocation106_spill] sm:$0xff]  ;;  %v15283_v53 = vld [vmem:[#allocation95_spill] sm:$0xff] }
 0x4a0   : > { %v3706_v57 = vadd.f32 %v3662_v54, %v3480_v10  ;;  %v3927_v27 = vmul.f32 %v13232_v22, %v15277_v26  ;;  %v3997_v63 = vmul.f32 %v15279_v14, %v15278_v32  ;;  %v3998_v39 = vmul.f32 %v15279_v14, %v15280_v52  ;;  %v13246_v10 = vpop.f32.mrf.mxu1 }
 0x4a1   : > { %6899 = vmatprep.mubr.bf16.mxu1 %v5871_v18  ;;  %v3707_v48 = vadd.f32 %v3663_v9, %v3481_v47  ;;  %v4068_v42 = vmul.f32 %v15282_v36, %v15281_v6  ;;  %v4069_v51 = vmul.f32 %v15282_v36, %v15283_v53  ;;  %15284 = vst [vmem:[#allocation54_spill] sm:$0xff] %v13246_v10 }
 0x4a2   : > { %v13249_v54 = vadd.f32 %v15285_v29, %v3706_v57  ;;  %v3958_v3 = vadd.f32 %v3926_v0, %v3887_v8  ;;  %v3959_v40 = vadd.f32 %v3927_v27, %v3888_v43  ;;  %v5294_v18 = vmul.f32 %v13071_v16, %v15103_v33  ;;  %v15286_v8 = vld [vmem:[#allocation121_spill] sm:$0xff] }
 0x4a3   : > { %v13254_v9 = vadd.f32 %v15285_v29, %v3707_v48  ;;  %v5295_v47 = vmul.f32 %v13071_v16, %v15105_v35  ;;  %v5333_v61 = vmul.f32 %v13080_v60, %v15161_v24  ;;  %v5334_v10 = vmul.f32 %v13080_v60, %v15108_v62  ;;  %v13270_v29 = vpop.f32.mrf.mxu1 }
 0x4a4   : > { %v4029_v36 = vadd.f32 %v3997_v63, %v3958_v3  ;;  %v4030_v57 = vadd.f32 %v3998_v39, %v3959_v40  ;;  %v4139_v43 = vmul.f32 %v15286_v8, %v13249_v54  ;;  %v5404_v33 = vmul.f32 %v13102_v7, %v12354_v56 }
 0x4a5   : > { %v4140_v0 = vmul.f32 %v15286_v8, %v13254_v9  ;;  %v5365_v27 = vadd.f32 %v5333_v61, %v5294_v18  ;;  %v5366_v48 = vadd.f32 %v5334_v10, %v5295_v47  ;;  %v5405_v35 = vmul.f32 %v13102_v7, %v12357_v44 }
 0x4a6   : > { %v4100_v16 = vadd.f32 %v4068_v42, %v4029_v36  ;;  %v4101_v60 = vadd.f32 %v4069_v51, %v4030_v57  ;;  %v5475_v63 = vmul.f32 %v13111_v55, %v12602_v58  ;;  %v5476_v39 = vmul.f32 %v13111_v55, %v12605_v30 }
 0x4a7   : > { %v5436_v3 = vadd.f32 %v5404_v33, %v5365_v27  ;;  %v5437_v40 = vadd.f32 %v5405_v35, %v5366_v48  ;;  %v5546_v56 = vmul.f32 %v13120_v19, %v12885_v41  ;;  %v5547_v61 = vmul.f32 %v13120_v19, %v12888_v37  ;;  %v13289_v27 = vpop.f32.mrf.mxu1 }
 0x4a8   : > { %v4171_v10 = vadd.f32 %v4139_v43, %v4100_v16  ;;  %v4172_v18 = vadd.f32 %v4140_v0, %v4101_v60  ;;  %v5617_v36 = vmul.f32 %v13129_v15, %v13145_v5  ;;  %v5618_v42 = vmul.f32 %v13129_v15, %v13147_v59 }
 0x4a9   : > { %v5507_v51 = vadd.f32 %v5475_v63, %v5436_v3  ;;  %v5508_v47 = vadd.f32 %v5476_v39, %v5437_v40  ;;  %v13285_v57 = vmul.f32 0.0, %v13158_v13  ;;  %v2340_v33 = vmul.f32 %v13135_v31, %v12908_v20 }
 0x4aa   : > { %v4210_v48 = vadd.f32 %v12834_v46, %v4171_v10  ;;  %v4211_v16 = vadd.f32 %v12834_v46, %v4172_v18  ;;  %v2341_v60 = vmul.f32 %v13135_v31, %v12894_v49  ;;  %v2389_v43 = vmul.f32 %v13141_v4, %v15168_v45 }
 0x4ab   : > { %v5578_v0 = vadd.f32 %v5546_v56, %v5507_v51  ;;  %v5579_v35 = vadd.f32 %v5547_v61, %v5508_v47  ;;  %v2390_v13 = vmul.f32 %v13141_v4, %v15214_v17  ;;  %v2614_v20 = vmul.f32 %v12635_v2, %v12929_v11  ;;  %v13307_v61 = vpop.f32.mrf.mxu1 }
 0x4ac   : > { %v4242_v63 = vmul.f32 %v4210_v48, %v13215_v28  ;;  %v4243_v39 = vmul.f32 %v4211_v16, %v13218_v1  ;;  %v2433_v3 = vadd.f32 %v2389_v43, %v2340_v33  ;;  %v2615_v40 = vmul.f32 %v12635_v2, %v12933_v34  ;;  %15287 = vst [vmem:[#allocation102_spill] sm:$0xff] %v13307_v61  ;;  %v15288_v1 = vld [vmem:[#allocation98_spill] sm:$0xff]  ;;  %v15290_v16 = vld [vmem:[#allocation52_spill] sm:$0xff] }
 0x4ad   : > { %v5649_v49 = vadd.f32 %v5617_v36, %v5578_v0  ;;  %v5650_v31 = vadd.f32 %v5618_v42, %v5579_v35  ;;  %v2434_v10 = vadd.f32 %v2390_v13, %v2341_v60  ;;  %v2842_v56 = vmul.f32 %v13164_v21, %v12947_v23  ;;  %v13320_v23 = vld [vmem:[%s13643_s11] ss:$0 sm:$0xff]  ;;  %v13332_v13 = vpop.f32.mrf.mxu1 }
 0x4ae   : > { %v2658_v4 = vadd.f32 %v2614_v20, %v2433_v3  ;;  %v2843_v11 = vmul.f32 %v13164_v21, %v15265_v12  ;;  %v2881_v28 = vmul.f32 %v15264_v50, %v13179_v25  ;;  %v2882_v18 = vmul.f32 %v15264_v50, %v15288_v1  ;;  %v15289_v12 = vld [vmem:[#allocation100_spill] sm:$0xff]  ;;  %15291 = vst [vmem:[#allocation88_spill] sm:$0xff] %v13332_v13  ;;  %v15292_v20 = vld [vmem:[#allocation55_spill] sm:$0xff] }
 0x4af   : > { %v5750_v2 = vadd.f32 %v13285_v57, %v5649_v49  ;;  %v5751_v34 = vadd.f32 %v13285_v57, %v5650_v31  ;;  %v2659_v36 = vadd.f32 %v2615_v40, %v2434_v10  ;;  %v3889_v42 = vmul.f32 %v13320_v23, %v15276_v38  ;;  %v13348_v61 = vpop.f32.mrf.mxu1 }
 0x4b0   : > { %v2709_v51 = vadd.f32 %v15289_v12, %v2658_v4  ;;  %v2913_v47 = vadd.f32 %v2881_v28, %v2842_v56  ;;  %v2914_v33 = vadd.f32 %v2882_v18, %v2843_v11  ;;  %v3890_v48 = vmul.f32 %v13320_v23, %v15277_v26  ;;  %v15293_v28 = vld [vmem:[#allocation106_spill] sm:$0xff] }
 0x4b1   : > { %v5789_v60 = vadd.f32 %v15290_v16, %v5750_v2  ;;  %v5790_v43 = vadd.f32 %v15290_v16, %v5751_v34  ;;  %v2710_v0 = vadd.f32 %v15289_v12, %v2659_v36  ;;  %v3928_v35 = vmul.f32 %v13232_v22, %v15278_v32  ;;  %v15294_v34 = vld [vmem:[#allocation90_spill] sm:$0xff]  ;;  %v15295_v12 = vld [vmem:[#allocation92_spill] sm:$0xff] }
 0x4b2   : > { %v2952_v38 = vmul.f32 %v15292_v20, %v2709_v51  ;;  %v3929_v3 = vmul.f32 %v13232_v22, %v15280_v52  ;;  %v3999_v40 = vmul.f32 %v15279_v14, %v15281_v6  ;;  %v4000_v26 = vmul.f32 %v15279_v14, %v15283_v53 }
 0x4b3   : > { %v5821_v49 = vmul.f32 %v5789_v60, %v4242_v63  ;;  %v5822_v31 = vmul.f32 %v5790_v43, %v4243_v39  ;;  %v2953_v10 = vmul.f32 %v15292_v20, %v2710_v0  ;;  %v3960_v56 = vadd.f32 %v3928_v35, %v3889_v42  ;;  %v15296_v63 = vld [vmem:[#allocation69_spill] sm:$0xff] }
 0x4b4   : > { %v2984_v4 = vadd.f32 %v2952_v38, %v2913_v47  ;;  %v3961_v11 = vadd.f32 %v3929_v3, %v3890_v48  ;;  %v4070_v18 = vmul.f32 %v15293_v28, %v13249_v54  ;;  %v4071_v2 = vmul.f32 %v15293_v28, %v13254_v9  ;;  %v15297_v47 = vld [vmem:[#allocation49_spill] sm:$0xff] }
 0x4b5   : > { %v5853_v36 = vadd.f32 %v5821_v49, %v15294_v34  ;;  %v5854_v17 = vadd.f32 %v5822_v31, %v15295_v12  ;;  %v2985_v45 = vadd.f32 %v2953_v10, %v2914_v33  ;;  %v4031_v13 = vadd.f32 %v3999_v40, %v3960_v56  ;;  %v15298_v40 = vld [vmem:[#allocation70_spill] sm:$0xff]  ;;  %v15299_v49 = vld [vmem:[#allocation91_spill] sm:$0xff] }
 0x4b6   : > { %v3023_v39 = vadd.f32 %v15296_v63, %v2984_v4  ;;  %v4032_v60 = vadd.f32 %v4000_v26, %v3961_v11  ;;  %v13352_v42 = vmul.f32 0.0, %v15286_v8  ;;  %v5296_v48 = vmul.f32 %v15297_v47, %v15161_v24 }
 0x4b7   : > { %v5872_v43 = vpack.c.bf16 %v5854_v17, %v5853_v36  ;;  %v3024_v35 = vadd.f32 %v15296_v63, %v2985_v45  ;;  %v4102_v38 = vadd.f32 %v4070_v18, %v4031_v13  ;;  %v5297_v3 = vmul.f32 %v15297_v47, %v15108_v62  ;;  %v13372_v13 = vpop.f32.mrf.mxu1 }
 0x4b8   : > { %v4103_v33 = vadd.f32 %v4071_v2, %v4032_v60  ;;  %v5335_v31 = vmul.f32 %v15299_v49, %v15298_v40  ;;  %v5336_v26 = vmul.f32 %v15299_v49, %v12357_v44  ;;  %v5406_v8 = vmul.f32 %v13102_v7, %v12602_v58  ;;  %15300 = vst [vmem:[#allocation96_spill] sm:$0xff] %v13372_v13 }
 0x4b9   : > { %6900 = vmatmul.mubr.bf16.gmra.mxu1 %v5872_v43  ;;  %v4173_v24 = vadd.f32 %v13352_v42, %v4102_v38  ;;  %v5407_v45 = vmul.f32 %v13102_v7, %v12605_v30  ;;  %v5477_v17 = vmul.f32 %v13111_v55, %v12885_v41  ;;  %v5478_v62 = vmul.f32 %v13111_v55, %v12888_v37 }
 0x4ba   : > { %v4174_v10 = vadd.f32 %v13352_v42, %v4103_v33  ;;  %v5367_v56 = vadd.f32 %v5335_v31, %v5296_v48  ;;  %v5368_v4 = vadd.f32 %v5336_v26, %v5297_v3  ;;  %v5548_v11 = vmul.f32 %v13120_v19, %v13145_v5  ;;  %v13391_v26 = vpop.f32.mrf.mxu1 }
 0x4bb   : > { %v4212_v18 = vadd.f32 %v12834_v46, %v4173_v24  ;;  %v5549_v2 = vmul.f32 %v13120_v19, %v13147_v59  ;;  %v13381_v34 = vmul.f32 0.0, %v13129_v15  ;;  %v2844_v36 = vmul.f32 %v13164_v21, %v13179_v25 }
 0x4bc   : > { %v4213_v12 = vadd.f32 %v12834_v46, %v4174_v10  ;;  %v5438_v60 = vadd.f32 %v5406_v8, %v5367_v56  ;;  %v5439_v43 = vadd.f32 %v5407_v45, %v5368_v4  ;;  %v2845_v48 = vmul.f32 %v13164_v21, %v15288_v1 }
 0x4bd   : > { %v4244_v38 = vmul.f32 %v4212_v18, %v3023_v39  ;;  %v2883_v3 = vmul.f32 %v15264_v50, %v2709_v51  ;;  %v2884_v33 = vmul.f32 %v15264_v50, %v2710_v0  ;;  %v2954_v31 = vmul.f32 0.0, %v15292_v20 }
 0x4be   : > { %v4245_v15 = vmul.f32 %v4213_v12, %v3024_v35  ;;  %v5509_v24 = vadd.f32 %v5477_v17, %v5438_v60  ;;  %v5510_v13 = vadd.f32 %v5478_v62, %v5439_v43  ;;  %v3891_v25 = vmul.f32 %v13320_v23, %v15278_v32  ;;  %v13405_v62 = vpop.f32.mrf.mxu1 }
 0x4bf   : > { %v2915_v8 = vadd.f32 %v2883_v3, %v2844_v36  ;;  %v2916_v45 = vadd.f32 %v2884_v33, %v2845_v48  ;;  %v3892_v21 = vmul.f32 %v13320_v23, %v15280_v52  ;;  %v3930_v1 = vmul.f32 %v13232_v22, %v15281_v6 }
 0x4c0   : > { %v5580_v51 = vadd.f32 %v5548_v11, %v5509_v24  ;;  %v5581_v50 = vadd.f32 %v5549_v2, %v5510_v13  ;;  %v3931_v0 = vmul.f32 %v13232_v22, %v15283_v53  ;;  %v4001_v20 = vmul.f32 %v15279_v14, %v13249_v54  ;;  %v13424_v2 = vpop.f32.mrf.mxu1 }
 0x4c1   : > { %v2986_v39 = vadd.f32 %v2954_v31, %v2915_v8  ;;  %v2987_v35 = vadd.f32 %v2954_v31, %v2916_v45  ;;  %v3962_v17 = vadd.f32 %v3930_v1, %v3891_v25  ;;  %v4002_v32 = vmul.f32 %v15279_v14, %v13254_v9  ;;  %v15316_v45 = vld [vmem:[#allocation67_spill] sm:$0xff] }
 0x4c2   : > { %v5651_v52 = vadd.f32 %v13381_v34, %v5580_v51  ;;  %v5652_v6 = vadd.f32 %v13381_v34, %v5581_v50  ;;  %v3963_v23 = vadd.f32 %v3931_v0, %v3892_v21  ;;  %v4072_v13 = vmul.f32 0.0, %v15293_v28  ;;  %v13443_v24 = vpop.f32.mrf.mxu1 }
 0x4c3   : > { %v3025_v22 = vadd.f32 %v15296_v63, %v2986_v39  ;;  %v3026_v53 = vadd.f32 %v15296_v63, %v2987_v35  ;;  %v4033_v54 = vadd.f32 %v4001_v20, %v3962_v17  ;;  %v5298_v10 = vmul.f32 %v15297_v47, %v15298_v40  ;;  %v15308_v39 = vld [vmem:[#allocation44_spill] sm:$0xff]  ;;  %v15309_v17 = vld [vmem:[#allocation54_spill] sm:$0xff] }
 0x4c4   : > { %v5752_v56 = vadd.f32 %v13285_v57, %v5651_v52  ;;  %v5753_v14 = vadd.f32 %v13285_v57, %v5652_v6  ;;  %v4034_v9 = vadd.f32 %v4002_v32, %v3963_v23  ;;  %v5299_v4 = vmul.f32 %v15297_v47, %v12357_v44 }
 0x4c5   : > { %v4104_v11 = vadd.f32 %v4072_v13, %v4033_v54  ;;  %v5337_v28 = vmul.f32 %v15299_v49, %v12602_v58  ;;  %v5338_v18 = vmul.f32 %v15299_v49, %v12605_v30  ;;  %v5408_v63 = vmul.f32 %v13102_v7, %v12885_v41 }
 0x4c6   : > { %v5791_v40 = vadd.f32 %v15290_v16, %v5752_v56  ;;  %v5792_v36 = vadd.f32 %v15290_v16, %v5753_v14  ;;  %v4105_v12 = vadd.f32 %v4072_v13, %v4034_v9  ;;  %v5409_v44 = vmul.f32 %v13102_v7, %v12888_v37  ;;  %v13441_v7 = vld [vmem:[%s15301_s28] ss:$0 sm:$0xff]  ;;  %v6015_v13 = vpop.f32.mrf.mxu1  ;;  %v15312_v14 = vld [vmem:[#allocation88_spill] sm:$0xff] }
 0x4c7   : > { %v4175_v47 = vadd.f32 %v13352_v42, %v4104_v11  ;;  %v5369_v60 = vadd.f32 %v5337_v28, %v5298_v10  ;;  %v5370_v58 = vadd.f32 %v5338_v18, %v5299_v4  ;;  %v5479_v30 = vmul.f32 %v13111_v55, %v13145_v5  ;;  %v15302_v5 = vld [vmem:[#allocation89_spill] sm:$0xff]  ;;  %v15311_v56 = vld [vmem:[#allocation102_spill] sm:$0xff] }
 0x4c8   : > { %v5823_v49 = vmul.f32 %v5791_v40, %v4244_v38  ;;  %v5824_v43 = vmul.f32 %v5792_v36, %v4245_v15  ;;  %v4176_v41 = vadd.f32 %v13352_v42, %v4105_v12  ;;  %v5480_v48 = vmul.f32 %v13111_v55, %v13147_v59  ;;  %v15303_v15 = vld [vmem:[#allocation62_spill] sm:$0xff]  ;;  %v15305_v59 = vld [vmem:[#allocation48_spill] sm:$0xff] }
 0x4c9   : > { %v4214_v3 = vadd.f32 %v12834_v46, %v4175_v47  ;;  %v5440_v33 = vadd.f32 %v5408_v63, %v5369_v60  ;;  %v5441_v31 = vadd.f32 %v5409_v44, %v5370_v58  ;;  %v5550_v37 = vmul.f32 0.0, %v13120_v19  ;;  %v15304_v55 = vld [vmem:[#allocation42_spill] sm:$0xff]  ;;  %v15313_v44 = vld [vmem:[#allocation47_spill] sm:$0xff]  ;;  %v6889_v58 = vpop.f32.mrf.mxu1 }
 0x4ca   : > { %v5855_v38 = vadd.f32 %v5823_v49, %v15302_v5  ;;  %v5856_v42 = vadd.f32 %v5824_v43, %v15303_v15  ;;  %v4215_v25 = vadd.f32 %v12834_v46, %v4176_v41  ;;  %v15306_v8 = vrot.slane %v15305_v59, 7  ;;  %v15315_v59 = vld [vmem:[#allocation94_spill] sm:$0xff] }
 0x4cb   : > { %v4246_v19 = vmul.f32 %v4214_v3, %v3025_v22  ;;  %v5511_v1 = vadd.f32 %v5479_v30, %v5440_v33  ;;  %v5512_v51 = vadd.f32 %v5480_v48, %v5441_v31  ;;  %v5989_v32 = vadd.f32 %v15309_v17, %v13441_v7  ;;  %v15310_v22 = vld [vmem:[#allocation46_spill] sm:$0xff] }
 0x4cc   : > { %v1251_v21 = vsel %vm1247_vm2, %v15306_v8, %v15304_v55  ;;  %v5873_v0 = vpack.c.bf16 %v5856_v42, %v5855_v38  ;;  %v4247_v20 = vmul.f32 %v4215_v25, %v3026_v53  ;;  %v5981_v6 = vadd.f32 %v13441_v7, %v13270_v29  ;;  %v15314_v38 = vld [vmem:[#allocation96_spill] sm:$0xff]  ;;  %v6028_v42 = vpop.f32.mrf.mxu1 }
 0x4cd   : > { %v1332_v50 = vsel %vm1019_vm0, %v1251_v21, 0.0  ;;  %v5582_v46 = vadd.f32 %v5550_v37, %v5511_v1  ;;  %v5583_v52 = vadd.f32 %v5550_v37, %v5512_v51  ;;  %v5992_v23 = vadd.f32 %v13289_v27, %v13441_v7 }
 0x4ce   : > { %v1553_v35 = vadd.f32 %v15308_v39, %v1332_v50  ;;  %6903 = vmatprep.mubr.bf16.mxu1 %v5873_v0  ;;  %v6109_v10 = vsub.f32 0.0, %v5989_v32  ;;  %v5984_v53 = vadd.f32 %v13441_v7, %v15311_v56  ;;  %v6005_v9 = vadd.f32 %v15312_v14, %v13441_v7  ;;  %v6890_v39 = vpop.f32.mrf.mxu1 }
 0x4cf   : > { %v5653_v4 = vadd.f32 %v13381_v34, %v5582_v46  ;;  %v5654_v11 = vadd.f32 %v13381_v34, %v5583_v52  ;;  %v6107_v28 = vsub.f32 0.0, %v5981_v6  ;;  %v6110_v29 = vsub.f32 0.0, %v5992_v23 }
 0x4d0   : > { %v1577_v54 = vpack.c.bf16 %v15310_v22, %v1553_v35  ;;  %v6141_v18 = vmin.f32 %v6109_v10, 80.0  ;;  %v6108_v27 = vsub.f32 0.0, %v5984_v53  ;;  %v6113_v63 = vsub.f32 0.0, %v6005_v9  ;;  %v6031_v14 = vpop.f32.mrf.mxu1 }
 0x4d1   : > { %v5997_v40 = vadd.f32 %v13441_v7, %v13348_v61  ;;  %v5754_v36 = vadd.f32 %v13285_v57, %v5653_v4  ;;  %v5755_v12 = vadd.f32 %v13285_v57, %v5654_v11  ;;  %v6139_v47 = vmin.f32 %v6107_v28, 80.0 }
 0x4d2   : > { %6855 = vmatprep.mubr.bf16.mxu0 %v1577_v54  ;;  %v6142_v60 = vmin.f32 %v6110_v29, 80.0  ;;  %v6175_v30 = vmul.f32 1.442695, %v6141_v18  ;;  %v6140_v34 = vmin.f32 %v6108_v27, 80.0  ;;  %v6145_v49 = vmin.f32 %v6113_v63, 80.0 }
 0x4d3   : > { %6856 = vmatmul.mubr.bf16.gmra.mxu0 %v15313_v44  ;;  %v6111_v43 = vsub.f32 0.0, %v5997_v40  ;;  %v5793_v41 = vadd.f32 %v15290_v16, %v5754_v36  ;;  %v5794_v48 = vadd.f32 %v15290_v16, %v5755_v12  ;;  %v6171_v3 = vmul.f32 1.442695, %v6139_v47 }
 0x4d4   : > { %v6177_v33 = vmul.f32 1.442695, %v6142_v60  ;;  %7239 = vpow2.f32 %v6175_v30  ;;  %v6173_v61 = vmul.f32 1.442695, %v6140_v34  ;;  %v6183_v31 = vmul.f32 1.442695, %v6145_v49 }
 0x4d5   : > { %v6143_v37 = vmin.f32 %v6111_v43, 80.0  ;;  %v5825_v57 = vmul.f32 %v5793_v41, %v4246_v19  ;;  %v5826_v5 = vmul.f32 %v5794_v48, %v4247_v20  ;;  %7241 = vpow2.f32 %v6171_v3 }
 0x4d6   : > { %v6008_v15 = vadd.f32 %v15314_v38, %v13441_v7  ;;  %7243 = vpow2.f32 %v6177_v33  ;;  %v6000_v55 = vadd.f32 %v13441_v7, %v13391_v26  ;;  %v6021_v16 = vadd.f32 %v13405_v62, %v13441_v7 }
 0x4d7   : > { %v6179_v25 = vmul.f32 1.442695, %v6143_v37  ;;  %v5857_v8 = vadd.f32 %v5825_v57, %v15315_v59  ;;  %v5858_v21 = vadd.f32 %v5826_v5, %v15316_v45  ;;  %7245 = vpow2.f32 %v6173_v61 }
 0x4d8   : > { %v6114_v19 = vsub.f32 0.0, %v6008_v15  ;;  %7247 = vpow2.f32 %v6183_v31  ;;  %v6112_v1 = vsub.f32 0.0, %v6000_v55  ;;  %v6117_v51 = vsub.f32 0.0, %v6021_v16 }
 0x4d9   : > { %v6013_v50 = vadd.f32 %v13441_v7, %v13424_v2  ;;  %v5874_v0 = vpack.c.bf16 %v5858_v21, %v5857_v8  ;;  %7249 = vpow2.f32 %v6179_v25  ;;  %v6024_v26 = vadd.f32 %v13443_v24, %v13441_v7 }
 0x4da   : > { %v6146_v20 = vmin.f32 %v6114_v19, 80.0  ;;  %v6144_v62 = vmin.f32 %v6112_v1, 80.0  ;;  %v6149_v35 = vmin.f32 %v6117_v51, 80.0  ;;  %v6016_v32 = vadd.f32 %v13441_v7, %v6015_v13  ;;  %v6301_v1 = vld [vmem:[%s8301_s23 + $0x10] sm:$0xff] }
 0x4db   : > { %v6115_v17 = vsub.f32 0.0, %v6013_v50  ;;  %6904 = vmatmul.mubr.bf16.gmra.mxu1 %v5874_v0  ;;  %v6118_v52 = vsub.f32 0.0, %v6024_v26  ;;  %v6037_v6 = vadd.f32 %v6889_v58, %v13441_v7  ;;  %v6029_v23 = vadd.f32 %v13441_v7, %v6028_v42 }
 0x4dc   : > { %v6185_v46 = vmul.f32 1.442695, %v6146_v20  ;;  %v6181_v2 = vmul.f32 1.442695, %v6144_v62  ;;  %v6191_v22 = vmul.f32 1.442695, %v6149_v35  ;;  %v6040_v13 = vadd.f32 %v6890_v39, %v13441_v7 }
 0x4dd   : > { %v6147_v54 = vmin.f32 %v6115_v17, 80.0  ;;  %v6116_v10 = vsub.f32 0.0, %v6016_v32  ;;  %v6150_v56 = vmin.f32 %v6118_v52, 80.0  ;;  %v6121_v24 = vsub.f32 0.0, %v6037_v6  ;;  %v6299_v20 = vld [vmem:[%s8301_s23] sm:$0xff]  ;;  %v6302_v17 = vld [vmem:[%s8301_s23 + $0x18] sm:$0xff] }
 0x4de   : > { %7251 = vpow2.f32 %v6185_v46  ;;  %v6119_v53 = vsub.f32 0.0, %v6029_v23  ;;  %v6122_v18 = vsub.f32 0.0, %v6040_v13  ;;  %v6032_v27 = vadd.f32 %v13441_v7, %v6031_v14  ;;  %v6300_v23 = vld [vmem:[%s8301_s23 + $0x8] sm:$0xff] }
 0x4df   : > { %7253 = vpow2.f32 %v6181_v2  ;;  %v6187_v9 = vmul.f32 1.442695, %v6147_v54  ;;  %v6148_v4 = vmin.f32 %v6116_v10, 80.0  ;;  %v6193_v11 = vmul.f32 1.442695, %v6150_v56  ;;  %v6305_v56 = vld [vmem:[%s8301_s23 + $0x30] sm:$0xff] }
 0x4e0   : > { %7255 = vpow2.f32 %v6191_v22  ;;  %v6153_v28 = vmin.f32 %v6121_v24, 80.0  ;;  %v6151_v44 = vmin.f32 %v6119_v53, 80.0  ;;  %v6120_v47 = vsub.f32 0.0, %v6032_v27 }
 0x4e1   : > { %7257 = vpow2.f32 %v6187_v9  ;;  %v6189_v29 = vmul.f32 1.442695, %v6148_v4  ;;  %v7240_v63 = vpop.eup %7239  ;;  %v6154_v30 = vmin.f32 %v6122_v18, 80.0  ;;  %v6303_v4 = vld [vmem:[%s8301_s23 + $0x20] sm:$0xff] }
 0x4e2   : > { %7259 = vpow2.f32 %v6193_v11  ;;  %v6199_v40 = vmul.f32 1.442695, %v6153_v28  ;;  %v7242_v36 = vpop.eup %7241  ;;  %v6237_v12 = vadd.f32 1.0, %v7240_v63  ;;  %v6152_v43 = vmin.f32 %v6120_v47, 80.0 }
 0x4e3   : > { %7261 = vpow2.f32 %v6189_v29  ;;  %v7244_v60 = vpop.eup %7243  ;;  %v6235_v58 = vadd.f32 1.0, %v7242_v36  ;;  %v6195_v61 = vmul.f32 1.442695, %v6151_v44  ;;  %v6201_v37 = vmul.f32 1.442695, %v6154_v30  ;;  %v6306_v30 = vld [vmem:[%s8301_s23 + $0x38] sm:$0xff] }
 0x4e4   : > { %7263 = vpow2.f32 %v6199_v40  ;;  %v7246_v34 = vpop.eup %7245  ;;  %v6238_v49 = vadd.f32 1.0, %v7244_v60  ;;  %v6197_v57 = vmul.f32 1.442695, %v6152_v43 }
 0x4e5   : > { %7265 = vrcp.f32 %v6237_v12  ;;  %v7248_v41 = vpop.eup %7247  ;;  %v6236_v48 = vadd.f32 1.0, %v7246_v34 }
 0x4e6   : > { %7267 = vrcp.f32 %v6235_v58  ;;  %v7250_v3 = vpop.eup %7249  ;;  %v6241_v33 = vadd.f32 1.0, %v7248_v41  ;;  %v6893_v59 = vpop.f32.mrf.mxu1  ;;  %v6304_v41 = vld [vmem:[%s8301_s23 + $0x28] sm:$0xff] }
 0x4e7   : > { %7269 = vrcp.f32 %v6238_v49  ;;  %v6239_v31 = vadd.f32 1.0, %v7250_v3  ;;  %v6053_v21 = vadd.f32 %v6893_v59, %v13441_v7  ;;  %v6308_v59 = vld [vmem:[%s8301_s23 + $0x48] sm:$0xff] }
 0x4e8   : > { %7271 = vrcp.f32 %v6236_v48  ;;  %v6044_v50 = vpop.f32.mrf.mxu1 }
 0x4e9   : > { %7273 = vrcp.f32 %v6241_v33  ;;  %v6125_v39 = vsub.f32 0.0, %v6053_v21  ;;  %v6045_v62 = vadd.f32 %v13441_v7, %v6044_v50  ;;  %v6313_v21 = vld [vmem:[%s8301_s23 + $0x70] sm:$0xff] }
 0x4ea   : > { %7275 = vrcp.f32 %v6239_v31  ;;  %v6894_v46 = vpop.f32.mrf.mxu1 }
 0x4eb   : > { %v7252_v5 = vpop.eup %7251  ;;  %7277 = vpow2.f32 %v6195_v61  ;;  %v6157_v2 = vmin.f32 %v6125_v39, 80.0  ;;  %v6123_v22 = vsub.f32 0.0, %v6045_v62  ;;  %v6056_v24 = vadd.f32 %v6894_v46, %v13441_v7  ;;  %v6309_v61 = vld [vmem:[%s8301_s23 + $0x50] sm:$0xff]  ;;  %v6311_v62 = vld [vmem:[%s8301_s23 + $0x60] sm:$0xff]  ;;  %v6312_v46 = vld [vmem:[%s8301_s23 + $0x68] sm:$0xff] }
 0x4ec   : > { %v7254_v38 = vpop.eup %7253  ;;  %v6242_v15 = vadd.f32 1.0, %v7252_v5  ;;  %7279 = vpow2.f32 %v6201_v37  ;;  %v6047_v53 = vpop.f32.mrf.mxu1 }
 0x4ed   : > { %v7256_v42 = vpop.eup %7255  ;;  %v6240_v25 = vadd.f32 1.0, %v7254_v38  ;;  %7281 = vpow2.f32 %v6197_v57  ;;  %v6207_v13 = vmul.f32 1.442695, %v6157_v2  ;;  %v6155_v11 = vmin.f32 %v6123_v22, 80.0  ;;  %v6307_v38 = vld [vmem:[%s8301_s23 + $0x40] sm:$0xff] }
 0x4ee   : > { %v7258_v55 = vpop.eup %7257  ;;  %7283 = vrcp.f32 %v6242_v15  ;;  %v6245_v16 = vadd.f32 1.0, %v7256_v42  ;;  %v6048_v28 = vadd.f32 %v13441_v7, %v6047_v53  ;;  %v6126_v27 = vsub.f32 0.0, %v6056_v24  ;;  %v6317_v53 = vld [vmem:[%s8301_s23 + $0x90] sm:$0xff] }
 0x4ef   : > { %v7260_v8 = vpop.eup %7259  ;;  %7285 = vrcp.f32 %v6240_v25  ;;  %v6243_v45 = vadd.f32 1.0, %v7258_v55  ;;  %v6203_v36 = vmul.f32 1.442695, %v6155_v11  ;;  %v6310_v25 = vld [vmem:[%s8301_s23 + $0x58] sm:$0xff] }
 0x4f0   : > { %v7262_v19 = vpop.eup %7261  ;;  %7287 = vrcp.f32 %v6245_v16  ;;  %v6246_v51 = vadd.f32 1.0, %v7260_v8  ;;  %v6124_v12 = vsub.f32 0.0, %v6048_v28  ;;  %v6158_v60 = vmin.f32 %v6126_v27, 80.0  ;;  %v6318_v28 = vld [vmem:[%s8301_s23 + $0x98] sm:$0xff] }
 0x4f1   : > { %v7264_v0 = vpop.eup %7263  ;;  %7289 = vrcp.f32 %v6243_v45  ;;  %v6244_v26 = vadd.f32 1.0, %v7262_v19 }
 0x4f2   : > { %v7266_v35 = vpop.eup %7265  ;;  %7291 = vrcp.f32 %v6246_v51  ;;  %v6249_v32 = vadd.f32 1.0, %v7264_v0  ;;  %v6156_v49 = vmin.f32 %v6124_v12, 80.0  ;;  %v6209_v3 = vmul.f32 1.442695, %v6158_v60 }
 0x4f3   : > { %v7268_v52 = vpop.eup %7267  ;;  %v6333_v6 = vmul.f32 %v7266_v35, %v6301_v1  ;;  %7293 = vrcp.f32 %v6244_v26  ;;  %v6314_v35 = vld [vmem:[%s8301_s23 + $0x78] sm:$0xff] }
 0x4f4   : > { %v7270_v54 = vpop.eup %7269  ;;  %v6331_v10 = vmul.f32 %v7268_v52, %v6299_v20  ;;  %7295 = vrcp.f32 %v6249_v32  ;;  %v6205_v37 = vmul.f32 1.442695, %v6156_v49 }
 0x4f5   : > { %v7272_v14 = vpop.eup %7271  ;;  %6365 = vst [vmem:[%s13503_s0 + $0x10] sm:$0xff] %v6333_v6  ;;  %v6334_v9 = vmul.f32 %v7270_v54, %v6302_v17  ;;  %7297 = vpow2.f32 %v6207_v13 }
 0x4f6   : > { %v7274_v29 = vpop.eup %7273  ;;  %6363 = vst [vmem:[%s13503_s0] sm:$0xff] %v6331_v10  ;;  %v6332_v18 = vmul.f32 %v7272_v14, %v6300_v23  ;;  %7299 = vpow2.f32 %v6203_v36 }
 0x4f7   : > { %v7276_v63 = vpop.eup %7275  ;;  %6366 = vst [vmem:[%s13503_s0 + $0x18] sm:$0xff] %v6334_v9  ;;  %v6337_v40 = vmul.f32 %v7274_v29, %v6305_v56  ;;  %v6315_v9 = vld [vmem:[%s8301_s23 + $0x80] sm:$0xff]  ;;  %v6316_v29 = vld [vmem:[%s8301_s23 + $0x88] sm:$0xff] }
 0x4f8   : > { %v7278_v44 = vpop.eup %7277  ;;  %6364 = vst [vmem:[%s13503_s0 + $0x8] sm:$0xff] %v6332_v18  ;;  %v6335_v47 = vmul.f32 %v7276_v63, %v6303_v4 }
 0x4f9   : > { %v7280_v58 = vpop.eup %7279  ;;  %6369 = vst [vmem:[%s13503_s0 + $0x30] sm:$0xff] %v6337_v40  ;;  %v6247_v34 = vadd.f32 1.0, %v7278_v44 }
 0x4fa   : > { %v7282_v43 = vpop.eup %7281  ;;  %6367 = vst [vmem:[%s13503_s0 + $0x20] sm:$0xff] %v6335_v47  ;;  %v6250_v48 = vadd.f32 1.0, %v7280_v58 }
 0x4fb   : > { %v7284_v33 = vpop.eup %7283  ;;  %7301 = vrcp.f32 %v6247_v34  ;;  %v6248_v31 = vadd.f32 1.0, %v7282_v43 }
 0x4fc   : > { %v7286_v57 = vpop.eup %7285  ;;  %v6338_v5 = vmul.f32 %v7284_v33, %v6306_v30  ;;  %7303 = vrcp.f32 %v6250_v48 }
 0x4fd   : > { %v7288_v15 = vpop.eup %7287  ;;  %v6336_v42 = vmul.f32 %v7286_v57, %v6304_v41  ;;  %7305 = vrcp.f32 %v6248_v31 }
 0x4fe   : > { %v7290_v55 = vpop.eup %7289  ;;  %6370 = vst [vmem:[%s13503_s0 + $0x38] sm:$0xff] %v6338_v5  ;;  %v6341_v16 = vmul.f32 %v7288_v15, %v6309_v61  ;;  %7307 = vpow2.f32 %v6209_v3 }
 0x4ff   : > { %v7292_v8 = vpop.eup %7291  ;;  %6368 = vst [vmem:[%s13503_s0 + $0x28] sm:$0xff] %v6336_v42  ;;  %v6339_v45 = vmul.f32 %v7290_v55, %v6307_v38  ;;  %7309 = vpow2.f32 %v6205_v37 }
 0x500   : > { %v7294_v19 = vpop.eup %7293  ;;  %6373 = vst [vmem:[%s13503_s0 + $0x50] sm:$0xff] %v6341_v16  ;;  %v6342_v1 = vmul.f32 %v7292_v8, %v6310_v25 }
 0x501   : > { %v7296_v51 = vpop.eup %7295  ;;  %6371 = vst [vmem:[%s13503_s0 + $0x40] sm:$0xff] %v6339_v45  ;;  %v6340_v50 = vmul.f32 %v7294_v19, %v6308_v59 }
 0x502   : > { %6374 = vst [vmem:[%s13503_s0 + $0x58] sm:$0xff] %v6342_v1  ;;  %v6345_v0 = vmul.f32 %v7296_v51, %v6313_v21  ;;  %v7298_v20 = vpop.eup %7297  ;;  %v6321_v21 = vld [vmem:[%s8301_s23 + $0xb0] sm:$0xff]  ;;  %v6319_v1 = vld [vmem:[%s8301_s23 + $0xa0] sm:$0xff] }
 0x503   : > { %6372 = vst [vmem:[%s13503_s0 + $0x48] sm:$0xff] %v6340_v50  ;;  %v6253_v26 = vadd.f32 1.0, %v7298_v20  ;;  %v7300_v39 = vpop.eup %7299 }
 0x504   : > { %6377 = vst [vmem:[%s13503_s0 + $0x70] sm:$0xff] %v6345_v0  ;;  %v6251_v17 = vadd.f32 1.0, %v7300_v39  ;;  %v6322_v0 = vld [vmem:[%s8301_s23 + $0xb8] sm:$0xff]  ;;  %v6320_v39 = vld [vmem:[%s8301_s23 + $0xa8] sm:$0xff] }
 0x505   : > { %7311 = vrcp.f32 %v6253_v26 }
 0x506   : > { %7313 = vrcp.f32 %v6251_v17 }
 0x508   : > { %v7302_v32 = vpop.eup %7301 }
 0x509   : > { %v7304_v52 = vpop.eup %7303  ;;  %v6343_v6 = vmul.f32 %v7302_v32, %v6311_v62 }
 0x50a   : > { %v7306_v23 = vpop.eup %7305  ;;  %v6346_v2 = vmul.f32 %v7304_v52, %v6314_v35 }
 0x50b   : > { %v7308_v22 = vpop.eup %7307  ;;  %6375 = vst [vmem:[%s13503_s0 + $0x60] sm:$0xff] %v6343_v6  ;;  %v6344_v54 = vmul.f32 %v7306_v23, %v6312_v46 }
 0x50c   : > { %v7310_v10 = vpop.eup %7309  ;;  %6378 = vst [vmem:[%s13503_s0 + $0x78] sm:$0xff] %v6346_v2  ;;  %v6254_v56 = vadd.f32 1.0, %v7308_v22 }
 0x50d   : > { %6376 = vst [vmem:[%s13503_s0 + $0x68] sm:$0xff] %v6344_v54  ;;  %v6252_v24 = vadd.f32 1.0, %v7310_v10 }
 0x50e   : > { %7315 = vrcp.f32 %v6254_v56 }
 0x50f   : > { %7317 = vrcp.f32 %v6252_v24 }
 0x512   : > { %v7312_v14 = vpop.eup %7311 }
 0x513   : > { %v6349_v4 = vmul.f32 %v7312_v14, %v6317_v53  ;;  %v7314_v13 = vpop.eup %7313 }
 0x514   : > { %v6347_v11 = vmul.f32 %v7314_v13, %v6315_v9 }
 0x515   : > { %6381 = vst [vmem:[%s13503_s0 + $0x90] sm:$0xff] %v6349_v4 }
 0x516   : > { %6379 = vst [vmem:[%s13503_s0 + $0x80] sm:$0xff] %v6347_v11 }
 0x51b   : > { %v7316_v18 = vpop.eup %7315 }
 0x51c   : > { %v7318_v27 = vpop.eup %7317  ;;  %v6350_v63 = vmul.f32 %v7316_v18, %v6318_v28 }
 0x51d   : > { %v6348_v40 = vmul.f32 %v7318_v27, %v6316_v29 }
 0x51e   : > { %6382 = vst [vmem:[%s13503_s0 + $0x98] sm:$0xff] %v6350_v63 }
 0x51f   : > { %6380 = vst [vmem:[%s13503_s0 + $0x88] sm:$0xff] %v6348_v40 }
 0x539   : > { %v6897_v36 = vpop.f32.mrf.mxu1 }
 0x53a   : > { %v6069_v12 = vadd.f32 %v6897_v36, %v13441_v7 }
 0x53b   : > { %v6060_v44 = vpop.f32.mrf.mxu1 }
 0x53c   : > { %v6129_v47 = vsub.f32 0.0, %v6069_v12  ;;  %v6061_v60 = vadd.f32 %v13441_v7, %v6060_v44 }
 0x53d   : > { %v6898_v58 = vpop.f32.mrf.mxu1 }
 0x53e   : > { %v6161_v30 = vmin.f32 %v6129_v47, 80.0  ;;  %v6127_v34 = vsub.f32 0.0, %v6061_v60  ;;  %v6072_v49 = vadd.f32 %v6898_v58, %v13441_v7 }
 0x53f   : > { %v6063_v43 = vpop.f32.mrf.mxu1 }
 0x540   : > { %v6215_v41 = vmul.f32 1.442695, %v6161_v30  ;;  %v6159_v48 = vmin.f32 %v6127_v34, 80.0  ;;  %v6130_v3 = vsub.f32 0.0, %v6072_v49  ;;  %v6064_v33 = vadd.f32 %v13441_v7, %v6063_v43 }
 0x542   : > { %7319 = vpow2.f32 %v6215_v41  ;;  %v6211_v61 = vmul.f32 1.442695, %v6159_v48  ;;  %v6162_v31 = vmin.f32 %v6130_v3, 80.0  ;;  %v6128_v37 = vsub.f32 0.0, %v6064_v33  ;;  %v6325_v48 = vld [vmem:[%s8301_s23 + $0xd0] sm:$0xff] }
 0x544   : > { %7321 = vpow2.f32 %v6211_v61  ;;  %v6217_v57 = vmul.f32 1.442695, %v6162_v31  ;;  %v6160_v5 = vmin.f32 %v6128_v37, 80.0  ;;  %v6323_v37 = vld [vmem:[%s8301_s23 + $0xc0] sm:$0xff] }
 0x546   : > { %7323 = vpow2.f32 %v6217_v57  ;;  %v6213_v38 = vmul.f32 1.442695, %v6160_v5 }
 0x548   : > { %7325 = vpow2.f32 %v6213_v38 }
 0x54f   : > { %v7320_v15 = vpop.eup %7319 }
 0x550   : > { %v6257_v42 = vadd.f32 1.0, %v7320_v15 }
 0x551   : > { %v7322_v25 = vpop.eup %7321 }
 0x552   : > { %7327 = vrcp.f32 %v6257_v42  ;;  %v6255_v55 = vadd.f32 1.0, %v7322_v25 }
 0x553   : > { %v7324_v16 = vpop.eup %7323 }
 0x554   : > { %7329 = vrcp.f32 %v6255_v55  ;;  %v6258_v59 = vadd.f32 1.0, %v7324_v16  ;;  %v6326_v55 = vld [vmem:[%s8301_s23 + $0xd8] sm:$0xff] }
 0x555   : > { %v7326_v8 = vpop.eup %7325 }
 0x556   : > { %7331 = vrcp.f32 %v6258_v59  ;;  %v6256_v45 = vadd.f32 1.0, %v7326_v8 }
 0x558   : > { %7333 = vrcp.f32 %v6256_v45 }
 0x55f   : > { %v7328_v19 = vpop.eup %7327 }
 0x560   : > { %v6353_v51 = vmul.f32 %v7328_v19, %v6321_v21 }
 0x561   : > { %v7330_v50 = vpop.eup %7329 }
 0x562   : > { %6385 = vst [vmem:[%s13503_s0 + $0xb0] sm:$0xff] %v6353_v51  ;;  %v6351_v20 = vmul.f32 %v7330_v50, %v6319_v1  ;;  %v6324_v1 = vld [vmem:[%s8301_s23 + $0xc8] sm:$0xff] }
 0x563   : > { %v7332_v26 = vpop.eup %7331 }
 0x564   : > { %6383 = vst [vmem:[%s13503_s0 + $0xa0] sm:$0xff] %v6351_v20  ;;  %v6354_v62 = vmul.f32 %v7332_v26, %v6322_v0 }
 0x565   : > { %v7334_v35 = vpop.eup %7333 }
 0x566   : > { %6386 = vst [vmem:[%s13503_s0 + $0xb8] sm:$0xff] %v6354_v62  ;;  %v6352_v17 = vmul.f32 %v7334_v35, %v6320_v39 }
 0x568   : > { %6384 = vst [vmem:[%s13503_s0 + $0xa8] sm:$0xff] %v6352_v17 }
 0x579   : > { %v6901_v32 = vpop.f32.mrf.mxu1 }
 0x57a   : > { %v6085_v46 = vadd.f32 %v6901_v32, %v13441_v7 }
 0x57b   : > { %v6076_v52 = vpop.f32.mrf.mxu1 }
 0x57c   : > { %v6133_v6 = vsub.f32 0.0, %v6085_v46  ;;  %v6077_v23 = vadd.f32 %v13441_v7, %v6076_v52 }
 0x57d   : > { %v6902_v2 = vpop.f32.mrf.mxu1 }
 0x57e   : > { %v6165_v22 = vmin.f32 %v6133_v6, 80.0  ;;  %v6131_v54 = vsub.f32 0.0, %v6077_v23  ;;  %v6088_v10 = vadd.f32 %v6902_v2, %v13441_v7 }
 0x57f   : > { %v6079_v56 = vpop.f32.mrf.mxu1 }
 0x580   : > { %v6223_v24 = vmul.f32 1.442695, %v6165_v22  ;;  %v6163_v53 = vmin.f32 %v6131_v54, 80.0  ;;  %v6134_v14 = vsub.f32 0.0, %v6088_v10  ;;  %v6080_v9 = vadd.f32 %v13441_v7, %v6079_v56  ;;  %v6329_v10 = vld [vmem:[%s8301_s23 + $0xf0] sm:$0xff] }
 0x582   : > { %7335 = vpow2.f32 %v6223_v24  ;;  %v6219_v4 = vmul.f32 1.442695, %v6163_v53  ;;  %v6166_v13 = vmin.f32 %v6134_v14, 80.0  ;;  %v6132_v11 = vsub.f32 0.0, %v6080_v9  ;;  %v6327_v24 = vld [vmem:[%s8301_s23 + $0xe0] sm:$0xff]  ;;  %v6330_v9 = vld [vmem:[%s8301_s23 + $0xf8] sm:$0xff] }
 0x584   : > { %7337 = vpow2.f32 %v6219_v4  ;;  %v6225_v28 = vmul.f32 1.442695, %v6166_v13  ;;  %v6164_v29 = vmin.f32 %v6132_v11, 80.0 }
 0x586   : > { %7339 = vpow2.f32 %v6225_v28  ;;  %v6221_v18 = vmul.f32 1.442695, %v6164_v29  ;;  %v6328_v28 = vld [vmem:[%s8301_s23 + $0xe8] sm:$0xff]  ;;  %s7960_s23 = smov [#allocation25]  }
 0x587   : > { %s7840_s7 = sshll.u32 %s7960_s23, 4  ;;  %s7841_s7 = int_to_ptr.vmem [resolvable:$false] %s7840_s7 }
 0x588   : > { %7341 = vpow2.f32 %v6221_v18  ;;  %s7842_s24 = scalar_lea.vmem %s7841_s7, 8192  ;;  %p7843_p3 = scmp.lt.s32.totalorder %s13583_s14, %s7841_s7 }
 0x589   : > { %p7844_p12 = scmp.lt.s32.totalorder %s7842_s24, %s7836_s10 }
 0x58b   : > { %p7845_p2 = por %p7844_p12, %p7843_p3 }
 0x58d   : > { %p7846_p4 = pnand %p7845_p2, %p7839_p6 }
 0x58f   : > { %v7336_v27 = vpop.eup %7335 }
 0x590   : > { %v6261_v63 = vadd.f32 1.0, %v7336_v27 }
 0x591   : > { %v7338_v40 = vpop.eup %7337 }
 0x592   : > { %7343 = vrcp.f32 %v6261_v63  ;;  %v6259_v12 = vadd.f32 1.0, %v7338_v40 }
 0x593   : > { %v6857_v36 = vpop.f32.mrf.mxu0  ;;  %v7340_v44 = vpop.eup %7339 }
 0x594   : > { %7345 = vrcp.f32 %v6259_v12  ;;  %v6262_v60 = vadd.f32 1.0, %v7340_v44 }
 0x595   : > { %v1844_v47 = vpop.f32.mrf.mxu0  ;;  %v7342_v58 = vpop.eup %7341 }
 0x596   : > { %7347 = vrcp.f32 %v6262_v60  ;;  %v6260_v34 = vadd.f32 1.0, %v7342_v58 }
 0x597   : > { %v6858_v30 = vpop.f32.mrf.mxu0 }
 0x598   : > { %7349 = vrcp.f32 %v6260_v34 }
 0x599   : > { %v1847_v49 = vpop.f32.mrf.mxu0 }
 0x59b   : > { %v6905_v43 = vpop.f32.mrf.mxu1 }
 0x59c   : > { %v6101_v41 = vadd.f32 %v6905_v43, %v13441_v7 }
 0x59d   : > { %v6092_v3 = vpop.f32.mrf.mxu1 }
 0x59e   : > { %v6137_v33 = vsub.f32 0.0, %v6101_v41  ;;  %v6093_v61 = vadd.f32 %v13441_v7, %v6092_v3 }
 0x59f   : > { %v7344_v31 = vpop.eup %7343  ;;  %v6906_v57 = vpop.f32.mrf.mxu1 }
 0x5a0   : > { %v6357_v5 = vmul.f32 %v7344_v31, %v6325_v48  ;;  %v6169_v38 = vmin.f32 %v6137_v33, 80.0  ;;  %v6135_v15 = vsub.f32 0.0, %v6093_v61  ;;  %v6104_v42 = vadd.f32 %v6906_v57, %v13441_v7 }
 0x5a1   : > { %v7346_v25 = vpop.eup %7345  ;;  %v6095_v16 = vpop.f32.mrf.mxu1 }
 0x5a2   : > { %6389 = vst [vmem:[%s13503_s0 + $0xd0] sm:$0xff] %v6357_v5  ;;  %v6355_v59 = vmul.f32 %v7346_v25, %v6323_v37  ;;  %v6231_v8 = vmul.f32 1.442695, %v6169_v38  ;;  %v6167_v45 = vmin.f32 %v6135_v15, 80.0  ;;  %v6138_v21 = vsub.f32 0.0, %v6104_v42 }
 0x5a3   : > { %v7348_v19 = vpop.eup %7347  ;;  %v6096_v51 = vadd.f32 %v13441_v7, %v6095_v16 }
 0x5a4   : > { %6387 = vst [vmem:[%s13503_s0 + $0xc0] sm:$0xff] %v6355_v59  ;;  %v6358_v50 = vmul.f32 %v7348_v19, %v6326_v55  ;;  %7351 = vpow2.f32 %v6231_v8  ;;  %v6227_v0 = vmul.f32 1.442695, %v6167_v45  ;;  %v6170_v20 = vmin.f32 %v6138_v21, 80.0 }
 0x5a5   : > { %v7350_v26 = vpop.eup %7349  ;;  %v6136_v39 = vsub.f32 0.0, %v6096_v51 }
 0x5a6   : > { %6390 = vst [vmem:[%s13503_s0 + $0xd8] sm:$0xff] %v6358_v50  ;;  %v6356_v62 = vmul.f32 %v7350_v26, %v6324_v1  ;;  %7353 = vpow2.f32 %v6227_v0  ;;  %v6233_v35 = vmul.f32 1.442695, %v6170_v20 }
 0x5a7   : > { %v6168_v17 = vmin.f32 %v6136_v39, 80.0 }
 0x5a8   : > { %6388 = vst [vmem:[%s13503_s0 + $0xc8] sm:$0xff] %v6356_v62  ;;  %7355 = vpow2.f32 %v6233_v35 }
 0x5a9   : > { %v6229_v32 = vmul.f32 1.442695, %v6168_v17 }
 0x5ab   : > { %7357 = vpow2.f32 %v6229_v32 }
 0x5b1   : > { %v7352_v46 = vpop.eup %7351 }
 0x5b2   : > { %v6265_v7 = vadd.f32 1.0, %v7352_v46 }
 0x5b3   : > { %v7354_v52 = vpop.eup %7353 }
 0x5b4   : > { %7359 = vrcp.f32 %v6265_v7  ;;  %v6263_v6 = vadd.f32 1.0, %v7354_v52 }
 0x5b5   : > { %v7356_v23 = vpop.eup %7355 }
 0x5b6   : > { %7361 = vrcp.f32 %v6263_v6  ;;  %v6266_v2 = vadd.f32 1.0, %v7356_v23 }
 0x5b8   : > { %v7358_v22 = vpop.eup %7357  ;;  %7363 = vrcp.f32 %v6266_v2 }
 0x5b9   : > { %v6264_v54 = vadd.f32 1.0, %v7358_v22 }
 0x5bb   : > { %7365 = vrcp.f32 %v6264_v54 }
 0x5c1   : > { %v7360_v56 = vpop.eup %7359 }
 0x5c2   : > { %v6361_v53 = vmul.f32 %v7360_v56, %v6329_v10 }
 0x5c3   : > { %v7362_v14 = vpop.eup %7361 }
 0x5c4   : > { %6393 = vst [vmem:[%s13503_s0 + $0xf0] sm:$0xff] %v6361_v53  ;;  %v6359_v4 = vmul.f32 %v7362_v14, %v6327_v24 }
 0x5c5   : > { %v7364_v13 = vpop.eup %7363 }
 0x5c6   : > { %6391 = vst [vmem:[%s13503_s0 + $0xe0] sm:$0xff] %v6359_v4  ;;  %v6362_v11 = vmul.f32 %v7364_v13, %v6330_v9 }
 0x5c8   : > { %v7366_v29 = vpop.eup %7365  ;;  %6394 = vst [vmem:[%s13503_s0 + $0xf8] sm:$0xff] %v6362_v11 }
 0x5c9   : > { %v6360_v18 = vmul.f32 %v7366_v29, %v6328_v28 }
 0x5cb   : > { %6392 = vst [vmem:[%s13503_s0 + $0xe8] sm:$0xff] %v6360_v18 }
 0x5cc   : > { %7849 = shalt.err (!%p7846_p4)
}
 0x5cd   : > { %s7850_s18 = scalar_lea.hbm %s13581_s21, 4096  ;;  %s7854_s15 = scalar_lea.hbm %s15318_s29, 8192 }
 0x5ce   : > { %p7851_p9 = scmp.ne.s32.totalorder %s13581_s21, %s7850_s18  ;;  %p7855_p10 = scmp.lt.s32.totalorder %s13581_s21, %s15318_s29 }
 0x5cf   : > { %p7856_p11 = scmp.lt.s32.totalorder %s7854_s15, %s7850_s18 }
 0x5d0   : > { %p7852_p5 = pnand %p7851_p9, %p15319_p8 }
 0x5d1   : > { %p7857_p7 = por %p7856_p11, %p7855_p10 }
 0x5d2   : > { %p7853_p1 = pneg %p7852_p5 }
 0x5d4   : > { %p7858_p0 = pnand %p7857_p7, %p7853_p1 }
 0x5d6   : > { %7861 = shalt.err (!%p7858_p0)
}
 0x5d7   : > { %s7961_s0 = smov 128   ;;  %s7962_s1 = smov 8  }
 0x5d8   : > { %6953 = dma.vmem_to_hbm [thread:$0]  (%p15319_p8), %s13583_s14, 4096, %s13581_s21, %s6396_s22, %s7961_s0, %s7961_s0, %s7962_s1  }
 0x5d9 PF: > { %s15320_s5 = sld [smem:[#allocation34_spill]] }
 0x5da   : > { %s15321_s20 = sld [smem:[#allocation41_spill]] }
 0x5db   : > { %s15322_s2 = sld [smem:[#allocation38_spill]] }
 0x5df   : > { %s6426_s10 = sand.u32 1, %s15320_s5  }
 0x5e0   : > { %p15323_p13 = scmp.ne.s32.totalorder %s15321_s20, 0  ;;  %s6427_s23 = scalar_lea.sflag [#allocation6], %s6426_s10 }
 0x5e1   : > { %p15324_p6 = scmp.ge.s32.totalorder %s15322_s2, 2 }
 0x5e3   : > { %p6997_p3 = pnand %p15324_p6, %p15323_p13 }
 0x5e5   : > { %p6998_p12 = pneg %p6997_p3 }
 0x5e7   : > { %7915 = dma.done.wait (%p6998_p12), %s6427_s23, 4096  }
 0x5e8   : > { %7917 = vsyncadd (%p6998_p12), %s6427_s23, 4294963200  ;;  %s43_s22 = sadd.s32 1, %s15322_s2   ;;  %s15325_s7 = sld [smem:[#allocation35_spill]] }
 0x5e9   : > { %p40_p2 = scmp.ge.s32.totalorder %s43_s22, 4   ;;  %s15326_s20 = sld [smem:[#allocation40_spill]] }
 0x5ea   : > { %s15327_s21 = sld [smem:[#allocation37_spill]]  ;;  %s15329_s0 = smov %s7924_s30 }
 0x5eb   : > { %s15328_s1 = sld [smem:[#allocation39_spill]]  ;;  %42 = sbr.rel (!%p40_p2) target bundleno = 28 (0x1c), region = 217 }
 0x5ee   : > { %s15330_s30 = smov %s15325_s7 }
 0x5f0   :  { %6432 = vsyncpa [#allocation5], 1 }
 0x5f1   :  { %6434 = vsyncpa [#allocation5 + $0x1], 1 }
 0x5f2   :  { %6435 = vsyncpa [#allocation8], 1 }
 0x5f3   :  { %6437 = vsyncpa [#allocation8 + $0x1], 1 }
 0x5f4   :  { %6438 = vsyncpa [#allocation11], 1 }
 0x5f5   :  { %6439 = vsyncpa [#allocation14], 1 }
 0x5f6   :  { %6440 = vsyncpa [#allocation17], 1 }
 0x5f7   :  { %6441 = vsyncpa [#allocation20], 1 }
 0x5f8   :  { %6442 = vsyncpa [#allocation23], 1 }
 0x5f9   :  { %6443 = vsyncpa [#allocation6], 1 }
 0x5fa   :  { %6445 = vsyncpa [#allocation6 + $0x1], 1 }

</bundles_post_ra>
